<compile_context>
chip_gen: v5e
topology: v5e:2x2
jax: 0.10.0
libtpu: 0.0.40
codegen_flags: <defaults>
</compile_context>

<pallas_src>
import functools

import jax
import jax.numpy as jnp
from jax import lax
from jax.experimental import pallas as pl
from jax.experimental.pallas import tpu as pltpu

EPS = 1e-5
_LANE = 128
_TAPS = tuple((kh, kw) for kh in range(3) for kw in range(3))

# MXU input dtype (accumulation is always f32 via preferred_element_type and
# the bias/relu epilogue is f32).
_COMPUTE_DTYPE = jnp.bfloat16


def _round_up(x, m):
    return (x + m - 1) // m * m


# ------------------------------ Pallas kernel -------------------------------

def _make_block_kernel(stride, hs, ho, wo, cin_p, cout_p, identity):
    """Fused BasicBlock kernel; one image per grid step."""
    s = stride
    cd = _COMPUTE_DTYPE
    m = ho * wo
    k1, k2 = 9 * cin_p, 9 * cout_p

    def body(x_ref, w1_ref, b1_ref, w2_ref, ws_ref, b2_ref, o_ref,
             out1_ref, lhs_ref):
        # ---- conv1 im2col: 9 lane-aligned 128-wide stores into the shared
        #      scratch, then ONE K=9*Cin bf16 matmul (bn1 scale folded in w1).
        for t, (kh, kw) in enumerate(_TAPS):
            base = ((kh % s) * s + (kw % s)) * hs        # phase-plane offset
            r0, c0 = kh // s, kw // s
            xt = x_ref[base + r0:base + r0 + ho, c0:c0 + wo, :]
            lhs_ref[:, t * cin_p:(t + 1) * cin_p] = (
                xt.reshape(m, cin_p).astype(cd))
        y1 = jnp.dot(lhs_ref[:, 0:k1], w1_ref[...],
                     preferred_element_type=jnp.float32)
        y1 = jnp.maximum(y1 + b1_ref[...], 0.0)          # f32 bias + relu

        # ---- conv1 output -> halo scratch; zero only the 1-pixel ring ------
        zrow = jnp.zeros((1, wo + 2, cout_p), jnp.float32)
        zcol = jnp.zeros((ho, 1, cout_p), jnp.float32)
        out1_ref[0:1, :, :] = zrow
        out1_ref[ho + 1:ho + 2, :, :] = zrow
        out1_ref[1:1 + ho, 0:1, :] = zcol
        out1_ref[1:1 + ho, wo + 1:wo + 2, :] = zcol
        out1_ref[1:1 + ho, 1:1 + wo, :] = y1.reshape(ho, wo, cout_p)

        # ---- conv2 im2col from the halo scratch, ONE K=9*Cout matmul -------
        for t, (kh, kw) in enumerate(_TAPS):
            ot = out1_ref[kh:kh + ho, kw:kw + wo, :]
            lhs_ref[:, t * cout_p:(t + 1) * cout_p] = (
                ot.reshape(m, cout_p).astype(cd))
        acc = jnp.dot(lhs_ref[:, 0:k2], w2_ref[...],
                      preferred_element_type=jnp.float32)

        # ---- shortcut -------------------------------------------------------
        off = 1 // s
        sc_base = ((1 % s) * s + (1 % s)) * hs
        xs = x_ref[sc_base + off:sc_base + off + ho, off:off + wo, :]
        if identity:
            # cin_p == cout_p here: plain VPU add, no MXU, no weight DMA.
            acc = acc + xs.reshape(m, cin_p)
        else:
            # 1x1 projection (bn folded) on the MXU.
            acc = acc + jnp.dot(xs.reshape(m, cin_p).astype(cd), ws_ref[...],
                                preferred_element_type=jnp.float32)

        # ---- merged bias (bn2 + shortcut bn) + relu, lane-dense store -------
        y = jnp.maximum(acc + b2_ref[...], 0.0)
        o_ref[...] = y.reshape(ho, wo, cout_p).astype(o_ref.dtype)

    if identity:
        def kernel(x_ref, w1_ref, b1_ref, w2_ref, b2_ref, o_ref,
                   out1_ref, lhs_ref):
            body(x_ref, w1_ref, b1_ref, w2_ref, None, b2_ref, o_ref,
                 out1_ref, lhs_ref)
        return kernel
    return body


# ------------------------------- glue (JAX) ---------------------------------

def _phase_split(x_nhwc, pad, stride, c_pad):
    """Zero-pad + channel-pad the image, then split into stride-phase planes
    stacked along rows: (N, s*s*Hs, Ws, c_pad).  A 3x3 tap (kh, kw) at conv
    stride s then reads phase (kh%s, kw%s) at the static unstrided window
    [kh//s : kh//s+Ho, kw//s : kw//s+Wo]."""
    n, h, w, c = x_nhwc.shape
    s = stride
    x = jnp.pad(x_nhwc, ((0, 0), (pad, pad), (pad, pad), (0, c_pad - c)))
    hp, wp = h + 2 * pad, w + 2 * pad
    hp2, wp2 = _round_up(hp, s), _round_up(wp, s)
    x = jnp.pad(x, ((0, 0), (0, hp2 - hp), (0, wp2 - wp), (0, 0)))
    hs, ws = hp2 // s, wp2 // s
    x = x.reshape(n, hs, s, ws, s, c_pad).transpose(0, 2, 4, 1, 3, 5)
    return x.reshape(n, s * s * hs, ws, c_pad), hs, ws


def _fold_bn(gamma, beta, mean, var):
    scale = gamma / jnp.sqrt(var + EPS)
    return scale, beta - mean * scale


def _pack_conv3x3(w_oihw, scale, cin_p, cout_p):
    """(Cout,Cin,3,3) -> (9*cin_p, cout_p), tap-major K, BN scale folded in."""
    cout, cin = w_oihw.shape[:2]
    wm = jnp.transpose(w_oihw, (2, 3, 1, 0)).reshape(9, cin, cout)
    wm = wm * scale[None, None, :]
    wm = jnp.pad(wm, ((0, 0), (0, cin_p - cin), (0, cout_p - cout)))
    return wm.reshape(9 * cin_p, cout_p)


def _pad_chan(v, c_pad):
    return jnp.pad(v, (0, c_pad - v.shape[0]))


def basic_block_forward(x_nchw, params, stride):
    """Pallas implementation of BasicBlock.forward (NCHW in, NCHW out)."""
    x = jnp.transpose(x_nchw, (0, 2, 3, 1)).astype(jnp.float32)   # -> NHWC
    n, h, w, cin = x.shape
    planes = params["conv1_w"].shape[0]
    cin_p, cout_p = _round_up(cin, _LANE), _round_up(planes, _LANE)
    s = stride
    ho = (h + 2 - 3) // s + 1
    wo = (w + 2 - 3) // s + 1
    if wo % 8 != 0:
        raise ValueError(f"Wo={wo} must be a multiple of 8 (sublane width); "
                         "pad the spatial width in the caller.")
    identity = (s == 1 and cin == planes)

    xph, hs, ws_cols = _phase_split(x, 1, s, cin_p)

    s1, b1 = _fold_bn(params["bn1_gamma"], params["bn1_beta"],
                      params["bn1_mean"], params["bn1_var"])
    s2, b2 = _fold_bn(params["bn2_gamma"], params["bn2_beta"],
                      params["bn2_mean"], params["bn2_var"])
    cd = _COMPUTE_DTYPE
    w1 = _pack_conv3x3(params["conv1_w"], s1, cin_p, cout_p).astype(cd)
    w2 = _pack_conv3x3(params["conv2_w"], s2, cout_p, cout_p).astype(cd)

    if identity:                                          # identity shortcut
        bs = jnp.zeros((planes,), jnp.float32)
        extra_in, extra_specs = [], []
    else:                                                 # 1x1 projection
        ss, bs = _fold_bn(params["bn_sc_gamma"], params["bn_sc_beta"],
                          params["bn_sc_mean"], params["bn_sc_var"])
        wsm = params["conv_sc_w"].reshape(planes, cin).T * ss[None, :]
        wsm = jnp.pad(wsm, ((0, cin_p - cin), (0, cout_p - planes))).astype(cd)
        extra_in = [wsm]
        extra_specs = [pl.BlockSpec((cin_p, cout_p), lambda b: (0, 0))]
    b1v = _pad_chan(b1, cout_p).reshape(1, cout_p)
    b2v = (_pad_chan(b2, cout_p) + _pad_chan(bs, cout_p)).reshape(1, cout_p)

    kernel = _make_block_kernel(s, hs, ho, wo, cin_p, cout_p, identity)

    m = ho * wo
    k1, k2 = 9 * cin_p, 9 * cout_p
    flops = 2 * n * m * cout_p * (k1 + k2 + (0 if identity else cin_p))
    bytes_io = (xph.size * xph.dtype.itemsize
                + (w1.size + w2.size + sum(a.size for a in extra_in)) * 2
                + (b1v.size + b2v.size) * 4
                + n * m * cout_p * 4)

    out = pl.pallas_call(
        kernel,
        out_shape=jax.ShapeDtypeStruct((n, ho, wo, cout_p), jnp.float32),
        grid=(n,),
        in_specs=[
            pl.BlockSpec((None, s * s * hs, ws_cols, cin_p),
                         lambda b: (b, 0, 0, 0)),                # phase-split x
            pl.BlockSpec((k1, cout_p), lambda b: (0, 0)),        # w1 (K-major)
            pl.BlockSpec((1, cout_p), lambda b: (0, 0)),         # bias1
            pl.BlockSpec((k2, cout_p), lambda b: (0, 0)),        # w2 (K-major)
            *extra_specs,                                        # [w_sc]
            pl.BlockSpec((1, cout_p), lambda b: (0, 0)),         # bias2 + sc
        ],
        out_specs=pl.BlockSpec((None, ho, wo, cout_p), lambda b: (b, 0, 0, 0)),
        scratch_shapes=[
            pltpu.VMEM((ho + 2, wo + 2, cout_p), jnp.float32),   # conv1 + halo
            pltpu.VMEM((m, max(k1, k2)), cd),                    # shared im2col
        ],
        compiler_params=pltpu.CompilerParams(
            dimension_semantics=("parallel",),
            vmem_limit_bytes=48 * 1024 * 1024),
        cost_estimate=pl.CostEstimate(flops=flops, transcendentals=0,
                                      bytes_accessed=bytes_io),
    )(xph, w1, b1v, w2, *extra_in, b2v)

    out = out[:, :, :, :planes]                              # strip lane pad
    return jnp.transpose(out, (0, 3, 1, 2))                  # -> NCHW


# --------------------------- reference (pure JAX) ----------------------------

def _ref_forward(x, params, stride):
    def conv(x, w, s, pad):
        return lax.conv_general_dilated(
            x, w, (s, s), ((pad, pad), (pad, pad)),
            dimension_numbers=("NCHW", "OIHW", "NCHW"))

    def bn(x, g, b, m, v):
        g, b, m, v = (t[None, :, None, None] for t in (g, b, m, v))
        return (x - m) / jnp.sqrt(v + EPS) * g + b

    out = jax.nn.relu(bn(conv(x, params["conv1_w"], stride, 1),
                         params["bn1_gamma"], params["bn1_beta"],
                         params["bn1_mean"], params["bn1_var"]))
    out = bn(conv(out, params["conv2_w"], 1, 1),
             params["bn2_gamma"], params["bn2_beta"],
             params["bn2_mean"], params["bn2_var"])
    cin, planes = x.shape[1], params["conv1_w"].shape[0]
    if stride != 1 or cin != planes:
        sc = bn(conv(x, params["conv_sc_w"], stride, 0),
                params["bn_sc_gamma"], params["bn_sc_beta"],
                params["bn_sc_mean"], params["bn_sc_var"])
    else:
        sc = x
    return jax.nn.relu(out + sc)


# ------------------------------ parameter setup ------------------------------

def make_params(key, in_planes, planes, stride):
    ks = iter(jax.random.split(key, 16))
    p = {
        "conv1_w": 0.1 * jax.random.normal(next(ks), (planes, in_planes, 3, 3), jnp.float32),
        "bn1_gamma": jax.random.uniform(next(ks), (planes,), jnp.float32, 0.5, 1.5),
        "bn1_beta": 0.1 * jax.random.normal(next(ks), (planes,), jnp.float32),
        "bn1_mean": 0.1 * jax.random.normal(next(ks), (planes,), jnp.float32),
        "bn1_var": jax.random.uniform(next(ks), (planes,), jnp.float32, 0.5, 1.5),
        "conv2_w": 0.1 * jax.random.normal(next(ks), (planes, planes, 3, 3), jnp.float32),
        "bn2_gamma": jax.random.uniform(next(ks), (planes,), jnp.float32, 0.5, 1.5),
        "bn2_beta": 0.1 * jax.random.normal(next(ks), (planes,), jnp.float32),
        "bn2_mean": 0.1 * jax.random.normal(next(ks), (planes,), jnp.float32),
        "bn2_var": jax.random.uniform(next(ks), (planes,), jnp.float32, 0.5, 1.5),
    }
    if stride != 1 or in_planes != planes:
        p.update({
            "conv_sc_w": 0.1 * jax.random.normal(next(ks), (planes, in_planes, 1, 1), jnp.float32),
            "bn_sc_gamma": jax.random.uniform(next(ks), (planes,), jnp.float32, 0.5, 1.5),
            "bn_sc_beta": 0.1 * jax.random.normal(next(ks), (planes,), jnp.float32),
            "bn_sc_mean": 0.1 * jax.random.normal(next(ks), (planes,), jnp.float32),
            "bn_sc_var": jax.random.uniform(next(ks), (planes,), jnp.float32, 0.5, 1.5),
        })
    return p


if __name__ == "__main__":
    key = jax.random.PRNGKey(0)
    kx, kp1, kp2 = jax.random.split(key, 3)
    x = jax.random.normal(kx, (2, 4, 16, 16), jnp.float32)   # NCHW, like PyTorch

    # bf16 MXU inputs (f32 accumulate) -> loosen tolerance vs. the f32 reference.
    ATOL, RTOL = 5e-2, 1e-2

    # Case 1: identity shortcut (in_planes == planes, stride == 1)
    params1 = make_params(kp1, in_planes=4, planes=4, stride=1)
    fwd1 = jax.jit(functools.partial(basic_block_forward, stride=1))
    out1 = jax.block_until_ready(fwd1(x, params1))
    ref1 = _ref_forward(x, params1, stride=1)
    assert out1.shape == (2, 4, 16, 16)
    assert jnp.allclose(out1, ref1, atol=ATOL, rtol=RTOL), "mismatch (identity shortcut)"

    # Case 2: projection shortcut (stride 2, channel change 4 -> 8)
    params2 = make_params(kp2, in_planes=4, planes=8, stride=2)
    fwd2 = jax.jit(functools.partial(basic_block_forward, stride=2))
    out2 = jax.block_until_ready(fwd2(x, params2))
    ref2 = _ref_forward(x, params2, stride=2)
    assert out2.shape == (2, 8, 8, 8)
    assert jnp.allclose(out2, ref2, atol=ATOL, rtol=RTOL), "mismatch (projection shortcut)"

    print("KERNEL_OK")
</pallas_src>

<mosaic_0001>
module attributes {stable_mosaic.version = 11 : i64} {
  func.func @kernel(%arg0: i32, %arg1: memref<1x18x18x128xf32, #tpu.memory_space<vmem>>, %arg2: memref<1152x128xbf16, #tpu.memory_space<vmem>>, %arg3: memref<1x128xf32, #tpu.memory_space<vmem>>, %arg4: memref<1152x128xbf16, #tpu.memory_space<vmem>>, %arg5: memref<1x128xf32, #tpu.memory_space<vmem>>, %arg6: memref<1x16x16x128xf32, #tpu.memory_space<vmem>>, %arg7: memref<18x18x128xf32, #tpu.memory_space<vmem>>, %arg8: memref<256x1152xbf16, #tpu.memory_space<vmem>>) attributes {dimension_semantics = [#tpu.dimension_semantics<parallel>], iteration_bounds = array<i64: 2>, scalar_prefetch = 0 : i64, scratch_operands = 2 : i64, tpu.core_type = #tpu.core_type<tc>, window_params = [{transform_indices = @transform_0, window_bounds = array<i64: 1, 18, 18, 128>}, {pipeline_mode = #tpu.pipeline_mode<synchronous>, transform_indices = @transform_1, window_bounds = array<i64: 1152, 128>}, {pipeline_mode = #tpu.pipeline_mode<synchronous>, transform_indices = @transform_2, window_bounds = array<i64: 1, 128>}, {pipeline_mode = #tpu.pipeline_mode<synchronous>, transform_indices = @transform_3, window_bounds = array<i64: 1152, 128>}, {pipeline_mode = #tpu.pipeline_mode<synchronous>, transform_indices = @transform_4, window_bounds = array<i64: 1, 128>}, {transform_indices = @transform_5, window_bounds = array<i64: 1, 16, 16, 128>}]} {
    %c0 = arith.constant 0 : index
    %c0_0 = arith.constant 0 : index
    %c0_1 = arith.constant 0 : index
    %c0_2 = arith.constant 0 : index
    %0 = vector.load %arg1[%c0, %c0_0, %c0_1, %c0_2] : memref<1x18x18x128xf32, #tpu.memory_space<vmem>>, vector<1x16x16x128xf32>
    %1 = vector.shape_cast %0 : vector<1x16x16x128xf32> to vector<16x16x128xf32>
    %2 = vector.shape_cast %1 : vector<16x16x128xf32> to vector<256x128xf32>
    %3 = arith.truncf %2 : vector<256x128xf32> to vector<256x128xbf16>
    %c0_3 = arith.constant 0 : index
    %c0_4 = arith.constant 0 : index
    %4 = vector.load %arg8[%c0_3, %c0_4] : memref<256x1152xbf16, #tpu.memory_space<vmem>>, vector<256x128xbf16>
    tpu.vector_store %arg8[%c0_3, %c0_4], %3 {strides = array<i32>} : memref<256x1152xbf16, #tpu.memory_space<vmem>>, vector<256x128xbf16>,
    %c0_5 = arith.constant 0 : index
    %c0_6 = arith.constant 0 : index
    %c1 = arith.constant 1 : index
    %c0_7 = arith.constant 0 : index
    %5 = vector.load %arg1[%c0_5, %c0_6, %c1, %c0_7] : memref<1x18x18x128xf32, #tpu.memory_space<vmem>>, vector<1x16x16x128xf32>
    %6 = vector.shape_cast %5 : vector<1x16x16x128xf32> to vector<16x16x128xf32>
    %7 = vector.shape_cast %6 : vector<16x16x128xf32> to vector<256x128xf32>
    %8 = arith.truncf %7 : vector<256x128xf32> to vector<256x128xbf16>
    %c0_8 = arith.constant 0 : index
    %c128 = arith.constant 128 : index
    %9 = vector.load %arg8[%c0_8, %c128] : memref<256x1152xbf16, #tpu.memory_space<vmem>>, vector<256x128xbf16>
    tpu.vector_store %arg8[%c0_8, %c128], %8 {strides = array<i32>} : memref<256x1152xbf16, #tpu.memory_space<vmem>>, vector<256x128xbf16>,
    %c0_9 = arith.constant 0 : index
    %c0_10 = arith.constant 0 : index
    %c2 = arith.constant 2 : index
    %c0_11 = arith.constant 0 : index
    %10 = vector.load %arg1[%c0_9, %c0_10, %c2, %c0_11] : memref<1x18x18x128xf32, #tpu.memory_space<vmem>>, vector<1x16x16x128xf32>
    %11 = vector.shape_cast %10 : vector<1x16x16x128xf32> to vector<16x16x128xf32>
    %12 = vector.shape_cast %11 : vector<16x16x128xf32> to vector<256x128xf32>
    %13 = arith.truncf %12 : vector<256x128xf32> to vector<256x128xbf16>
    %c0_12 = arith.constant 0 : index
    %c256 = arith.constant 256 : index
    %14 = vector.load %arg8[%c0_12, %c256] : memref<256x1152xbf16, #tpu.memory_space<vmem>>, vector<256x128xbf16>
    tpu.vector_store %arg8[%c0_12, %c256], %13 {strides = array<i32>} : memref<256x1152xbf16, #tpu.memory_space<vmem>>, vector<256x128xbf16>,
    %c0_13 = arith.constant 0 : index
    %c1_14 = arith.constant 1 : index
    %c0_15 = arith.constant 0 : index
    %c0_16 = arith.constant 0 : index
    %15 = vector.load %arg1[%c0_13, %c1_14, %c0_15, %c0_16] : memref<1x18x18x128xf32, #tpu.memory_space<vmem>>, vector<1x16x16x128xf32>
    %16 = vector.shape_cast %15 : vector<1x16x16x128xf32> to vector<16x16x128xf32>
    %17 = vector.shape_cast %16 : vector<16x16x128xf32> to vector<256x128xf32>
    %18 = arith.truncf %17 : vector<256x128xf32> to vector<256x128xbf16>
    %c0_17 = arith.constant 0 : index
    %c384 = arith.constant 384 : index
    %19 = vector.load %arg8[%c0_17, %c384] : memref<256x1152xbf16, #tpu.memory_space<vmem>>, vector<256x128xbf16>
    tpu.vector_store %arg8[%c0_17, %c384], %18 {strides = array<i32>} : memref<256x1152xbf16, #tpu.memory_space<vmem>>, vector<256x128xbf16>,
    %c0_18 = arith.constant 0 : index
    %c1_19 = arith.constant 1 : index
    %c1_20 = arith.constant 1 : index
    %c0_21 = arith.constant 0 : index
    %20 = vector.load %arg1[%c0_18, %c1_19, %c1_20, %c0_21] : memref<1x18x18x128xf32, #tpu.memory_space<vmem>>, vector<1x16x16x128xf32>
    %21 = vector.shape_cast %20 : vector<1x16x16x128xf32> to vector<16x16x128xf32>
    %22 = vector.shape_cast %21 : vector<16x16x128xf32> to vector<256x128xf32>
    %23 = arith.truncf %22 : vector<256x128xf32> to vector<256x128xbf16>
    %c0_22 = arith.constant 0 : index
    %c512 = arith.constant 512 : index
    %24 = vector.load %arg8[%c0_22, %c512] : memref<256x1152xbf16, #tpu.memory_space<vmem>>, vector<256x128xbf16>
    tpu.vector_store %arg8[%c0_22, %c512], %23 {strides = array<i32>} : memref<256x1152xbf16, #tpu.memory_space<vmem>>, vector<256x128xbf16>,
    %c0_23 = arith.constant 0 : index
    %c1_24 = arith.constant 1 : index
    %c2_25 = arith.constant 2 : index
    %c0_26 = arith.constant 0 : index
    %25 = vector.load %arg1[%c0_23, %c1_24, %c2_25, %c0_26] : memref<1x18x18x128xf32, #tpu.memory_space<vmem>>, vector<1x16x16x128xf32>
    %26 = vector.shape_cast %25 : vector<1x16x16x128xf32> to vector<16x16x128xf32>
    %27 = vector.shape_cast %26 : vector<16x16x128xf32> to vector<256x128xf32>
    %28 = arith.truncf %27 : vector<256x128xf32> to vector<256x128xbf16>
    %c0_27 = arith.constant 0 : index
    %c640 = arith.constant 640 : index
    %29 = vector.load %arg8[%c0_27, %c640] : memref<256x1152xbf16, #tpu.memory_space<vmem>>, vector<256x128xbf16>
    tpu.vector_store %arg8[%c0_27, %c640], %28 {strides = array<i32>} : memref<256x1152xbf16, #tpu.memory_space<vmem>>, vector<256x128xbf16>,
    %c0_28 = arith.constant 0 : index
    %c2_29 = arith.constant 2 : index
    %c0_30 = arith.constant 0 : index
    %c0_31 = arith.constant 0 : index
    %30 = vector.load %arg1[%c0_28, %c2_29, %c0_30, %c0_31] : memref<1x18x18x128xf32, #tpu.memory_space<vmem>>, vector<1x16x16x128xf32>
    %31 = vector.shape_cast %30 : vector<1x16x16x128xf32> to vector<16x16x128xf32>
    %32 = vector.shape_cast %31 : vector<16x16x128xf32> to vector<256x128xf32>
    %33 = arith.truncf %32 : vector<256x128xf32> to vector<256x128xbf16>
    %c0_32 = arith.constant 0 : index
    %c768 = arith.constant 768 : index
    %34 = vector.load %arg8[%c0_32, %c768] : memref<256x1152xbf16, #tpu.memory_space<vmem>>, vector<256x128xbf16>
    tpu.vector_store %arg8[%c0_32, %c768], %33 {strides = array<i32>} : memref<256x1152xbf16, #tpu.memory_space<vmem>>, vector<256x128xbf16>,
    %c0_33 = arith.constant 0 : index
    %c2_34 = arith.constant 2 : index
    %c1_35 = arith.constant 1 : index
    %c0_36 = arith.constant 0 : index
    %35 = vector.load %arg1[%c0_33, %c2_34, %c1_35, %c0_36] : memref<1x18x18x128xf32, #tpu.memory_space<vmem>>, vector<1x16x16x128xf32>
    %36 = vector.shape_cast %35 : vector<1x16x16x128xf32> to vector<16x16x128xf32>
    %37 = vector.shape_cast %36 : vector<16x16x128xf32> to vector<256x128xf32>
    %38 = arith.truncf %37 : vector<256x128xf32> to vector<256x128xbf16>
    %c0_37 = arith.constant 0 : index
    %c896 = arith.constant 896 : index
    %39 = vector.load %arg8[%c0_37, %c896] : memref<256x1152xbf16, #tpu.memory_space<vmem>>, vector<256x128xbf16>
    tpu.vector_store %arg8[%c0_37, %c896], %38 {strides = array<i32>} : memref<256x1152xbf16, #tpu.memory_space<vmem>>, vector<256x128xbf16>,
    %c0_38 = arith.constant 0 : index
    %c2_39 = arith.constant 2 : index
    %c2_40 = arith.constant 2 : index
    %c0_41 = arith.constant 0 : index
    %40 = vector.load %arg1[%c0_38, %c2_39, %c2_40, %c0_41] : memref<1x18x18x128xf32, #tpu.memory_space<vmem>>, vector<1x16x16x128xf32>
    %41 = vector.shape_cast %40 : vector<1x16x16x128xf32> to vector<16x16x128xf32>
    %42 = vector.shape_cast %41 : vector<16x16x128xf32> to vector<256x128xf32>
    %43 = arith.truncf %42 : vector<256x128xf32> to vector<256x128xbf16>
    %c0_42 = arith.constant 0 : index
    %c1024 = arith.constant 1024 : index
    %44 = vector.load %arg8[%c0_42, %c1024] : memref<256x1152xbf16, #tpu.memory_space<vmem>>, vector<256x128xbf16>
    tpu.vector_store %arg8[%c0_42, %c1024], %43 {strides = array<i32>} : memref<256x1152xbf16, #tpu.memory_space<vmem>>, vector<256x128xbf16>,
    %c0_43 = arith.constant 0 : index
    %c0_44 = arith.constant 0 : index
    %45 = vector.load %arg8[%c0_43, %c0_44] : memref<256x1152xbf16, #tpu.memory_space<vmem>>, vector<256x1152xbf16>
    %c0_45 = arith.constant 0 : index
    %c0_46 = arith.constant 0 : index
    %46 = vector.load %arg2[%c0_45, %c0_46] : memref<1152x128xbf16, #tpu.memory_space<vmem>>, vector<1152x128xbf16>
    %cst = arith.constant dense<0.000000e+00> : vector<256x128xf32>
    %47 = tpu.matmul %45, %46, %cst {dimension_numbers = #tpu.dot_dimension_numbers<[1], [0], [0], [1], [0, 0, 1, 1], [], []>} : vector<256x1152xbf16>, vector<1152x128xbf16>, vector<256x128xf32> -> vector<256x128xf32>
    %c0_47 = arith.constant 0 : index
    %c0_48 = arith.constant 0 : index
    %48 = vector.load %arg3[%c0_47, %c0_48] : memref<1x128xf32, #tpu.memory_space<vmem>>, vector<1x128xf32>
    %49 = vector.broadcast %48 : vector<1x128xf32> to vector<256x128xf32>
    %50 = arith.addf %47, %49 : vector<256x128xf32>
    %cst_49 = arith.constant 0.000000e+00 : f32
    %51 = vector.broadcast %cst_49 : f32 to vector<256x128xf32>
    %52 = arith.maximumf %50, %51 : vector<256x128xf32>
    %cst_50 = arith.constant 0.000000e+00 : f32
    %53 = vector.broadcast %cst_50 : f32 to vector<1x18x128xf32>
    %cst_51 = arith.constant 0.000000e+00 : f32
    %54 = vector.broadcast %cst_51 : f32 to vector<16x1x128xf32>
    %c0_52 = arith.constant 0 : index
    %c0_53 = arith.constant 0 : index
    %c0_54 = arith.constant 0 : index
    %55 = vector.load %arg7[%c0_52, %c0_53, %c0_54] : memref<18x18x128xf32, #tpu.memory_space<vmem>>, vector<1x18x128xf32>
    tpu.vector_store %arg7[%c0_52, %c0_53, %c0_54], %53 {strides = array<i32>} : memref<18x18x128xf32, #tpu.memory_space<vmem>>, vector<1x18x128xf32>,
    %c17 = arith.constant 17 : index
    %c0_55 = arith.constant 0 : index
    %c0_56 = arith.constant 0 : index
    %56 = vector.load %arg7[%c17, %c0_55, %c0_56] : memref<18x18x128xf32, #tpu.memory_space<vmem>>, vector<1x18x128xf32>
    tpu.vector_store %arg7[%c17, %c0_55, %c0_56], %53 {strides = array<i32>} : memref<18x18x128xf32, #tpu.memory_space<vmem>>, vector<1x18x128xf32>,
    %c1_57 = arith.constant 1 : index
    %c0_58 = arith.constant 0 : index
    %c0_59 = arith.constant 0 : index
    %57 = vector.load %arg7[%c1_57, %c0_58, %c0_59] : memref<18x18x128xf32, #tpu.memory_space<vmem>>, vector<16x1x128xf32>
    tpu.vector_store %arg7[%c1_57, %c0_58, %c0_59], %54 {strides = array<i32>} : memref<18x18x128xf32, #tpu.memory_space<vmem>>, vector<16x1x128xf32>,
    %c1_60 = arith.constant 1 : index
    %c17_61 = arith.constant 17 : index
    %c0_62 = arith.constant 0 : index
    %58 = vector.load %arg7[%c1_60, %c17_61, %c0_62] : memref<18x18x128xf32, #tpu.memory_space<vmem>>, vector<16x1x128xf32>
    tpu.vector_store %arg7[%c1_60, %c17_61, %c0_62], %54 {strides = array<i32>} : memref<18x18x128xf32, #tpu.memory_space<vmem>>, vector<16x1x128xf32>,
    %59 = vector.shape_cast %52 : vector<256x128xf32> to vector<16x16x128xf32>
    %c1_63 = arith.constant 1 : index
    %c1_64 = arith.constant 1 : index
    %c0_65 = arith.constant 0 : index
    %60 = vector.load %arg7[%c1_63, %c1_64, %c0_65] : memref<18x18x128xf32, #tpu.memory_space<vmem>>, vector<16x16x128xf32>
    tpu.vector_store %arg7[%c1_63, %c1_64, %c0_65], %59 {strides = array<i32>} : memref<18x18x128xf32, #tpu.memory_space<vmem>>, vector<16x16x128xf32>,
    %c0_66 = arith.constant 0 : index
    %c0_67 = arith.constant 0 : index
    %c0_68 = arith.constant 0 : index
    %61 = vector.load %arg7[%c0_66, %c0_67, %c0_68] : memref<18x18x128xf32, #tpu.memory_space<vmem>>, vector<16x16x128xf32>
    %62 = vector.shape_cast %61 : vector<16x16x128xf32> to vector<256x128xf32>
    %63 = arith.truncf %62 : vector<256x128xf32> to vector<256x128xbf16>
    %c0_69 = arith.constant 0 : index
    %c0_70 = arith.constant 0 : index
    %64 = vector.load %arg8[%c0_69, %c0_70] : memref<256x1152xbf16, #tpu.memory_space<vmem>>, vector<256x128xbf16>
    tpu.vector_store %arg8[%c0_69, %c0_70], %63 {strides = array<i32>} : memref<256x1152xbf16, #tpu.memory_space<vmem>>, vector<256x128xbf16>,
    %c0_71 = arith.constant 0 : index
    %c1_72 = arith.constant 1 : index
    %c0_73 = arith.constant 0 : index
    %65 = vector.load %arg7[%c0_71, %c1_72, %c0_73] : memref<18x18x128xf32, #tpu.memory_space<vmem>>, vector<16x16x128xf32>
    %66 = vector.shape_cast %65 : vector<16x16x128xf32> to vector<256x128xf32>
    %67 = arith.truncf %66 : vector<256x128xf32> to vector<256x128xbf16>
    %c0_74 = arith.constant 0 : index
    %c128_75 = arith.constant 128 : index
    %68 = vector.load %arg8[%c0_74, %c128_75] : memref<256x1152xbf16, #tpu.memory_space<vmem>>, vector<256x128xbf16>
    tpu.vector_store %arg8[%c0_74, %c128_75], %67 {strides = array<i32>} : memref<256x1152xbf16, #tpu.memory_space<vmem>>, vector<256x128xbf16>,
    %c0_76 = arith.constant 0 : index
    %c2_77 = arith.constant 2 : index
    %c0_78 = arith.constant 0 : index
    %69 = vector.load %arg7[%c0_76, %c2_77, %c0_78] : memref<18x18x128xf32, #tpu.memory_space<vmem>>, vector<16x16x128xf32>
    %70 = vector.shape_cast %69 : vector<16x16x128xf32> to vector<256x128xf32>
    %71 = arith.truncf %70 : vector<256x128xf32> to vector<256x128xbf16>
    %c0_79 = arith.constant 0 : index
    %c256_80 = arith.constant 256 : index
    %72 = vector.load %arg8[%c0_79, %c256_80] : memref<256x1152xbf16, #tpu.memory_space<vmem>>, vector<256x128xbf16>
    tpu.vector_store %arg8[%c0_79, %c256_80], %71 {strides = array<i32>} : memref<256x1152xbf16, #tpu.memory_space<vmem>>, vector<256x128xbf16>,
    %c1_81 = arith.constant 1 : index
    %c0_82 = arith.constant 0 : index
    %c0_83 = arith.constant 0 : index
    %73 = vector.load %arg7[%c1_81, %c0_82, %c0_83] : memref<18x18x128xf32, #tpu.memory_space<vmem>>, vector<16x16x128xf32>
    %74 = vector.shape_cast %73 : vector<16x16x128xf32> to vector<256x128xf32>
    %75 = arith.truncf %74 : vector<256x128xf32> to vector<256x128xbf16>
    %c0_84 = arith.constant 0 : index
    %c384_85 = arith.constant 384 : index
    %76 = vector.load %arg8[%c0_84, %c384_85] : memref<256x1152xbf16, #tpu.memory_space<vmem>>, vector<256x128xbf16>
    tpu.vector_store %arg8[%c0_84, %c384_85], %75 {strides = array<i32>} : memref<256x1152xbf16, #tpu.memory_space<vmem>>, vector<256x128xbf16>,
    %c1_86 = arith.constant 1 : index
    %c1_87 = arith.constant 1 : index
    %c0_88 = arith.constant 0 : index
    %77 = vector.load %arg7[%c1_86, %c1_87, %c0_88] : memref<18x18x128xf32, #tpu.memory_space<vmem>>, vector<16x16x128xf32>
    %78 = vector.shape_cast %77 : vector<16x16x128xf32> to vector<256x128xf32>
    %79 = arith.truncf %78 : vector<256x128xf32> to vector<256x128xbf16>
    %c0_89 = arith.constant 0 : index
    %c512_90 = arith.constant 512 : index
    %80 = vector.load %arg8[%c0_89, %c512_90] : memref<256x1152xbf16, #tpu.memory_space<vmem>>, vector<256x128xbf16>
    tpu.vector_store %arg8[%c0_89, %c512_90], %79 {strides = array<i32>} : memref<256x1152xbf16, #tpu.memory_space<vmem>>, vector<256x128xbf16>,
    %c1_91 = arith.constant 1 : index
    %c2_92 = arith.constant 2 : index
    %c0_93 = arith.constant 0 : index
    %81 = vector.load %arg7[%c1_91, %c2_92, %c0_93] : memref<18x18x128xf32, #tpu.memory_space<vmem>>, vector<16x16x128xf32>
    %82 = vector.shape_cast %81 : vector<16x16x128xf32> to vector<256x128xf32>
    %83 = arith.truncf %82 : vector<256x128xf32> to vector<256x128xbf16>
    %c0_94 = arith.constant 0 : index
    %c640_95 = arith.constant 640 : index
    %84 = vector.load %arg8[%c0_94, %c640_95] : memref<256x1152xbf16, #tpu.memory_space<vmem>>, vector<256x128xbf16>
    tpu.vector_store %arg8[%c0_94, %c640_95], %83 {strides = array<i32>} : memref<256x1152xbf16, #tpu.memory_space<vmem>>, vector<256x128xbf16>,
    %c2_96 = arith.constant 2 : index
    %c0_97 = arith.constant 0 : index
    %c0_98 = arith.constant 0 : index
    %85 = vector.load %arg7[%c2_96, %c0_97, %c0_98] : memref<18x18x128xf32, #tpu.memory_space<vmem>>, vector<16x16x128xf32>
    %86 = vector.shape_cast %85 : vector<16x16x128xf32> to vector<256x128xf32>
    %87 = arith.truncf %86 : vector<256x128xf32> to vector<256x128xbf16>
    %c0_99 = arith.constant 0 : index
    %c768_100 = arith.constant 768 : index
    %88 = vector.load %arg8[%c0_99, %c768_100] : memref<256x1152xbf16, #tpu.memory_space<vmem>>, vector<256x128xbf16>
    tpu.vector_store %arg8[%c0_99, %c768_100], %87 {strides = array<i32>} : memref<256x1152xbf16, #tpu.memory_space<vmem>>, vector<256x128xbf16>,
    %c2_101 = arith.constant 2 : index
    %c1_102 = arith.constant 1 : index
    %c0_103 = arith.constant 0 : index
    %89 = vector.load %arg7[%c2_101, %c1_102, %c0_103] : memref<18x18x128xf32, #tpu.memory_space<vmem>>, vector<16x16x128xf32>
    %90 = vector.shape_cast %89 : vector<16x16x128xf32> to vector<256x128xf32>
    %91 = arith.truncf %90 : vector<256x128xf32> to vector<256x128xbf16>
    %c0_104 = arith.constant 0 : index
    %c896_105 = arith.constant 896 : index
    %92 = vector.load %arg8[%c0_104, %c896_105] : memref<256x1152xbf16, #tpu.memory_space<vmem>>, vector<256x128xbf16>
    tpu.vector_store %arg8[%c0_104, %c896_105], %91 {strides = array<i32>} : memref<256x1152xbf16, #tpu.memory_space<vmem>>, vector<256x128xbf16>,
    %c2_106 = arith.constant 2 : index
    %c2_107 = arith.constant 2 : index
    %c0_108 = arith.constant 0 : index
    %93 = vector.load %arg7[%c2_106, %c2_107, %c0_108] : memref<18x18x128xf32, #tpu.memory_space<vmem>>, vector<16x16x128xf32>
    %94 = vector.shape_cast %93 : vector<16x16x128xf32> to vector<256x128xf32>
    %95 = arith.truncf %94 : vector<256x128xf32> to vector<256x128xbf16>
    %c0_109 = arith.constant 0 : index
    %c1024_110 = arith.constant 1024 : index
    %96 = vector.load %arg8[%c0_109, %c1024_110] : memref<256x1152xbf16, #tpu.memory_space<vmem>>, vector<256x128xbf16>
    tpu.vector_store %arg8[%c0_109, %c1024_110], %95 {strides = array<i32>} : memref<256x1152xbf16, #tpu.memory_space<vmem>>, vector<256x128xbf16>,
    %c0_111 = arith.constant 0 : index
    %c0_112 = arith.constant 0 : index
    %97 = vector.load %arg8[%c0_111, %c0_112] : memref<256x1152xbf16, #tpu.memory_space<vmem>>, vector<256x1152xbf16>
    %c0_113 = arith.constant 0 : index
    %c0_114 = arith.constant 0 : index
    %98 = vector.load %arg4[%c0_113, %c0_114] : memref<1152x128xbf16, #tpu.memory_space<vmem>>, vector<1152x128xbf16>
    %cst_115 = arith.constant dense<0.000000e+00> : vector<256x128xf32>
    %99 = tpu.matmul %97, %98, %cst_115 {dimension_numbers = #tpu.dot_dimension_numbers<[1], [0], [0], [1], [0, 0, 1, 1], [], []>} : vector<256x1152xbf16>, vector<1152x128xbf16>, vector<256x128xf32> -> vector<256x128xf32>
    %c0_116 = arith.constant 0 : index
    %c1_117 = arith.constant 1 : index
    %c1_118 = arith.constant 1 : index
    %c0_119 = arith.constant 0 : index
    %100 = vector.load %arg1[%c0_116, %c1_117, %c1_118, %c0_119] : memref<1x18x18x128xf32, #tpu.memory_space<vmem>>, vector<1x16x16x128xf32>
    %101 = vector.shape_cast %100 : vector<1x16x16x128xf32> to vector<16x16x128xf32>
    %102 = vector.shape_cast %101 : vector<16x16x128xf32> to vector<256x128xf32>
    %103 = arith.addf %99, %102 : vector<256x128xf32>
    %c0_120 = arith.constant 0 : index
    %c0_121 = arith.constant 0 : index
    %104 = vector.load %arg5[%c0_120, %c0_121] : memref<1x128xf32, #tpu.memory_space<vmem>>, vector<1x128xf32>
    %105 = vector.broadcast %104 : vector<1x128xf32> to vector<256x128xf32>
    %106 = arith.addf %103, %105 : vector<256x128xf32>
    %cst_122 = arith.constant 0.000000e+00 : f32
    %107 = vector.broadcast %cst_122 : f32 to vector<256x128xf32>
    %108 = arith.maximumf %106, %107 : vector<256x128xf32>
    %109 = vector.shape_cast %108 : vector<256x128xf32> to vector<16x16x128xf32>
    %c0_123 = arith.constant 0 : index
    %c0_124 = arith.constant 0 : index
    %c0_125 = arith.constant 0 : index
    %c0_126 = arith.constant 0 : index
    %110 = vector.load %arg6[%c0_123, %c0_124, %c0_125, %c0_126] : memref<1x16x16x128xf32, #tpu.memory_space<vmem>>, vector<1x16x16x128xf32>
    %111 = vector.shape_cast %110 : vector<1x16x16x128xf32> to vector<16x16x128xf32>
    %112 = vector.shape_cast %109 : vector<16x16x128xf32> to vector<1x16x16x128xf32>
    tpu.vector_store %arg6[%c0_123, %c0_124, %c0_125, %c0_126], %112 {strides = array<i32>} : memref<1x16x16x128xf32, #tpu.memory_space<vmem>>, vector<1x16x16x128xf32>,
    return
  }
  func.func @transform_0(%arg0: i32) -> (i32, i32, i32, i32) {
    %c0_i32 = arith.constant 0 : i32
    %c0_i32_0 = arith.constant 0 : i32
    %c0_i32_1 = arith.constant 0 : i32
    %c0_i32_2 = arith.constant 0 : i32
    return %arg0, %c0_i32, %c0_i32_0, %c0_i32_1 : i32, i32, i32, i32
  }
  func.func @transform_1(%arg0: i32) -> (i32, i32) {
    %c0_i32 = arith.constant 0 : i32
    %c0_i32_0 = arith.constant 0 : i32
    %c0_i32_1 = arith.constant 0 : i32
    return %c0_i32, %c0_i32_0 : i32, i32
  }
  func.func @transform_2(%arg0: i32) -> (i32, i32) {
    %c0_i32 = arith.constant 0 : i32
    %c0_i32_0 = arith.constant 0 : i32
    %c0_i32_1 = arith.constant 0 : i32
    return %c0_i32, %c0_i32_0 : i32, i32
  }
  func.func @transform_3(%arg0: i32) -> (i32, i32) {
    %c0_i32 = arith.constant 0 : i32
    %c0_i32_0 = arith.constant 0 : i32
    %c0_i32_1 = arith.constant 0 : i32
    return %c0_i32, %c0_i32_0 : i32, i32
  }
  func.func @transform_4(%arg0: i32) -> (i32, i32) {
    %c0_i32 = arith.constant 0 : i32
    %c0_i32_0 = arith.constant 0 : i32
    %c0_i32_1 = arith.constant 0 : i32
    return %c0_i32, %c0_i32_0 : i32, i32
  }
  func.func @transform_5(%arg0: i32) -> (i32, i32, i32, i32) {
    %c0_i32 = arith.constant 0 : i32
    %c0_i32_0 = arith.constant 0 : i32
    %c0_i32_1 = arith.constant 0 : i32
    %c0_i32_2 = arith.constant 0 : i32
    return %arg0, %c0_i32, %c0_i32_0, %c0_i32_1 : i32, i32, i32, i32
  }
}

</mosaic_0001>

<bundles_post_ra>
// kernel: basic_block_forward.1
= control target key start
LH: loop header
LB: loop body
LE: loop exit
PB: predicated region body
PF: predicated region fallthrough
CT: control target
= control target key end

     0   :  { %s9261_s18 = smov 0   ;;  %s10831_s0 = inlined_call_operand.vmem [shape: f32[2,18,18,128], index: 0, kind: input, shape index: {}]   ;;  %s10832_s1 = inlined_call_operand.vmem [shape: bf16[1152,128], index: 1, kind: input, shape index: {}]   ;;  %s10833_s2 = inlined_call_operand.vmem [shape: f32[1,128], index: 2, kind: input, shape index: {}]   ;;  %s10834_s3 = inlined_call_operand.vmem [shape: bf16[1152,128], index: 3, kind: input, shape index: {}]   ;;  %s10835_s4 = inlined_call_operand.vmem [shape: f32[1,128], index: 4, kind: input, shape index: {}]   ;;  %s10836_s5 = inlined_call_operand.vmem [shape: f32[2,16,16,128], index: 5, kind: output, shape index: {}]  }
   0x1 LB: > { %s6797_s19 = sadd.s32 4294967295, %s9227_s18   ;;  %p6801_p0 = scmp.ge.s32.totalorder %s9227_s18, 1  ;;  %s9227_s18 = sphi %s9261_s18, %s15_s18  }
   0x2   : > { %p187_p1 = scmp.lt.s32.totalorder %s9227_s18, 3 }
   0x4   : > { %p188_p2 = pnand %p6801_p0, %p187_p1 }
   0x6   : > { %191 = sbr.rel (%p188_p2) target bundleno = 1585 (0x631), region = 40 }
   0xb   : > { %v8911_v0 = vld [vmem:[%s10832_s1 + $0x38] sm:$0xff]  ;;  %p215_p3 = scmp.lt.s32.totalorder %s6797_s19, 1  ;;  %v8910_v2 = vld [vmem:[%s10832_s1 + $0x30] sm:$0xff]  ;;  %v9229_v3 = vmov 0.0   ;;  %v8909_v5 = vld [vmem:[%s10832_s1 + $0x28] sm:$0xff]  ;;  %v9230_v18 = vmov 0.0|0.0  }
   0xc   : > { %v8919_v1 = vld [vmem:[%s10832_s1 + $0x78] sm:$0xff]  ;;  %2567 = vmatpush.bf16.msra.mxu0 %v8911_v0  ;;  %9192 = vmatpush.bf16.msra.mxu2 %v8911_v0  ;;  %3400 = vst [vmem:[#allocation2] sm:$0xff] %v9229_v3  ;;  %v8918_v4 = vld [vmem:[%s10832_s1 + $0x70] sm:$0xff]  ;;  %v8917_v6 = vld [vmem:[%s10832_s1 + $0x68] sm:$0xff] }
   0xd   : > { %s10842_s19 = smov (!%p215_p3, %s6797_s19), 1  ;;  %9200 = vmatpush.bf16.msra.mxu3 %v8919_v1  ;;  %2656 = vmatpush.bf16.msra.mxu1 %v8919_v1  ;;  %3401 = vst [vmem:[#allocation2 + $0x8] sm:$0xff] %v9229_v3  ;;  %v8908_v11 = vld [vmem:[%s10832_s1 + $0x20] sm:$0xff]  ;;  %v8907_v13 = vld [vmem:[%s10832_s1 + $0x18] sm:$0xff]  ;;  %v8906_v16 = vld [vmem:[%s10832_s1 + $0x10] sm:$0xff] }
   0xe   : > { %s9208_s28 = smul.u32 432, %s10842_s19  ;;  %3402 = vst [vmem:[#allocation2 + $0x10] sm:$0x3] %v9229_v3  ;;  %v8916_v12 = vld [vmem:[%s10832_s1 + $0x60] sm:$0xff]  ;;  %v8915_v14 = vld [vmem:[%s10832_s1 + $0x58] sm:$0xff]  ;;  %v8914_v19 = vld [vmem:[%s10832_s1 + $0x50] sm:$0xff] }
   0xf   : > { %3404 = vst [vmem:[#allocation2 + $0x198] sm:$0xff] %v9229_v3  ;;  %v8905_v20 = vld [vmem:[%s10832_s1 + $0x8] sm:$0xff]  ;;  %v8904_v22 = vld [vmem:[%s10832_s1] sm:$0xff]  ;;  %v8927_v24 = vld [vmem:[%s10832_s1 + $0xb8] sm:$0xff] }
  0x10   : > { %2568 = vmatpush.bf16.msra.mxu0 %v8910_v2  ;;  %9193 = vmatpush.bf16.msra.mxu2 %v8910_v2  ;;  %s9294_s8 = scalar_lea.vmem %s10831_s0, %s9208_s28  ;;  %3405 = vst [vmem:[#allocation2 + $0x1a0] sm:$0xff] %v9229_v3  ;;  %v8913_v21 = vld [vmem:[%s10832_s1 + $0x48] sm:$0xff]  ;;  %v8912_v23 = vld [vmem:[%s10832_s1 + $0x40] sm:$0xff]  ;;  %v8935_v25 = vld [vmem:[%s10832_s1 + $0xf8] sm:$0xff]  ;;  %s8759_s28 = sshll.u32 %s10842_s19, 8 }
  0x11   : > { %9201 = vmatpush.bf16.msra.mxu3 %v8918_v4  ;;  %2657 = vmatpush.bf16.msra.mxu1 %v8918_v4  ;;  %v225_v7 = vld [vmem:[%s9294_s8] sm:$0xff]  ;;  %v226_v8 = vld [vmem:[%s9294_s8 + $0x8] sm:$0xff]  ;;  %3406 = vst [vmem:[#allocation2 + $0x1a8] sm:$0x3] %v9229_v3  ;;  %v8943_v27 = vld [vmem:[%s10832_s1 + $0x138] sm:$0xff]  ;;  %s10726_s6 = scalar_lea.vmem %s10836_s5, %s8759_s28 }
  0x12   : > { %v257_v9 = vpack.c.bf16 %v225_v7, %v225_v7  ;;  %v258_v10 = vpack.c.bf16 %v226_v8, %v226_v8  ;;  %3408 = vst [vmem:[#allocation2 + $0x18] sm:$0x1] %v9229_v3  ;;  %v241_v28 = vld [vmem:[%s9294_s8 + $0xc0] sm:$0xff]  ;;  %v242_v29 = vld [vmem:[%s9294_s8 + $0xc8] sm:$0xff]  ;;  %v8926_v35 = vld [vmem:[%s10832_s1 + $0xb0] sm:$0xff] }
  0x13   : > { %3409 = vst [vmem:[#allocation2 + $0x30] sm:$0x1] %v9229_v3  ;;  %v337_v30 = vld [vmem:[%s9294_s8 + $0xc1] sm:$0xff]  ;;  %v273_v31 = vpack.c.bf16 %v241_v28, %v241_v28  ;;  %v338_v32 = vld [vmem:[%s9294_s8 + $0xc9] sm:$0xff]  ;;  %v274_v33 = vpack.c.bf16 %v242_v29, %v242_v29  ;;  %v227_v40 = vld [vmem:[%s9294_s8 + $0x18] sm:$0xff] }
  0x14   : > { %2569 = vmatpush.bf16.msra.mxu0 %v8909_v5  ;;  %9194 = vmatpush.bf16.msra.mxu2 %v8909_v5  ;;  %289 = vst [vmem:[#allocation3] sm:$0xf] %v257_v9  ;;  %v321_v34 = vld [vmem:[%s9294_s8 + $0x1] sm:$0xff]  ;;  %v8934_v36 = vld [vmem:[%s10832_s1 + $0xf0] sm:$0xff]  ;;  %v369_v37 = vpack.c.bf16 %v337_v30, %v337_v30  ;;  %v370_v39 = vpack.c.bf16 %v338_v32, %v338_v32  ;;  %v243_v45 = vld [vmem:[%s9294_s8 + $0xd8] sm:$0xff] }
  0x15   : > { %9202 = vmatpush.bf16.msra.mxu3 %v8917_v6  ;;  %2658 = vmatpush.bf16.msra.mxu1 %v8917_v6  ;;  %290 = vst [vmem:[#allocation3 + $0x24] sm:$0xf] %v258_v10  ;;  %v322_v38 = vld [vmem:[%s9294_s8 + $0x9] sm:$0xff]  ;;  %v353_v42 = vpack.c.bf16 %v321_v34, %v321_v34  ;;  %v228_v43 = vld [vmem:[%s9294_s8 + $0x20] sm:$0xff]  ;;  %v9392_v46 = vpack.c.bf16 %v227_v40, %v227_v40  ;;  %v230_v4 = vld [vmem:[%s9294_s8 + $0x38] sm:$0xff] }
  0x16   : > { %3410 = vst [vmem:[#allocation2 + $0x48] sm:$0x1] %v9229_v3  ;;  %v8942_v41 = vld [vmem:[%s10832_s1 + $0x130] sm:$0xff]  ;;  %v354_v44 = vpack.c.bf16 %v322_v38, %v322_v38  ;;  %v244_v47 = vld [vmem:[%s9294_s8 + $0xe0] sm:$0xff]  ;;  %v9395_v48 = vpack.c.bf16 %v228_v43, %v228_v43  ;;  %v275_v50 = vpack.c.bf16 %v243_v45, %v243_v45  ;;  %v231_v28 = vld [vmem:[%s9294_s8 + $0x48] sm:$0xff] }
  0x17   : > { %3411 = vst [vmem:[#allocation2 + $0x60] sm:$0x1] %v9229_v3  ;;  %v339_v49 = vld [vmem:[%s9294_s8 + $0xd9] sm:$0xff]  ;;  %v340_v51 = vld [vmem:[%s9294_s8 + $0xe1] sm:$0xff]  ;;  %v276_v53 = vpack.c.bf16 %v244_v47, %v244_v47  ;;  %v3569_v54 = vld [vmem:[#allocation2 + $0x9] sm:$0xff] }
  0x18   : > { %2570 = vmatpush.bf16.msra.mxu0 %v8908_v11  ;;  %9195 = vmatpush.bf16.msra.mxu2 %v8908_v11  ;;  %3412 = vst [vmem:[#allocation2 + $0x78] sm:$0x1] %v9229_v3  ;;  %v3568_v52 = vld [vmem:[#allocation2 + $0x1] sm:$0xff]  ;;  %v371_v55 = vpack.c.bf16 %v339_v49, %v339_v49  ;;  %v372_v57 = vpack.c.bf16 %v340_v51, %v340_v51  ;;  %v323_v58 = vld [vmem:[%s9294_s8 + $0x19] sm:$0xff]  ;;  %v229_v1 = vld [vmem:[%s9294_s8 + $0x30] sm:$0xff] }
  0x19   : > { %9203 = vmatpush.bf16.msra.mxu3 %v8916_v12  ;;  %2659 = vmatpush.bf16.msra.mxu1 %v8916_v12  ;;  %3413 = vst [vmem:[#allocation2 + $0x90] sm:$0x1] %v9229_v3  ;;  %v3600_v60 = vpack.c.bf16 %v3568_v52, %v3568_v52  ;;  %v324_v61 = vld [vmem:[%s9294_s8 + $0x21] sm:$0xff]  ;;  %v3601_v0 = vpack.c.bf16 %v3569_v54, %v3569_v54  ;;  %v245_v8 = vld [vmem:[%s9294_s8 + $0xf0] sm:$0xff]  ;;  %v246_v11 = vld [vmem:[%s9294_s8 + $0xf8] sm:$0xff] }
  0x1a   : > { %3414 = vst [vmem:[#allocation2 + $0xa8] sm:$0x1] %v9229_v3  ;;  %v9407_v7 = vpack.c.bf16 %v324_v61, %v324_v61  ;;  %v9410_v10 = vpack.c.bf16 %v229_v1, %v229_v1  ;;  %v341_v12 = vld [vmem:[%s9294_s8 + $0xf1] sm:$0xff]  ;;  %v327_v45 = vld [vmem:[%s9294_s8 + $0x49] sm:$0xff]  ;;  %v8932_v61 = vld [vmem:[%s10832_s1 + $0xe0] sm:$0xff] }
  0x1b   : > { %v6999_v15 = vld [vmem:[#allocation3] sm:$0xf]  ;;  %3415 = vst [vmem:[#allocation2 + $0xc0] sm:$0x1] %v9229_v3 }
  0x1c   : > { %2571 = vmatpush.bf16.msra.mxu0 %v8907_v13  ;;  %9196 = vmatpush.bf16.msra.mxu2 %v8907_v13  ;;  %v8764_v17 = vld [vmem:[#allocation3 + $0x20] sm:$0xf0]  ;;  %3536 = vst [vmem:[#allocation3] sm:$0xf] %v9230_v18 }
  0x1d   : > { %9204 = vmatpush.bf16.msra.mxu3 %v8915_v14  ;;  %2660 = vmatpush.bf16.msra.mxu1 %v8915_v14  ;;  %3537 = vst [vmem:[#allocation3 + $0x24] sm:$0xf] %v9230_v18  ;;  %v7000_v26 = vor.u32 %v8764_v17, %v6999_v15  ;;  %v9414_v15 = vpack.c.bf16 %v230_v4, %v230_v4  ;;  %v8933_v17 = vld [vmem:[%s10832_s1 + $0xe8] sm:$0xff]  ;;  %v232_v30 = vld [vmem:[%s9294_s8 + $0x50] sm:$0xff] }
  0x1e   : > { %3416 = vst [vmem:[#allocation2 + $0xd8] sm:$0x1] %v9229_v3  ;;  %v9442_v38 = vpack.c.bf16 %v232_v30, %v232_v30  ;;  %v328_v47 = vld [vmem:[%s9294_s8 + $0x51] sm:$0xff] }
  0x1f   : > { %3417 = vst [vmem:[#allocation2 + $0xf0] sm:$0x1] %v9229_v3  ;;  %v8923_v30 = vld [vmem:[%s10832_s1 + $0x98] sm:$0xff] }
  0x20   : > { %2572 = vmatpush.bf16.msra.mxu0 %v8906_v16  ;;  %9197 = vmatpush.bf16.msra.mxu2 %v8906_v16  ;;  %3418 = vst [vmem:[#allocation2 + $0x108] sm:$0x1] %v9229_v3  ;;  %v8925_v16 = vld [vmem:[%s10832_s1 + $0xa8] sm:$0xff] }
  0x21   : > { %9205 = vmatpush.bf16.msra.mxu3 %v8914_v19  ;;  %2661 = vmatpush.bf16.msra.mxu1 %v8914_v19  ;;  %3419 = vst [vmem:[#allocation2 + $0x120] sm:$0x1] %v9229_v3  ;;  %v277_v19 = vpack.c.bf16 %v245_v8, %v245_v8  ;;  %v345_v8 = vld [vmem:[%s9294_s8 + $0x121] sm:$0xff] }
  0x22   : > { %3420 = vst [vmem:[#allocation2 + $0x138] sm:$0x1] %v9229_v3 }
  0x23   : > { %3421 = vst [vmem:[#allocation2 + $0x150] sm:$0x1] %v9229_v3 }
  0x24   : > { %2573 = vmatpush.bf16.msra.mxu0 %v8905_v20  ;;  %9198 = vmatpush.bf16.msra.mxu2 %v8905_v20  ;;  %3422 = vst [vmem:[#allocation2 + $0x168] sm:$0x1] %v9229_v3  ;;  %v342_v20 = vld [vmem:[%s9294_s8 + $0xf9] sm:$0xff] }
  0x25   : > { %9206 = vmatpush.bf16.msra.mxu3 %v8913_v21  ;;  %2662 = vmatpush.bf16.msra.mxu1 %v8913_v21  ;;  %3423 = vst [vmem:[#allocation2 + $0x180] sm:$0x1] %v9229_v3 }
  0x26   : > { %3424 = vst [vmem:[#allocation2 + $0x29] sm:$0x1] %v9229_v3 }
  0x27   : > { %3425 = vst [vmem:[#allocation2 + $0x41] sm:$0x1] %v9229_v3 }
  0x28   : > { %2574 = vmatpush.bf16.msra.mxu0 %v8904_v22  ;;  %9199 = vmatpush.bf16.msra.mxu2 %v8904_v22  ;;  %3426 = vst [vmem:[#allocation2 + $0x59] sm:$0x1] %v9229_v3  ;;  %v278_v22 = vpack.c.bf16 %v246_v11, %v246_v11  ;;  %v346_v11 = vld [vmem:[%s9294_s8 + $0x129] sm:$0xff] }
  0x29   : > { %9207 = vmatpush.bf16.msra.mxu3 %v8912_v23  ;;  %3427 = vst [vmem:[#allocation2 + $0x71] sm:$0x1] %v9229_v3  ;;  %2663 = vmatpush.bf16.msra.mxu1 %v8912_v23  ;;  %v325_v23 = vld [vmem:[%s9294_s8 + $0x31] sm:$0xff] }
  0x2a   : > { %3428 = vst [vmem:[#allocation2 + $0x89] sm:$0x1] %v9229_v3  ;;  %v9433_v29 = vpack.c.bf16 %v325_v23, %v325_v23 }
  0x2b   : > { %2575 = vmatmul.bf16.vlgmr.msra.gmra.mxu0 %v7000_v26  ;;  %3429 = vst [vmem:[#allocation2 + $0xa1] sm:$0x1] %v9229_v3  ;;  %v326_v26 = vld [vmem:[%s9294_s8 + $0x39] sm:$0xff] }
  0x2c   : > { %2745 = vmatpush.bf16.msrb.mxu2 %v8927_v24  ;;  %3430 = vst [vmem:[#allocation2 + $0xb9] sm:$0x1] %v9229_v3  ;;  %2923 = vmatpush.bf16.msrb.mxu0 %v8943_v27  ;;  %v8941_v24 = vld [vmem:[%s10832_s1 + $0x128] sm:$0xff]  ;;  %v374_v27 = vpack.c.bf16 %v342_v20, %v342_v20  ;;  %v9436_v32 = vpack.c.bf16 %v326_v26, %v326_v26 }
  0x2d   : > { %2834 = vmatpush.bf16.msrb.mxu3 %v8935_v25  ;;  %3431 = vst [vmem:[#allocation2 + $0xd1] sm:$0x1] %v9229_v3  ;;  %v373_v25 = vpack.c.bf16 %v341_v12, %v341_v12  ;;  %v377_v12 = vpack.c.bf16 %v345_v8, %v345_v8 }
  0x2e   : > { %3432 = vst [vmem:[#allocation2 + $0xe9] sm:$0x1] %v9229_v3 }
  0x2f   : > { %3433 = vst [vmem:[#allocation2 + $0x101] sm:$0x1] %v9229_v3 }
  0x30   : > { %3434 = vst [vmem:[#allocation2 + $0x119] sm:$0x1] %v9229_v3  ;;  %2746 = vmatpush.bf16.msrb.mxu2 %v8926_v35  ;;  %2924 = vmatpush.bf16.msrb.mxu0 %v8942_v41  ;;  %v9439_v35 = vpack.c.bf16 %v231_v28, %v231_v28 }
  0x31   : > { %3435 = vst [vmem:[#allocation2 + $0x131] sm:$0x1] %v9229_v3  ;;  %2835 = vmatpush.bf16.msrb.mxu3 %v8934_v36  ;;  %v248_v36 = vld [vmem:[%s9294_s8 + $0x110] sm:$0xff] }
  0x32   : > { %3436 = vst [vmem:[#allocation2 + $0x149] sm:$0x1] %v9229_v3 }
  0x33   : > { %3437 = vst [vmem:[#allocation2 + $0x161] sm:$0x1] %v9229_v3 }
  0x34   : > { %3438 = vst [vmem:[#allocation2 + $0x179] sm:$0x1] %v9229_v3  ;;  %2747 = vmatpush.bf16.msrb.mxu2 %v8925_v16  ;;  %2925 = vmatpush.bf16.msrb.mxu0 %v8941_v24  ;;  %v329_v16 = vld [vmem:[%s9294_s8 + $0x61] sm:$0xff] }
  0x35   : > { %3439 = vst [vmem:[#allocation2 + $0x191] sm:$0x1] %v9229_v3  ;;  %v9404_v3 = vpack.c.bf16 %v323_v58, %v323_v58  ;;  %2836 = vmatpush.bf16.msrb.mxu3 %v8933_v17  ;;  %v9454_v58 = vpack.c.bf16 %v328_v47, %v328_v47  ;;  %v330_v17 = vld [vmem:[%s9294_s8 + $0x69] sm:$0xff] }
  0x36   : > { %305 = vst [vmem:[#allocation3 + $0x240] sm:$0xf] %v273_v31 }
  0x37   : > { %306 = vst [vmem:[#allocation3 + $0x264] sm:$0xf] %v274_v33  ;;  %v247_v33 = vld [vmem:[%s9294_s8 + $0x108] sm:$0xff] }
  0x38   : > { %401 = vst [vmem:[#allocation3 + $0x244] sm:$0xf] %v369_v37  ;;  %v279_v41 = vpack.c.bf16 %v247_v33, %v247_v33 }
  0x39   : > { %402 = vst [vmem:[#allocation3 + $0x268] sm:$0xf] %v370_v39  ;;  %v343_v39 = vld [vmem:[%s9294_s8 + $0x109] sm:$0xff]  ;;  %2837 = vmatpush.bf16.msrb.mxu3 %v8932_v61 }
  0x3a   : > { %385 = vst [vmem:[#allocation3 + $0x4] sm:$0xf] %v353_v42  ;;  %v344_v42 = vld [vmem:[%s9294_s8 + $0x111] sm:$0xff]  ;;  %v375_v51 = vpack.c.bf16 %v343_v39, %v343_v39  ;;  %v348_v39 = vld [vmem:[%s9294_s8 + $0x141] sm:$0xff] }
  0x3b   : > { %386 = vst [vmem:[#allocation3 + $0x28] sm:$0xf] %v354_v44  ;;  %v280_v44 = vpack.c.bf16 %v248_v36, %v248_v36  ;;  %v8930_v61 = vld [vmem:[%s10832_s1 + $0xd0] sm:$0xff] }
  0x3c   : > { %291 = vst [vmem:[#allocation3 + $0x48] sm:$0xf] %v9392_v46 }
  0x3d   : > { %v7287_v56 = vld [vmem:[#allocation3 + $0x240] sm:$0xf]  ;;  %292 = vst [vmem:[#allocation3 + $0x6c] sm:$0xf] %v9395_v48 }
  0x3e   : > { %v8836_v59 = vld [vmem:[#allocation3 + $0x260] sm:$0xf0]  ;;  %307 = vst [vmem:[#allocation3 + $0x288] sm:$0xf] %v275_v50 }
  0x3f   : > { %v7288_v62 = vor.u32 %v8836_v59, %v7287_v56  ;;  %v8832_v63 = vld [vmem:[#allocation3 + $0x244] sm:$0xf]  ;;  %308 = vst [vmem:[#allocation3 + $0x2ac] sm:$0xf] %v276_v53  ;;  %v376_v53 = vpack.c.bf16 %v344_v42, %v344_v42  ;;  %v9452_v56 = vpack.c.bf16 %v327_v45, %v327_v45  ;;  %v380_v42 = vpack.c.bf16 %v348_v39, %v348_v39 }
  0x40   : > { %v7289_v2 = vld [vmem:[#allocation3 + $0x264] sm:$0xf0]  ;;  %403 = vst [vmem:[#allocation3 + $0x28c] sm:$0xf] %v371_v55 }
  0x41   : > { %2615 = vmatmul.bf16.vlgmr.msra.gmra.mxu2 %v7288_v62  ;;  %v7292_v5 = vor.u32 %v8832_v63, %v7289_v2  ;;  %v8760_v6 = vld [vmem:[#allocation3 + $0x4] sm:$0xf]  ;;  %404 = vst [vmem:[#allocation3 + $0x2b0] sm:$0xf] %v372_v57  ;;  %v8940_v62 = vld [vmem:[%s10832_s1 + $0x120] sm:$0xff] }
  0x42   : > { %v7001_v9 = vld [vmem:[#allocation3 + $0x24] sm:$0xf0]  ;;  %3632 = vst [vmem:[#allocation3 + $0x4] sm:$0xf] %v3600_v60  ;;  %v8924_v60 = vld [vmem:[%s10832_s1 + $0xa0] sm:$0xff]  ;;  %2926 = vmatpush.bf16.msrb.mxu0 %v8940_v62 }
  0x43   : > { %2704 = vmatmul.bf16.vlgmr.msra.gmra.mxu3 %v7292_v5  ;;  %v7004_v13 = vor.u32 %v8760_v6, %v7001_v9  ;;  %3633 = vst [vmem:[#allocation3 + $0x28] sm:$0xf] %v3601_v0  ;;  %v7035_v14 = vld [vmem:[#allocation3 + $0x48] sm:$0xf]  ;;  %2748 = vmatpush.bf16.msrb.mxu2 %v8924_v60  ;;  %v233_v63 = vld [vmem:[%s9294_s8 + $0x60] sm:$0xff]  ;;  %v234_v0 = vld [vmem:[%s9294_s8 + $0x68] sm:$0xff] }
  0x44   : > { %v8773_v18 = vld [vmem:[#allocation3 + $0x68] sm:$0xf0]  ;;  %387 = vst [vmem:[#allocation3 + $0x4c] sm:$0xf] %v9404_v3  ;;  %v9469_v1 = vpack.c.bf16 %v233_v63, %v233_v63  ;;  %v249_v2 = vld [vmem:[%s9294_s8 + $0x120] sm:$0xff]  ;;  %v9473_v4 = vpack.c.bf16 %v234_v0, %v234_v0  ;;  %v250_v5 = vld [vmem:[%s9294_s8 + $0x128] sm:$0xff] }
  0x45   : > { %2664 = vmatmul.bf16.vlgmr.msra.gmra.mxu1 %v7004_v13  ;;  %v7036_v21 = vor.u32 %v8773_v18, %v7035_v14  ;;  %388 = vst [vmem:[#allocation3 + $0x70] sm:$0xf] %v9407_v7  ;;  %v7323_v31 = vld [vmem:[#allocation3 + $0x288] sm:$0xf]  ;;  %v281_v6 = vpack.c.bf16 %v249_v2, %v249_v2  ;;  %v282_v9 = vpack.c.bf16 %v250_v5, %v250_v5  ;;  %v8922_v60 = vld [vmem:[%s10832_s1 + $0x90] sm:$0xff] }
  0x46   : > { %293 = vst [vmem:[#allocation3 + $0x90] sm:$0xf] %v9410_v10  ;;  %v8845_v34 = vld [vmem:[#allocation3 + $0x2a8] sm:$0xf0]  ;;  %v9483_v18 = vpack.c.bf16 %v329_v16, %v329_v16  ;;  %v253_v0 = vld [vmem:[%s9294_s8 + $0x150] sm:$0xff] }
  0x47   : > { %2580 = vmatmul.bf16.gmra.mxu0 %v7036_v21  ;;  %294 = vst [vmem:[#allocation3 + $0xb4] sm:$0xf] %v9414_v15  ;;  %v8841_v37 = vld [vmem:[#allocation3 + $0x28c] sm:$0xf]  ;;  %v7324_v43 = vor.u32 %v8845_v34, %v7323_v31  ;;  %2749 = vmatpush.bf16.msrb.mxu2 %v8923_v30  ;;  %v349_v5 = vld [vmem:[%s9294_s8 + $0x151] sm:$0xff]  ;;  %v8937_v30 = vld [vmem:[%s10832_s1 + $0x108] sm:$0xff] }
  0x48   : > { %309 = vst [vmem:[#allocation3 + $0x2d0] sm:$0xf] %v277_v19  ;;  %v7325_v40 = vld [vmem:[#allocation3 + $0x2ac] sm:$0xf0]  ;;  %v9485_v19 = vpack.c.bf16 %v330_v17, %v330_v17  ;;  %v8931_v31 = vld [vmem:[%s10832_s1 + $0xd8] sm:$0xff] }
  0x49   : > { %310 = vst [vmem:[#allocation3 + $0x2f4] sm:$0xf] %v278_v22  ;;  %v7328_v52 = vor.u32 %v8841_v37, %v7325_v40  ;;  %2838 = vmatpush.bf16.msrb.mxu3 %v8931_v31  ;;  %v251_v34 = vld [vmem:[%s9294_s8 + $0x138] sm:$0xff] }
  0x4a   : > { %405 = vst [vmem:[#allocation3 + $0x2d4] sm:$0xf] %v373_v25  ;;  %v283_v36 = vpack.c.bf16 %v251_v34, %v251_v34  ;;  %v347_v37 = vld [vmem:[%s9294_s8 + $0x139] sm:$0xff]  ;;  %v255_v34 = vld [vmem:[%s9294_s8 + $0x168] sm:$0xff]  ;;  %v352_v39 = vld [vmem:[%s9294_s8 + $0x171] sm:$0xff] }
  0x4b   : > { %406 = vst [vmem:[#allocation3 + $0x2f8] sm:$0xf] %v374_v27  ;;  %v8769_v49 = vld [vmem:[#allocation3 + $0x4c] sm:$0xf]  ;;  %2750 = vmatpush.bf16.msrb.mxu2 %v8922_v60  ;;  %v8920_v60 = vld [vmem:[%s10832_s1 + $0x80] sm:$0xff] }
  0x4c   : > { %389 = vst [vmem:[#allocation3 + $0x94] sm:$0xf] %v9433_v29  ;;  %v7037_v50 = vld [vmem:[#allocation3 + $0x6c] sm:$0xf0]  ;;  %v238_v62 = vld [vmem:[%s9294_s8 + $0x98] sm:$0xff] }
  0x4d   : > { %390 = vst [vmem:[#allocation3 + $0xb8] sm:$0xf] %v9436_v32  ;;  %v7071_v54 = vld [vmem:[#allocation3 + $0x90] sm:$0xf]  ;;  %v7040_v57 = vor.u32 %v8769_v49, %v7037_v50  ;;  %2839 = vmatpush.bf16.msrb.mxu3 %v8930_v61  ;;  %v254_v2 = vld [vmem:[%s9294_s8 + $0x158] sm:$0xff] }
  0x4e   : > { %295 = vst [vmem:[#allocation3 + $0xd8] sm:$0xf] %v9439_v35  ;;  %v8782_v55 = vld [vmem:[#allocation3 + $0xb0] sm:$0xf0]  ;;  %v286_v8 = vpack.c.bf16 %v254_v2, %v254_v2  ;;  %v8951_v31 = vld [vmem:[%s10832_s1 + $0x178] sm:$0xff] }
  0x4f   : > { %296 = vst [vmem:[#allocation3 + $0xfc] sm:$0xf] %v9442_v38  ;;  %v7072_v59 = vor.u32 %v8782_v55, %v7071_v54  ;;  %v7359_v13 = vld [vmem:[#allocation3 + $0x2d0] sm:$0xf]  ;;  %3012 = vmatpush.bf16.msrb.mxu1 %v8951_v31 }
  0x50   : > { %311 = vst [vmem:[#allocation3 + $0x318] sm:$0xf] %v279_v41  ;;  %v8854_v14 = vld [vmem:[#allocation3 + $0x2f0] sm:$0xf0] }
  0x51   : > { %2620 = vmatmul.bf16.gmra.mxu2 %v7324_v43  ;;  %312 = vst [vmem:[#allocation3 + $0x33c] sm:$0xf] %v280_v44  ;;  %v7360_v21 = vor.u32 %v8854_v14, %v7359_v13  ;;  %v332_v44 = vld [vmem:[%s9294_s8 + $0x81] sm:$0xff]  ;;  %v334_v14 = vld [vmem:[%s9294_s8 + $0x99] sm:$0xff] }
  0x52   : > { %407 = vst [vmem:[#allocation3 + $0x31c] sm:$0xf] %v375_v51  ;;  %v7361_v20 = vld [vmem:[#allocation3 + $0x2f4] sm:$0xf0]  ;;  %v9516_v47 = vpack.c.bf16 %v332_v44, %v332_v44  ;;  %v366_v17 = vpack.c.bf16 %v334_v14, %v334_v14  ;;  %v8928_v61 = vld [vmem:[%s10832_s1 + $0xc0] sm:$0xff] }
  0x53   : > { %2709 = vmatmul.bf16.gmra.mxu3 %v7328_v52  ;;  %408 = vst [vmem:[#allocation3 + $0x340] sm:$0xf] %v376_v53  ;;  %v8778_v22 = vld [vmem:[#allocation3 + $0x94] sm:$0xf] }
  0x54   : > { %391 = vst [vmem:[#allocation3 + $0xdc] sm:$0xf] %v9452_v56  ;;  %v7073_v23 = vld [vmem:[#allocation3 + $0xb4] sm:$0xf0] }
  0x55   : > { %2669 = vmatmul.bf16.gmra.mxu1 %v7040_v57  ;;  %392 = vst [vmem:[#allocation3 + $0x100] sm:$0xf] %v9454_v58  ;;  %v7107_v25 = vld [vmem:[#allocation3 + $0xd8] sm:$0xf]  ;;  %v7076_v27 = vor.u32 %v8778_v22, %v7073_v23 }
  0x56   : > { %578 = vst [vmem:[#allocation3 + $0xc] sm:$0xf] %v9392_v46  ;;  %v378_v46 = vpack.c.bf16 %v346_v11, %v346_v11  ;;  %v8791_v26 = vld [vmem:[#allocation3 + $0xf8] sm:$0xf0] }
  0x57   : > { %2585 = vmatmul.bf16.gmra.mxu0 %v7072_v59  ;;  %579 = vst [vmem:[#allocation3 + $0x30] sm:$0xf] %v9395_v48  ;;  %v8850_v48 = vld [vmem:[#allocation3 + $0x2d4] sm:$0xf]  ;;  %v7108_v28 = vor.u32 %v8791_v26, %v7107_v25  ;;  %v7395_v41 = vld [vmem:[#allocation3 + $0x318] sm:$0xf] }
  0x58   : > { %297 = vst [vmem:[#allocation3 + $0x120] sm:$0xf] %v9469_v1  ;;  %v7364_v24 = vor.u32 %v8850_v48, %v7361_v20  ;;  %v8863_v43 = vld [vmem:[#allocation3 + $0x338] sm:$0xf0] }
  0x59   : > { %298 = vst [vmem:[#allocation3 + $0x144] sm:$0xf] %v9473_v4  ;;  %v8859_v49 = vld [vmem:[#allocation3 + $0x31c] sm:$0xf] }
  0x5a   : > { %313 = vst [vmem:[#allocation3 + $0x360] sm:$0xf] %v281_v6  ;;  %v7397_v50 = vld [vmem:[#allocation3 + $0x33c] sm:$0xf0]  ;;  %v350_v6 = vld [vmem:[%s9294_s8 + $0x159] sm:$0xff] }
  0x5b   : > { %314 = vst [vmem:[#allocation3 + $0x384] sm:$0xf] %v282_v9  ;;  %v8787_v51 = vld [vmem:[#allocation3 + $0xdc] sm:$0xf]  ;;  %v7400_v53 = vor.u32 %v8859_v49, %v7397_v50  ;;  %v381_v9 = vpack.c.bf16 %v349_v5, %v349_v5 }
  0x5c   : > { %409 = vst [vmem:[#allocation3 + $0x364] sm:$0xf] %v377_v12  ;;  %v7109_v52 = vld [vmem:[#allocation3 + $0xfc] sm:$0xf0]  ;;  %v382_v12 = vpack.c.bf16 %v350_v6, %v350_v6 }
  0x5d   : > { %410 = vst [vmem:[#allocation3 + $0x388] sm:$0xf] %v378_v46  ;;  %v7112_v57 = vor.u32 %v8787_v51, %v7109_v52  ;;  %v333_v46 = vld [vmem:[%s9294_s8 + $0x91] sm:$0xff] }
  0x5e   : > { %393 = vst [vmem:[#allocation3 + $0x124] sm:$0xf] %v9483_v18  ;;  %v365_v16 = vpack.c.bf16 %v333_v46, %v333_v46 }
  0x5f   : > { %394 = vst [vmem:[#allocation3 + $0x148] sm:$0xf] %v9485_v19  ;;  %v7143_v54 = vld [vmem:[#allocation3 + $0x120] sm:$0xf] }
  0x60   : > { %674 = vst [vmem:[#allocation3 + $0x10] sm:$0xf] %v9404_v3  ;;  %v8939_v3 = vld [vmem:[%s10832_s1 + $0x118] sm:$0xff]  ;;  %v8800_v55 = vld [vmem:[#allocation3 + $0x140] sm:$0xf0] }
  0x61   : > { %2625 = vmatmul.bf16.gmra.mxu2 %v7360_v21  ;;  %675 = vst [vmem:[#allocation3 + $0x34] sm:$0xf] %v9407_v7  ;;  %v235_v7 = vld [vmem:[%s9294_s8 + $0x78] sm:$0xff]  ;;  %2927 = vmatpush.bf16.msrb.mxu0 %v8939_v3  ;;  %v7144_v59 = vor.u32 %v8800_v55, %v7143_v54  ;;  %v7431_v11 = vld [vmem:[#allocation3 + $0x360] sm:$0xf]  ;;  %v239_v3 = vld [vmem:[%s9294_s8 + $0xa8] sm:$0xff] }
  0x62   : > { %580 = vst [vmem:[#allocation3 + $0x54] sm:$0xf] %v9410_v10  ;;  %v236_v10 = vld [vmem:[%s9294_s8 + $0x80] sm:$0xff]  ;;  %v267_v33 = vpack.c.bf16 %v235_v7, %v235_v7  ;;  %v8872_v13 = vld [vmem:[#allocation3 + $0x380] sm:$0xf0] }
  0x63   : > { %2714 = vmatmul.bf16.gmra.mxu3 %v7364_v24  ;;  %581 = vst [vmem:[#allocation3 + $0x78] sm:$0xf] %v9414_v15  ;;  %v268_v15 = vpack.c.bf16 %v236_v10, %v236_v10  ;;  %v7432_v48 = vor.u32 %v8872_v13, %v7431_v11  ;;  %v240_v7 = vld [vmem:[%s9294_s8 + $0xb0] sm:$0xff]  ;;  %v271_v10 = vpack.c.bf16 %v239_v3, %v239_v3  ;;  %v8945_v3 = vld [vmem:[%s10832_s1 + $0x148] sm:$0xff] }
  0x64   : > { %676 = vst [vmem:[#allocation3 + $0x58] sm:$0xf] %v9433_v29  ;;  %v252_v29 = vld [vmem:[%s9294_s8 + $0x140] sm:$0xff] }
  0x65   : > { %2674 = vmatmul.bf16.gmra.mxu1 %v7076_v27  ;;  %677 = vst [vmem:[#allocation3 + $0x7c] sm:$0xf] %v9436_v32  ;;  %v284_v40 = vpack.c.bf16 %v252_v29, %v252_v29  ;;  %v379_v32 = vpack.c.bf16 %v347_v37, %v347_v37  ;;  %v8796_v20 = vld [vmem:[#allocation3 + $0x124] sm:$0xf]  ;;  %v8921_v27 = vld [vmem:[%s10832_s1 + $0x88] sm:$0xff] }
  0x66   : > { %582 = vst [vmem:[#allocation3 + $0x9c] sm:$0xf] %v9439_v35  ;;  %v331_v35 = vld [vmem:[%s9294_s8 + $0x79] sm:$0xff]  ;;  %2751 = vmatpush.bf16.msrb.mxu2 %v8921_v27  ;;  %v351_v29 = vld [vmem:[%s9294_s8 + $0x169] sm:$0xff] }
  0x67   : > { %2590 = vmatmul.bf16.gmra.mxu0 %v7108_v28  ;;  %583 = vst [vmem:[#allocation3 + $0xc0] sm:$0xf] %v9442_v38  ;;  %v9514_v45 = vpack.c.bf16 %v331_v35, %v331_v35  ;;  %v7396_v38 = vor.u32 %v8863_v43, %v7395_v41  ;;  %v7145_v21 = vld [vmem:[#allocation3 + $0x144] sm:$0xf0]  ;;  %v8929_v28 = vld [vmem:[%s10832_s1 + $0xc8] sm:$0xff] }
  0x68   : > { %299 = vst [vmem:[#allocation3 + $0x168] sm:$0xf] %v267_v33  ;;  %v7148_v25 = vor.u32 %v8796_v20, %v7145_v21  ;;  %2840 = vmatpush.bf16.msrb.mxu3 %v8929_v28  ;;  %v335_v43 = vld [vmem:[%s9294_s8 + $0xa9] sm:$0xff]  ;;  %v336_v35 = vld [vmem:[%s9294_s8 + $0xb1] sm:$0xff] }
  0x69   : > { %300 = vst [vmem:[#allocation3 + $0x18c] sm:$0xf] %v268_v15  ;;  %v367_v44 = vpack.c.bf16 %v335_v43, %v335_v43  ;;  %v368_v49 = vpack.c.bf16 %v336_v35, %v336_v35  ;;  %v6870_v28 = vld [vmem:[%s9294_s8 + $0x22] sm:$0xff]  ;;  %v6871_v35 = vld [vmem:[%s9294_s8 + $0x32] sm:$0xff] }
  0x6a   : > { %315 = vst [vmem:[#allocation3 + $0x3a8] sm:$0xf] %v283_v36  ;;  %v287_v36 = vpack.c.bf16 %v255_v34, %v255_v34  ;;  %2752 = vmatpush.bf16.msrb.mxu2 %v8920_v60  ;;  %v739_v31 = vpack.c.bf16 %v6870_v28, %v6870_v28  ;;  %v8975_v34 = vld [vmem:[%s10832_s1 + $0x238] sm:$0xff] }
  0x6b   : > { %316 = vst [vmem:[#allocation3 + $0x3cc] sm:$0xf] %v284_v40  ;;  %v7051_v60 = vld [vmem:[#allocation3 + $0x58] sm:$0xf] }
  0x6c   : > { %411 = vst [vmem:[#allocation3 + $0x3ac] sm:$0xf] %v379_v32  ;;  %v383_v32 = vpack.c.bf16 %v351_v29, %v351_v29  ;;  %2841 = vmatpush.bf16.msrb.mxu3 %v8928_v61  ;;  %v8775_v61 = vld [vmem:[#allocation3 + $0x78] sm:$0xf0] }
  0x6d   : > { %412 = vst [vmem:[#allocation3 + $0x3d0] sm:$0xf] %v380_v42  ;;  %v384_v42 = vpack.c.bf16 %v352_v39, %v352_v39 }
  0x6e   : > { %395 = vst [vmem:[#allocation3 + $0x16c] sm:$0xf] %v9514_v45 }
  0x6f   : > { %396 = vst [vmem:[#allocation3 + $0x190] sm:$0xf] %v9516_v47  ;;  %v7179_v23 = vld [vmem:[#allocation3 + $0x168] sm:$0xf] }
  0x70   : > { %678 = vst [vmem:[#allocation3 + $0xa0] sm:$0xf] %v9452_v56  ;;  %v8938_v56 = vld [vmem:[%s10832_s1 + $0x110] sm:$0xff]  ;;  %v8809_v24 = vld [vmem:[#allocation3 + $0x188] sm:$0xf0] }
  0x71   : > { %2630 = vmatmul.bf16.gmra.mxu2 %v7396_v38  ;;  %679 = vst [vmem:[#allocation3 + $0xc4] sm:$0xf] %v9454_v58  ;;  %v237_v58 = vld [vmem:[%s9294_s8 + $0x90] sm:$0xff]  ;;  %2928 = vmatpush.bf16.msrb.mxu0 %v8938_v56  ;;  %v7180_v26 = vor.u32 %v8809_v24, %v7179_v23  ;;  %v7467_v40 = vld [vmem:[#allocation3 + $0x3a8] sm:$0xf]  ;;  %v8949_v56 = vld [vmem:[%s10832_s1 + $0x168] sm:$0xff] }
  0x72   : > { %584 = vst [vmem:[#allocation3 + $0xe4] sm:$0xf] %v9469_v1  ;;  %v269_v63 = vpack.c.bf16 %v237_v58, %v237_v58  ;;  %v270_v1 = vpack.c.bf16 %v238_v62, %v238_v62  ;;  %v8881_v41 = vld [vmem:[#allocation3 + $0x3c8] sm:$0xf0]  ;;  %v8936_v58 = vld [vmem:[%s10832_s1 + $0x100] sm:$0xff] }
  0x73   : > { %2719 = vmatmul.bf16.gmra.mxu3 %v7400_v53  ;;  %585 = vst [vmem:[#allocation3 + $0x108] sm:$0xf] %v9473_v4  ;;  %v285_v4 = vpack.c.bf16 %v253_v0, %v253_v0  ;;  %v7468_v50 = vor.u32 %v8881_v41, %v7467_v40  ;;  %v417_v62 = vld [vmem:[%s9294_s8 + $0x2] sm:$0xff]  ;;  %v418_v0 = vld [vmem:[%s9294_s8 + $0xa] sm:$0xff]  ;;  %v8959_v24 = vld [vmem:[%s10832_s1 + $0x1b8] sm:$0xff] }
  0x74   : > { %680 = vst [vmem:[#allocation3 + $0xe8] sm:$0xf] %v9483_v18  ;;  %v8868_v18 = vld [vmem:[#allocation3 + $0x364] sm:$0xf]  ;;  %v450_v2 = vpack.c.bf16 %v418_v0, %v418_v0  ;;  %3101 = vmatpush.bf16.msra.mxu2 %v8959_v24  ;;  %v7015_v41 = vld [vmem:[#allocation3 + $0x10] sm:$0xf] }
  0x75   : > { %2679 = vmatmul.bf16.gmra.mxu1 %v7112_v57  ;;  %681 = vst [vmem:[#allocation3 + $0x10c] sm:$0xf] %v9485_v19  ;;  %v7433_v19 = vld [vmem:[#allocation3 + $0x384] sm:$0xf0]  ;;  %2929 = vmatpush.bf16.msrb.mxu0 %v8937_v30  ;;  %v8805_v38 = vld [vmem:[#allocation3 + $0x16c] sm:$0xf] }
  0x76   : > { %586 = vst [vmem:[#allocation3 + $0x12c] sm:$0xf] %v267_v33  ;;  %v7436_v22 = vor.u32 %v8868_v18, %v7433_v19  ;;  %v272_v33 = vpack.c.bf16 %v240_v7, %v240_v7  ;;  %v7181_v51 = vld [vmem:[#allocation3 + $0x18c] sm:$0xf0]  ;;  %v8950_v57 = vld [vmem:[%s10832_s1 + $0x170] sm:$0xff] }
  0x77   : > { %2595 = vmatmul.bf16.gmra.mxu0 %v7144_v59  ;;  %587 = vst [vmem:[#allocation3 + $0x150] sm:$0xf] %v268_v15  ;;  %v256_v15 = vld [vmem:[%s9294_s8 + $0x170] sm:$0xff]  ;;  %v7184_v55 = vor.u32 %v8805_v38, %v7181_v51  ;;  %3013 = vmatpush.bf16.msrb.mxu1 %v8950_v57  ;;  %v3664_v18 = vld [vmem:[#allocation2 + $0x2] sm:$0xff]  ;;  %v8761_v38 = vld [vmem:[#allocation3 + $0xc] sm:$0xf] }
  0x78   : > { %301 = vst [vmem:[#allocation3 + $0x1b0] sm:$0xf] %v269_v63  ;;  %v288_v37 = vpack.c.bf16 %v256_v15, %v256_v15  ;;  %v3665_v19 = vld [vmem:[#allocation2 + $0xa] sm:$0xff]  ;;  %v3696_v20 = vpack.c.bf16 %v3664_v18, %v3664_v18  ;;  %v7009_v51 = vld [vmem:[#allocation3 + $0x2c] sm:$0xf0] }
  0x79   : > { %302 = vst [vmem:[#allocation3 + $0x1d4] sm:$0xf] %v270_v1  ;;  %2930 = vmatpush.bf16.msrb.mxu0 %v8936_v58  ;;  %v3697_v21 = vpack.c.bf16 %v3665_v19, %v3665_v19  ;;  %v8770_v19 = vld [vmem:[#allocation3 + $0x54] sm:$0xf] }
  0x7a   : > { %317 = vst [vmem:[#allocation3 + $0x3f0] sm:$0xf] %v285_v4 }
  0x7b   : > { %318 = vst [vmem:[#allocation3 + $0x414] sm:$0xf] %v286_v8  ;;  %3014 = vmatpush.bf16.msrb.mxu1 %v8949_v56 }
  0x7c   : > { %413 = vst [vmem:[#allocation3 + $0x3f4] sm:$0xf] %v381_v9  ;;  %v8947_v9 = vld [vmem:[%s10832_s1 + $0x158] sm:$0xff] }
  0x7d   : > { %414 = vst [vmem:[#allocation3 + $0x418] sm:$0xf] %v382_v12  ;;  %3279 = vmatpush.bf16.msra.mxu0 %v8975_v34 }
  0x7e   : > { %397 = vst [vmem:[#allocation3 + $0x1b4] sm:$0xf] %v365_v16 }
  0x7f   : > { %398 = vst [vmem:[#allocation3 + $0x1d8] sm:$0xf] %v366_v17  ;;  %v7215_v53 = vld [vmem:[#allocation3 + $0x1b0] sm:$0xf] }
  0x80   : > { %682 = vst [vmem:[#allocation3 + $0x130] sm:$0xf] %v9514_v45  ;;  %v8877_v45 = vld [vmem:[#allocation3 + $0x3ac] sm:$0xf]  ;;  %v8818_v54 = vld [vmem:[#allocation3 + $0x1d0] sm:$0xf0] }
  0x81   : > { %2635 = vmatmul.bf16.gmra.mxu2 %v7432_v48  ;;  %683 = vst [vmem:[#allocation3 + $0x154] sm:$0xf] %v9516_v47  ;;  %v7469_v47 = vld [vmem:[#allocation3 + $0x3cc] sm:$0xf0]  ;;  %v7216_v59 = vor.u32 %v8818_v54, %v7215_v53 }
  0x82   : > { %588 = vst [vmem:[#allocation3 + $0x174] sm:$0xf] %v269_v63  ;;  %v7472_v52 = vor.u32 %v8877_v45, %v7469_v47  ;;  %v8948_v63 = vld [vmem:[%s10832_s1 + $0x160] sm:$0xff]  ;;  %v740_v47 = vpack.c.bf16 %v6871_v35, %v6871_v35 }
  0x83   : > { %2724 = vmatmul.bf16.gmra.mxu3 %v7436_v22  ;;  %589 = vst [vmem:[#allocation3 + $0x198] sm:$0xf] %v270_v1  ;;  %v449_v1 = vpack.c.bf16 %v417_v62, %v417_v62  ;;  %v7503_v4 = vld [vmem:[#allocation3 + $0x3f0] sm:$0xf]  ;;  %v8890_v5 = vld [vmem:[#allocation3 + $0x410] sm:$0xf0]  ;;  %3015 = vmatpush.bf16.msrb.mxu1 %v8948_v63 }
  0x84   : > { %684 = vst [vmem:[#allocation3 + $0x178] sm:$0xf] %v365_v16  ;;  %v8886_v6 = vld [vmem:[#allocation3 + $0x3f4] sm:$0xf]  ;;  %v7505_v8 = vld [vmem:[#allocation3 + $0x414] sm:$0xf0]  ;;  %v7504_v11 = vor.u32 %v8890_v5, %v7503_v4 }
  0x85   : > { %2684 = vmatmul.bf16.gmra.mxu1 %v7148_v25  ;;  %685 = vst [vmem:[#allocation3 + $0x19c] sm:$0xf] %v366_v17  ;;  %v8814_v12 = vld [vmem:[#allocation3 + $0x1b4] sm:$0xf]  ;;  %v7508_v46 = vor.u32 %v8886_v6, %v7505_v8  ;;  %v8946_v22 = vld [vmem:[%s10832_s1 + $0x150] sm:$0xff]  ;;  %v8967_v25 = vld [vmem:[%s10832_s1 + $0x1f8] sm:$0xff] }
  0x86   : > { %303 = vst [vmem:[#allocation3 + $0x1f8] sm:$0xf] %v271_v10  ;;  %v7217_v13 = vld [vmem:[#allocation3 + $0x1d4] sm:$0xf0]  ;;  %3190 = vmatpush.bf16.msra.mxu3 %v8967_v25  ;;  %v6874_v63 = vld [vmem:[%s9294_s8 + $0x52] sm:$0xff] }
  0x87   : > { %2600 = vmatmul.bf16.gmra.mxu0 %v7180_v26  ;;  %304 = vst [vmem:[#allocation3 + $0x21c] sm:$0xf] %v272_v33  ;;  %3016 = vmatpush.bf16.msrb.mxu1 %v8947_v9  ;;  %v7220_v17 = vor.u32 %v8814_v12, %v7217_v13  ;;  %v6869_v26 = vld [vmem:[%s9294_s8 + $0x1a] sm:$0xff]  ;;  %v6873_v62 = vld [vmem:[%s9294_s8 + $0x4a] sm:$0xff]  ;;  %v743_v6 = vpack.c.bf16 %v6874_v63, %v6874_v63 }
  0x88   : > { %319 = vst [vmem:[#allocation3 + $0x438] sm:$0xf] %v287_v36  ;;  %v738_v30 = vpack.c.bf16 %v6869_v26, %v6869_v26  ;;  %v8966_v4 = vld [vmem:[%s10832_s1 + $0x1f0] sm:$0xff]  ;;  %v742_v5 = vpack.c.bf16 %v6873_v62, %v6873_v62  ;;  %v8793_v62 = vld [vmem:[#allocation3 + $0x108] sm:$0xf0] }
  0x89   : > { %320 = vst [vmem:[#allocation3 + $0x45c] sm:$0xf] %v288_v37 }
  0x8a   : > { %415 = vst [vmem:[#allocation3 + $0x43c] sm:$0xf] %v383_v32  ;;  %3191 = vmatpush.bf16.msra.mxu3 %v8966_v4  ;;  %v6878_v4 = vld [vmem:[%s9294_s8 + $0x82] sm:$0xff] }
  0x8b   : > { %416 = vst [vmem:[#allocation3 + $0x460] sm:$0xf] %v384_v42  ;;  %3017 = vmatpush.bf16.msrb.mxu1 %v8946_v22  ;;  %v8766_v42 = vld [vmem:[#allocation3 + $0x30] sm:$0xf0] }
  0x8c   : > { %399 = vst [vmem:[#allocation3 + $0x1fc] sm:$0xf] %v367_v44  ;;  %v7016_v45 = vor.u32 %v8766_v42, %v7015_v41 }
  0x8d   : > { %400 = vst [vmem:[#allocation3 + $0x220] sm:$0xf] %v368_v49  ;;  %v7251_v14 = vld [vmem:[#allocation3 + $0x1f8] sm:$0xf] }
  0x8e   : > { %590 = vst [vmem:[#allocation3 + $0x1bc] sm:$0xf] %v271_v10  ;;  %v8827_v16 = vld [vmem:[#allocation3 + $0x218] sm:$0xf0] }
  0x8f   : > { %591 = vst [vmem:[#allocation3 + $0x1e0] sm:$0xf] %v272_v33  ;;  %v7252_v23 = vor.u32 %v8827_v16, %v7251_v14  ;;  %3018 = vmatpush.bf16.msrb.mxu1 %v8945_v3  ;;  %v7539_v7 = vld [vmem:[#allocation3 + $0x438] sm:$0xf]  ;;  %v8944_v33 = vld [vmem:[%s10832_s1 + $0x140] sm:$0xff] }
  0x90   : > { %686 = vst [vmem:[#allocation3 + $0x1c0] sm:$0xf] %v367_v44  ;;  %v8899_v10 = vld [vmem:[#allocation3 + $0x458] sm:$0xf0]  ;;  %v6872_v44 = vld [vmem:[%s9294_s8 + $0x3a] sm:$0xff] }
  0x91   : > { %2640 = vmatmul.bf16.gmra.mxu2 %v7468_v50  ;;  %687 = vst [vmem:[#allocation3 + $0x1e4] sm:$0xf] %v368_v49  ;;  %v8895_v15 = vld [vmem:[#allocation3 + $0x43c] sm:$0xf]  ;;  %v7540_v36 = vor.u32 %v8899_v10, %v7539_v7  ;;  %v741_v49 = vpack.c.bf16 %v6872_v44, %v6872_v44  ;;  %v6875_v10 = vld [vmem:[%s9294_s8 + $0x62] sm:$0xff] }
  0x92   : > { %481 = vst [vmem:[#allocation3 + $0x8] sm:$0xf] %v449_v1  ;;  %v7541_v29 = vld [vmem:[#allocation3 + $0x45c] sm:$0xf0]  ;;  %v7052_v1 = vor.u32 %v8775_v61, %v7051_v60 }
  0x93   : > { %2729 = vmatmul.bf16.gmra.mxu3 %v7472_v52  ;;  %482 = vst [vmem:[#allocation3 + $0x2c] sm:$0xf] %v450_v2  ;;  %3019 = vmatpush.bf16.msrb.mxu1 %v8944_v33  ;;  %v8823_v37 = vld [vmem:[#allocation3 + $0x1fc] sm:$0xf]  ;;  %v7544_v40 = vor.u32 %v8895_v15, %v7541_v29  ;;  %v9617_v52 = vld [vmem:[%s10833_s2] ss:$0 sm:$0xff]  ;;  %v744_v29 = vpack.c.bf16 %v6875_v10, %v6875_v10 }
  0x94   : > { %770 = vst [vmem:[#allocation3 + $0x14] sm:$0xf] %v738_v30  ;;  %v7253_v39 = vld [vmem:[#allocation3 + $0x21c] sm:$0xf0] }
  0x95   : > { %2689 = vmatmul.bf16.gmra.mxu1 %v7184_v55  ;;  %771 = vst [vmem:[#allocation3 + $0x38] sm:$0xf] %v739_v31  ;;  %v7256_v43 = vor.u32 %v8823_v37, %v7253_v39  ;;  %v8958_v2 = vld [vmem:[%s10832_s1 + $0x1b0] sm:$0xff] }
  0x96   : > { %483 = vst [vmem:[#allocation3 + $0x50] sm:$0xf] %v738_v30  ;;  %3102 = vmatpush.bf16.msra.mxu2 %v8958_v2  ;;  %v7087_v30 = vld [vmem:[#allocation3 + $0xa0] sm:$0xf]  ;;  %v6877_v2 = vld [vmem:[%s9294_s8 + $0x7a] sm:$0xff] }
  0x97   : > { %2605 = vmatmul.bf16.gmra.mxu0 %v7216_v59  ;;  %484 = vst [vmem:[#allocation3 + $0x74] sm:$0xf] %v739_v31  ;;  %v7012_v59 = vor.u32 %v8761_v38, %v7009_v51  ;;  %v8784_v31 = vld [vmem:[#allocation3 + $0xc0] sm:$0xf0]  ;;  %v6876_v33 = vld [vmem:[%s9294_s8 + $0x6a] sm:$0xff] }
  0x98   : > { %772 = vst [vmem:[#allocation3 + $0x5c] sm:$0xf] %v740_v47  ;;  %v7088_v15 = vor.u32 %v8784_v31, %v7087_v30  ;;  %v7081_v38 = vld [vmem:[#allocation3 + $0xbc] sm:$0xf0] }
  0x99   : > { %v9588_v48 = vld [vmem:[#allocation3 + $0x8] sm:$0xf]  ;;  %773 = vst [vmem:[#allocation3 + $0x80] sm:$0xf] %v741_v49 }
  0x9a   : > { %v8765_v27 = vld [vmem:[#allocation3 + $0x28] sm:$0xf0]  ;;  %3728 = vst [vmem:[#allocation3 + $0x8] sm:$0xf] %v3696_v20 }
  0x9b   : > { %3729 = vst [vmem:[#allocation3 + $0x2c] sm:$0xf] %v3697_v21  ;;  %v7008_v53 = vor.u32 %v8765_v27, %v9588_v48  ;;  %v8762_v54 = vld [vmem:[#allocation3 + $0x14] sm:$0xf]  ;;  %v7045_v48 = vld [vmem:[#allocation3 + $0x74] sm:$0xf0] }
  0x9c   : > { %485 = vst [vmem:[#allocation3 + $0x98] sm:$0xf] %v740_v47  ;;  %v7017_v55 = vld [vmem:[#allocation3 + $0x34] sm:$0xf0]  ;;  %v7048_v28 = vor.u32 %v8770_v19, %v7045_v48 }
  0x9d   : > { %486 = vst [vmem:[#allocation3 + $0xbc] sm:$0xf] %v741_v49  ;;  %v7020_v56 = vor.u32 %v8762_v54, %v7017_v55  ;;  %v7043_v14 = vld [vmem:[#allocation3 + $0x50] sm:$0xf]  ;;  %v8779_v49 = vld [vmem:[#allocation3 + $0x9c] sm:$0xf] }
  0x9e   : > { %774 = vst [vmem:[#allocation3 + $0xa4] sm:$0xf] %v742_v5  ;;  %v8774_v16 = vld [vmem:[#allocation3 + $0x70] sm:$0xf0] }
  0x9f   : > { %775 = vst [vmem:[#allocation3 + $0xc8] sm:$0xf] %v743_v6  ;;  %v7044_v22 = vor.u32 %v8774_v16, %v7043_v14  ;;  %v8771_v24 = vld [vmem:[#allocation3 + $0x5c] sm:$0xf] }
  0xa0   : > { %487 = vst [vmem:[#allocation3 + $0xe0] sm:$0xf] %v742_v5  ;;  %v7053_v25 = vld [vmem:[#allocation3 + $0x7c] sm:$0xf0] }
  0xa1   : > { %2645 = vmatmul.bf16.gmra.mxu2 %v7504_v11  ;;  %488 = vst [vmem:[#allocation3 + $0x104] sm:$0xf] %v743_v6  ;;  %v7056_v3 = vor.u32 %v8771_v24, %v7053_v25  ;;  %v8973_v24 = vld [vmem:[%s10832_s1 + $0x228] sm:$0xff] }
  0xa2   : > { %776 = vst [vmem:[#allocation3 + $0xec] sm:$0xf] %v744_v29 }
  0xa3   : > { %2734 = vmatmul.bf16.gmra.mxu3 %v7508_v46  ;;  %489 = vst [vmem:[#allocation3 + $0x128] sm:$0xf] %v744_v29  ;;  %v7079_v35 = vld [vmem:[#allocation3 + $0x98] sm:$0xf] }
  0xa4   : > { %v8783_v44 = vld [vmem:[#allocation3 + $0xb8] sm:$0xf0] }
  0xa5   : > { %2694 = vmatmul.bf16.gmra.mxu1 %v7220_v17  ;;  %v8974_v17 = vld [vmem:[%s10832_s1 + $0x230] sm:$0xff]  ;;  %v7080_v54 = vor.u32 %v8783_v44, %v7079_v35 }
  0xa6   : > { %3280 = vmatpush.bf16.msra.mxu0 %v8974_v17 }
  0xa7   : > { %2610 = vmatmul.bf16.gmra.mxu0 %v7252_v23 }
  0xa8   : > { %v2576_v32 = vpop.f32.mrf.mxu0 }
  0xa9   : > { %v2577_v57 = vadd.f32 %v9617_v52, %v2576_v32  ;;  %v8789_v10 = vld [vmem:[#allocation3 + $0xec] sm:$0xf] }
  0xaa   : > { %3281 = vmatpush.bf16.msra.mxu0 %v8973_v24 }
  0xb0   : > { %v9612_v50 = vpop.f32.mrf.mxu0 }
  0xb1   : > { %2650 = vmatmul.bf16.gmra.mxu2 %v7540_v36  ;;  %v745_v36 = vpack.c.bf16 %v6876_v33, %v6876_v33 }
  0xb3   : > { %2739 = vmatmul.bf16.gmra.mxu3 %v7544_v40  ;;  %777 = vst [vmem:[#allocation3 + $0x110] sm:$0xf] %v745_v36 }
  0xb4   : > { %490 = vst [vmem:[#allocation3 + $0x14c] sm:$0xf] %v745_v36 }
  0xb5   : > { %2699 = vmatmul.bf16.gmra.mxu1 %v7256_v43 }
  0xb7   : > { %2931 = vmatmul.bf16.vlgmr.msrb.gmra.mxu0 %v7016_v45 }
  0xba   : > { %v7125_v33 = vld [vmem:[#allocation3 + $0x10c] sm:$0xf0] }
  0xc1   : > { %2753 = vmatmul.bf16.vlgmr.msrb.gmra.mxu2 %v7008_v53 }
  0xc2   : > { %v2665_v58 = vpop.f32.mrf.mxu1 }
  0xc3   : > { %2842 = vmatmul.bf16.vlgmr.msrb.gmra.mxu3 %v7012_v59  ;;  %v9623_v0 = vadd.f32 %v2665_v58, %v2577_v57  ;;  %v8780_v57 = vld [vmem:[#allocation3 + $0xa4] sm:$0xf]  ;;  %v7089_v59 = vld [vmem:[#allocation3 + $0xc4] sm:$0xf0] }
  0xc4   : > { %v2616_v8 = vpop.f32.mrf.mxu2  ;;  %v2581_v9 = vpop.f32.mrf.mxu0  ;;  %v7123_v58 = vld [vmem:[#allocation3 + $0xe8] sm:$0xf]  ;;  %v7092_v63 = vor.u32 %v8780_v57, %v7089_v59 }
  0xc5   : > { %v2617_v11 = vadd.f32 %v9617_v52, %v2616_v8  ;;  %3020 = vmatmul.bf16.vlgmr.msrb.gmra.mxu1 %v7020_v56  ;;  %v2582_v27 = vadd.f32 %v9617_v52, %v2581_v9  ;;  %v7084_v56 = vor.u32 %v8779_v49, %v7081_v38  ;;  %v7124_v6 = vor.u32 %v8793_v62, %v7123_v58  ;;  %v8957_v8 = vld [vmem:[%s10832_s1 + $0x1a8] sm:$0xff] }
  0xc6   : > { %v2705_v12 = vpop.f32.mrf.mxu3  ;;  %v8965_v9 = vld [vmem:[%s10832_s1 + $0x1e8] sm:$0xff]  ;;  %3103 = vmatpush.bf16.msra.mxu2 %v8957_v8 }
  0xc7   : > { %v9632_v13 = vadd.f32 %v2705_v12, %v2617_v11  ;;  %2936 = vmatmul.bf16.gmra.mxu0 %v7052_v1  ;;  %v746_v11 = vpack.c.bf16 %v6877_v2, %v6877_v2  ;;  %v747_v12 = vpack.c.bf16 %v6878_v4, %v6878_v4  ;;  %3192 = vmatpush.bf16.msra.mxu3 %v8965_v9 }
  0xc9   : > { %778 = vst [vmem:[#allocation3 + $0x134] sm:$0xf] %v746_v11 }
  0xca   : > { %v9634_v46 = vpop.f32.mrf.mxu1  ;;  %779 = vst [vmem:[#allocation3 + $0x158] sm:$0xf] %v747_v12 }
  0xcb   : > { %491 = vst [vmem:[#allocation3 + $0x170] sm:$0xf] %v746_v11 }
  0xcc   : > { %v2618_v18 = vpop.f32.mrf.mxu2  ;;  %v2583_v20 = vpop.f32.mrf.mxu0  ;;  %492 = vst [vmem:[#allocation3 + $0x194] sm:$0xf] %v747_v12 }
  0xcd   : > { %v2619_v21 = vadd.f32 %v9617_v52, %v2618_v18  ;;  %v2584_v42 = vadd.f32 %v9617_v52, %v2583_v20 }
  0xce   : > { %v2707_v23 = vpop.f32.mrf.mxu3 }
  0xcf   : > { %v9640_v26 = vadd.f32 %v2707_v23, %v2619_v21  ;;  %v7115_v21 = vld [vmem:[#allocation3 + $0xe0] sm:$0xf] }
  0xd0   : > { %v8798_v9 = vld [vmem:[#allocation3 + $0x134] sm:$0xf] }
  0xd1   : > { %2758 = vmatmul.bf16.gmra.mxu2 %v7044_v22  ;;  %v8792_v22 = vld [vmem:[#allocation3 + $0x100] sm:$0xf0]  ;;  %v7161_v11 = vld [vmem:[#allocation3 + $0x154] sm:$0xf0] }
  0xd2   : > { %v2670_v7 = vpop.f32.mrf.mxu1 }
  0xd3   : > { %2847 = vmatmul.bf16.gmra.mxu3 %v7048_v28  ;;  %v9645_v34 = vadd.f32 %v2670_v7, %v2582_v27  ;;  %v8788_v27 = vld [vmem:[#allocation3 + $0xe4] sm:$0xf]  ;;  %v7117_v28 = vld [vmem:[#allocation3 + $0x104] sm:$0xf0] }
  0xd4   : > { %v2621_v37 = vpop.f32.mrf.mxu2  ;;  %v2586_v39 = vpop.f32.mrf.mxu0  ;;  %v7120_v36 = vor.u32 %v8788_v27, %v7117_v28  ;;  %v8956_v27 = vld [vmem:[%s10832_s1 + $0x1a0] sm:$0xff] }
  0xd5   : > { %v2622_v40 = vadd.f32 %v9617_v52, %v2621_v37  ;;  %3025 = vmatmul.bf16.gmra.mxu1 %v7056_v3  ;;  %v2587_v61 = vadd.f32 %v9617_v52, %v2586_v39  ;;  %v7116_v3 = vor.u32 %v8792_v22, %v7115_v21  ;;  %v7159_v37 = vld [vmem:[#allocation3 + $0x130] sm:$0xf]  ;;  %v8802_v39 = vld [vmem:[#allocation3 + $0x150] sm:$0xf0]  ;;  %v6881_v21 = vld [vmem:[%s9294_s8 + $0xaa] sm:$0xff]  ;;  %3104 = vmatpush.bf16.msra.mxu2 %v8956_v27 }
  0xd6   : > { %v2710_v32 = vpop.f32.mrf.mxu3  ;;  %v7160_v44 = vor.u32 %v8802_v39, %v7159_v37  ;;  %v6882_v22 = vld [vmem:[%s9294_s8 + $0xb2] sm:$0xff]  ;;  %v8964_v28 = vld [vmem:[%s10832_s1 + $0x1e0] sm:$0xff]  ;;  %v6820_v37 = vld [vmem:[%s9294_s8 + $0xc8] sm:$0xff] }
  0xd7   : > { %v9648_v41 = vadd.f32 %v2710_v32, %v2622_v40  ;;  %2941 = vmatmul.bf16.gmra.mxu0 %v7088_v15  ;;  %v7128_v40 = vor.u32 %v8789_v10, %v7125_v33  ;;  %3193 = vmatpush.bf16.msra.mxu3 %v8964_v28  ;;  %v6851_v39 = vld [vmem:[%s9294_s8 + $0xc1] sm:$0xff] }
  0xda   : > { %v2672_v43 = vpop.f32.mrf.mxu1 }
  0xdb   : > { %v9651_v45 = vadd.f32 %v2672_v43, %v2584_v42  ;;  %v6879_v42 = vld [vmem:[%s9294_s8 + $0x92] sm:$0xff]  ;;  %v6880_v43 = vld [vmem:[%s9294_s8 + $0x9a] sm:$0xff] }
  0xdc   : > { %v2623_v47 = vpop.f32.mrf.mxu2  ;;  %v2588_v51 = vpop.f32.mrf.mxu0  ;;  %v749_v49 = vpack.c.bf16 %v6880_v43, %v6880_v43  ;;  %v6852_v43 = vld [vmem:[%s9294_s8 + $0xc9] sm:$0xff] }
  0xdd   : > { %v2624_v53 = vadd.f32 %v9617_v52, %v2623_v47  ;;  %v2589_v48 = vadd.f32 %v9617_v52, %v2588_v51  ;;  %v748_v47 = vpack.c.bf16 %v6879_v42, %v6879_v42  ;;  %v561_v42 = vpack.c.bf16 %v6820_v37, %v6820_v37 }
  0xde   : > { %v2712_v55 = vpop.f32.mrf.mxu3  ;;  %781 = vst [vmem:[#allocation3 + $0x1a0] sm:$0xf] %v749_v49 }
  0xdf   : > { %v9654_v60 = vadd.f32 %v2712_v55, %v2624_v53  ;;  %780 = vst [vmem:[#allocation3 + $0x17c] sm:$0xf] %v748_v47 }
  0xe0   : > { %493 = vst [vmem:[#allocation3 + $0x1b8] sm:$0xf] %v748_v47  ;;  %v657_v47 = vpack.c.bf16 %v6852_v43, %v6852_v43 }
  0xe1   : > { %2763 = vmatmul.bf16.gmra.mxu2 %v7080_v54  ;;  %494 = vst [vmem:[#allocation3 + $0x1dc] sm:$0xf] %v749_v49 }
  0xe2   : > { %v2675_v1 = vpop.f32.mrf.mxu1  ;;  %593 = vst [vmem:[#allocation3 + $0x228] sm:$0xf] %v561_v42 }
  0xe3   : > { %2852 = vmatmul.bf16.gmra.mxu3 %v7084_v56  ;;  %v9659_v5 = vadd.f32 %v2675_v1, %v2587_v61  ;;  %v7151_v61 = vld [vmem:[#allocation3 + $0x128] sm:$0xf]  ;;  %v8801_v56 = vld [vmem:[#allocation3 + $0x148] sm:$0xf0]  ;;  %v7153_v1 = vld [vmem:[#allocation3 + $0x14c] sm:$0xf0] }
  0xe4   : > { %v2626_v14 = vpop.f32.mrf.mxu2  ;;  %v2591_v16 = vpop.f32.mrf.mxu0  ;;  %689 = vst [vmem:[#allocation3 + $0x22c] sm:$0xf] %v657_v47 }
  0xe5   : > { %v2627_v17 = vadd.f32 %v9617_v52, %v2626_v14  ;;  %3030 = vmatmul.bf16.gmra.mxu1 %v7092_v63  ;;  %v2592_v29 = vadd.f32 %v9617_v52, %v2591_v16  ;;  %v8797_v63 = vld [vmem:[#allocation3 + $0x12c] sm:$0xf] }
  0xe6   : > { %v2715_v18 = vpop.f32.mrf.mxu3  ;;  %v7156_v16 = vor.u32 %v8797_v63, %v7153_v1 }
  0xe7   : > { %v9668_v19 = vadd.f32 %v2715_v18, %v2627_v17  ;;  %2946 = vmatmul.bf16.gmra.mxu0 %v7124_v6  ;;  %v7152_v6 = vor.u32 %v8801_v56, %v7151_v61  ;;  %v7195_v17 = vld [vmem:[#allocation3 + $0x178] sm:$0xf]  ;;  %v8811_v18 = vld [vmem:[#allocation3 + $0x198] sm:$0xf0] }
  0xe8   : > { %v7189_v61 = vld [vmem:[#allocation3 + $0x194] sm:$0xf0]  ;;  %v8819_v47 = vld [vmem:[#allocation3 + $0x1d8] sm:$0xf0] }
  0xea   : > { %v2677_v20 = vpop.f32.mrf.mxu1 }
  0xeb   : > { %v9671_v23 = vadd.f32 %v2677_v20, %v2589_v48  ;;  %v7164_v48 = vor.u32 %v8798_v9, %v7161_v11  ;;  %v7231_v11 = vld [vmem:[#allocation3 + $0x1c0] sm:$0xf] }
  0xec   : > { %v2628_v25 = vpop.f32.mrf.mxu2  ;;  %v2593_v30 = vpop.f32.mrf.mxu0 }
  0xed   : > { %v2629_v31 = vadd.f32 %v9617_v52, %v2628_v25  ;;  %v2594_v57 = vadd.f32 %v9617_v52, %v2593_v30  ;;  %v7196_v25 = vor.u32 %v8811_v18, %v7195_v17  ;;  %v750_v30 = vpack.c.bf16 %v6881_v21, %v6881_v21  ;;  %v6883_v18 = vld [vmem:[%s9294_s8 + $0xc2] sm:$0xff] }
  0xee   : > { %v2717_v7 = vpop.f32.mrf.mxu3 }
  0xef   : > { %v9677_v15 = vadd.f32 %v2717_v7, %v2629_v31  ;;  %v751_v31 = vpack.c.bf16 %v6882_v22, %v6882_v22  ;;  %782 = vst [vmem:[#allocation3 + $0x1c4] sm:$0xf] %v750_v30  ;;  %v752_v22 = vpack.c.bf16 %v6883_v18, %v6883_v18 }
  0xf0   : > { %495 = vst [vmem:[#allocation3 + $0x200] sm:$0xf] %v750_v30 }
  0xf1   : > { %2768 = vmatmul.bf16.gmra.mxu2 %v7116_v3  ;;  %783 = vst [vmem:[#allocation3 + $0x1e8] sm:$0xf] %v751_v31 }
  0xf2   : > { %v2680_v32 = vpop.f32.mrf.mxu1  ;;  %496 = vst [vmem:[#allocation3 + $0x224] sm:$0xf] %v751_v31 }
  0xf3   : > { %2857 = vmatmul.bf16.gmra.mxu3 %v7120_v36  ;;  %v9682_v35 = vadd.f32 %v2680_v32, %v2592_v29  ;;  %v6819_v36 = vld [vmem:[%s9294_s8 + $0xc0] sm:$0xff]  ;;  %784 = vst [vmem:[#allocation3 + $0x20c] sm:$0xf] %v752_v22 }
  0xf4   : > { %v2631_v38 = vpop.f32.mrf.mxu2  ;;  %v2596_v51 = vpop.f32.mrf.mxu0  ;;  %v560_v32 = vpack.c.bf16 %v6819_v36, %v6819_v36  ;;  %497 = vst [vmem:[#allocation3 + $0x248] sm:$0xf] %v752_v22  ;;  %v8963_v22 = vld [vmem:[%s10832_s1 + $0x1d8] sm:$0xff] }
  0xf5   : > { %v2632_v53 = vadd.f32 %v9617_v52, %v2631_v38  ;;  %3035 = vmatmul.bf16.gmra.mxu1 %v7128_v40  ;;  %v2597_v14 = vadd.f32 %v9617_v52, %v2596_v51  ;;  %v7187_v38 = vld [vmem:[#allocation3 + $0x170] sm:$0xf]  ;;  %v8810_v51 = vld [vmem:[#allocation3 + $0x190] sm:$0xf0]  ;;  %3194 = vmatpush.bf16.msra.mxu3 %v8963_v22 }
  0xf6   : > { %v2720_v54 = vpop.f32.mrf.mxu3  ;;  %592 = vst [vmem:[#allocation3 + $0x204] sm:$0xf] %v560_v32  ;;  %v7188_v63 = vor.u32 %v8810_v51, %v7187_v38  ;;  %v8815_v51 = vld [vmem:[#allocation3 + $0x1bc] sm:$0xf] }
  0xf7   : > { %v9685_v55 = vadd.f32 %v2720_v54, %v2632_v53  ;;  %2951 = vmatmul.bf16.gmra.mxu0 %v7160_v44  ;;  %v656_v44 = vpack.c.bf16 %v6851_v39, %v6851_v39  ;;  %v8972_v54 = vld [vmem:[%s10832_s1 + $0x220] sm:$0xff] }
  0xf8   : > { %3282 = vmatpush.bf16.msra.mxu0 %v8972_v54  ;;  %v6854_v39 = vld [vmem:[%s9294_s8 + $0xe1] sm:$0xff]  ;;  %v7225_v54 = vld [vmem:[#allocation3 + $0x1dc] sm:$0xf0] }
  0xf9   : > { %688 = vst [vmem:[#allocation3 + $0x208] sm:$0xf] %v656_v44  ;;  %v659_v42 = vpack.c.bf16 %v6854_v39, %v6854_v39  ;;  %v7223_v44 = vld [vmem:[#allocation3 + $0x1b8] sm:$0xf] }
  0xfa   : > { %v2682_v59 = vpop.f32.mrf.mxu1 }
  0xfb   : > { %v9688_v58 = vadd.f32 %v2682_v59, %v2594_v57  ;;  %v8806_v59 = vld [vmem:[#allocation3 + $0x174] sm:$0xf]  ;;  %691 = vst [vmem:[#allocation3 + $0x274] sm:$0xf] %v659_v42  ;;  %v6856_v42 = vld [vmem:[%s9294_s8 + $0xf9] sm:$0xff] }
  0xfc   : > { %v2633_v62 = vpop.f32.mrf.mxu2  ;;  %v2598_v2 = vpop.f32.mrf.mxu0  ;;  %v7192_v9 = vor.u32 %v8806_v59, %v7189_v61  ;;  %v7224_v61 = vor.u32 %v8819_v47, %v7223_v44  ;;  %v661_v44 = vpack.c.bf16 %v6856_v42, %v6856_v42  ;;  %v6826_v42 = vld [vmem:[%s9294_s8 + $0x110] sm:$0xff] }
  0xfd   : > { %v2634_v4 = vadd.f32 %v9617_v52, %v2633_v62  ;;  %v2599_v29 = vadd.f32 %v9617_v52, %v2598_v2  ;;  %v8807_v2 = vld [vmem:[#allocation3 + $0x17c] sm:$0xf] }
  0xfe   : > { %v2722_v8 = vpop.f32.mrf.mxu3  ;;  %693 = vst [vmem:[#allocation3 + $0x2bc] sm:$0xf] %v661_v44 }
  0xff   : > { %v9691_v12 = vadd.f32 %v2722_v8, %v2634_v4  ;;  %v7197_v4 = vld [vmem:[#allocation3 + $0x19c] sm:$0xf0] }
 0x101   : > { %2773 = vmatmul.bf16.gmra.mxu2 %v7152_v6 }
 0x102   : > { %v2685_v20 = vpop.f32.mrf.mxu1 }
 0x103   : > { %2862 = vmatmul.bf16.gmra.mxu3 %v7156_v16  ;;  %v9696_v24 = vadd.f32 %v2685_v20, %v2597_v14  ;;  %v8820_v14 = vld [vmem:[#allocation3 + $0x1e0] sm:$0xf0]  ;;  %v7200_v16 = vor.u32 %v8807_v2, %v7197_v4  ;;  %v7228_v4 = vor.u32 %v8815_v51, %v7225_v54 }
 0x104   : > { %v2636_v3 = vpop.f32.mrf.mxu2  ;;  %v2601_v7 = vpop.f32.mrf.mxu0  ;;  %v7232_v21 = vor.u32 %v8820_v14, %v7231_v11  ;;  %v8828_v51 = vld [vmem:[#allocation3 + $0x220] sm:$0xf0] }
 0x105   : > { %v2637_v10 = vadd.f32 %v9617_v52, %v2636_v3  ;;  %3040 = vmatmul.bf16.gmra.mxu1 %v7164_v48  ;;  %v2602_v8 = vadd.f32 %v9617_v52, %v2601_v7  ;;  %v6884_v48 = vld [vmem:[%s9294_s8 + $0xca] sm:$0xff]  ;;  %v6821_v7 = vld [vmem:[%s9294_s8 + $0xd8] sm:$0xff] }
 0x106   : > { %v2725_v33 = vpop.f32.mrf.mxu3  ;;  %v562_v36 = vpack.c.bf16 %v6821_v7, %v6821_v7 }
 0x107   : > { %v9709_v40 = vadd.f32 %v2725_v33, %v2637_v10  ;;  %2956 = vmatmul.bf16.gmra.mxu0 %v7196_v25  ;;  %v753_v25 = vpack.c.bf16 %v6884_v48, %v6884_v48  ;;  %v6822_v10 = vld [vmem:[%s9294_s8 + $0xe0] sm:$0xff] }
 0x108   : > { %v6853_v33 = vld [vmem:[%s9294_s8 + $0xd9] sm:$0xff]  ;;  %v563_v37 = vpack.c.bf16 %v6822_v10, %v6822_v10  ;;  %594 = vst [vmem:[#allocation3 + $0x24c] sm:$0xf] %v562_v36  ;;  %v6823_v10 = vld [vmem:[%s9294_s8 + $0xf0] sm:$0xff] }
 0x109   : > { %785 = vst [vmem:[#allocation3 + $0x230] sm:$0xf] %v753_v25  ;;  %v658_v32 = vpack.c.bf16 %v6853_v33, %v6853_v33  ;;  %v6824_v33 = vld [vmem:[%s9294_s8 + $0xf8] sm:$0xff]  ;;  %v564_v39 = vpack.c.bf16 %v6823_v10, %v6823_v10 }
 0x10a   : > { %v2687_v49 = vpop.f32.mrf.mxu1  ;;  %498 = vst [vmem:[#allocation3 + $0x26c] sm:$0xf] %v753_v25  ;;  %v6855_v36 = vld [vmem:[%s9294_s8 + $0xf1] sm:$0xff] }
 0x10b   : > { %v9712_v53 = vadd.f32 %v2687_v49, %v2599_v29  ;;  %595 = vst [vmem:[#allocation3 + $0x270] sm:$0xf] %v563_v37 }
 0x10c   : > { %v2638_v57 = vpop.f32.mrf.mxu2  ;;  %v2603_v56 = vpop.f32.mrf.mxu0  ;;  %690 = vst [vmem:[#allocation3 + $0x250] sm:$0xf] %v658_v32  ;;  %v565_v32 = vpack.c.bf16 %v6824_v33, %v6824_v33 }
 0x10d   : > { %v2639_v62 = vadd.f32 %v9617_v52, %v2638_v57  ;;  %v2604_v3 = vadd.f32 %v9617_v52, %v2603_v56  ;;  %596 = vst [vmem:[#allocation3 + $0x294] sm:$0xf] %v564_v39 }
 0x10e   : > { %v2727_v1 = vpop.f32.mrf.mxu3  ;;  %597 = vst [vmem:[#allocation3 + $0x2b8] sm:$0xf] %v565_v32  ;;  %v6825_v32 = vld [vmem:[%s9294_s8 + $0x108] sm:$0xff] }
 0x10f   : > { %v9718_v6 = vadd.f32 %v2727_v1, %v2639_v62  ;;  %v8816_v62 = vld [vmem:[#allocation3 + $0x1c4] sm:$0xf] }
 0x111   : > { %2778 = vmatmul.bf16.gmra.mxu2 %v7188_v63  ;;  %v7233_v63 = vld [vmem:[#allocation3 + $0x1e4] sm:$0xf0] }
 0x112   : > { %v2690_v17 = vpop.f32.mrf.mxu1  ;;  %v7236_v11 = vor.u32 %v8816_v62, %v7233_v63 }
 0x113   : > { %2867 = vmatmul.bf16.gmra.mxu3 %v7192_v9  ;;  %v9723_v20 = vadd.f32 %v2690_v17, %v2602_v8  ;;  %v7267_v8 = vld [vmem:[#allocation3 + $0x208] sm:$0xf]  ;;  %v8829_v9 = vld [vmem:[#allocation3 + $0x228] sm:$0xf0]  ;;  %v6886_v17 = vld [vmem:[%s9294_s8 + $0xe2] sm:$0xff] }
 0x114   : > { %v2641_v27 = vpop.f32.mrf.mxu2  ;;  %v2606_v28 = vpop.f32.mrf.mxu0  ;;  %v7268_v48 = vor.u32 %v8829_v9, %v7267_v8  ;;  %v8825_v8 = vld [vmem:[#allocation3 + $0x20c] sm:$0xf]  ;;  %v7269_v9 = vld [vmem:[#allocation3 + $0x22c] sm:$0xf0] }
 0x115   : > { %v2642_v30 = vadd.f32 %v9617_v52, %v2641_v27  ;;  %3045 = vmatmul.bf16.gmra.mxu1 %v7200_v16  ;;  %v2607_v2 = vadd.f32 %v9617_v52, %v2606_v28  ;;  %v6885_v16 = vld [vmem:[%s9294_s8 + $0xda] sm:$0xff]  ;;  %v755_v27 = vpack.c.bf16 %v6886_v17, %v6886_v17 }
 0x116   : > { %v2730_v31 = vpop.f32.mrf.mxu3  ;;  %v754_v25 = vpack.c.bf16 %v6885_v16, %v6885_v16  ;;  %v7303_v17 = vld [vmem:[#allocation3 + $0x250] sm:$0xf] }
 0x117   : > { %v9730_v29 = vadd.f32 %v2730_v31, %v2642_v30  ;;  %2961 = vmatmul.bf16.gmra.mxu0 %v7232_v21  ;;  %v8955_v21 = vld [vmem:[%s10832_s1 + $0x198] sm:$0xff]  ;;  %787 = vst [vmem:[#allocation3 + $0x278] sm:$0xf] %v755_v27 }
 0x118   : > { %3105 = vmatpush.bf16.msra.mxu2 %v8955_v21  ;;  %786 = vst [vmem:[#allocation3 + $0x254] sm:$0xf] %v754_v25  ;;  %v7272_v21 = vor.u32 %v8825_v8, %v7269_v9  ;;  %v8833_v8 = vld [vmem:[#allocation3 + $0x24c] sm:$0xf]  ;;  %v7297_v9 = vld [vmem:[#allocation3 + $0x26c] sm:$0xf0] }
 0x119   : > { %499 = vst [vmem:[#allocation3 + $0x290] sm:$0xf] %v754_v25  ;;  %v6887_v25 = vld [vmem:[%s9294_s8 + $0xf2] sm:$0xff] }
 0x11a   : > { %v2692_v43 = vpop.f32.mrf.mxu1  ;;  %500 = vst [vmem:[#allocation3 + $0x2b4] sm:$0xf] %v755_v27  ;;  %v6888_v27 = vld [vmem:[%s9294_s8 + $0xfa] sm:$0xff] }
 0x11b   : > { %v9733_v49 = vadd.f32 %v2692_v43, %v2604_v3  ;;  %v660_v43 = vpack.c.bf16 %v6855_v36, %v6855_v36 }
 0x11c   : > { %v2643_v38 = vpop.f32.mrf.mxu2  ;;  %v2608_v57 = vpop.f32.mrf.mxu0 }
 0x11d   : > { %v2644_v59 = vadd.f32 %v9617_v52, %v2643_v38  ;;  %v2609_v7 = vadd.f32 %v9617_v52, %v2608_v57  ;;  %v7259_v38 = vld [vmem:[#allocation3 + $0x200] sm:$0xf]  ;;  %v8971_v57 = vld [vmem:[%s10832_s1 + $0x218] sm:$0xff]  ;;  %692 = vst [vmem:[#allocation3 + $0x298] sm:$0xf] %v660_v43 }
 0x11e   : > { %v2732_v56 = vpop.f32.mrf.mxu3  ;;  %3283 = vmatpush.bf16.msra.mxu0 %v8971_v57  ;;  %v6857_v43 = vld [vmem:[%s9294_s8 + $0x109] sm:$0xff]  ;;  %v6858_v57 = vld [vmem:[%s9294_s8 + $0x111] sm:$0xff] }
 0x11f   : > { %v9736_v1 = vadd.f32 %v2732_v56, %v2644_v59  ;;  %v7261_v56 = vld [vmem:[#allocation3 + $0x224] sm:$0xf0] }
 0x121   : > { %2783 = vmatmul.bf16.gmra.mxu2 %v7224_v61  ;;  %v8824_v61 = vld [vmem:[#allocation3 + $0x204] sm:$0xf] }
 0x122   : > { %v2695_v14 = vpop.f32.mrf.mxu1  ;;  %v7264_v16 = vor.u32 %v8824_v61, %v7261_v56  ;;  %v663_v61 = vpack.c.bf16 %v6858_v57, %v6858_v57 }
 0x123   : > { %2872 = vmatmul.bf16.gmra.mxu3 %v7228_v4  ;;  %v9741_v18 = vadd.f32 %v2695_v14, %v2607_v2  ;;  %v7260_v2 = vor.u32 %v8828_v51, %v7259_v38  ;;  %v566_v38 = vpack.c.bf16 %v6825_v32, %v6825_v32  ;;  %v567_v51 = vpack.c.bf16 %v6826_v42, %v6826_v42  ;;  %v8954_v32 = vld [vmem:[%s10832_s1 + $0x190] sm:$0xff] }
 0x124   : > { %v2646_v28 = vpop.f32.mrf.mxu2  ;;  %v2611_v30 = vpop.f32.mrf.mxu0  ;;  %695 = vst [vmem:[#allocation3 + $0x304] sm:$0xf] %v663_v61  ;;  %v8962_v42 = vld [vmem:[%s10832_s1 + $0x1d0] sm:$0xff]  ;;  %3106 = vmatpush.bf16.msra.mxu2 %v8954_v32 }
 0x125   : > { %v2647_v31 = vadd.f32 %v9617_v52, %v2646_v28  ;;  %3050 = vmatmul.bf16.gmra.mxu1 %v7236_v11  ;;  %v2612_v14 = vadd.f32 %v9617_v52, %v2611_v30  ;;  %598 = vst [vmem:[#allocation3 + $0x2dc] sm:$0xf] %v566_v38  ;;  %3195 = vmatpush.bf16.msra.mxu3 %v8962_v42 }
 0x126   : > { %v2735_v3 = vpop.f32.mrf.mxu3  ;;  %599 = vst [vmem:[#allocation3 + $0x300] sm:$0xf] %v567_v51 }
 0x127   : > { %v9754_v37 = vadd.f32 %v2735_v3, %v2647_v31  ;;  %2966 = vmatmul.bf16.gmra.mxu0 %v7268_v48  ;;  %v8838_v48 = vld [vmem:[#allocation3 + $0x270] sm:$0xf0]  ;;  %v756_v3 = vpack.c.bf16 %v6887_v25, %v6887_v25 }
 0x128   : > { %v7304_v31 = vor.u32 %v8838_v48, %v7303_v17 }
 0x129   : > { %788 = vst [vmem:[#allocation3 + $0x29c] sm:$0xf] %v756_v3 }
 0x12a   : > { %v2697_v47 = vpop.f32.mrf.mxu1  ;;  %501 = vst [vmem:[#allocation3 + $0x2d8] sm:$0xf] %v756_v3  ;;  %v8847_v3 = vld [vmem:[#allocation3 + $0x2b8] sm:$0xf0] }
 0x12b   : > { %v9757_v54 = vadd.f32 %v2697_v47, %v2609_v7  ;;  %v757_v7 = vpack.c.bf16 %v6888_v27, %v6888_v27  ;;  %v9127_v47 = vld [vmem:[%s10834_s3 + $0x38] sm:$0xff]  ;;  %v7300_v27 = vor.u32 %v8833_v8, %v7297_v9 }
 0x12c   : > { %v2648_v59 = vpop.f32.mrf.mxu2  ;;  %v2613_v62 = vpop.f32.mrf.mxu0  ;;  %5841 = vmatpush.bf16.msra.mxu1 %v9127_v47 }
 0x12d   : > { %v2649_v63 = vadd.f32 %v9617_v52, %v2648_v59  ;;  %v2614_v39 = vadd.f32 %v9617_v52, %v2613_v62  ;;  %789 = vst [vmem:[#allocation3 + $0x2c0] sm:$0xf] %v757_v7  ;;  %v662_v59 = vpack.c.bf16 %v6857_v43, %v6857_v43  ;;  %v7295_v62 = vld [vmem:[#allocation3 + $0x248] sm:$0xf] }
 0x12e   : > { %v2737_v4 = vpop.f32.mrf.mxu3  ;;  %502 = vst [vmem:[#allocation3 + $0x2fc] sm:$0xf] %v757_v7 }
 0x12f   : > { %v9763_v11 = vadd.f32 %v2737_v4, %v2649_v63  ;;  %v8837_v63 = vld [vmem:[#allocation3 + $0x268] sm:$0xf0]  ;;  %694 = vst [vmem:[#allocation3 + $0x2e0] sm:$0xf] %v662_v59  ;;  %v2579_v59 = vadd.f32 %v9617_v52, %v9612_v50  ;;  %v8846_v50 = vld [vmem:[#allocation3 + $0x2b0] sm:$0xf0] }
 0x130   : > { %v7296_v17 = vor.u32 %v8837_v63, %v7295_v62  ;;  %v6828_v62 = vld [vmem:[%s9294_s8 + $0x128] sm:$0xff] }
 0x131   : > { %2788 = vmatmul.bf16.gmra.mxu2 %v7260_v2  ;;  %v6859_v63 = vld [vmem:[%s9294_s8 + $0x121] sm:$0xff]  ;;  %v569_v9 = vpack.c.bf16 %v6828_v62, %v6828_v62  ;;  %v6892_v62 = vld [vmem:[%s9294_s8 + $0x12a] sm:$0xff] }
 0x132   : > { %v2700_v22 = vpop.f32.mrf.mxu1 }
 0x133   : > { %2877 = vmatmul.bf16.gmra.mxu3 %v7264_v16  ;;  %v9768_v28 = vadd.f32 %v2700_v22, %v2612_v14  ;;  %v7305_v22 = vld [vmem:[#allocation3 + $0x274] sm:$0xf0]  ;;  %601 = vst [vmem:[#allocation3 + $0x348] sm:$0xf] %v569_v9  ;;  %v761_v9 = vpack.c.bf16 %v6892_v62, %v6892_v62 }
 0x134   : > { %v2651_v10 = vpop.f32.mrf.mxu2  ;;  %v9770_v33 = vpop.f32.mrf.mxu0 }
 0x135   : > { %v2652_v30 = vadd.f32 %v9617_v52, %v2651_v10  ;;  %3055 = vmatmul.bf16.gmra.mxu1 %v7272_v21  ;;  %v8834_v21 = vld [vmem:[#allocation3 + $0x254] sm:$0xf]  ;;  %793 = vst [vmem:[#allocation3 + $0x350] sm:$0xf] %v761_v9 }
 0x136   : > { %v2740_v36 = vpop.f32.mrf.mxu3  ;;  %v7308_v7 = vor.u32 %v8834_v21, %v7305_v22  ;;  %v7331_v21 = vld [vmem:[#allocation3 + $0x290] sm:$0xf]  ;;  %v2668_v22 = vadd.f32 %v9634_v46, %v2579_v59  ;;  %v8843_v46 = vld [vmem:[#allocation3 + $0x29c] sm:$0xf]  ;;  %506 = vst [vmem:[#allocation3 + $0x38c] sm:$0xf] %v761_v9 }
 0x137   : > { %v9777_v44 = vadd.f32 %v2740_v36, %v2652_v30  ;;  %2971 = vmatmul.bf16.gmra.mxu0 %v7304_v31  ;;  %v7339_v31 = vld [vmem:[#allocation3 + $0x298] sm:$0xf]  ;;  %v6890_v36 = vld [vmem:[%s9294_s8 + $0x112] sm:$0xff] }
 0x138   : > { %v6889_v30 = vld [vmem:[%s9294_s8 + $0x10a] sm:$0xff]  ;;  %v759_v47 = vpack.c.bf16 %v6890_v36, %v6890_v36 }
 0x139   : > { %v758_v43 = vpack.c.bf16 %v6889_v30, %v6889_v30  ;;  %v7333_v30 = vld [vmem:[#allocation3 + $0x2b4] sm:$0xf0] }
 0x13a   : > { %v2702_v56 = vpop.f32.mrf.mxu1  ;;  %791 = vst [vmem:[#allocation3 + $0x308] sm:$0xf] %v759_v47 }
 0x13b   : > { %v9783_v2 = vadd.f32 %v2702_v56, %v2614_v39  ;;  %v7340_v39 = vor.u32 %v8847_v3, %v7339_v31  ;;  %790 = vst [vmem:[#allocation3 + $0x2e4] sm:$0xf] %v758_v43  ;;  %v6827_v56 = vld [vmem:[%s9294_s8 + $0x120] sm:$0xff]  ;;  %v8970_v31 = vld [vmem:[%s10832_s1 + $0x210] sm:$0xff] }
 0x13c   : > { %v2653_v4 = vpop.f32.mrf.mxu2  ;;  %v9785_v14 = vpop.f32.mrf.mxu0  ;;  %503 = vst [vmem:[#allocation3 + $0x320] sm:$0xf] %v758_v43  ;;  %v568_v8 = vpack.c.bf16 %v6827_v56, %v6827_v56  ;;  %3284 = vmatpush.bf16.msra.mxu0 %v8970_v31  ;;  %v6891_v56 = vld [vmem:[%s9294_s8 + $0x122] sm:$0xff] }
 0x13d   : > { %v2654_v16 = vadd.f32 %v9617_v52, %v2653_v4  ;;  %504 = vst [vmem:[#allocation3 + $0x344] sm:$0xf] %v759_v47  ;;  %v7375_v47 = vld [vmem:[#allocation3 + $0x2e0] sm:$0xf] }
 0x13e   : > { %v2742_v48 = vpop.f32.mrf.mxu3  ;;  %600 = vst [vmem:[#allocation3 + $0x324] sm:$0xf] %v568_v8  ;;  %v760_v8 = vpack.c.bf16 %v6891_v56, %v6891_v56 }
 0x13f   : > { %v9788_v25 = vadd.f32 %v2742_v48, %v2654_v16  ;;  %v6860_v16 = vld [vmem:[%s9294_s8 + $0x129] sm:$0xff] }
 0x140   : > { %792 = vst [vmem:[#allocation3 + $0x32c] sm:$0xf] %v760_v8 }
 0x141   : > { %2793 = vmatmul.bf16.gmra.mxu2 %v7296_v17  ;;  %v665_v17 = vpack.c.bf16 %v6860_v16, %v6860_v16  ;;  %505 = vst [vmem:[#allocation3 + $0x368] sm:$0xf] %v760_v8  ;;  %v7377_v62 = vld [vmem:[#allocation3 + $0x304] sm:$0xf0] }
 0x142   : > { %v3021_v10 = vpop.f32.mrf.mxu1  ;;  %v8852_v56 = vld [vmem:[#allocation3 + $0x2e4] sm:$0xf] }
 0x143   : > { %2882 = vmatmul.bf16.gmra.mxu3 %v7300_v27  ;;  %697 = vst [vmem:[#allocation3 + $0x34c] sm:$0xf] %v665_v17 }
 0x144   : > { %v2754_v38 = vpop.f32.mrf.mxu2  ;;  %v9798_v51 = vpop.f32.mrf.mxu0 }
 0x145   : > { %v2755_v57 = vadd.f32 %v2754_v38, %v9623_v0  ;;  %3060 = vmatmul.bf16.gmra.mxu1 %v7308_v7  ;;  %v664_v0 = vpack.c.bf16 %v6859_v63, %v6859_v63  ;;  %v8842_v7 = vld [vmem:[#allocation3 + $0x294] sm:$0xf]  ;;  %v8856_v38 = vld [vmem:[#allocation3 + $0x300] sm:$0xf0] }
 0x146   : > { %v2843_v61 = vpop.f32.mrf.mxu3  ;;  %v7336_v43 = vor.u32 %v8842_v7, %v7333_v30  ;;  %v6862_v7 = vld [vmem:[%s9294_s8 + $0x141] sm:$0xff] }
 0x147   : > { %v2844_v4 = vadd.f32 %v2843_v61, %v2755_v57  ;;  %2976 = vmatmul.bf16.gmra.mxu0 %v7340_v39  ;;  %696 = vst [vmem:[#allocation3 + $0x328] sm:$0xf] %v664_v0  ;;  %v7332_v39 = vor.u32 %v8846_v50, %v7331_v21  ;;  %v6830_v21 = vld [vmem:[%s9294_s8 + $0x140] sm:$0xff] }
 0x148   : > { %v6861_v50 = vld [vmem:[%s9294_s8 + $0x139] sm:$0xff] }
 0x149   : > { %v2933_v48 = vadd.f32 %v9770_v33, %v2844_v4  ;;  %v7376_v4 = vor.u32 %v8856_v38, %v7375_v47  ;;  %v666_v30 = vpack.c.bf16 %v6861_v50, %v6861_v50  ;;  %v7369_v47 = vld [vmem:[#allocation3 + $0x2fc] sm:$0xf0] }
 0x14a   : > { %v3023_v52 = vpop.f32.mrf.mxu1 }
 0x14b   : > { %v9809_v27 = vadd.f32 %v3021_v10, %v2933_v48  ;;  %v7341_v10 = vld [vmem:[#allocation3 + $0x2bc] sm:$0xf0]  ;;  %v6829_v48 = vld [vmem:[%s9294_s8 + $0x138] sm:$0xff]  ;;  %698 = vst [vmem:[#allocation3 + $0x370] sm:$0xf] %v666_v30 }
 0x14c   : > { %v2756_v3 = vpop.f32.mrf.mxu2  ;;  %v9814_v36 = vpop.f32.mrf.mxu0  ;;  %v7344_v59 = vor.u32 %v8843_v46, %v7341_v10  ;;  %v570_v31 = vpack.c.bf16 %v6829_v48, %v6829_v48  ;;  %v6893_v48 = vld [vmem:[%s9294_s8 + $0x13a] sm:$0xff] }
 0x14d   : > { %v2757_v33 = vadd.f32 %v2756_v3, %v2668_v22  ;;  %v571_v3 = vpack.c.bf16 %v6830_v21, %v6830_v21  ;;  %v6894_v21 = vld [vmem:[%s9294_s8 + $0x142] sm:$0xff] }
 0x14e   : > { %v2845_v32 = vpop.f32.mrf.mxu3  ;;  %602 = vst [vmem:[#allocation3 + $0x36c] sm:$0xf] %v570_v31  ;;  %v7411_v9 = vld [vmem:[#allocation3 + $0x328] sm:$0xf]  ;;  %v763_v31 = vpack.c.bf16 %v6894_v21, %v6894_v21 }
 0x14f   : > { %v2846_v42 = vadd.f32 %v2845_v32, %v2757_v33  ;;  %v8855_v32 = vld [vmem:[#allocation3 + $0x2f8] sm:$0xf0]  ;;  %603 = vst [vmem:[#allocation3 + $0x390] sm:$0xf] %v571_v3 }
 0x150   : > { %795 = vst [vmem:[#allocation3 + $0x398] sm:$0xf] %v763_v31 }
 0x151   : > { %2798 = vmatmul.bf16.gmra.mxu2 %v7332_v39  ;;  %v2935_v57 = vadd.f32 %v9785_v14, %v2846_v42  ;;  %v7367_v39 = vld [vmem:[#allocation3 + $0x2d8] sm:$0xf]  ;;  %508 = vst [vmem:[#allocation3 + $0x3d4] sm:$0xf] %v763_v31 }
 0x152   : > { %v3026_v61 = vpop.f32.mrf.mxu1 }
 0x153   : > { %2887 = vmatmul.bf16.gmra.mxu3 %v7336_v43  ;;  %v9819_v63 = vadd.f32 %v3023_v52, %v2935_v57  ;;  %v9126_v52 = vld [vmem:[%s10834_s3 + $0x30] sm:$0xff]  ;;  %v8851_v43 = vld [vmem:[#allocation3 + $0x2dc] sm:$0xf] }
 0x154   : > { %v2759_v16 = vpop.f32.mrf.mxu2  ;;  %v9821_v0 = vpop.f32.mrf.mxu0  ;;  %5842 = vmatpush.bf16.msra.mxu1 %v9126_v52  ;;  %v7372_v8 = vor.u32 %v8851_v43, %v7369_v47  ;;  %v8961_v52 = vld [vmem:[%s10832_s1 + $0x1c8] sm:$0xff]  ;;  %v6864_v47 = vld [vmem:[%s9294_s8 + $0x159] sm:$0xff] }
 0x155   : > { %v2760_v17 = vadd.f32 %v2759_v16, %v9645_v34  ;;  %3065 = vmatmul.bf16.gmra.mxu1 %v7344_v59  ;;  %v667_v34 = vpack.c.bf16 %v6862_v7, %v6862_v7  ;;  %3196 = vmatpush.bf16.msra.mxu3 %v8961_v52 }
 0x156   : > { %v2848_v14 = vpop.f32.mrf.mxu3 }
 0x157   : > { %v2849_v22 = vadd.f32 %v2848_v14, %v2760_v17  ;;  %2981 = vmatmul.bf16.gmra.mxu0 %v7376_v4  ;;  %699 = vst [vmem:[#allocation3 + $0x394] sm:$0xf] %v667_v34  ;;  %v7380_v17 = vor.u32 %v8852_v56, %v7377_v62  ;;  %v8864_v56 = vld [vmem:[#allocation3 + $0x340] sm:$0xf0] }
 0x159   : > { %v2938_v33 = vadd.f32 %v9798_v51, %v2849_v22  ;;  %v7368_v51 = vor.u32 %v8855_v32, %v7367_v39  ;;  %v8953_v22 = vld [vmem:[%s10832_s1 + $0x188] sm:$0xff]  ;;  %v6832_v39 = vld [vmem:[%s9294_s8 + $0x158] sm:$0xff] }
 0x15a   : > { %v3028_v46 = vpop.f32.mrf.mxu1  ;;  %3107 = vmatpush.bf16.msra.mxu2 %v8953_v22  ;;  %v6863_v32 = vld [vmem:[%s9294_s8 + $0x151] sm:$0xff]  ;;  %v573_v43 = vpack.c.bf16 %v6832_v39, %v6832_v39  ;;  %v6896_v39 = vld [vmem:[%s9294_s8 + $0x15a] sm:$0xff] }
 0x15b   : > { %v9832_v10 = vadd.f32 %v3026_v61, %v2938_v33  ;;  %v8865_v61 = vld [vmem:[#allocation3 + $0x348] sm:$0xf0]  ;;  %v6831_v33 = vld [vmem:[%s9294_s8 + $0x150] sm:$0xff] }
 0x15c   : > { %v2761_v42 = vpop.f32.mrf.mxu2  ;;  %v9834_v38 = vpop.f32.mrf.mxu0  ;;  %605 = vst [vmem:[#allocation3 + $0x3d8] sm:$0xf] %v573_v43 }
 0x15d   : > { %v2762_v57 = vadd.f32 %v2761_v42, %v9651_v45  ;;  %v7412_v45 = vor.u32 %v8865_v61, %v7411_v9  ;;  %v572_v42 = vpack.c.bf16 %v6831_v33, %v6831_v33  ;;  %v8860_v61 = vld [vmem:[#allocation3 + $0x324] sm:$0xf] }
 0x15e   : > { %v2850_v59 = vpop.f32.mrf.mxu3  ;;  %v8874_v31 = vld [vmem:[#allocation3 + $0x390] sm:$0xf0]  ;;  %v6895_v33 = vld [vmem:[%s9294_s8 + $0x152] sm:$0xff] }
 0x15f   : > { %v2851_v4 = vadd.f32 %v2850_v59, %v2762_v57  ;;  %v668_v57 = vpack.c.bf16 %v6863_v32, %v6863_v32  ;;  %604 = vst [vmem:[#allocation3 + $0x3b4] sm:$0xf] %v572_v42  ;;  %v7403_v59 = vld [vmem:[#allocation3 + $0x320] sm:$0xf]  ;;  %v765_v42 = vpack.c.bf16 %v6896_v39, %v6896_v39  ;;  %v7449_v39 = vld [vmem:[#allocation3 + $0x394] sm:$0xf0] }
 0x161   : > { %2803 = vmatmul.bf16.gmra.mxu2 %v7368_v51  ;;  %v2940_v16 = vadd.f32 %v9814_v36, %v2851_v4  ;;  %v762_v36 = vpack.c.bf16 %v6893_v48, %v6893_v48  ;;  %v669_v51 = vpack.c.bf16 %v6864_v47, %v6864_v47  ;;  %700 = vst [vmem:[#allocation3 + $0x3b8] sm:$0xf] %v668_v57 }
 0x162   : > { %v3031_v14 = vpop.f32.mrf.mxu1  ;;  %v7404_v48 = vor.u32 %v8864_v56, %v7403_v59  ;;  %797 = vst [vmem:[#allocation3 + $0x3e0] sm:$0xf] %v765_v42  ;;  %v6865_v59 = vld [vmem:[%s9294_s8 + $0x169] sm:$0xff] }
 0x163   : > { %2892 = vmatmul.bf16.gmra.mxu3 %v7372_v8  ;;  %v9840_v50 = vadd.f32 %v3028_v46, %v2940_v16  ;;  %794 = vst [vmem:[#allocation3 + $0x374] sm:$0xf] %v762_v36  ;;  %v8969_v8 = vld [vmem:[%s10832_s1 + $0x208] sm:$0xff]  ;;  %v7405_v16 = vld [vmem:[#allocation3 + $0x344] sm:$0xf0] }
 0x164   : > { %v2764_v3 = vpop.f32.mrf.mxu2  ;;  %v9848_v7 = vpop.f32.mrf.mxu0  ;;  %507 = vst [vmem:[#allocation3 + $0x3b0] sm:$0xf] %v762_v36  ;;  %3285 = vmatpush.bf16.msra.mxu0 %v8969_v8  ;;  %v7408_v52 = vor.u32 %v8860_v61, %v7405_v16  ;;  %v7447_v36 = vld [vmem:[#allocation3 + $0x370] sm:$0xf]  ;;  %v6866_v61 = vld [vmem:[%s9294_s8 + $0x171] sm:$0xff]  ;;  %v670_v16 = vpack.c.bf16 %v6865_v59, %v6865_v59 }
 0x165   : > { %v2765_v30 = vadd.f32 %v2764_v3, %v9659_v5  ;;  %3070 = vmatmul.bf16.gmra.mxu1 %v7380_v17  ;;  %701 = vst [vmem:[#allocation3 + $0x3dc] sm:$0xf] %v669_v51  ;;  %v7448_v32 = vor.u32 %v8874_v31, %v7447_v36  ;;  %v6833_v51 = vld [vmem:[%s9294_s8 + $0x168] sm:$0xff]  ;;  %v7441_v36 = vld [vmem:[#allocation3 + $0x38c] sm:$0xf0] }
 0x166   : > { %v2853_v34 = vpop.f32.mrf.mxu3  ;;  %v574_v8 = vpack.c.bf16 %v6833_v51, %v6833_v51  ;;  %510 = vst [vmem:[#allocation3 + $0x41c] sm:$0xf] %v765_v42  ;;  %v6897_v51 = vld [vmem:[%s9294_s8 + $0x16a] sm:$0xff] }
 0x167   : > { %v2854_v46 = vadd.f32 %v2853_v34, %v2765_v30  ;;  %2986 = vmatmul.bf16.gmra.mxu0 %v7412_v45  ;;  %v7413_v45 = vld [vmem:[#allocation3 + $0x34c] sm:$0xf0]  ;;  %702 = vst [vmem:[#allocation3 + $0x400] sm:$0xf] %v670_v16 }
 0x168   : > { %606 = vst [vmem:[#allocation3 + $0x3fc] sm:$0xf] %v574_v8  ;;  %v7483_v42 = vld [vmem:[#allocation3 + $0x3b8] sm:$0xf] }
 0x169   : > { %v2943_v5 = vadd.f32 %v9821_v0, %v2854_v46  ;;  %v764_v46 = vpack.c.bf16 %v6895_v33, %v6895_v33 }
 0x16a   : > { %v3033_v62 = vpop.f32.mrf.mxu1  ;;  %v8870_v33 = vld [vmem:[#allocation3 + $0x374] sm:$0xf] }
 0x16b   : > { %v9856_v4 = vadd.f32 %v3031_v14, %v2943_v5  ;;  %v8861_v14 = vld [vmem:[#allocation3 + $0x32c] sm:$0xf]  ;;  %796 = vst [vmem:[#allocation3 + $0x3bc] sm:$0xf] %v764_v46  ;;  %v6834_v5 = vld [vmem:[%s9294_s8 + $0x170] sm:$0xff] }
 0x16c   : > { %v2766_v9 = vpop.f32.mrf.mxu2  ;;  %v9861_v17 = vpop.f32.mrf.mxu0  ;;  %v7416_v30 = vor.u32 %v8861_v14, %v7413_v45  ;;  %509 = vst [vmem:[#allocation3 + $0x3f8] sm:$0xf] %v764_v46 }
 0x16d   : > { %v2767_v0 = vadd.f32 %v2766_v9, %v9671_v23  ;;  %v575_v9 = vpack.c.bf16 %v6834_v5, %v6834_v5  ;;  %v6898_v5 = vld [vmem:[%s9294_s8 + $0x172] sm:$0xff] }
 0x16e   : > { %v2855_v21 = vpop.f32.mrf.mxu3  ;;  %v767_v8 = vpack.c.bf16 %v6898_v5, %v6898_v5 }
 0x16f   : > { %v2856_v22 = vadd.f32 %v2855_v21, %v2767_v0  ;;  %v8873_v21 = vld [vmem:[#allocation3 + $0x388] sm:$0xf0]  ;;  %607 = vst [vmem:[#allocation3 + $0x420] sm:$0xf] %v575_v9 }
 0x170   : > { %799 = vst [vmem:[#allocation3 + $0x428] sm:$0xf] %v767_v8 }
 0x171   : > { %2808 = vmatmul.bf16.gmra.mxu2 %v7404_v48  ;;  %v2945_v3 = vadd.f32 %v9834_v38, %v2856_v22  ;;  %v7439_v48 = vld [vmem:[#allocation3 + $0x368] sm:$0xf]  ;;  %512 = vst [vmem:[#allocation3 + $0x464] sm:$0xf] %v767_v8 }
 0x172   : > { %v3036_v34 = vpop.f32.mrf.mxu1 }
 0x173   : > { %2897 = vmatmul.bf16.gmra.mxu3 %v7408_v52  ;;  %v9867_v23 = vadd.f32 %v3033_v62, %v2945_v3  ;;  %v9125_v62 = vld [vmem:[%s10834_s3 + $0x28] sm:$0xff]  ;;  %v8869_v52 = vld [vmem:[#allocation3 + $0x36c] sm:$0xf] }
 0x174   : > { %v2769_v43 = vpop.f32.mrf.mxu2  ;;  %v9869_v47 = vpop.f32.mrf.mxu0  ;;  %5843 = vmatpush.bf16.msra.mxu1 %v9125_v62  ;;  %v7444_v46 = vor.u32 %v8869_v52, %v7441_v36  ;;  %v8960_v62 = vld [vmem:[%s10832_s1 + $0x1c0] sm:$0xff]  ;;  %v6868_v36 = vld [vmem:[%s9294_s8 + $0x189] sm:$0xff] }
 0x175   : > { %v2770_v57 = vadd.f32 %v2769_v43, %v9682_v35  ;;  %3075 = vmatmul.bf16.gmra.mxu1 %v7416_v30  ;;  %v671_v35 = vpack.c.bf16 %v6866_v61, %v6866_v61  ;;  %3197 = vmatpush.bf16.msra.mxu3 %v8960_v62 }
 0x176   : > { %v2858_v38 = vpop.f32.mrf.mxu3 }
 0x177   : > { %v2859_v56 = vadd.f32 %v2858_v38, %v2770_v57  ;;  %2991 = vmatmul.bf16.gmra.mxu0 %v7448_v32  ;;  %703 = vst [vmem:[#allocation3 + $0x424] sm:$0xf] %v671_v35  ;;  %v7452_v57 = vor.u32 %v8870_v33, %v7449_v39  ;;  %v8882_v33 = vld [vmem:[#allocation3 + $0x3d0] sm:$0xf0] }
 0x179   : > { %v2948_v0 = vadd.f32 %v9848_v7, %v2859_v56  ;;  %v7440_v7 = vor.u32 %v8873_v21, %v7439_v48  ;;  %v8952_v56 = vld [vmem:[%s10832_s1 + $0x180] sm:$0xff]  ;;  %v6836_v48 = vld [vmem:[%s9294_s8 + $0x188] sm:$0xff] }
 0x17a   : > { %v3038_v14 = vpop.f32.mrf.mxu1  ;;  %3108 = vmatpush.bf16.msra.mxu2 %v8952_v56  ;;  %v6867_v21 = vld [vmem:[%s9294_s8 + $0x181] sm:$0xff]  ;;  %v577_v52 = vpack.c.bf16 %v6836_v48, %v6836_v48 }
 0x17b   : > { %v9880_v45 = vadd.f32 %v3036_v34, %v2948_v0  ;;  %v8883_v34 = vld [vmem:[#allocation3 + $0x3d8] sm:$0xf0]  ;;  %v6835_v0 = vld [vmem:[%s9294_s8 + $0x180] sm:$0xff] }
 0x17c   : > { %v2771_v22 = vpop.f32.mrf.mxu2  ;;  %v9882_v31 = vpop.f32.mrf.mxu0  ;;  %609 = vst [vmem:[#allocation3 + $0x468] sm:$0xf] %v577_v52 }
 0x17d   : > { %v2772_v3 = vadd.f32 %v2771_v22, %v9688_v58  ;;  %v7484_v58 = vor.u32 %v8883_v34, %v7483_v42  ;;  %v576_v22 = vpack.c.bf16 %v6835_v0, %v6835_v0  ;;  %v8878_v34 = vld [vmem:[#allocation3 + $0x3b4] sm:$0xf] }
 0x17e   : > { %v2860_v30 = vpop.f32.mrf.mxu3  ;;  %v8892_v8 = vld [vmem:[#allocation3 + $0x420] sm:$0xf0]  ;;  %v6899_v0 = vld [vmem:[%s9294_s8 + $0x182] sm:$0xff] }
 0x17f   : > { %v2861_v32 = vadd.f32 %v2860_v30, %v2772_v3  ;;  %v672_v3 = vpack.c.bf16 %v6867_v21, %v6867_v21  ;;  %608 = vst [vmem:[#allocation3 + $0x444] sm:$0xf] %v576_v22  ;;  %v7475_v30 = vld [vmem:[#allocation3 + $0x3b0] sm:$0xf]  ;;  %v768_v21 = vpack.c.bf16 %v6899_v0, %v6899_v0  ;;  %v8887_v0 = vld [vmem:[#allocation3 + $0x3fc] sm:$0xf] }
 0x181   : > { %2813 = vmatmul.bf16.gmra.mxu2 %v7440_v7  ;;  %v2950_v43 = vadd.f32 %v9861_v17, %v2861_v32  ;;  %v766_v17 = vpack.c.bf16 %v6897_v51, %v6897_v51  ;;  %v673_v7 = vpack.c.bf16 %v6868_v36, %v6868_v36  ;;  %704 = vst [vmem:[#allocation3 + $0x448] sm:$0xf] %v672_v3  ;;  %v6901_v3 = vld [vmem:[%s9294_s8 + $0x30] sm:$0xff] }
 0x182   : > { %v3041_v38 = vpop.f32.mrf.mxu1  ;;  %v7476_v51 = vor.u32 %v8882_v33, %v7475_v30  ;;  %800 = vst [vmem:[#allocation3 + $0x44c] sm:$0xf] %v768_v21  ;;  %v9124_v33 = vld [vmem:[%s10834_s3 + $0x20] sm:$0xff] }
 0x183   : > { %2902 = vmatmul.bf16.gmra.mxu3 %v7444_v46  ;;  %v9888_v59 = vadd.f32 %v3038_v14, %v2950_v43  ;;  %798 = vst [vmem:[#allocation3 + $0x404] sm:$0xf] %v766_v17  ;;  %v8968_v46 = vld [vmem:[%s10832_s1 + $0x200] sm:$0xff]  ;;  %v7477_v43 = vld [vmem:[#allocation3 + $0x3d4] sm:$0xf0]  ;;  %5844 = vmatpush.bf16.msra.mxu1 %v9124_v33 }
 0x184   : > { %v2774_v9 = vpop.f32.mrf.mxu2  ;;  %v9896_v61 = vpop.f32.mrf.mxu0  ;;  %511 = vst [vmem:[#allocation3 + $0x440] sm:$0xf] %v766_v17  ;;  %3286 = vmatpush.bf16.msra.mxu0 %v8968_v46  ;;  %v7480_v62 = vor.u32 %v8878_v34, %v7477_v43  ;;  %v7519_v17 = vld [vmem:[#allocation3 + $0x400] sm:$0xf]  ;;  %v835_v46 = vpack.c.bf16 %v6901_v3, %v6901_v3  ;;  %v6934_v34 = vld [vmem:[%s9294_s8 + $0x39] sm:$0xff] }
 0x185   : > { %v2775_v16 = vadd.f32 %v2774_v9, %v9696_v24  ;;  %3080 = vmatmul.bf16.gmra.mxu1 %v7452_v57  ;;  %705 = vst [vmem:[#allocation3 + $0x46c] sm:$0xf] %v673_v7  ;;  %v7520_v48 = vor.u32 %v8892_v8, %v7519_v17  ;;  %v6902_v7 = vld [vmem:[%s9294_s8 + $0x38] sm:$0xff] }
 0x186   : > { %v2863_v35 = vpop.f32.mrf.mxu3  ;;  %867 = vst [vmem:[#allocation3 + $0x18] sm:$0xf] %v835_v46 }
 0x187   : > { %v2864_v14 = vadd.f32 %v2863_v35, %v2775_v16  ;;  %2996 = vmatmul.bf16.gmra.mxu0 %v7484_v58  ;;  %v7485_v58 = vld [vmem:[#allocation3 + $0x3dc] sm:$0xf0] }
 0x188   : > { %v7555_v3 = vld [vmem:[#allocation3 + $0x448] sm:$0xf] }
 0x189   : > { %v2953_v24 = vadd.f32 %v9869_v47, %v2864_v14 }
 0x18a   : > { %v9904_v39 = vpop.f32.mrf.mxu1 }
 0x18b   : > { %v9906_v32 = vadd.f32 %v3041_v38, %v2953_v24  ;;  %v8879_v38 = vld [vmem:[#allocation3 + $0x3bc] sm:$0xf]  ;;  %v6933_v24 = vld [vmem:[%s9294_s8 + $0x31] sm:$0xff] }
 0x18c   : > { %v2776_v42 = vpop.f32.mrf.mxu2  ;;  %v9911_v57 = vpop.f32.mrf.mxu0  ;;  %v7488_v16 = vor.u32 %v8879_v38, %v7485_v58  ;;  %v931_v43 = vpack.c.bf16 %v6933_v24, %v6933_v24  ;;  %v7511_v58 = vld [vmem:[#allocation3 + $0x3f8] sm:$0xf] }
 0x18d   : > { %v2777_v47 = vadd.f32 %v2776_v42, %v9712_v53  ;;  %v6900_v53 = vld [vmem:[%s9294_s8 + $0x18a] sm:$0xff]  ;;  %v836_v42 = vpack.c.bf16 %v6902_v7, %v6902_v7  ;;  %v8901_v7 = vld [vmem:[#allocation3 + $0x468] sm:$0xf0] }
 0x18e   : > { %v2865_v5 = vpop.f32.mrf.mxu3  ;;  %v769_v14 = vpack.c.bf16 %v6900_v53, %v6900_v53  ;;  %963 = vst [vmem:[#allocation3 + $0x1c] sm:$0xf] %v931_v43  ;;  %v7513_v53 = vld [vmem:[#allocation3 + $0x41c] sm:$0xf0]  ;;  %v7556_v33 = vor.u32 %v8901_v7, %v7555_v3  ;;  %v7549_v3 = vld [vmem:[#allocation3 + $0x464] sm:$0xf0] }
 0x18f   : > { %v2866_v56 = vadd.f32 %v2865_v5, %v2777_v47  ;;  %v6965_v47 = vld [vmem:[%s9294_s8 + $0x32] sm:$0xff]  ;;  %868 = vst [vmem:[#allocation3 + $0x3c] sm:$0xf] %v836_v42 }
 0x190   : > { %801 = vst [vmem:[#allocation3 + $0x470] sm:$0xf] %v769_v14  ;;  %v1027_v38 = vpack.c.bf16 %v6965_v47, %v6965_v47  ;;  %v6903_v47 = vld [vmem:[%s9294_s8 + $0x48] sm:$0xff] }
 0x191   : > { %2818 = vmatmul.bf16.gmra.mxu2 %v7476_v51  ;;  %v9915_v9 = vadd.f32 %v9882_v31, %v2866_v56  ;;  %v6966_v51 = vld [vmem:[%s9294_s8 + $0x3a] sm:$0xff]  ;;  %v8891_v56 = vld [vmem:[#allocation3 + $0x418] sm:$0xf0] }
 0x192   : > { %v3046_v35 = vpop.f32.mrf.mxu1  ;;  %v1028_v17 = vpack.c.bf16 %v6966_v51, %v6966_v51  ;;  %v7512_v21 = vor.u32 %v8891_v56, %v7511_v58  ;;  %1059 = vst [vmem:[#allocation3 + $0x20] sm:$0xf] %v1027_v38  ;;  %v6935_v51 = vld [vmem:[%s9294_s8 + $0x49] sm:$0xff]  ;;  %v6936_v58 = vld [vmem:[%s9294_s8 + $0x51] sm:$0xff] }
 0x193   : > { %2907 = vmatmul.bf16.gmra.mxu3 %v7480_v62  ;;  %v933_v56 = vpack.c.bf16 %v6935_v51, %v6935_v51 }
 0x194   : > { %v2779_v22 = vpop.f32.mrf.mxu2  ;;  %v9919_v52 = vpop.f32.mrf.mxu0  ;;  %1060 = vst [vmem:[#allocation3 + $0x44] sm:$0xf] %v1028_v17  ;;  %v6967_v17 = vld [vmem:[%s9294_s8 + $0x4a] sm:$0xff] }
 0x195   : > { %v2780_v36 = vadd.f32 %v2779_v22, %v9723_v20  ;;  %3085 = vmatmul.bf16.gmra.mxu1 %v7488_v16  ;;  %v932_v20 = vpack.c.bf16 %v6934_v34, %v6934_v34  ;;  %v8888_v22 = vld [vmem:[#allocation3 + $0x404] sm:$0xf]  ;;  %965 = vst [vmem:[#allocation3 + $0x64] sm:$0xf] %v933_v56 }
 0x196   : > { %v2868_v31 = vpop.f32.mrf.mxu3 }
 0x197   : > { %v2869_v30 = vadd.f32 %v2868_v31, %v2780_v36  ;;  %3001 = vmatmul.bf16.gmra.mxu0 %v7520_v48  ;;  %964 = vst [vmem:[#allocation3 + $0x40] sm:$0xf] %v932_v20  ;;  %v7521_v36 = vld [vmem:[#allocation3 + $0x424] sm:$0xf0]  ;;  %v6904_v20 = vld [vmem:[%s9294_s8 + $0x50] sm:$0xff] }
 0x198   : > { %v838_v38 = vpack.c.bf16 %v6904_v20, %v6904_v20 }
 0x199   : > { %v2958_v5 = vadd.f32 %v9896_v61, %v2869_v30  ;;  %v7524_v30 = vor.u32 %v8888_v22, %v7521_v36 }
 0x19a   : > { %v9932_v62 = vpop.f32.mrf.mxu1  ;;  %870 = vst [vmem:[#allocation3 + $0x84] sm:$0xf] %v838_v38 }
 0x19b   : > { %v9934_v8 = vadd.f32 %v3046_v35, %v2958_v5  ;;  %v7516_v35 = vor.u32 %v8887_v0, %v7513_v53  ;;  %v934_v0 = vpack.c.bf16 %v6936_v58, %v6936_v58  ;;  %v8768_v20 = vld [vmem:[#allocation3 + $0x40] sm:$0xf0] }
 0x19c   : > { %v2781_v16 = vpop.f32.mrf.mxu2  ;;  %v9936_v48 = vpop.f32.mrf.mxu0 }
 0x19d   : > { %v2782_v61 = vadd.f32 %v2781_v16, %v9733_v49  ;;  %v6968_v16 = vld [vmem:[%s9294_s8 + $0x52] sm:$0xff]  ;;  %966 = vst [vmem:[#allocation3 + $0x88] sm:$0xf] %v934_v0  ;;  %v6906_v0 = vld [vmem:[%s9294_s8 + $0x68] sm:$0xff] }
 0x19e   : > { %v2870_v14 = vpop.f32.mrf.mxu3  ;;  %v1030_v22 = vpack.c.bf16 %v6968_v16, %v6968_v16  ;;  %v6905_v16 = vld [vmem:[%s9294_s8 + $0x60] sm:$0xff] }
 0x19f   : > { %v2871_v31 = vadd.f32 %v2870_v14, %v2782_v61  ;;  %v1029_v61 = vpack.c.bf16 %v6967_v17, %v6967_v17 }
 0x1a0   : > { %1062 = vst [vmem:[#allocation3 + $0x8c] sm:$0xf] %v1030_v22  ;;  %v6938_v22 = vld [vmem:[%s9294_s8 + $0x69] sm:$0xff] }
 0x1a1   : > { %2823 = vmatmul.bf16.gmra.mxu2 %v7512_v21  ;;  %v9940_v24 = vadd.f32 %v9911_v57, %v2871_v31  ;;  %v837_v57 = vpack.c.bf16 %v6903_v47, %v6903_v47  ;;  %v7547_v21 = vld [vmem:[#allocation3 + $0x440] sm:$0xf]  ;;  %1061 = vst [vmem:[#allocation3 + $0x68] sm:$0xf] %v1029_v61 }
 0x1a2   : > { %v3051_v49 = vpop.f32.mrf.mxu1  ;;  %v7031_v47 = vld [vmem:[#allocation3 + $0x20] sm:$0xf] }
 0x1a3   : > { %2912 = vmatmul.bf16.gmra.mxu3 %v7516_v35  ;;  %869 = vst [vmem:[#allocation3 + $0x60] sm:$0xf] %v837_v57  ;;  %v8896_v35 = vld [vmem:[#allocation3 + $0x444] sm:$0xf] }
 0x1a4   : > { %v2784_v46 = vpop.f32.mrf.mxu2  ;;  %v9942_v42 = vpop.f32.mrf.mxu0 }
 0x1a5   : > { %v2785_v34 = vadd.f32 %v2784_v46, %v9741_v18  ;;  %3090 = vmatmul.bf16.gmra.mxu1 %v7524_v30  ;;  %v8900_v18 = vld [vmem:[#allocation3 + $0x460] sm:$0xf0]  ;;  %v8897_v46 = vld [vmem:[#allocation3 + $0x44c] sm:$0xf] }
 0x1a6   : > { %v2873_v43 = vpop.f32.mrf.mxu3 }
 0x1a7   : > { %v2874_v5 = vadd.f32 %v2873_v43, %v2785_v34  ;;  %3006 = vmatmul.bf16.gmra.mxu0 %v7556_v33  ;;  %v7557_v34 = vld [vmem:[#allocation3 + $0x46c] sm:$0xf0] }
 0x1a9   : > { %v2963_v53 = vadd.f32 %v9919_v52, %v2874_v5  ;;  %v7548_v52 = vor.u32 %v8900_v18, %v7547_v21  ;;  %v7560_v5 = vor.u32 %v8897_v46, %v7557_v34  ;;  %v839_v21 = vpack.c.bf16 %v6905_v16, %v6905_v16  ;;  %v8767_v46 = vld [vmem:[#allocation3 + $0x38] sm:$0xf0] }
 0x1aa   : > { %v9952_v14 = vpop.f32.mrf.mxu1  ;;  %v840_v18 = vpack.c.bf16 %v6906_v0, %v6906_v0  ;;  %v7067_v0 = vld [vmem:[#allocation3 + $0x68] sm:$0xf] }
 0x1ab   : > { %v9954_v36 = vadd.f32 %v3051_v49, %v2963_v53  ;;  %v7552_v49 = vor.u32 %v8896_v35, %v7549_v3  ;;  %v6937_v53 = vld [vmem:[%s9294_s8 + $0x61] sm:$0xff]  ;;  %v936_v3 = vpack.c.bf16 %v6938_v22, %v6938_v22  ;;  %871 = vst [vmem:[#allocation3 + $0xa8] sm:$0xf] %v839_v21 }
 0x1ac   : > { %v2786_v31 = vpop.f32.mrf.mxu2  ;;  %v9956_v7 = vpop.f32.mrf.mxu0  ;;  %v6969_v35 = vld [vmem:[%s9294_s8 + $0x62] sm:$0xff]  ;;  %872 = vst [vmem:[#allocation3 + $0xcc] sm:$0xf] %v840_v18 }
 0x1ad   : > { %v2787_v30 = vadd.f32 %v2786_v31, %v9757_v54  ;;  %v7032_v54 = vor.u32 %v8768_v20, %v7031_v47  ;;  %v935_v31 = vpack.c.bf16 %v6937_v53, %v6937_v53  ;;  %v8763_v20 = vld [vmem:[#allocation3 + $0x1c] sm:$0xf]  ;;  %968 = vst [vmem:[#allocation3 + $0xd0] sm:$0xf] %v936_v3  ;;  %v6939_v3 = vld [vmem:[%s9294_s8 + $0x79] sm:$0xff] }
 0x1ae   : > { %v2875_v33 = vpop.f32.mrf.mxu3 }
 0x1af   : > { %v2876_v43 = vadd.f32 %v2875_v33, %v2787_v30  ;;  %v6970_v30 = vld [vmem:[%s9294_s8 + $0x6a] sm:$0xff]  ;;  %967 = vst [vmem:[#allocation3 + $0xac] sm:$0xf] %v935_v31  ;;  %v6907_v31 = vld [vmem:[%s9294_s8 + $0x78] sm:$0xff] }
 0x1b0   : > { %v7023_v33 = vld [vmem:[#allocation3 + $0x18] sm:$0xf] }
 0x1b1   : > { %2828 = vmatmul.bf16.gmra.mxu2 %v7548_v52  ;;  %v9960_v51 = vadd.f32 %v9936_v48, %v2876_v43  ;;  %v9123_v48 = vld [vmem:[%s10834_s3 + $0x18] sm:$0xff]  ;;  %v1031_v52 = vpack.c.bf16 %v6969_v35, %v6969_v35  ;;  %v1032_v43 = vpack.c.bf16 %v6970_v30, %v6970_v30  ;;  %v6908_v35 = vld [vmem:[%s9294_s8 + $0x80] sm:$0xff] }
 0x1b2   : > { %v3056_v57 = vpop.f32.mrf.mxu1  ;;  %5845 = vmatpush.bf16.msra.mxu1 %v9123_v48 }
 0x1b3   : > { %2917 = vmatmul.bf16.gmra.mxu3 %v7552_v49  ;;  %1063 = vst [vmem:[#allocation3 + $0xb0] sm:$0xf] %v1031_v52  ;;  %v842_v52 = vpack.c.bf16 %v6908_v35, %v6908_v35 }
 0x1b4   : > { %v2789_v38 = vpop.f32.mrf.mxu2  ;;  %v9962_v58 = vpop.f32.mrf.mxu0  ;;  %1064 = vst [vmem:[#allocation3 + $0xd4] sm:$0xf] %v1032_v43  ;;  %v6972_v43 = vld [vmem:[%s9294_s8 + $0x82] sm:$0xff] }
 0x1b5   : > { %v2790_v56 = vadd.f32 %v2789_v38, %v9768_v28  ;;  %3095 = vmatmul.bf16.gmra.mxu1 %v7560_v5  ;;  %v7025_v5 = vld [vmem:[#allocation3 + $0x3c] sm:$0xf0]  ;;  %874 = vst [vmem:[#allocation3 + $0x114] sm:$0xf] %v842_v52 }
 0x1b6   : > { %v2878_v17 = vpop.f32.mrf.mxu3  ;;  %v7028_v16 = vor.u32 %v8763_v20, %v7025_v5 }
 0x1b7   : > { %v2879_v61 = vadd.f32 %v2878_v17, %v2790_v56  ;;  %3287 = vmatmul.bf16.vlgmr.msra.gmra.mxu0 %v7032_v54 }
 0x1b9   : > { %v2968_v28 = vadd.f32 %v9942_v42, %v2879_v61  ;;  %v7024_v42 = vor.u32 %v8767_v46, %v7023_v33  ;;  %v6940_v33 = vld [vmem:[%s9294_s8 + $0x81] sm:$0xff] }
 0x1ba   : > { %v9975_v34 = vpop.f32.mrf.mxu1  ;;  %v6971_v46 = vld [vmem:[%s9294_s8 + $0x7a] sm:$0xff] }
 0x1bb   : > { %v9977_v49 = vadd.f32 %v3056_v57, %v2968_v28  ;;  %v8777_v57 = vld [vmem:[#allocation3 + $0x88] sm:$0xf0]  ;;  %v841_v28 = vpack.c.bf16 %v6907_v31, %v6907_v31  ;;  %v1033_v5 = vpack.c.bf16 %v6971_v46, %v6971_v46  ;;  %v7103_v35 = vld [vmem:[#allocation3 + $0xb0] sm:$0xf]  ;;  %v6909_v46 = vld [vmem:[%s9294_s8 + $0x90] sm:$0xff] }
 0x1bc   : > { %v2791_v47 = vpop.f32.mrf.mxu2  ;;  %v2974_v54 = vpop.f32.mrf.mxu0 }
 0x1bd   : > { %v2792_v38 = vadd.f32 %v2791_v47, %v9783_v2  ;;  %v7068_v2 = vor.u32 %v8777_v57, %v7067_v0  ;;  %v938_v47 = vpack.c.bf16 %v6940_v33, %v6940_v33  ;;  %873 = vst [vmem:[#allocation3 + $0xf0] sm:$0xf] %v841_v28  ;;  %v8772_v0 = vld [vmem:[#allocation3 + $0x64] sm:$0xf]  ;;  %v7061_v57 = vld [vmem:[#allocation3 + $0x84] sm:$0xf0] }
 0x1be   : > { %v2880_v56 = vpop.f32.mrf.mxu3  ;;  %1065 = vst [vmem:[#allocation3 + $0xf8] sm:$0xf] %v1033_v5  ;;  %v7064_v31 = vor.u32 %v8772_v0, %v7061_v57  ;;  %v843_v5 = vpack.c.bf16 %v6909_v46, %v6909_v46  ;;  %v6974_v57 = vld [vmem:[%s9294_s8 + $0x9a] sm:$0xff] }
 0x1bf   : > { %v2881_v17 = vadd.f32 %v2880_v56, %v2792_v38  ;;  %v7059_v38 = vld [vmem:[#allocation3 + $0x60] sm:$0xf]  ;;  %v1034_v56 = vpack.c.bf16 %v6972_v43, %v6972_v43  ;;  %970 = vst [vmem:[#allocation3 + $0x118] sm:$0xf] %v938_v47  ;;  %v6910_v43 = vld [vmem:[%s9294_s8 + $0x98] sm:$0xff] }
 0x1c0   : > { %v6941_v47 = vld [vmem:[%s9294_s8 + $0x91] sm:$0xff]  ;;  %875 = vst [vmem:[#allocation3 + $0x138] sm:$0xf] %v843_v5 }
 0x1c1   : > { %3109 = vmatmul.bf16.vlgmr.msra.gmra.mxu2 %v7024_v42  ;;  %v9981_v53 = vadd.f32 %v9956_v7, %v2881_v17  ;;  %v937_v7 = vpack.c.bf16 %v6939_v3, %v6939_v3  ;;  %v8776_v42 = vld [vmem:[#allocation3 + $0x80] sm:$0xf0]  ;;  %1066 = vst [vmem:[#allocation3 + $0x11c] sm:$0xf] %v1034_v56  ;;  %v939_v56 = vpack.c.bf16 %v6941_v47, %v6941_v47 }
 0x1c2   : > { %v3061_v61 = vpop.f32.mrf.mxu1 }
 0x1c3   : > { %3198 = vmatmul.bf16.vlgmr.msra.gmra.mxu3 %v7028_v16  ;;  %969 = vst [vmem:[#allocation3 + $0xf4] sm:$0xf] %v937_v7 }
 0x1c4   : > { %v2794_v48 = vpop.f32.mrf.mxu2  ;;  %v2977_v21 = vpop.f32.mrf.mxu0  ;;  %971 = vst [vmem:[#allocation3 + $0x13c] sm:$0xf] %v939_v56 }
 0x1c5   : > { %v2795_v18 = vadd.f32 %v2794_v48, %v9632_v13 }
 0x1c6   : > { %v2883_v22 = vpop.f32.mrf.mxu3 }
 0x1c7   : > { %v2884_v30 = vadd.f32 %v2883_v22, %v2795_v18  ;;  %3292 = vmatmul.bf16.gmra.mxu0 %v7068_v2  ;;  %v7060_v18 = vor.u32 %v8776_v42, %v7059_v38  ;;  %v844_v38 = vpack.c.bf16 %v6910_v43, %v6910_v43  ;;  %v6942_v42 = vld [vmem:[%s9294_s8 + $0x99] sm:$0xff] }
 0x1c8   : > { %v940_v0 = vpack.c.bf16 %v6942_v42, %v6942_v42 }
 0x1c9   : > { %v2973_v20 = vadd.f32 %v9962_v58, %v2884_v30  ;;  %876 = vst [vmem:[#allocation3 + $0x15c] sm:$0xf] %v844_v38 }
 0x1ca   : > { %v9991_v13 = vpop.f32.mrf.mxu1  ;;  %972 = vst [vmem:[#allocation3 + $0x160] sm:$0xf] %v940_v0  ;;  %v6911_v0 = vld [vmem:[%s9294_s8 + $0xa8] sm:$0xff] }
 0x1cb   : > { %v9993_v17 = vadd.f32 %v3061_v61, %v2973_v20  ;;  %v8786_v61 = vld [vmem:[#allocation3 + $0xd0] sm:$0xf0] }
 0x1cc   : > { %v2796_v16 = vpop.f32.mrf.mxu2  ;;  %v2979_v2 = vpop.f32.mrf.mxu0  ;;  %v7104_v28 = vor.u32 %v8786_v61, %v7103_v35 }
 0x1cd   : > { %v2797_v48 = vadd.f32 %v2796_v16, %v9640_v26  ;;  %v6973_v16 = vld [vmem:[%s9294_s8 + $0x92] sm:$0xff] }
 0x1ce   : > { %v2885_v58 = vpop.f32.mrf.mxu3 }
 0x1cf   : > { %v2886_v22 = vadd.f32 %v2885_v58, %v2797_v48  ;;  %v8785_v58 = vld [vmem:[#allocation3 + $0xc8] sm:$0xf0] }
 0x1d1   : > { %3114 = vmatmul.bf16.gmra.mxu2 %v7060_v18  ;;  %v9996_v3 = vadd.f32 %v2974_v54, %v2886_v22  ;;  %v9122_v54 = vld [vmem:[%s10834_s3 + $0x10] sm:$0xff]  ;;  %v7095_v18 = vld [vmem:[#allocation3 + $0xa8] sm:$0xf] }
 0x1d2   : > { %v3066_v30 = vpop.f32.mrf.mxu1  ;;  %5846 = vmatpush.bf16.msra.mxu1 %v9122_v54 }
 0x1d3   : > { %3203 = vmatmul.bf16.gmra.mxu3 %v7064_v31  ;;  %v1036_v31 = vpack.c.bf16 %v6974_v57, %v6974_v57  ;;  %v6912_v57 = vld [vmem:[%s9294_s8 + $0xb0] sm:$0xff] }
 0x1d4   : > { %v2799_v26 = vpop.f32.mrf.mxu2  ;;  %v2982_v52 = vpop.f32.mrf.mxu0 }
 0x1d5   : > { %v2800_v33 = vadd.f32 %v2799_v26, %v9648_v41  ;;  %v1035_v41 = vpack.c.bf16 %v6973_v16, %v6973_v16  ;;  %v7097_v26 = vld [vmem:[#allocation3 + $0xcc] sm:$0xf0]  ;;  %1068 = vst [vmem:[#allocation3 + $0x164] sm:$0xf] %v1036_v31  ;;  %v6944_v31 = vld [vmem:[%s9294_s8 + $0xb1] sm:$0xff] }
 0x1d6   : > { %v2888_v7 = vpop.f32.mrf.mxu3 }
 0x1d7   : > { %v2889_v20 = vadd.f32 %v2888_v7, %v2800_v33  ;;  %3297 = vmatmul.bf16.gmra.mxu0 %v7104_v28  ;;  %v8781_v28 = vld [vmem:[#allocation3 + $0xac] sm:$0xf]  ;;  %1067 = vst [vmem:[#allocation3 + $0x140] sm:$0xf] %v1035_v41 }
 0x1d8   : > { %v7100_v47 = vor.u32 %v8781_v28, %v7097_v26  ;;  %v6976_v28 = vld [vmem:[%s9294_s8 + $0xb2] sm:$0xff]  ;;  %v942_v26 = vpack.c.bf16 %v6944_v31, %v6944_v31 }
 0x1d9   : > { %v2978_v48 = vadd.f32 %v2977_v21, %v2889_v20  ;;  %v7096_v21 = vor.u32 %v8785_v58, %v7095_v18  ;;  %v7139_v20 = vld [vmem:[#allocation3 + $0xf8] sm:$0xf]  ;;  %v845_v18 = vpack.c.bf16 %v6911_v0, %v6911_v0  ;;  %v846_v58 = vpack.c.bf16 %v6912_v57, %v6912_v57 }
 0x1da   : > { %v10008_v22 = vpop.f32.mrf.mxu1  ;;  %974 = vst [vmem:[#allocation3 + $0x1a8] sm:$0xf] %v942_v26  ;;  %v6913_v26 = vld [vmem:[%s9294_s8 + $0xc0] sm:$0xff] }
 0x1db   : > { %v10010_v35 = vadd.f32 %v3066_v30, %v2978_v48  ;;  %v8795_v30 = vld [vmem:[#allocation3 + $0x118] sm:$0xf0]  ;;  %877 = vst [vmem:[#allocation3 + $0x180] sm:$0xf] %v845_v18 }
 0x1dc   : > { %v2801_v61 = vpop.f32.mrf.mxu2  ;;  %v2984_v33 = vpop.f32.mrf.mxu0  ;;  %v6943_v48 = vld [vmem:[%s9294_s8 + $0xa9] sm:$0xff]  ;;  %878 = vst [vmem:[#allocation3 + $0x1a4] sm:$0xf] %v846_v58 }
 0x1dd   : > { %v2802_v7 = vadd.f32 %v2801_v61, %v9654_v60  ;;  %v7140_v60 = vor.u32 %v8795_v30, %v7139_v20  ;;  %v6975_v61 = vld [vmem:[%s9294_s8 + $0xaa] sm:$0xff] }
 0x1de   : > { %v2890_v46 = vpop.f32.mrf.mxu3 }
 0x1df   : > { %v2891_v43 = vadd.f32 %v2890_v46, %v2802_v7  ;;  %v7131_v46 = vld [vmem:[#allocation3 + $0xf0] sm:$0xf] }
 0x1e1   : > { %3119 = vmatmul.bf16.gmra.mxu2 %v7096_v21  ;;  %v10013_v54 = vadd.f32 %v2979_v2, %v2891_v43  ;;  %v941_v2 = vpack.c.bf16 %v6943_v48, %v6943_v48  ;;  %v1037_v21 = vpack.c.bf16 %v6975_v61, %v6975_v61  ;;  %v8794_v43 = vld [vmem:[#allocation3 + $0x110] sm:$0xf0] }
 0x1e2   : > { %v3071_v5 = vpop.f32.mrf.mxu1  ;;  %v7132_v0 = vor.u32 %v8794_v43, %v7131_v46  ;;  %v847_v43 = vpack.c.bf16 %v6913_v26, %v6913_v26 }
 0x1e3   : > { %3208 = vmatmul.bf16.gmra.mxu3 %v7100_v47  ;;  %973 = vst [vmem:[#allocation3 + $0x184] sm:$0xf] %v941_v2 }
 0x1e4   : > { %v2804_v38 = vpop.f32.mrf.mxu2  ;;  %v2987_v42 = vpop.f32.mrf.mxu0  ;;  %1069 = vst [vmem:[#allocation3 + $0x188] sm:$0xf] %v1037_v21  ;;  %v6945_v21 = vld [vmem:[%s9294_s8 + $0xc1] sm:$0xff] }
 0x1e5   : > { %v2805_v56 = vadd.f32 %v2804_v38, %v9668_v19  ;;  %v1038_v19 = vpack.c.bf16 %v6976_v28, %v6976_v28  ;;  %v7133_v38 = vld [vmem:[#allocation3 + $0x114] sm:$0xf0]  ;;  %879 = vst [vmem:[#allocation3 + $0x1c8] sm:$0xf] %v847_v43 }
 0x1e6   : > { %v2893_v16 = vpop.f32.mrf.mxu3 }
 0x1e7   : > { %v2894_v41 = vadd.f32 %v2893_v16, %v2805_v56  ;;  %3302 = vmatmul.bf16.gmra.mxu0 %v7140_v60  ;;  %v8790_v60 = vld [vmem:[#allocation3 + $0xf4] sm:$0xf]  ;;  %1070 = vst [vmem:[#allocation3 + $0x1ac] sm:$0xf] %v1038_v19 }
 0x1e8   : > { %v7136_v48 = vor.u32 %v8790_v60, %v7133_v38  ;;  %v943_v60 = vpack.c.bf16 %v6945_v21, %v6945_v21  ;;  %v6977_v38 = vld [vmem:[%s9294_s8 + $0xc2] sm:$0xff] }
 0x1e9   : > { %v2983_v7 = vadd.f32 %v2982_v52, %v2894_v41  ;;  %v7175_v41 = vld [vmem:[#allocation3 + $0x140] sm:$0xf] }
 0x1ea   : > { %v10022_v47 = vpop.f32.mrf.mxu1  ;;  %975 = vst [vmem:[#allocation3 + $0x1cc] sm:$0xf] %v943_v60 }
 0x1eb   : > { %v10024_v20 = vadd.f32 %v3071_v5, %v2983_v7  ;;  %v8804_v5 = vld [vmem:[#allocation3 + $0x160] sm:$0xf0]  ;;  %v6914_v7 = vld [vmem:[%s9294_s8 + $0xc8] sm:$0xff]  ;;  %v7211_v43 = vld [vmem:[#allocation3 + $0x188] sm:$0xf] }
 0x1ec   : > { %v2806_v30 = vpop.f32.mrf.mxu2  ;;  %v2989_v56 = vpop.f32.mrf.mxu0  ;;  %v7176_v31 = vor.u32 %v8804_v5, %v7175_v41  ;;  %v848_v19 = vpack.c.bf16 %v6914_v7, %v6914_v7 }
 0x1ed   : > { %v2807_v16 = vadd.f32 %v2806_v30, %v9677_v15  ;;  %v6946_v30 = vld [vmem:[%s9294_s8 + $0xc9] sm:$0xff] }
 0x1ee   : > { %v2895_v52 = vpop.f32.mrf.mxu3  ;;  %880 = vst [vmem:[#allocation3 + $0x1ec] sm:$0xf] %v848_v19 }
 0x1ef   : > { %v2896_v57 = vadd.f32 %v2895_v52, %v2807_v16  ;;  %v944_v16 = vpack.c.bf16 %v6946_v30, %v6946_v30 }
 0x1f1   : > { %3124 = vmatmul.bf16.gmra.mxu2 %v7132_v0  ;;  %v10027_v18 = vadd.f32 %v2984_v33, %v2896_v57  ;;  %v9121_v33 = vld [vmem:[%s10834_s3 + $0x8] sm:$0xff]  ;;  %976 = vst [vmem:[#allocation3 + $0x1f0] sm:$0xf] %v944_v16 }
 0x1f2   : > { %v3076_v58 = vpop.f32.mrf.mxu1  ;;  %v6978_v0 = vld [vmem:[%s9294_s8 + $0xca] sm:$0xff]  ;;  %5847 = vmatpush.bf16.msra.mxu1 %v9121_v33 }
 0x1f3   : > { %3213 = vmatmul.bf16.gmra.mxu3 %v7136_v48  ;;  %v7167_v57 = vld [vmem:[#allocation3 + $0x138] sm:$0xf]  ;;  %v8803_v48 = vld [vmem:[#allocation3 + $0x158] sm:$0xf0]  ;;  %v1040_v5 = vpack.c.bf16 %v6978_v0, %v6978_v0 }
 0x1f4   : > { %v2809_v15 = vpop.f32.mrf.mxu2  ;;  %v2992_v2 = vpop.f32.mrf.mxu0 }
 0x1f5   : > { %v2810_v61 = vadd.f32 %v2809_v15, %v9685_v55  ;;  %v1039_v55 = vpack.c.bf16 %v6977_v38, %v6977_v38  ;;  %1072 = vst [vmem:[#allocation3 + $0x1f4] sm:$0xf] %v1040_v5 }
 0x1f6   : > { %v2898_v28 = vpop.f32.mrf.mxu3 }
 0x1f7   : > { %v2899_v46 = vadd.f32 %v2898_v28, %v2810_v61  ;;  %3307 = vmatmul.bf16.gmra.mxu0 %v7176_v31  ;;  %v8799_v61 = vld [vmem:[#allocation3 + $0x13c] sm:$0xf]  ;;  %v7169_v28 = vld [vmem:[#allocation3 + $0x15c] sm:$0xf0]  ;;  %1071 = vst [vmem:[#allocation3 + $0x1d0] sm:$0xf] %v1039_v55 }
 0x1f8   : > { %v7172_v33 = vor.u32 %v8799_v61, %v7169_v28  ;;  %v6916_v55 = vld [vmem:[%s9294_s8 + $0xe0] sm:$0xff] }
 0x1f9   : > { %v2988_v52 = vadd.f32 %v2987_v42, %v2899_v46  ;;  %v7168_v42 = vor.u32 %v8803_v48, %v7167_v57  ;;  %v6947_v57 = vld [vmem:[%s9294_s8 + $0xd9] sm:$0xff]  ;;  %v6948_v61 = vld [vmem:[%s9294_s8 + $0xe1] sm:$0xff] }
 0x1fa   : > { %v10039_v41 = vpop.f32.mrf.mxu1  ;;  %v6979_v28 = vld [vmem:[%s9294_s8 + $0xda] sm:$0xff] }
 0x1fb   : > { %v10041_v31 = vadd.f32 %v3076_v58, %v2988_v52  ;;  %v8813_v58 = vld [vmem:[#allocation3 + $0x1a8] sm:$0xf0] }
 0x1fc   : > { %v2811_v15 = vpop.f32.mrf.mxu2  ;;  %v2994_v26 = vpop.f32.mrf.mxu0  ;;  %v6915_v52 = vld [vmem:[%s9294_s8 + $0xd8] sm:$0xff] }
 0x1fd   : > { %v2812_v7 = vadd.f32 %v2811_v15, %v9691_v12  ;;  %v7212_v12 = vor.u32 %v8813_v58, %v7211_v43  ;;  %v849_v5 = vpack.c.bf16 %v6915_v52, %v6915_v52  ;;  %v850_v15 = vpack.c.bf16 %v6916_v55, %v6916_v55  ;;  %v8812_v43 = vld [vmem:[#allocation3 + $0x1a0] sm:$0xf0] }
 0x1fe   : > { %v2900_v21 = vpop.f32.mrf.mxu3 }
 0x1ff   : > { %v2901_v46 = vadd.f32 %v2900_v21, %v2812_v7  ;;  %v6980_v7 = vld [vmem:[%s9294_s8 + $0xe2] sm:$0xff]  ;;  %881 = vst [vmem:[#allocation3 + $0x210] sm:$0xf] %v849_v5 }
 0x200   : > { %882 = vst [vmem:[#allocation3 + $0x234] sm:$0xf] %v850_v15  ;;  %v7247_v15 = vld [vmem:[#allocation3 + $0x1d0] sm:$0xf] }
 0x201   : > { %3129 = vmatmul.bf16.gmra.mxu2 %v7168_v42  ;;  %v10044_v19 = vadd.f32 %v2989_v56, %v2901_v46  ;;  %v945_v56 = vpack.c.bf16 %v6947_v57, %v6947_v57  ;;  %v946_v42 = vpack.c.bf16 %v6948_v61, %v6948_v61  ;;  %v1041_v46 = vpack.c.bf16 %v6979_v28, %v6979_v28 }
 0x202   : > { %v3081_v30 = vpop.f32.mrf.mxu1 }
 0x203   : > { %3218 = vmatmul.bf16.gmra.mxu3 %v7172_v33  ;;  %v7203_v33 = vld [vmem:[#allocation3 + $0x180] sm:$0xf]  ;;  %977 = vst [vmem:[#allocation3 + $0x214] sm:$0xf] %v945_v56 }
 0x204   : > { %v2814_v60 = vpop.f32.mrf.mxu2  ;;  %v2997_v38 = vpop.f32.mrf.mxu0  ;;  %978 = vst [vmem:[#allocation3 + $0x238] sm:$0xf] %v946_v42  ;;  %v7204_v57 = vor.u32 %v8812_v43, %v7203_v33  ;;  %v6918_v33 = vld [vmem:[%s9294_s8 + $0xf8] sm:$0xff] }
 0x205   : > { %v2815_v16 = vadd.f32 %v2814_v60, %v9709_v40  ;;  %v1042_v40 = vpack.c.bf16 %v6980_v7, %v6980_v7  ;;  %1073 = vst [vmem:[#allocation3 + $0x218] sm:$0xf] %v1041_v46  ;;  %v6917_v46 = vld [vmem:[%s9294_s8 + $0xf0] sm:$0xff] }
 0x206   : > { %v2903_v0 = vpop.f32.mrf.mxu3  ;;  %v6949_v43 = vld [vmem:[%s9294_s8 + $0xf1] sm:$0xff] }
 0x207   : > { %v2904_v48 = vadd.f32 %v2903_v0, %v2815_v16  ;;  %3312 = vmatmul.bf16.gmra.mxu0 %v7212_v12  ;;  %v8808_v16 = vld [vmem:[#allocation3 + $0x184] sm:$0xf]  ;;  %v7205_v0 = vld [vmem:[#allocation3 + $0x1a4] sm:$0xf0]  ;;  %1074 = vst [vmem:[#allocation3 + $0x23c] sm:$0xf] %v1042_v40 }
 0x208   : > { %v7208_v5 = vor.u32 %v8808_v16, %v7205_v0  ;;  %v852_v16 = vpack.c.bf16 %v6918_v33, %v6918_v33  ;;  %v6950_v0 = vld [vmem:[%s9294_s8 + $0xf9] sm:$0xff] }
 0x209   : > { %v2993_v21 = vadd.f32 %v2992_v2, %v2904_v48  ;;  %v7241_v33 = vld [vmem:[#allocation3 + $0x1ec] sm:$0xf0] }
 0x20a   : > { %v10053_v58 = vpop.f32.mrf.mxu1  ;;  %884 = vst [vmem:[#allocation3 + $0x27c] sm:$0xf] %v852_v16 }
 0x20b   : > { %v10055_v60 = vadd.f32 %v3081_v30, %v2993_v21  ;;  %v8822_v30 = vld [vmem:[#allocation3 + $0x1f0] sm:$0xf0] }
 0x20c   : > { %v2816_v12 = vpop.f32.mrf.mxu2  ;;  %v2999_v52 = vpop.f32.mrf.mxu0  ;;  %v7248_v28 = vor.u32 %v8822_v30, %v7247_v15  ;;  %v7239_v15 = vld [vmem:[#allocation3 + $0x1c8] sm:$0xf]  ;;  %v8821_v30 = vld [vmem:[#allocation3 + $0x1e8] sm:$0xf0] }
 0x20d   : > { %v2817_v55 = vadd.f32 %v2816_v12, %v9718_v6  ;;  %v851_v12 = vpack.c.bf16 %v6917_v46, %v6917_v46  ;;  %v8817_v46 = vld [vmem:[#allocation3 + $0x1cc] sm:$0xf] }
 0x20e   : > { %v2905_v2 = vpop.f32.mrf.mxu3  ;;  %v8831_v16 = vld [vmem:[#allocation3 + $0x238] sm:$0xf0] }
 0x20f   : > { %v2906_v48 = vadd.f32 %v2905_v2, %v2817_v55  ;;  %v947_v55 = vpack.c.bf16 %v6949_v43, %v6949_v43  ;;  %v948_v2 = vpack.c.bf16 %v6950_v0, %v6950_v0  ;;  %883 = vst [vmem:[#allocation3 + $0x258] sm:$0xf] %v851_v12  ;;  %v7240_v0 = vor.u32 %v8821_v30, %v7239_v15  ;;  %v7275_v30 = vld [vmem:[#allocation3 + $0x210] sm:$0xf] }
 0x210   : > { %v7244_v12 = vor.u32 %v8817_v46, %v7241_v33  ;;  %v6919_v46 = vld [vmem:[%s9294_s8 + $0x108] sm:$0xff]  ;;  %v6920_v33 = vld [vmem:[%s9294_s8 + $0x110] sm:$0xff] }
 0x211   : > { %3134 = vmatmul.bf16.gmra.mxu2 %v7204_v57  ;;  %v10058_v61 = vadd.f32 %v2994_v26, %v2906_v48  ;;  %v9120_v26 = vld [vmem:[%s10834_s3] sm:$0xff]  ;;  %v6981_v57 = vld [vmem:[%s9294_s8 + $0xf2] sm:$0xff]  ;;  %979 = vst [vmem:[#allocation3 + $0x25c] sm:$0xf] %v947_v55 }
 0x212   : > { %v3086_v56 = vpop.f32.mrf.mxu1  ;;  %v6982_v48 = vld [vmem:[%s9294_s8 + $0xfa] sm:$0xff]  ;;  %5848 = vmatpush.bf16.msra.mxu1 %v9120_v26  ;;  %980 = vst [vmem:[#allocation3 + $0x280] sm:$0xf] %v948_v2 }
 0x213   : > { %3223 = vmatmul.bf16.gmra.mxu3 %v7208_v5 }
 0x214   : > { %v2819_v6 = vpop.f32.mrf.mxu2  ;;  %v3002_v7 = vpop.f32.mrf.mxu0 }
 0x215   : > { %v2820_v42 = vadd.f32 %v2819_v6, %v9730_v29  ;;  %v1043_v29 = vpack.c.bf16 %v6981_v57, %v6981_v57  ;;  %v7283_v57 = vld [vmem:[#allocation3 + $0x218] sm:$0xf] }
 0x216   : > { %v2908_v21 = vpop.f32.mrf.mxu3  ;;  %v7284_v55 = vor.u32 %v8831_v16, %v7283_v57  ;;  %v6984_v57 = vld [vmem:[%s9294_s8 + $0x112] sm:$0xff] }
 0x217   : > { %v2909_v40 = vadd.f32 %v2908_v21, %v2820_v42  ;;  %3317 = vmatmul.bf16.gmra.mxu0 %v7248_v28  ;;  %v1044_v28 = vpack.c.bf16 %v6982_v48, %v6982_v48  ;;  %1075 = vst [vmem:[#allocation3 + $0x260] sm:$0xf] %v1043_v29 }
 0x219   : > { %v2998_v5 = vadd.f32 %v2997_v38, %v2909_v40  ;;  %1076 = vst [vmem:[#allocation3 + $0x284] sm:$0xf] %v1044_v28  ;;  %v8830_v28 = vld [vmem:[#allocation3 + $0x230] sm:$0xf0] }
 0x21a   : > { %v10070_v6 = vpop.f32.mrf.mxu1 }
 0x21b   : > { %10837 = vst [vmem:[#allocation4_spill] sm:$0xff] %v10070_v6  ;;  %v10072_v42 = vadd.f32 %v3086_v56, %v2998_v5  ;;  %v8826_v6 = vld [vmem:[#allocation3 + $0x214] sm:$0xf] }
 0x21c   : > { %v2821_v21 = vpop.f32.mrf.mxu2  ;;  %v3004_v38 = vpop.f32.mrf.mxu0 }
 0x21d   : > { %v2822_v43 = vadd.f32 %v2821_v21, %v9736_v1 }
 0x21e   : > { %v2910_v40 = vpop.f32.mrf.mxu3 }
 0x21f   : > { %v2911_v26 = vadd.f32 %v2910_v40, %v2822_v43  ;;  %v853_v43 = vpack.c.bf16 %v6919_v46, %v6919_v46  ;;  %v6952_v40 = vld [vmem:[%s9294_s8 + $0x111] sm:$0xff] }
 0x221   : > { %3139 = vmatmul.bf16.gmra.mxu2 %v7240_v0  ;;  %v10075_v56 = vadd.f32 %v2999_v52, %v2911_v26  ;;  %v6951_v52 = vld [vmem:[%s9294_s8 + $0x109] sm:$0xff]  ;;  %v854_v0 = vpack.c.bf16 %v6920_v33, %v6920_v33  ;;  %885 = vst [vmem:[#allocation3 + $0x2a0] sm:$0xf] %v853_v43 }
 0x222   : > { %v3091_v1 = vpop.f32.mrf.mxu1  ;;  %v949_v26 = vpack.c.bf16 %v6951_v52, %v6951_v52 }
 0x223   : > { %10838 = vst [vmem:[#allocation5_spill] sm:$0xff] %v10075_v56  ;;  %3228 = vmatmul.bf16.gmra.mxu3 %v7244_v12  ;;  %v6983_v12 = vld [vmem:[%s9294_s8 + $0x10a] sm:$0xff] }
 0x224   : > { %v2824_v2 = vpop.f32.mrf.mxu2  ;;  %v3007_v15 = vpop.f32.mrf.mxu0  ;;  %886 = vst [vmem:[#allocation3 + $0x2c4] sm:$0xf] %v854_v0 }
 0x225   : > { %v2825_v48 = vadd.f32 %v2824_v2, %v9754_v37  ;;  %v950_v37 = vpack.c.bf16 %v6952_v40, %v6952_v40  ;;  %981 = vst [vmem:[#allocation3 + $0x2a4] sm:$0xf] %v949_v26 }
 0x226   : > { %v2913_v5 = vpop.f32.mrf.mxu3 }
 0x227   : > { %v2914_v29 = vadd.f32 %v2913_v5, %v2825_v48  ;;  %3322 = vmatmul.bf16.gmra.mxu0 %v7284_v55  ;;  %v7277_v48 = vld [vmem:[#allocation3 + $0x234] sm:$0xf0]  ;;  %v1045_v55 = vpack.c.bf16 %v6983_v12, %v6983_v12  ;;  %982 = vst [vmem:[#allocation3 + $0x2c8] sm:$0xf] %v950_v37 }
 0x228   : > { %v7280_v52 = vor.u32 %v8826_v6, %v7277_v48 }
 0x229   : > { %v3003_v21 = vadd.f32 %v3002_v7, %v2914_v29  ;;  %v7276_v7 = vor.u32 %v8830_v28, %v7275_v30  ;;  %v1046_v29 = vpack.c.bf16 %v6984_v57, %v6984_v57  ;;  %1077 = vst [vmem:[#allocation3 + $0x2a8] sm:$0xf] %v1045_v55  ;;  %v7895_v30 = vld [vmem:[#allocation3] sm:$0xf]  ;;  %v8980_v28 = vld [vmem:[#allocation3 + $0x20] sm:$0xf0] }
 0x22a   : > { %v10087_v46 = vpop.f32.mrf.mxu1  ;;  %v7896_v12 = vor.u32 %v8980_v28, %v7895_v30  ;;  %v6921_v30 = vld [vmem:[%s9294_s8 + $0x120] sm:$0xff]  ;;  %v6922_v28 = vld [vmem:[%s9294_s8 + $0x128] sm:$0xff] }
 0x22b   : > { %v10084_v16 = vadd.f32 %v3091_v1, %v3003_v21  ;;  %v7319_v1 = vld [vmem:[#allocation3 + $0x260] sm:$0xf]  ;;  %v8840_v21 = vld [vmem:[#allocation3 + $0x280] sm:$0xf0]  ;;  %1078 = vst [vmem:[#allocation3 + $0x2cc] sm:$0xf] %v1046_v29 }
 0x22c   : > { %v2826_v2 = vpop.f32.mrf.mxu2  ;;  %v10091_v43 = vpop.f32.mrf.mxu0  ;;  %5849 = vmatmul.bf16.vlgmr.msra.gmra.mxu1 %v7896_v12  ;;  %v7313_v29 = vld [vmem:[#allocation3 + $0x27c] sm:$0xf0] }
 0x22d   : > { %v2827_v5 = vadd.f32 %v2826_v2, %v9763_v11  ;;  %v7320_v11 = vor.u32 %v8840_v21, %v7319_v1  ;;  %v8839_v2 = vld [vmem:[#allocation3 + $0x278] sm:$0xf0] }
 0x22e   : > { %v2915_v56 = vpop.f32.mrf.mxu3 }
 0x22f   : > { %v2916_v33 = vadd.f32 %v2915_v56, %v2827_v5 }
 0x230   : > { %v7355_v21 = vld [vmem:[#allocation3 + $0x2a8] sm:$0xf] }
 0x231   : > { %3144 = vmatmul.bf16.gmra.mxu2 %v7276_v7  ;;  %v10089_v40 = vadd.f32 %v3004_v38, %v2916_v33  ;;  %v7311_v38 = vld [vmem:[#allocation3 + $0x258] sm:$0xf]  ;;  %v8835_v7 = vld [vmem:[#allocation3 + $0x25c] sm:$0xf] }
 0x232   : > { %v3096_v57 = vpop.f32.mrf.mxu1  ;;  %v7312_v33 = vor.u32 %v8839_v2, %v7311_v38  ;;  %v9135_v2 = vld [vmem:[%s10834_s3 + $0x78] sm:$0xff] }
 0x233   : > { %3233 = vmatmul.bf16.gmra.mxu3 %v7280_v52  ;;  %5930 = vmatpush.bf16.msrb.mxu2 %v9135_v2 }
 0x234   : > { %v2829_v0 = vpop.f32.mrf.mxu2  ;;  %v3288_v55 = vpop.f32.mrf.mxu0 }
 0x235   : > { %v2830_v26 = vadd.f32 %v2829_v0, %v9777_v44  ;;  %v6953_v0 = vld [vmem:[%s9294_s8 + $0x121] sm:$0xff] }
 0x236   : > { %v2918_v56 = vpop.f32.mrf.mxu3 }
 0x237   : > { %v2919_v6 = vadd.f32 %v2918_v56, %v2830_v26  ;;  %3327 = vmatmul.bf16.gmra.mxu0 %v7320_v11  ;;  %v8849_v11 = vld [vmem:[#allocation3 + $0x2c8] sm:$0xf0]  ;;  %v855_v26 = vpack.c.bf16 %v6921_v30, %v6921_v30  ;;  %v856_v56 = vpack.c.bf16 %v6922_v28, %v6922_v28  ;;  %v7347_v30 = vld [vmem:[#allocation3 + $0x2a0] sm:$0xf]  ;;  %v8848_v28 = vld [vmem:[#allocation3 + $0x2c0] sm:$0xf0] }
 0x238   : > { %v7356_v12 = vor.u32 %v8849_v11, %v7355_v21 }
 0x239   : > { %v3008_v37 = vadd.f32 %v3007_v15, %v2919_v6  ;;  %v7316_v15 = vor.u32 %v8835_v7, %v7313_v29  ;;  %v6954_v6 = vld [vmem:[%s9294_s8 + $0x129] sm:$0xff]  ;;  %887 = vst [vmem:[#allocation3 + $0x2e8] sm:$0xf] %v855_v26 }
 0x23a   : > { %v952_v7 = vpack.c.bf16 %v6954_v6, %v6954_v6  ;;  %888 = vst [vmem:[#allocation3 + $0x30c] sm:$0xf] %v856_v56  ;;  %v8844_v6 = vld [vmem:[#allocation3 + $0x2a4] sm:$0xf] }
 0x23b   : > { %v10094_v48 = vadd.f32 %v3096_v57, %v3008_v37  ;;  %v951_v57 = vpack.c.bf16 %v6953_v0, %v6953_v0  ;;  %v6986_v37 = vld [vmem:[%s9294_s8 + $0x12a] sm:$0xff]  ;;  %v9159_v0 = vld [vmem:[%s10834_s3 + $0x138] sm:$0xff] }
 0x23c   : > { %v2831_v5 = vpop.f32.mrf.mxu2  ;;  %984 = vst [vmem:[#allocation3 + $0x310] sm:$0xf] %v952_v7  ;;  %6197 = vmatpush.bf16.msrb.mxu1 %v9159_v0 }
 0x23d   : > { %v2832_v44 = vadd.f32 %v2831_v5, %v9788_v25  ;;  %v6985_v25 = vld [vmem:[%s9294_s8 + $0x122] sm:$0xff]  ;;  %v9143_v5 = vld [vmem:[%s10834_s3 + $0xb8] sm:$0xff]  ;;  %983 = vst [vmem:[#allocation3 + $0x2ec] sm:$0xf] %v951_v57  ;;  %v7348_v57 = vor.u32 %v8848_v28, %v7347_v30 }
 0x23e   : > { %v2920_v52 = vpop.f32.mrf.mxu3  ;;  %6019 = vmatpush.bf16.msrb.mxu3 %v9143_v5 }
 0x23f   : > { %v10097_v1 = vadd.f32 %v2920_v52, %v2832_v44  ;;  %v3290_v44 = vpop.f32.mrf.mxu0 }
 0x241   : > { %3149 = vmatmul.bf16.gmra.mxu2 %v7312_v33  ;;  %v1047_v33 = vpack.c.bf16 %v6985_v25, %v6985_v25  ;;  %v7349_v25 = vld [vmem:[#allocation3 + $0x2c4] sm:$0xf0] }
 0x242   : > { %v7352_v5 = vor.u32 %v8844_v6, %v7349_v25 }
 0x243   : > { %3238 = vmatmul.bf16.gmra.mxu3 %v7316_v15  ;;  %v1048_v15 = vpack.c.bf16 %v6986_v37, %v6986_v37  ;;  %1079 = vst [vmem:[#allocation3 + $0x2f0] sm:$0xf] %v1047_v33 }
 0x244   : > { %v3110_v38 = vpop.f32.mrf.mxu2 }
 0x245   : > { %v3111_v29 = vadd.f32 %v3110_v38, %v9809_v27  ;;  %v9151_v27 = vld [vmem:[%s10834_s3 + $0xf8] sm:$0xff]  ;;  %1080 = vst [vmem:[#allocation3 + $0x314] sm:$0xf] %v1048_v15 }
 0x246   : > { %v3199_v52 = vpop.f32.mrf.mxu3  ;;  %6108 = vmatpush.bf16.msrb.mxu0 %v9151_v27 }
 0x247   : > { %v3200_v21 = vadd.f32 %v3199_v52, %v3111_v29  ;;  %3332 = vmatmul.bf16.gmra.mxu0 %v7356_v12  ;;  %v3293_v2 = vpop.f32.mrf.mxu0 }
 0x249   : > { %v3289_v11 = vadd.f32 %v3288_v55, %v3200_v21 }
 0x24a   : > { %v7391_v7 = vld [vmem:[#allocation3 + $0x2f0] sm:$0xf] }
 0x24b   : > { %v3368_v26 = vmax.f32 %v3289_v11, 0.0 }
 0x24c   : > { %v3112_v56 = vpop.f32.mrf.mxu2  ;;  %v8858_v33 = vld [vmem:[#allocation3 + $0x310] sm:$0xf0] }
 0x24d   : > { %3440 = vst [vmem:[#allocation2 + $0x19] sm:$0xff] %v3368_v26  ;;  %v3602_v55 = vpack.c.bf16 %v3368_v26, %v3368_v26  ;;  %v3113_v12 = vadd.f32 %v3112_v56, %v9819_v63  ;;  %v7392_v15 = vor.u32 %v8858_v33, %v7391_v7  ;;  %v6924_v26 = vld [vmem:[%s9294_s8 + $0x140] sm:$0xff] }
 0x24e   : > { %v3201_v37 = vpop.f32.mrf.mxu3  ;;  %v6955_v56 = vld [vmem:[%s9294_s8 + $0x139] sm:$0xff] }
 0x24f   : > { %3920 = vst [vmem:[#allocation3 + $0x10] sm:$0xf] %v3602_v55  ;;  %v3202_v38 = vadd.f32 %v3201_v37, %v3113_v12  ;;  %v3295_v25 = vpop.f32.mrf.mxu0  ;;  %v8857_v37 = vld [vmem:[#allocation3 + $0x308] sm:$0xf0] }
 0x250   : > { %3634 = vst [vmem:[#allocation3 + $0x4c] sm:$0xf] %v3602_v55  ;;  %v7383_v55 = vld [vmem:[#allocation3 + $0x2e8] sm:$0xf] }
 0x251   : > { %v3291_v29 = vadd.f32 %v3290_v44, %v3202_v38  ;;  %3154 = vmatmul.bf16.gmra.mxu2 %v7348_v57  ;;  %v6923_v44 = vld [vmem:[%s9294_s8 + $0x138] sm:$0xff]  ;;  %v858_v57 = vpack.c.bf16 %v6924_v26, %v6924_v26 }
 0x252   : > { %v857_v12 = vpack.c.bf16 %v6923_v44, %v6923_v44  ;;  %v8853_v38 = vld [vmem:[#allocation3 + $0x2ec] sm:$0xf] }
 0x253   : > { %v3369_v52 = vmax.f32 %v3291_v29, 0.0  ;;  %3243 = vmatmul.bf16.gmra.mxu3 %v7352_v5  ;;  %v953_v5 = vpack.c.bf16 %v6955_v56, %v6955_v56  ;;  %890 = vst [vmem:[#allocation3 + $0x354] sm:$0xf] %v858_v57 }
 0x254   : > { %v3474_v21 = vld [vmem:[#allocation2 + $0x18] sm:$0xff]  ;;  %v3115_v11 = vpop.f32.mrf.mxu2  ;;  %889 = vst [vmem:[#allocation3 + $0x330] sm:$0xf] %v857_v12 }
 0x255   : > { %v3506_v63 = vpack.c.bf16 %v3474_v21, %v3474_v21  ;;  %3441 = vst [vmem:[#allocation2 + $0x21] sm:$0xff] %v3369_v52  ;;  %v3603_v30 = vpack.c.bf16 %v3369_v52, %v3369_v52  ;;  %v3116_v28 = vadd.f32 %v3115_v11, %v9832_v10  ;;  %v7385_v10 = vld [vmem:[#allocation3 + $0x30c] sm:$0xf0] }
 0x256   : > { %v3204_v27 = vpop.f32.mrf.mxu3  ;;  %985 = vst [vmem:[#allocation3 + $0x334] sm:$0xf] %v953_v5 }
 0x257   : > { %3824 = vst [vmem:[#allocation3 + $0xc] sm:$0xf] %v3506_v63  ;;  %v3205_v0 = vadd.f32 %v3204_v27, %v3116_v28  ;;  %3337 = vmatmul.bf16.gmra.mxu0 %v7392_v15  ;;  %v3298_v56 = vpop.f32.mrf.mxu0 }
 0x258   : > { %3538 = vst [vmem:[#allocation3 + $0x48] sm:$0xf] %v3506_v63 }
 0x259   : > { %3921 = vst [vmem:[#allocation3 + $0x34] sm:$0xf] %v3603_v30  ;;  %v3294_v6 = vadd.f32 %v3293_v2, %v3205_v0  ;;  %v7384_v2 = vor.u32 %v8857_v37, %v7383_v55 }
 0x25a   : > { %3635 = vst [vmem:[#allocation3 + $0x70] sm:$0xf] %v3603_v30  ;;  %v7388_v30 = vor.u32 %v8853_v38, %v7385_v10 }
 0x25b   : > { %v3370_v7 = vmax.f32 %v3294_v6, 0.0 }
 0x25c   : > { %v3475_v29 = vld [vmem:[#allocation2 + $0x20] sm:$0xff]  ;;  %v3117_v15 = vpop.f32.mrf.mxu2 }
 0x25d   : > { %v3666_v33 = vld [vmem:[#allocation2 + $0x1a] sm:$0xff]  ;;  %v3667_v52 = vld [vmem:[#allocation2 + $0x22] sm:$0xff]  ;;  %v3507_v21 = vpack.c.bf16 %v3475_v29, %v3475_v29  ;;  %3442 = vst [vmem:[#allocation2 + $0x31] sm:$0xff] %v3370_v7  ;;  %v3118_v28 = vadd.f32 %v3117_v15, %v9840_v50  ;;  %v3604_v44 = vpack.c.bf16 %v3370_v7, %v3370_v7 }
 0x25e   : > { %v3698_v11 = vpack.c.bf16 %v3666_v33, %v3666_v33  ;;  %v3699_v63 = vpack.c.bf16 %v3667_v52, %v3667_v52  ;;  %v3206_v27 = vpop.f32.mrf.mxu3  ;;  %v7419_v33 = vld [vmem:[#allocation3 + $0x330] sm:$0xf]  ;;  %v8866_v52 = vld [vmem:[#allocation3 + $0x350] sm:$0xf0] }
 0x25f   : > { %3825 = vst [vmem:[#allocation3 + $0x30] sm:$0xf] %v3507_v21  ;;  %v3207_v0 = vadd.f32 %v3206_v27, %v3118_v28  ;;  %v7931_v7 = vld [vmem:[#allocation3 + $0x48] sm:$0xf] }
 0x260   : > { %4016 = vst [vmem:[#allocation3 + $0x14] sm:$0xf] %v3698_v11  ;;  %v6987_v28 = vld [vmem:[%s9294_s8 + $0x13a] sm:$0xff] }
 0x261   : > { %4017 = vst [vmem:[#allocation3 + $0x38] sm:$0xf] %v3699_v63  ;;  %3159 = vmatmul.bf16.gmra.mxu2 %v7384_v2  ;;  %v3296_v26 = vadd.f32 %v3295_v25, %v3207_v0  ;;  %v7420_v2 = vor.u32 %v8866_v52, %v7419_v33 }
 0x262   : > { %3539 = vst [vmem:[#allocation3 + $0x6c] sm:$0xf] %v3507_v21  ;;  %v6956_v21 = vld [vmem:[%s9294_s8 + $0x141] sm:$0xff] }
 0x263   : > { %3730 = vst [vmem:[#allocation3 + $0x50] sm:$0xf] %v3698_v11  ;;  %3248 = vmatmul.bf16.gmra.mxu3 %v7388_v30  ;;  %v3371_v12 = vmax.f32 %v3296_v26, 0.0  ;;  %v954_v0 = vpack.c.bf16 %v6956_v21, %v6956_v21 }
 0x264   : > { %3731 = vst [vmem:[#allocation3 + $0x74] sm:$0xf] %v3699_v63  ;;  %v3476_v6 = vld [vmem:[#allocation2 + $0x30] sm:$0xff]  ;;  %v3120_v55 = vpop.f32.mrf.mxu2  ;;  %v3300_v63 = vpop.f32.mrf.mxu0 }
 0x265   : > { %v3508_v57 = vpack.c.bf16 %v3476_v6, %v3476_v6  ;;  %4209 = vst [vmem:[#allocation3 + $0x1c] sm:$0xf] %v3604_v44  ;;  %v3121_v50 = vadd.f32 %v3120_v55, %v9856_v4  ;;  %v3605_v5 = vpack.c.bf16 %v3371_v12, %v3371_v12 }
 0x266   : > { %3636 = vst [vmem:[#allocation3 + $0x94] sm:$0xf] %v3604_v44  ;;  %v3209_v37 = vpop.f32.mrf.mxu3 }
 0x267   : > { %4113 = vst [vmem:[#allocation3 + $0x18] sm:$0xf] %v3508_v57  ;;  %v3210_v38 = vadd.f32 %v3209_v37, %v3121_v50  ;;  %v9134_v37 = vld [vmem:[%s10834_s3 + $0x70] sm:$0xff] }
 0x268   : > { %3540 = vst [vmem:[#allocation3 + $0x90] sm:$0xf] %v3508_v57  ;;  %5931 = vmatpush.bf16.msrb.mxu2 %v9134_v37 }
 0x269   : > { %3826 = vst [vmem:[#allocation3 + $0x54] sm:$0xf] %v3508_v57  ;;  %v3299_v25 = vadd.f32 %v3298_v56, %v3210_v38  ;;  %v8989_v10 = vld [vmem:[#allocation3 + $0x68] sm:$0xf0] }
 0x26a   : > { %3922 = vst [vmem:[#allocation3 + $0x58] sm:$0xf] %v3604_v44  ;;  %v7932_v29 = vor.u32 %v8989_v10, %v7931_v7  ;;  %v1049_v44 = vpack.c.bf16 %v6987_v28, %v6987_v28  ;;  %v9150_v10 = vld [vmem:[%s10834_s3 + $0xf0] sm:$0xff] }
 0x26b   : > { %3443 = vst [vmem:[#allocation2 + $0x39] sm:$0xff] %v3371_v12  ;;  %v3372_v15 = vmax.f32 %v3299_v25, 0.0  ;;  %6109 = vmatpush.bf16.msrb.mxu0 %v9150_v10 }
 0x26c   : > { %4210 = vst [vmem:[#allocation3 + $0x40] sm:$0xf] %v3605_v5  ;;  %5854 = vmatmul.bf16.gmra.mxu1 %v7932_v29  ;;  %v3122_v4 = vpop.f32.mrf.mxu2  ;;  %v9158_v29 = vld [vmem:[%s10834_s3 + $0x130] sm:$0xff]  ;;  %v3303_v52 = vpop.f32.mrf.mxu0 }
 0x26d   : > { %3637 = vst [vmem:[#allocation3 + $0xb8] sm:$0xf] %v3605_v5  ;;  %v3606_v11 = vpack.c.bf16 %v3372_v15, %v3372_v15  ;;  %v3123_v27 = vadd.f32 %v3122_v4, %v9867_v23  ;;  %v9142_v23 = vld [vmem:[%s10834_s3 + $0xb0] sm:$0xff]  ;;  %v8862_v4 = vld [vmem:[#allocation3 + $0x334] sm:$0xf]  ;;  %6198 = vmatpush.bf16.msrb.mxu1 %v9158_v29 }
 0x26e   : > { %3923 = vst [vmem:[#allocation3 + $0x7c] sm:$0xf] %v3605_v5  ;;  %v3211_v30 = vpop.f32.mrf.mxu3  ;;  %6020 = vmatpush.bf16.msrb.mxu3 %v9142_v23 }
 0x26f   : > { %3444 = vst [vmem:[#allocation2 + $0x49] sm:$0xff] %v3372_v15  ;;  %v3212_v12 = vadd.f32 %v3211_v30, %v3123_v27 }
 0x270   : > { %3638 = vst [vmem:[#allocation3 + $0xdc] sm:$0xf] %v3606_v11 }
 0x271   : > { %3924 = vst [vmem:[#allocation3 + $0xa0] sm:$0xf] %v3606_v11  ;;  %3164 = vmatmul.bf16.gmra.mxu2 %v7420_v2  ;;  %v3301_v25 = vadd.f32 %v3300_v63, %v3212_v12 }
 0x272   : > { %v3477_v26 = vld [vmem:[#allocation2 + $0x38] sm:$0xff]  ;;  %4211 = vst [vmem:[#allocation3 + $0x64] sm:$0xf] %v3606_v11 }
 0x273   : > { %v3668_v56 = vld [vmem:[#allocation2 + $0x32] sm:$0xff]  ;;  %v3669_v6 = vld [vmem:[#allocation2 + $0x3a] sm:$0xff]  ;;  %v3509_v55 = vpack.c.bf16 %v3477_v26, %v3477_v26  ;;  %986 = vst [vmem:[#allocation3 + $0x358] sm:$0xf] %v954_v0  ;;  %v3373_v21 = vmax.f32 %v3301_v25, 0.0  ;;  %v6988_v0 = vld [vmem:[%s9294_s8 + $0x142] sm:$0xff] }
 0x274   : > { %v3700_v57 = vpack.c.bf16 %v3668_v56, %v3668_v56  ;;  %v3701_v50 = vpack.c.bf16 %v3669_v6, %v3669_v6  ;;  %1081 = vst [vmem:[#allocation3 + $0x338] sm:$0xf] %v1049_v44  ;;  %v3125_v38 = vpop.f32.mrf.mxu2  ;;  %v7967_v44 = vld [vmem:[#allocation3 + $0x90] sm:$0xf]  ;;  %v3305_v23 = vpop.f32.mrf.mxu0 }
 0x275   : > { %4114 = vst [vmem:[#allocation3 + $0x3c] sm:$0xf] %v3509_v55  ;;  %v3126_v5 = vadd.f32 %v3125_v38, %v9880_v45  ;;  %v3607_v30 = vpack.c.bf16 %v3373_v21, %v3373_v21 }
 0x276   : > { %4305 = vst [vmem:[#allocation3 + $0x20] sm:$0xf] %v3700_v57  ;;  %v3214_v7 = vpop.f32.mrf.mxu3  ;;  %v3478_v33 = vld [vmem:[#allocation2 + $0x48] sm:$0xff] }
 0x277   : > { %4306 = vst [vmem:[#allocation3 + $0x44] sm:$0xf] %v3701_v50  ;;  %v3215_v15 = vadd.f32 %v3214_v7, %v3126_v5  ;;  %v3510_v45 = vpack.c.bf16 %v3478_v33, %v3478_v33 }
 0x278   : > { %3541 = vst [vmem:[#allocation3 + $0xb4] sm:$0xf] %v3509_v55 }
 0x279   : > { %3732 = vst [vmem:[#allocation3 + $0x98] sm:$0xf] %v3700_v57  ;;  %v3304_v2 = vadd.f32 %v3303_v52, %v3215_v15 }
 0x27a   : > { %3733 = vst [vmem:[#allocation3 + $0xbc] sm:$0xf] %v3701_v50  ;;  %v7421_v11 = vld [vmem:[#allocation3 + $0x354] sm:$0xf0] }
 0x27b   : > { %3827 = vst [vmem:[#allocation3 + $0x78] sm:$0xf] %v3509_v55  ;;  %v7424_v63 = vor.u32 %v8862_v4, %v7421_v11  ;;  %v3374_v56 = vmax.f32 %v3304_v2, 0.0  ;;  %v1050_v55 = vpack.c.bf16 %v6988_v0, %v6988_v0  ;;  %v7427_v33 = vld [vmem:[#allocation3 + $0x338] sm:$0xf] }
 0x27c   : > { %4018 = vst [vmem:[#allocation3 + $0x5c] sm:$0xf] %v3700_v57  ;;  %v3127_v28 = vpop.f32.mrf.mxu2 }
 0x27d   : > { %4019 = vst [vmem:[#allocation3 + $0x80] sm:$0xf] %v3701_v50  ;;  %3253 = vmatmul.bf16.gmra.mxu3 %v7424_v63  ;;  %v3128_v27 = vadd.f32 %v3127_v28, %v9888_v59  ;;  %v3608_v50 = vpack.c.bf16 %v3374_v56, %v3374_v56 }
 0x27e   : > { %3542 = vst [vmem:[#allocation3 + $0xd8] sm:$0xf] %v3510_v45  ;;  %v3216_v26 = vpop.f32.mrf.mxu3 }
 0x27f   : > { %3828 = vst [vmem:[#allocation3 + $0x9c] sm:$0xf] %v3510_v45  ;;  %v8998_v6 = vld [vmem:[#allocation3 + $0xb0] sm:$0xf0]  ;;  %v3217_v12 = vadd.f32 %v3216_v26, %v3128_v27 }
 0x280   : > { %4115 = vst [vmem:[#allocation3 + $0x60] sm:$0xf] %v3510_v45  ;;  %v7968_v37 = vor.u32 %v8998_v6, %v7967_v44 }
 0x281   : > { %3445 = vst [vmem:[#allocation2 + $0x51] sm:$0xff] %v3373_v21  ;;  %v3306_v57 = vadd.f32 %v3305_v23, %v3217_v12 }
 0x282   : > { %3639 = vst [vmem:[#allocation3 + $0x100] sm:$0xf] %v3607_v30  ;;  %5859 = vmatmul.bf16.gmra.mxu1 %v7968_v37  ;;  %v3308_v37 = vpop.f32.mrf.mxu0 }
 0x283   : > { %3925 = vst [vmem:[#allocation3 + $0xc4] sm:$0xf] %v3607_v30  ;;  %v3375_v59 = vmax.f32 %v3306_v57, 0.0 }
 0x284   : > { %4212 = vst [vmem:[#allocation3 + $0x88] sm:$0xf] %v3607_v30  ;;  %v3130_v63 = vpop.f32.mrf.mxu2 }
 0x285   : > { %1082 = vst [vmem:[#allocation3 + $0x35c] sm:$0xf] %v1050_v55  ;;  %v3609_v30 = vpack.c.bf16 %v3375_v59, %v3375_v59  ;;  %v8003_v44 = vld [vmem:[#allocation3 + $0xd8] sm:$0xf]  ;;  %v3131_v6 = vadd.f32 %v3130_v63, %v9906_v32  ;;  %v3044_v55 = vadd.f32 %v9904_v39, %v9915_v9  ;;  %v6925_v32 = vld [vmem:[%s9294_s8 + $0x150] sm:$0xff]  ;;  %v6958_v9 = vld [vmem:[%s9294_s8 + $0x159] sm:$0xff] }
 0x286   : > { %3446 = vst [vmem:[#allocation2 + $0x61] sm:$0xff] %v3374_v56  ;;  %v3219_v27 = vpop.f32.mrf.mxu3  ;;  %v859_v39 = vpack.c.bf16 %v6925_v32, %v6925_v32 }
 0x287   : > { %3640 = vst [vmem:[#allocation3 + $0x124] sm:$0xf] %v3608_v50  ;;  %v3220_v23 = vadd.f32 %v3219_v27, %v3131_v6  ;;  %v6928_v6 = vld [vmem:[%s9294_s8 + $0x170] sm:$0xff] }
 0x288   : > { %v3479_v38 = vld [vmem:[#allocation2 + $0x50] sm:$0xff]  ;;  %3926 = vst [vmem:[#allocation3 + $0xe8] sm:$0xf] %v3608_v50 }
 0x289   : > { %v3670_v5 = vld [vmem:[#allocation2 + $0x4a] sm:$0xff]  ;;  %v3671_v25 = vld [vmem:[#allocation2 + $0x52] sm:$0xff]  ;;  %v3511_v7 = vpack.c.bf16 %v3479_v38, %v3479_v38  ;;  %4213 = vst [vmem:[#allocation3 + $0xac] sm:$0xf] %v3608_v50 }
 0x28a   : > { %v3702_v10 = vpack.c.bf16 %v3670_v5, %v3670_v5  ;;  %v3703_v29 = vpack.c.bf16 %v3671_v25, %v3671_v25  ;;  %3447 = vst [vmem:[#allocation2 + $0x69] sm:$0xff] %v3375_v59  ;;  %v6926_v59 = vld [vmem:[%s9294_s8 + $0x158] sm:$0xff]  ;;  %v3309_v25 = vadd.f32 %v3308_v37, %v3220_v23 }
 0x28b   : > { %3543 = vst [vmem:[#allocation3 + $0xfc] sm:$0xf] %v3511_v7  ;;  %v6957_v5 = vld [vmem:[%s9294_s8 + $0x151] sm:$0xff] }
 0x28c   : > { %3734 = vst [vmem:[#allocation3 + $0xe0] sm:$0xf] %v3702_v10  ;;  %v8867_v52 = vld [vmem:[#allocation3 + $0x358] sm:$0xf0]  ;;  %v3132_v57 = vpop.f32.mrf.mxu2 }
 0x28d   : > { %3735 = vst [vmem:[#allocation3 + $0x104] sm:$0xf] %v3703_v29  ;;  %v7428_v15 = vor.u32 %v8867_v52, %v7427_v33  ;;  %v3480_v4 = vld [vmem:[#allocation2 + $0x60] sm:$0xff]  ;;  %v3133_v50 = vadd.f32 %v3132_v57, %v3044_v55  ;;  %v860_v33 = vpack.c.bf16 %v6926_v59, %v6926_v59  ;;  %v6989_v52 = vld [vmem:[%s9294_s8 + $0x152] sm:$0xff] }
 0x28e   : > { %3829 = vst [vmem:[#allocation3 + $0xc0] sm:$0xf] %v3511_v7  ;;  %v3512_v45 = vpack.c.bf16 %v3480_v4, %v3480_v4  ;;  %v3221_v38 = vpop.f32.mrf.mxu3  ;;  %v6990_v4 = vld [vmem:[%s9294_s8 + $0x15a] sm:$0xff] }
 0x28f   : > { %4020 = vst [vmem:[#allocation3 + $0xa4] sm:$0xf] %v3702_v10  ;;  %3342 = vmatmul.bf16.gmra.mxu0 %v7428_v15  ;;  %v955_v15 = vpack.c.bf16 %v6957_v5, %v6957_v5  ;;  %v862_v5 = vpack.c.bf16 %v6928_v6, %v6928_v6 }
 0x290   : > { %4021 = vst [vmem:[#allocation3 + $0xc8] sm:$0xf] %v3703_v29 }
 0x291   : > { %4116 = vst [vmem:[#allocation3 + $0x84] sm:$0xf] %v3511_v7  ;;  %v3481_v21 = vld [vmem:[#allocation2 + $0x68] sm:$0xff]  ;;  %v3222_v7 = vadd.f32 %v3221_v38, %v3133_v50 }
 0x292   : > { %4307 = vst [vmem:[#allocation3 + $0x68] sm:$0xf] %v3702_v10  ;;  %v3672_v11 = vld [vmem:[#allocation2 + $0x62] sm:$0xff]  ;;  %v3513_v2 = vpack.c.bf16 %v3481_v21, %v3481_v21  ;;  %v3673_v28 = vld [vmem:[#allocation2 + $0x6a] sm:$0xff]  ;;  %v956_v21 = vpack.c.bf16 %v6958_v9, %v6958_v9 }
 0x293   : > { %4308 = vst [vmem:[#allocation3 + $0x8c] sm:$0xf] %v3703_v29  ;;  %v3704_v0 = vpack.c.bf16 %v3672_v11, %v3672_v11  ;;  %v9007_v26 = vld [vmem:[#allocation3 + $0xf8] sm:$0xf0]  ;;  %v3705_v56 = vpack.c.bf16 %v3673_v28, %v3673_v28  ;;  %v3376_v11 = vmax.f32 %v3309_v25, 0.0  ;;  %v1052_v28 = vpack.c.bf16 %v6990_v4, %v6990_v4 }
 0x294   : > { %3544 = vst [vmem:[#allocation3 + $0x120] sm:$0xf] %v3512_v45  ;;  %v8004_v12 = vor.u32 %v9007_v26, %v8003_v44  ;;  %v9133_v10 = vld [vmem:[%s10834_s3 + $0x68] sm:$0xff]  ;;  %v3135_v55 = vpop.f32.mrf.mxu2 }
 0x295   : > { %3830 = vst [vmem:[#allocation3 + $0xe4] sm:$0xf] %v3512_v45  ;;  %v9141_v29 = vld [vmem:[%s10834_s3 + $0xa8] sm:$0xff]  ;;  %5932 = vmatpush.bf16.msrb.mxu2 %v9133_v10  ;;  %v3610_v27 = vpack.c.bf16 %v3376_v11, %v3376_v11 }
 0x296   : > { %4117 = vst [vmem:[#allocation3 + $0xa8] sm:$0xf] %v3512_v45  ;;  %5864 = vmatmul.bf16.gmra.mxu1 %v8004_v12  ;;  %v3310_v45 = vpop.f32.mrf.mxu0  ;;  %6021 = vmatpush.bf16.msrb.mxu3 %v9141_v29  ;;  %v6927_v26 = vld [vmem:[%s9294_s8 + $0x168] sm:$0xff]  ;;  %v3224_v32 = vpop.f32.mrf.mxu3 }
 0x297   : > { %3545 = vst [vmem:[#allocation3 + $0x144] sm:$0xf] %v3513_v2  ;;  %v3311_v63 = vadd.f32 %v3310_v45, %v3222_v7  ;;  %v861_v57 = vpack.c.bf16 %v6927_v26, %v6927_v26  ;;  %v6959_v50 = vld [vmem:[%s9294_s8 + $0x169] sm:$0xff] }
 0x298   : > { %3641 = vst [vmem:[#allocation3 + $0x148] sm:$0xf] %v3609_v30  ;;  %v9157_v9 = vld [vmem:[%s10834_s3 + $0x128] sm:$0xff] }
 0x299   : > { %3736 = vst [vmem:[#allocation3 + $0x128] sm:$0xf] %v3704_v0  ;;  %6199 = vmatpush.bf16.msrb.mxu1 %v9157_v9 }
 0x29a   : > { %3737 = vst [vmem:[#allocation3 + $0x14c] sm:$0xf] %v3705_v56 }
 0x29b   : > { %3831 = vst [vmem:[#allocation3 + $0x108] sm:$0xf] %v3513_v2  ;;  %v8039_v25 = vld [vmem:[#allocation3 + $0x120] sm:$0xf] }
 0x29c   : > { %3927 = vst [vmem:[#allocation3 + $0x10c] sm:$0xf] %v3609_v30 }
 0x29d   : > { %4022 = vst [vmem:[#allocation3 + $0xec] sm:$0xf] %v3704_v0 }
 0x29e   : > { %4023 = vst [vmem:[#allocation3 + $0x110] sm:$0xf] %v3705_v56  ;;  %v3313_v4 = vpop.f32.mrf.mxu0 }
 0x29f   : > { %4118 = vst [vmem:[#allocation3 + $0xcc] sm:$0xf] %v3513_v2  ;;  %v1051_v2 = vpack.c.bf16 %v6989_v52, %v6989_v52  ;;  %v9016_v52 = vld [vmem:[#allocation3 + $0x140] sm:$0xf0] }
 0x2a0   : > { %4214 = vst [vmem:[#allocation3 + $0xd0] sm:$0xf] %v3609_v30  ;;  %v3377_v30 = vmax.f32 %v3311_v63, 0.0  ;;  %v8040_v45 = vor.u32 %v9016_v52, %v8039_v25 }
 0x2a1   : > { %4309 = vst [vmem:[#allocation3 + $0xb0] sm:$0xf] %v3704_v0 }
 0x2a2   : > { %4310 = vst [vmem:[#allocation3 + $0xd4] sm:$0xf] %v3705_v56  ;;  %v3611_v44 = vpack.c.bf16 %v3377_v30, %v3377_v30 }
 0x2a3   : > { %891 = vst [vmem:[#allocation3 + $0x378] sm:$0xf] %v859_v39  ;;  %v9149_v39 = vld [vmem:[%s10834_s3 + $0xe8] sm:$0xff] }
 0x2a4   : > { %892 = vst [vmem:[#allocation3 + $0x39c] sm:$0xf] %v860_v33  ;;  %v3136_v33 = vadd.f32 %v3135_v55, %v9934_v8  ;;  %6110 = vmatpush.bf16.msrb.mxu0 %v9149_v39 }
 0x2a5   : > { %987 = vst [vmem:[#allocation3 + $0x37c] sm:$0xf] %v955_v15 }
 0x2a6   : > { %988 = vst [vmem:[#allocation3 + $0x3a0] sm:$0xf] %v956_v21  ;;  %v957_v21 = vpack.c.bf16 %v6959_v50, %v6959_v50  ;;  %5869 = vmatmul.bf16.gmra.mxu1 %v8040_v45  ;;  %v3225_v8 = vadd.f32 %v3224_v32, %v3136_v33  ;;  %v3315_v50 = vpop.f32.mrf.mxu0  ;;  %v6930_v33 = vld [vmem:[%s9294_s8 + $0x188] sm:$0xff] }
 0x2a7   : > { %1083 = vst [vmem:[#allocation3 + $0x380] sm:$0xf] %v1051_v2  ;;  %v6961_v45 = vld [vmem:[%s9294_s8 + $0x181] sm:$0xff] }
 0x2a8   : > { %1084 = vst [vmem:[#allocation3 + $0x3a4] sm:$0xf] %v1052_v28 }
 0x2a9   : > { %3448 = vst [vmem:[#allocation2 + $0x79] sm:$0xff] %v3376_v11  ;;  %v3049_v11 = vadd.f32 %v9932_v62, %v9940_v24  ;;  %v3314_v62 = vadd.f32 %v3313_v4, %v3225_v8 }
 0x2aa   : > { %v7455_v0 = vld [vmem:[#allocation3 + $0x378] sm:$0xf]  ;;  %3642 = vst [vmem:[#allocation3 + $0x16c] sm:$0xf] %v3610_v27 }
 0x2ab   : > { %v8875_v56 = vld [vmem:[#allocation3 + $0x398] sm:$0xf0]  ;;  %3928 = vst [vmem:[#allocation3 + $0x130] sm:$0xf] %v3610_v27 }
 0x2ac   : > { %v7456_v12 = vor.u32 %v8875_v56, %v7455_v0  ;;  %v8871_v37 = vld [vmem:[#allocation3 + $0x37c] sm:$0xf]  ;;  %4215 = vst [vmem:[#allocation3 + $0xf4] sm:$0xf] %v3610_v27  ;;  %v3137_v27 = vpop.f32.mrf.mxu2  ;;  %v3226_v56 = vpop.f32.mrf.mxu3 }
 0x2ad   : > { %v7457_v23 = vld [vmem:[#allocation3 + $0x39c] sm:$0xf0]  ;;  %3449 = vst [vmem:[#allocation2 + $0x81] sm:$0xff] %v3377_v30  ;;  %v3138_v26 = vadd.f32 %v3137_v27, %v3049_v11 }
 0x2ae   : > { %3169 = vmatmul.bf16.gmra.mxu2 %v7456_v12  ;;  %v7460_v59 = vor.u32 %v8871_v37, %v7457_v23  ;;  %v7463_v38 = vld [vmem:[#allocation3 + $0x380] sm:$0xf]  ;;  %3643 = vst [vmem:[#allocation3 + $0x190] sm:$0xf] %v3611_v44 }
 0x2af   : > { %v8876_v7 = vld [vmem:[#allocation3 + $0x3a0] sm:$0xf0]  ;;  %3929 = vst [vmem:[#allocation3 + $0x154] sm:$0xf] %v3611_v44  ;;  %v3227_v24 = vadd.f32 %v3226_v56, %v3138_v26  ;;  %v6991_v23 = vld [vmem:[%s9294_s8 + $0x16a] sm:$0xff] }
 0x2b0   : > { %3258 = vmatmul.bf16.gmra.mxu3 %v7460_v59  ;;  %v7464_v10 = vor.u32 %v8876_v7, %v7463_v38  ;;  %v3482_v29 = vld [vmem:[#allocation2 + $0x78] sm:$0xff]  ;;  %4216 = vst [vmem:[#allocation3 + $0x118] sm:$0xf] %v3611_v44  ;;  %v3378_v59 = vmax.f32 %v3314_v62, 0.0  ;;  %v959_v62 = vpack.c.bf16 %v6961_v45, %v6961_v45 }
 0x2b1   : > { %v3514_v15 = vpack.c.bf16 %v3482_v29, %v3482_v29  ;;  %893 = vst [vmem:[#allocation3 + $0x3c0] sm:$0xf] %v861_v57  ;;  %v6960_v37 = vld [vmem:[%s9294_s8 + $0x171] sm:$0xff]  ;;  %v3316_v38 = vadd.f32 %v3315_v50, %v3227_v24  ;;  %v3054_v24 = vadd.f32 %v9952_v14, %v9960_v51  ;;  %v9132_v14 = vld [vmem:[%s10834_s3 + $0x60] sm:$0xff] }
 0x2b2   : > { %3347 = vmatmul.bf16.gmra.mxu0 %v7464_v10  ;;  %894 = vst [vmem:[#allocation3 + $0x3e4] sm:$0xf] %v862_v5  ;;  %v6992_v57 = vld [vmem:[%s9294_s8 + $0x172] sm:$0xff]  ;;  %v958_v32 = vpack.c.bf16 %v6960_v37, %v6960_v37  ;;  %v1053_v5 = vpack.c.bf16 %v6991_v23, %v6991_v23  ;;  %v3612_v7 = vpack.c.bf16 %v3378_v59, %v3378_v59  ;;  %v6929_v10 = vld [vmem:[%s9294_s8 + $0x180] sm:$0xff] }
 0x2b3   : > { %3546 = vst [vmem:[#allocation3 + $0x168] sm:$0xf] %v3514_v15  ;;  %v1054_v25 = vpack.c.bf16 %v6992_v57, %v6992_v57  ;;  %v3379_v39 = vmax.f32 %v3316_v38, 0.0  ;;  %v863_v4 = vpack.c.bf16 %v6929_v10, %v6929_v10  ;;  %v9140_v51 = vld [vmem:[%s10834_s3 + $0xa0] sm:$0xff]  ;;  %v6962_v10 = vld [vmem:[%s9294_s8 + $0x189] sm:$0xff]  ;;  %5933 = vmatpush.bf16.msrb.mxu2 %v9132_v14 }
 0x2b4   : > { %3832 = vst [vmem:[#allocation3 + $0x12c] sm:$0xf] %v3514_v15  ;;  %v3483_v63 = vld [vmem:[#allocation2 + $0x80] sm:$0xff]  ;;  %v3140_v52 = vpop.f32.mrf.mxu2  ;;  %6022 = vmatpush.bf16.msrb.mxu3 %v9140_v51 }
 0x2b5   : > { %v3674_v2 = vld [vmem:[#allocation2 + $0x7a] sm:$0xff]  ;;  %v3675_v28 = vld [vmem:[#allocation2 + $0x82] sm:$0xff]  ;;  %4119 = vst [vmem:[#allocation3 + $0xf0] sm:$0xf] %v3514_v15  ;;  %v3515_v30 = vpack.c.bf16 %v3483_v63, %v3483_v63  ;;  %v3613_v9 = vpack.c.bf16 %v3379_v39, %v3379_v39 }
 0x2b6   : > { %v3706_v0 = vpack.c.bf16 %v3674_v2, %v3674_v2  ;;  %v3707_v44 = vpack.c.bf16 %v3675_v28, %v3675_v28  ;;  %989 = vst [vmem:[#allocation3 + $0x3c4] sm:$0xf] %v957_v21  ;;  %v3229_v21 = vpop.f32.mrf.mxu3  ;;  %v864_v2 = vpack.c.bf16 %v6930_v33, %v6930_v33  ;;  %v6993_v33 = vld [vmem:[%s9294_s8 + $0x182] sm:$0xff] }
 0x2b7   : > { %3547 = vst [vmem:[#allocation3 + $0x18c] sm:$0xf] %v3515_v30 }
 0x2b8   : > { %3738 = vst [vmem:[#allocation3 + $0x170] sm:$0xf] %v3706_v0  ;;  %v7491_v6 = vld [vmem:[#allocation3 + $0x3c0] sm:$0xf] }
 0x2b9   : > { %3739 = vst [vmem:[#allocation3 + $0x194] sm:$0xf] %v3707_v44  ;;  %v8884_v12 = vld [vmem:[#allocation3 + $0x3e0] sm:$0xf0] }
 0x2ba   : > { %3833 = vst [vmem:[#allocation3 + $0x150] sm:$0xf] %v3515_v30  ;;  %v7492_v55 = vor.u32 %v8884_v12, %v7491_v6  ;;  %v8075_v28 = vld [vmem:[#allocation3 + $0x168] sm:$0xf]  ;;  %v3318_v6 = vpop.f32.mrf.mxu0 }
 0x2bb   : > { %4024 = vst [vmem:[#allocation3 + $0x134] sm:$0xf] %v3706_v0 }
 0x2bc   : > { %4025 = vst [vmem:[#allocation3 + $0x158] sm:$0xf] %v3707_v44  ;;  %v3142_v57 = vpop.f32.mrf.mxu2 }
 0x2bd   : > { %4120 = vst [vmem:[#allocation3 + $0x114] sm:$0xf] %v3515_v30  ;;  %v8880_v29 = vld [vmem:[#allocation3 + $0x3c4] sm:$0xf] }
 0x2be   : > { %4311 = vst [vmem:[#allocation3 + $0xf8] sm:$0xf] %v3706_v0  ;;  %3174 = vmatmul.bf16.gmra.mxu2 %v7492_v55  ;;  %v9025_v27 = vld [vmem:[#allocation3 + $0x188] sm:$0xf0]  ;;  %v3231_v38 = vpop.f32.mrf.mxu3 }
 0x2bf   : > { %4312 = vst [vmem:[#allocation3 + $0x11c] sm:$0xf] %v3707_v44  ;;  %v3141_v44 = vadd.f32 %v3140_v52, %v9954_v36  ;;  %v8076_v26 = vor.u32 %v9025_v27, %v8075_v28  ;;  %v6994_v52 = vld [vmem:[%s9294_s8 + $0x18a] sm:$0xff]  ;;  %v6931_v27 = vld [vmem:[%s9294_s8 + $0x198] sm:$0xff] }
 0x2c0   : > { %990 = vst [vmem:[#allocation3 + $0x3e8] sm:$0xf] %v958_v32 }
 0x2c1   : > { %1085 = vst [vmem:[#allocation3 + $0x3c8] sm:$0xf] %v1053_v5  ;;  %5874 = vmatmul.bf16.gmra.mxu1 %v8076_v26  ;;  %v3230_v23 = vadd.f32 %v3229_v21, %v3141_v44  ;;  %v9148_v5 = vld [vmem:[%s10834_s3 + $0xe0] sm:$0xff] }
 0x2c2   : > { %1086 = vst [vmem:[#allocation3 + $0x3ec] sm:$0xf] %v1054_v25  ;;  %6111 = vmatpush.bf16.msrb.mxu0 %v9148_v5  ;;  %v9130_v5 = vld [vmem:[%s10834_s3 + $0x50] sm:$0xff] }
 0x2c3   : > { %3450 = vst [vmem:[#allocation2 + $0x91] sm:$0xff] %v3378_v59  ;;  %v3143_v59 = vadd.f32 %v3142_v57, %v3054_v24 }
 0x2c4   : > { %3644 = vst [vmem:[#allocation3 + $0x1b4] sm:$0xf] %v3612_v7  ;;  %v3145_v57 = vpop.f32.mrf.mxu2 }
 0x2c5   : > { %3930 = vst [vmem:[#allocation3 + $0x178] sm:$0xf] %v3612_v7 }
 0x2c6   : > { %4217 = vst [vmem:[#allocation3 + $0x13c] sm:$0xf] %v3612_v7  ;;  %v3319_v7 = vadd.f32 %v3318_v6, %v3230_v23  ;;  %v6963_v23 = vld [vmem:[%s9294_s8 + $0x199] sm:$0xff] }
 0x2c7   : > { %v7493_v15 = vld [vmem:[#allocation3 + $0x3e4] sm:$0xf0]  ;;  %3451 = vst [vmem:[#allocation2 + $0x99] sm:$0xff] %v3379_v39  ;;  %v3232_v39 = vadd.f32 %v3231_v38, %v3143_v59  ;;  %v961_v51 = vpack.c.bf16 %v6963_v23, %v6963_v23 }
 0x2c8   : > { %v7496_v11 = vor.u32 %v8880_v29, %v7493_v15  ;;  %v7499_v63 = vld [vmem:[#allocation3 + $0x3c8] sm:$0xf]  ;;  %3645 = vst [vmem:[#allocation3 + $0x1d8] sm:$0xf] %v3613_v9  ;;  %v3320_v15 = vpop.f32.mrf.mxu0  ;;  %v3380_v45 = vmax.f32 %v3319_v7, 0.0  ;;  %v9146_v7 = vld [vmem:[%s10834_s3 + $0xd0] sm:$0xff] }
 0x2c9   : > { %v8885_v8 = vld [vmem:[#allocation3 + $0x3e8] sm:$0xf0]  ;;  %3931 = vst [vmem:[#allocation3 + $0x19c] sm:$0xf] %v3613_v9  ;;  %v3321_v21 = vadd.f32 %v3320_v15, %v3232_v39  ;;  %v3146_v39 = vadd.f32 %v3145_v57, %v9977_v49 }
 0x2ca   : > { %3263 = vmatmul.bf16.gmra.mxu3 %v7496_v11  ;;  %v7500_v30 = vor.u32 %v8885_v8, %v7499_v63  ;;  %v3484_v0 = vld [vmem:[#allocation2 + $0x90] sm:$0xff]  ;;  %4218 = vst [vmem:[#allocation3 + $0x160] sm:$0xf] %v3613_v9  ;;  %v1055_v11 = vpack.c.bf16 %v6993_v33, %v6993_v33  ;;  %v1056_v63 = vpack.c.bf16 %v6994_v52, %v6994_v52  ;;  %v9147_v59 = vld [vmem:[%s10834_s3 + $0xd8] sm:$0xff] }
 0x2cb   : > { %v3516_v56 = vpack.c.bf16 %v3484_v0, %v3484_v0  ;;  %895 = vst [vmem:[#allocation3 + $0x408] sm:$0xf] %v863_v4  ;;  %v960_v4 = vpack.c.bf16 %v6962_v10, %v6962_v10  ;;  %v3381_v28 = vmax.f32 %v3321_v21, 0.0  ;;  %v6932_v0 = vld [vmem:[%s9294_s8 + $0x1a0] sm:$0xff]  ;;  %6112 = vmatpush.bf16.msrb.mxu0 %v9147_v59 }
 0x2cc   : > { %3352 = vmatmul.bf16.gmra.mxu0 %v7500_v30  ;;  %896 = vst [vmem:[#allocation3 + $0x42c] sm:$0xf] %v864_v2  ;;  %v3614_v2 = vpack.c.bf16 %v3380_v45, %v3380_v45  ;;  %v866_v24 = vpack.c.bf16 %v6932_v0, %v6932_v0  ;;  %v9156_v10 = vld [vmem:[%s10834_s3 + $0x120] sm:$0xff] }
 0x2cd   : > { %3548 = vst [vmem:[#allocation3 + $0x1b0] sm:$0xf] %v3516_v56  ;;  %v3615_v8 = vpack.c.bf16 %v3381_v28, %v3381_v28  ;;  %6200 = vmatpush.bf16.msrb.mxu1 %v9156_v10  ;;  %v4175_v23 = vld [vmem:[#allocation2 + $0x199] sm:$0xff] }
 0x2ce   : > { %3834 = vst [vmem:[#allocation3 + $0x174] sm:$0xf] %v3516_v56  ;;  %v3485_v12 = vld [vmem:[#allocation2 + $0x98] sm:$0xff] }
 0x2cf   : > { %v3676_v37 = vld [vmem:[#allocation2 + $0x92] sm:$0xff]  ;;  %v3677_v55 = vld [vmem:[#allocation2 + $0x9a] sm:$0xff]  ;;  %4121 = vst [vmem:[#allocation3 + $0x138] sm:$0xf] %v3516_v56  ;;  %v3517_v36 = vpack.c.bf16 %v3485_v12, %v3485_v12  ;;  %v865_v56 = vpack.c.bf16 %v6931_v27, %v6931_v27  ;;  %6113 = vmatpush.bf16.msrb.mxu0 %v9146_v7 }
 0x2d0   : > { %v3708_v50 = vpack.c.bf16 %v3676_v37, %v3676_v37  ;;  %v3709_v32 = vpack.c.bf16 %v3677_v55, %v3677_v55  ;;  %991 = vst [vmem:[#allocation3 + $0x40c] sm:$0xf] %v959_v62  ;;  %v10193_v44 = vpop.f32.mrf.mxu0  ;;  %v9131_v12 = vld [vmem:[%s10834_s3 + $0x58] sm:$0xff] }
 0x2d1   : > { %3549 = vst [vmem:[#allocation3 + $0x1d4] sm:$0xf] %v3517_v36  ;;  %v9139_v37 = vld [vmem:[%s10834_s3 + $0x98] sm:$0xff]  ;;  %5934 = vmatpush.bf16.msrb.mxu2 %v9131_v12  ;;  %v9144_v12 = vld [vmem:[%s10834_s3 + $0xc0] sm:$0xff] }
 0x2d2   : > { %3740 = vst [vmem:[#allocation3 + $0x1b8] sm:$0xf] %v3708_v50  ;;  %v7527_v25 = vld [vmem:[#allocation3 + $0x408] sm:$0xf]  ;;  %6023 = vmatpush.bf16.msrb.mxu3 %v9139_v37  ;;  %v9220_v37 = vld [vmem:[#allocation2] sm:$0xff] }
 0x2d3   : > { %3741 = vst [vmem:[#allocation3 + $0x1dc] sm:$0xf] %v3709_v32  ;;  %v8893_v9 = vld [vmem:[#allocation3 + $0x428] sm:$0xf0] }
 0x2d4   : > { %3835 = vst [vmem:[#allocation3 + $0x198] sm:$0xf] %v3517_v36  ;;  %v7528_v29 = vor.u32 %v8893_v9, %v7527_v25  ;;  %v8111_v14 = vld [vmem:[#allocation3 + $0x1b0] sm:$0xf]  ;;  %v9138_v25 = vld [vmem:[%s10834_s3 + $0x90] sm:$0xff] }
 0x2d5   : > { %4026 = vst [vmem:[#allocation3 + $0x17c] sm:$0xf] %v3708_v50  ;;  %5935 = vmatpush.bf16.msrb.mxu2 %v9130_v5  ;;  %v6995_v57 = vld [vmem:[%s9294_s8 + $0x19a] sm:$0xff] }
 0x2d6   : > { %4027 = vst [vmem:[#allocation3 + $0x1a0] sm:$0xf] %v3709_v32  ;;  %3179 = vmatmul.bf16.gmra.mxu2 %v7528_v29  ;;  %v9129_v29 = vld [vmem:[%s10834_s3 + $0x48] sm:$0xff]  ;;  %6024 = vmatpush.bf16.msrb.mxu3 %v9138_v25 }
 0x2d7   : > { %4122 = vst [vmem:[#allocation3 + $0x15c] sm:$0xf] %v3517_v36  ;;  %v8889_v30 = vld [vmem:[#allocation3 + $0x40c] sm:$0xf]  ;;  %v3234_v36 = vpop.f32.mrf.mxu3 }
 0x2d8   : > { %4313 = vst [vmem:[#allocation3 + $0x140] sm:$0xf] %v3708_v50  ;;  %v9034_v9 = vld [vmem:[#allocation3 + $0x1d0] sm:$0xf0]  ;;  %v3325_v49 = vpop.f32.mrf.mxu0 }
 0x2d9   : > { %4314 = vst [vmem:[#allocation3 + $0x164] sm:$0xf] %v3709_v32  ;;  %5936 = vmatpush.bf16.msrb.mxu2 %v9129_v29 }
 0x2da   : > { %992 = vst [vmem:[#allocation3 + $0x430] sm:$0xf] %v960_v4  ;;  %v8112_v4 = vor.u32 %v9034_v9, %v8111_v14 }
 0x2db   : > { %1087 = vst [vmem:[#allocation3 + $0x410] sm:$0xf] %v1055_v11 }
 0x2dc   : > { %1088 = vst [vmem:[#allocation3 + $0x434] sm:$0xf] %v1056_v63  ;;  %5879 = vmatmul.bf16.gmra.mxu1 %v8112_v4  ;;  %v9137_v63 = vld [vmem:[%s10834_s3 + $0x88] sm:$0xff] }
 0x2dd   : > { %3452 = vst [vmem:[#allocation2 + $0xa9] sm:$0xff] %v3380_v45  ;;  %6025 = vmatpush.bf16.msrb.mxu3 %v9137_v63  ;;  %v4272_v63 = vld [vmem:[#allocation2 + $0x1a2] sm:$0xff] }
 0x2de   : > { %3646 = vst [vmem:[#allocation3 + $0x1fc] sm:$0xf] %v3614_v2 }
 0x2df   : > { %3932 = vst [vmem:[#allocation3 + $0x1c0] sm:$0xf] %v3614_v2  ;;  %v3236_v27 = vpop.f32.mrf.mxu3 }
 0x2e0   : > { %4219 = vst [vmem:[#allocation3 + $0x184] sm:$0xf] %v3614_v2  ;;  %v3235_v2 = vadd.f32 %v3234_v36, %v3146_v39  ;;  %v3328_v5 = vpop.f32.mrf.mxu0  ;;  %v4176_v39 = vld [vmem:[#allocation2 + $0x1a1] sm:$0xff] }
 0x2e1   : > { %v7529_v26 = vld [vmem:[#allocation3 + $0x42c] sm:$0xf0]  ;;  %3453 = vst [vmem:[#allocation2 + $0xb1] sm:$0xff] %v3381_v28  ;;  %v9145_v28 = vld [vmem:[%s10834_s3 + $0xc8] sm:$0xff] }
 0x2e2   : > { %v7532_v6 = vor.u32 %v8889_v30, %v7529_v26  ;;  %v7535_v62 = vld [vmem:[#allocation3 + $0x410] sm:$0xf]  ;;  %3647 = vst [vmem:[#allocation3 + $0x220] sm:$0xf] %v3615_v8  ;;  %v3059_v30 = vadd.f32 %v9975_v34, %v9981_v53  ;;  %v3324_v53 = vadd.f32 %v10193_v44, %v3235_v2  ;;  %6114 = vmatpush.bf16.msrb.mxu0 %v9145_v28 }
 0x2e3   : > { %v8894_v55 = vld [vmem:[#allocation3 + $0x430] sm:$0xf0]  ;;  %3933 = vst [vmem:[#allocation3 + $0x1e4] sm:$0xf] %v3615_v8  ;;  %v4207_v44 = vpack.c.bf16 %v4175_v23, %v4175_v23  ;;  %v3064_v23 = vadd.f32 %v9991_v13, %v9996_v3  ;;  %v7903_v3 = vld [vmem:[#allocation3 + $0x8] sm:$0xf] }
 0x2e4   : > { %3268 = vmatmul.bf16.gmra.mxu3 %v7532_v6  ;;  %v7536_v50 = vor.u32 %v8894_v55, %v7535_v62  ;;  %v3486_v32 = vld [vmem:[#allocation2 + $0xa8] sm:$0xff]  ;;  %4220 = vst [vmem:[#allocation3 + $0x1a8] sm:$0xf] %v3615_v8  ;;  %v3147_v8 = vpop.f32.mrf.mxu2  ;;  %v9128_v62 = vld [vmem:[%s10834_s3 + $0x40] sm:$0xff]  ;;  %v4111_v55 = vpack.c.bf16 %v9220_v37, %v9220_v37  ;;  %v3382_v59 = vmax.f32 %v3324_v53, 0.0 }
 0x2e5   : > { %v3518_v38 = vpack.c.bf16 %v3486_v32, %v3486_v32  ;;  %897 = vst [vmem:[#allocation3 + $0x450] sm:$0xf] %v865_v56  ;;  %v3148_v6 = vadd.f32 %v3147_v8, %v3059_v30  ;;  %v6964_v34 = vld [vmem:[%s9294_s8 + $0x1a1] sm:$0xff]  ;;  %5937 = vmatpush.bf16.msrb.mxu2 %v9128_v62 }
 0x2e6   : > { %3357 = vmatmul.bf16.gmra.mxu0 %v7536_v50  ;;  %898 = vst [vmem:[#allocation3 + $0x474] sm:$0xf] %v866_v24  ;;  %v9136_v24 = vld [vmem:[%s10834_s3 + $0x80] sm:$0xff]  ;;  %v962_v36 = vpack.c.bf16 %v6964_v34, %v6964_v34  ;;  %v3616_v10 = vpack.c.bf16 %v3382_v59, %v3382_v59 }
 0x2e7   : > { %3550 = vst [vmem:[#allocation3 + $0x1f8] sm:$0xf] %v3518_v38  ;;  %v6996_v50 = vld [vmem:[%s9294_s8 + $0x1a2] sm:$0xff]  ;;  %v3237_v32 = vadd.f32 %v3236_v27, %v3148_v6  ;;  %6026 = vmatpush.bf16.msrb.mxu3 %v9136_v24  ;;  %6115 = vmatpush.bf16.msrb.mxu0 %v9144_v12  ;;  %v3239_v14 = vpop.f32.mrf.mxu3 }
 0x2e8   : > { %3836 = vst [vmem:[#allocation3 + $0x1bc] sm:$0xf] %v3518_v38  ;;  %v3487_v33 = vld [vmem:[#allocation2 + $0xb0] sm:$0xff]  ;;  %v1058_v25 = vpack.c.bf16 %v6996_v50, %v6996_v50  ;;  %v3330_v62 = vpop.f32.mrf.mxu0 }
 0x2e9   : > { %v3678_v52 = vld [vmem:[#allocation2 + $0xaa] sm:$0xff]  ;;  %v3679_v15 = vld [vmem:[#allocation2 + $0xb2] sm:$0xff]  ;;  %4123 = vst [vmem:[#allocation3 + $0x180] sm:$0xf] %v3518_v38  ;;  %v3519_v45 = vpack.c.bf16 %v3487_v33, %v3487_v33  ;;  %v3326_v9 = vadd.f32 %v3325_v49, %v3237_v32 }
 0x2ea   : > { %v3710_v21 = vpack.c.bf16 %v3678_v52, %v3678_v52  ;;  %v3711_v11 = vpack.c.bf16 %v3679_v15, %v3679_v15  ;;  %993 = vst [vmem:[#allocation3 + $0x454] sm:$0xf] %v961_v51  ;;  %v1057_v51 = vpack.c.bf16 %v6995_v57, %v6995_v57  ;;  %v4271_v52 = vld [vmem:[#allocation2 + $0x19a] sm:$0xff] }
 0x2eb   : > { %3551 = vst [vmem:[#allocation3 + $0x21c] sm:$0xf] %v3519_v45  ;;  %v3383_v2 = vmax.f32 %v3326_v9, 0.0  ;;  %v4303_v28 = vpack.c.bf16 %v4271_v52, %v4271_v52  ;;  %v3069_v52 = vadd.f32 %v10008_v22, %v10013_v54 }
 0x2ec   : > { %3742 = vst [vmem:[#allocation3 + $0x200] sm:$0xf] %v3710_v21  ;;  %v7563_v0 = vld [vmem:[#allocation3 + $0x450] sm:$0xf]  ;;  %v3150_v38 = vpop.f32.mrf.mxu2 }
 0x2ed   : > { %3743 = vst [vmem:[#allocation3 + $0x224] sm:$0xf] %v3711_v11  ;;  %v8902_v26 = vld [vmem:[#allocation3 + $0x470] sm:$0xf0]  ;;  %v3151_v15 = vadd.f32 %v3150_v38, %v9993_v17  ;;  %v4304_v17 = vpack.c.bf16 %v4272_v63, %v4272_v63  ;;  %v3617_v6 = vpack.c.bf16 %v3383_v2, %v3383_v2  ;;  %v8977_v63 = vld [vmem:[#allocation3 + $0xc] sm:$0xf] }
 0x2ee   : > { %3837 = vst [vmem:[#allocation3 + $0x1e0] sm:$0xf] %v3519_v45  ;;  %v7564_v56 = vor.u32 %v8902_v26, %v7563_v0  ;;  %v8147_v29 = vld [vmem:[#allocation3 + $0x1f8] sm:$0xf]  ;;  %v10243_v0 = vpop.f32.mrf.mxu1 }
 0x2ef   : > { %4028 = vst [vmem:[#allocation3 + $0x1c4] sm:$0xf] %v3710_v21  ;;  %v3240_v8 = vadd.f32 %v3239_v14, %v3151_v15  ;;  %v3241_v30 = vpop.f32.mrf.mxu3  ;;  %v7905_v15 = vld [vmem:[#allocation3 + $0x2c] sm:$0xf0] }
 0x2f0   : > { %4029 = vst [vmem:[#allocation3 + $0x1e8] sm:$0xf] %v3711_v11  ;;  %3184 = vmatmul.bf16.gmra.mxu2 %v7564_v56  ;;  %v3333_v13 = vpop.f32.mrf.mxu0  ;;  %v7908_v22 = vor.u32 %v8977_v63, %v7905_v15 }
 0x2f1   : > { %4124 = vst [vmem:[#allocation3 + $0x1a4] sm:$0xf] %v3519_v45  ;;  %v8898_v7 = vld [vmem:[#allocation3 + $0x454] sm:$0xf]  ;;  %v8976_v45 = vld [vmem:[#allocation3 + $0x4] sm:$0xf]  ;;  %v3329_v53 = vadd.f32 %v3328_v5, %v3240_v8 }
 0x2f2   : > { %4315 = vst [vmem:[#allocation3 + $0x188] sm:$0xf] %v3710_v21  ;;  %v9043_v33 = vld [vmem:[#allocation3 + $0x218] sm:$0xf0]  ;;  %v7897_v21 = vld [vmem:[#allocation3 + $0x24] sm:$0xf0] }
 0x2f3   : > { %4316 = vst [vmem:[#allocation3 + $0x1ac] sm:$0xf] %v3711_v11  ;;  %v8148_v4 = vor.u32 %v9043_v33, %v8147_v29  ;;  %v4208_v11 = vpack.c.bf16 %v4176_v39, %v4176_v39  ;;  %v7900_v49 = vor.u32 %v8976_v45, %v7897_v21  ;;  %v3384_v57 = vmax.f32 %v3329_v53, 0.0  ;;  %v8985_v33 = vld [vmem:[#allocation3 + $0x4c] sm:$0xf] }
 0x2f4   : > { %4143 = vst [vmem:[#allocation3 + $0x450] sm:$0xf] %v4111_v55  ;;  %v3152_v27 = vpop.f32.mrf.mxu2  ;;  %v9155_v21 = vld [vmem:[%s10834_s3 + $0x118] sm:$0xff] }
 0x2f5   : > { %4144 = vst [vmem:[#allocation3 + $0x474] sm:$0xf] %v4111_v55  ;;  %5884 = vmatmul.bf16.gmra.mxu1 %v8148_v4 }
 0x2f6   : > { %994 = vst [vmem:[#allocation3 + $0x478] sm:$0xf] %v962_v36  ;;  %v3153_v36 = vadd.f32 %v3152_v27, %v3064_v23  ;;  %v10247_v50 = vpop.f32.mrf.mxu1  ;;  %6201 = vmatpush.bf16.msrb.mxu1 %v9155_v21 }
 0x2f7   : > { %4239 = vst [vmem:[#allocation3 + $0x454] sm:$0xf] %v4207_v44  ;;  %v3244_v14 = vpop.f32.mrf.mxu3 }
 0x2f8   : > { %1089 = vst [vmem:[#allocation3 + $0x458] sm:$0xf] %v1057_v51  ;;  %v3242_v39 = vadd.f32 %v3241_v30, %v3153_v36  ;;  %v7939_v36 = vld [vmem:[#allocation3 + $0x50] sm:$0xf] }
 0x2f9   : > { %1090 = vst [vmem:[#allocation3 + $0x47c] sm:$0xf] %v1058_v25 }
 0x2fa   : > { %3454 = vst [vmem:[#allocation2 + $0xc1] sm:$0xff] %v3382_v59  ;;  %v3331_v4 = vadd.f32 %v3330_v62, %v3242_v39 }
 0x2fb   : > { %3648 = vst [vmem:[#allocation3 + $0x244] sm:$0xf] %v3616_v10 }
 0x2fc   : > { %3934 = vst [vmem:[#allocation3 + $0x208] sm:$0xf] %v3616_v10  ;;  %v3155_v38 = vpop.f32.mrf.mxu2 }
 0x2fd   : > { %v7565_v26 = vld [vmem:[#allocation3 + $0x474] sm:$0xf0]  ;;  %4221 = vst [vmem:[#allocation3 + $0x1cc] sm:$0xf] %v3616_v10  ;;  %v3156_v9 = vadd.f32 %v3155_v38, %v10010_v35  ;;  %v7933_v10 = vld [vmem:[#allocation3 + $0x6c] sm:$0xf0] }
 0x2fe   : > { %v7568_v56 = vor.u32 %v8898_v7, %v7565_v26  ;;  %4240 = vst [vmem:[#allocation3 + $0x478] sm:$0xf] %v4208_v11  ;;  %v8981_v7 = vld [vmem:[#allocation3 + $0x28] sm:$0xf0]  ;;  %v7936_v11 = vor.u32 %v8985_v33, %v7933_v10  ;;  %v10255_v8 = vpop.f32.mrf.mxu1 }
 0x2ff   : > { %v7571_v24 = vld [vmem:[#allocation3 + $0x458] sm:$0xf]  ;;  %3455 = vst [vmem:[#allocation2 + $0xc9] sm:$0xff] %v3383_v2  ;;  %v7904_v29 = vor.u32 %v8981_v7, %v7903_v3  ;;  %v3245_v45 = vadd.f32 %v3244_v14, %v3156_v9  ;;  %v3246_v26 = vpop.f32.mrf.mxu3 }
 0x300   : > { %3273 = vmatmul.bf16.gmra.mxu3 %v7568_v56  ;;  %v8903_v34 = vld [vmem:[#allocation3 + $0x478] sm:$0xf0]  ;;  %4335 = vst [vmem:[#allocation3 + $0x458] sm:$0xf] %v4303_v28  ;;  %5938 = vmatmul.bf16.vlgmr.msrb.gmra.mxu2 %v7900_v49  ;;  %v3618_v28 = vpack.c.bf16 %v3384_v57, %v3384_v57 }
 0x301   : > { %v7572_v12 = vor.u32 %v8903_v34, %v7571_v24  ;;  %4336 = vst [vmem:[#allocation3 + $0x47c] sm:$0xf] %v4304_v17  ;;  %v3488_v37 = vld [vmem:[#allocation2 + $0xc0] sm:$0xff]  ;;  %v3385_v17 = vmax.f32 %v3331_v4, 0.0  ;;  %v3334_v56 = vadd.f32 %v3333_v13, %v3245_v45  ;;  %v3335_v24 = vpop.f32.mrf.mxu0 }
 0x302   : > { %v3520_v55 = vpack.c.bf16 %v3488_v37, %v3488_v37  ;;  %3649 = vst [vmem:[#allocation3 + $0x268] sm:$0xf] %v3617_v6 }
 0x303   : > { %3362 = vmatmul.bf16.gmra.mxu0 %v7572_v12  ;;  %3935 = vst [vmem:[#allocation3 + $0x22c] sm:$0xf] %v3617_v6  ;;  %v3619_v34 = vpack.c.bf16 %v3385_v17, %v3385_v17  ;;  %v3386_v53 = vmax.f32 %v3334_v56, 0.0  ;;  %v8999_v56 = vld [vmem:[#allocation3 + $0xb8] sm:$0xf0] }
 0x304   : > { %3552 = vst [vmem:[#allocation3 + $0x240] sm:$0xf] %v3520_v55  ;;  %v3157_v35 = vpop.f32.mrf.mxu2 }
 0x305   : > { %3838 = vst [vmem:[#allocation3 + $0x204] sm:$0xf] %v3520_v55  ;;  %v3158_v49 = vadd.f32 %v3157_v35, %v3069_v52  ;;  %v3620_v23 = vpack.c.bf16 %v3386_v53, %v3386_v53  ;;  %v8986_v52 = vld [vmem:[#allocation3 + $0x54] sm:$0xf] }
 0x306   : > { %4125 = vst [vmem:[#allocation3 + $0x1c8] sm:$0xf] %v3520_v55  ;;  %v3489_v32 = vld [vmem:[#allocation2 + $0xc8] sm:$0xff]  ;;  %v10257_v55 = vpop.f32.mrf.mxu1 }
 0x307   : > { %v3680_v44 = vld [vmem:[#allocation2 + $0xc2] sm:$0xff]  ;;  %v3681_v59 = vld [vmem:[#allocation2 + $0xca] sm:$0xff]  ;;  %v3521_v51 = vpack.c.bf16 %v3489_v32, %v3489_v32  ;;  %4222 = vst [vmem:[#allocation3 + $0x1f0] sm:$0xf] %v3617_v6  ;;  %v3247_v62 = vadd.f32 %v3246_v26, %v3158_v49  ;;  %v3249_v32 = vpop.f32.mrf.mxu3  ;;  %v3074_v49 = vadd.f32 %v10022_v47, %v10027_v18 }
 0x308   : > { %v3712_v5 = vpack.c.bf16 %v3680_v44, %v3680_v44  ;;  %v3713_v25 = vpack.c.bf16 %v3681_v59, %v3681_v59  ;;  %3456 = vst [vmem:[#allocation2 + $0xd9] sm:$0xff] %v3384_v57  ;;  %v8990_v44 = vld [vmem:[#allocation3 + $0x70] sm:$0xf0]  ;;  %v7969_v59 = vld [vmem:[#allocation3 + $0xb4] sm:$0xf0] }
 0x309   : > { %3553 = vst [vmem:[#allocation3 + $0x264] sm:$0xf] %v3521_v51  ;;  %v3336_v12 = vadd.f32 %v3335_v24, %v3247_v62  ;;  %v10259_v38 = vpop.f32.mrf.mxu0 }
 0x30a   : > { %3744 = vst [vmem:[#allocation3 + $0x248] sm:$0xf] %v3712_v5 }
 0x30b   : > { %3745 = vst [vmem:[#allocation3 + $0x26c] sm:$0xf] %v3713_v25  ;;  %v8183_v27 = vld [vmem:[#allocation3 + $0x240] sm:$0xf]  ;;  %v3387_v57 = vmax.f32 %v3336_v12, 0.0 }
 0x30c   : > { %3839 = vst [vmem:[#allocation3 + $0x228] sm:$0xf] %v3521_v51  ;;  %v3160_v37 = vpop.f32.mrf.mxu2  ;;  %v9003_v12 = vld [vmem:[#allocation3 + $0xdc] sm:$0xf] }
 0x30d   : > { %4030 = vst [vmem:[#allocation3 + $0x20c] sm:$0xf] %v3712_v5  ;;  %v10261_v14 = vpack.c.bf16 %v3387_v57, %v3387_v57 }
 0x30e   : > { %4031 = vst [vmem:[#allocation3 + $0x230] sm:$0xf] %v3713_v25  ;;  %v10264_v4 = vpop.f32.mrf.mxu1 }
 0x30f   : > { %4126 = vst [vmem:[#allocation3 + $0x1ec] sm:$0xf] %v3521_v51  ;;  %v3490_v2 = vld [vmem:[#allocation2 + $0xd8] sm:$0xff]  ;;  %v8994_v51 = vld [vmem:[#allocation3 + $0x94] sm:$0xf]  ;;  %v3251_v21 = vpop.f32.mrf.mxu3 }
 0x310   : > { %4317 = vst [vmem:[#allocation3 + $0x1d0] sm:$0xf] %v3712_v5  ;;  %6027 = vmatmul.bf16.vlgmr.msrb.gmra.mxu3 %v7904_v29  ;;  %v3522_v54 = vpack.c.bf16 %v3490_v2, %v3490_v2  ;;  %5943 = vmatmul.bf16.gmra.mxu2 %v7936_v11  ;;  %v9052_v30 = vld [vmem:[#allocation3 + $0x260] sm:$0xf0]  ;;  %v7940_v5 = vor.u32 %v8990_v44, %v7939_v36 }
 0x311   : > { %4318 = vst [vmem:[#allocation3 + $0x1f4] sm:$0xf] %v3713_v25  ;;  %v8184_v6 = vor.u32 %v9052_v30, %v8183_v27  ;;  %v7941_v25 = vld [vmem:[#allocation3 + $0x74] sm:$0xf0]  ;;  %v7972_v13 = vor.u32 %v8994_v51, %v7969_v59  ;;  %v3161_v11 = vadd.f32 %v3160_v37, %v10024_v20  ;;  %v3340_v35 = vpop.f32.mrf.mxu0  ;;  %v7977_v37 = vld [vmem:[#allocation3 + $0xbc] sm:$0xf0] }
 0x312   : > { %3554 = vst [vmem:[#allocation3 + $0x288] sm:$0xf] %v3522_v54  ;;  %v7944_v15 = vor.u32 %v8986_v52, %v7941_v25  ;;  %v8995_v59 = vld [vmem:[#allocation3 + $0x9c] sm:$0xf] }
 0x313   : > { %6116 = vmatmul.bf16.vlgmr.msrb.gmra.mxu0 %v7908_v22  ;;  %3650 = vst [vmem:[#allocation3 + $0x28c] sm:$0xf] %v3618_v28  ;;  %5889 = vmatmul.bf16.gmra.mxu1 %v8184_v6  ;;  %v3250_v6 = vadd.f32 %v3249_v32, %v3161_v11 }
 0x314   : > { %3840 = vst [vmem:[#allocation3 + $0x24c] sm:$0xf] %v3522_v54  ;;  %v3162_v3 = vpop.f32.mrf.mxu2 }
 0x315   : > { %3936 = vst [vmem:[#allocation3 + $0x250] sm:$0xf] %v3618_v28  ;;  %v3163_v62 = vadd.f32 %v3162_v3, %v3074_v49  ;;  %v3079_v49 = vadd.f32 %v10039_v41, %v10044_v19 }
 0x316   : > { %4127 = vst [vmem:[#allocation3 + $0x210] sm:$0xf] %v3522_v54 }
 0x317   : > { %4223 = vst [vmem:[#allocation3 + $0x214] sm:$0xf] %v3618_v28  ;;  %v3254_v44 = vpop.f32.mrf.mxu3 }
 0x318   : > { %3457 = vst [vmem:[#allocation2 + $0xe1] sm:$0xff] %v3385_v17  ;;  %v7975_v17 = vld [vmem:[#allocation3 + $0x98] sm:$0xf] }
 0x319   : > { %3651 = vst [vmem:[#allocation3 + $0x2b0] sm:$0xf] %v3619_v34  ;;  %v8219_v54 = vld [vmem:[#allocation3 + $0x288] sm:$0xf]  ;;  %v7976_v18 = vor.u32 %v8999_v56, %v7975_v17  ;;  %v3343_v51 = vpop.f32.mrf.mxu0  ;;  %v9004_v56 = vld [vmem:[#allocation3 + $0xe4] sm:$0xf] }
 0x31a   : > { %3937 = vst [vmem:[#allocation3 + $0x274] sm:$0xf] %v3619_v34 }
 0x31b   : > { %4224 = vst [vmem:[#allocation3 + $0x238] sm:$0xf] %v3619_v34  ;;  %v8005_v34 = vld [vmem:[#allocation3 + $0xfc] sm:$0xf0] }
 0x31c   : > { %3458 = vst [vmem:[#allocation2 + $0xf1] sm:$0xff] %v3386_v53  ;;  %v3165_v28 = vpop.f32.mrf.mxu2  ;;  %v10269_v53 = vpop.f32.mrf.mxu1  ;;  %v8008_v36 = vor.u32 %v9003_v12, %v8005_v34 }
 0x31d   : > { %3652 = vst [vmem:[#allocation3 + $0x2d4] sm:$0xf] %v3620_v23  ;;  %v3166_v32 = vadd.f32 %v3165_v28, %v10041_v31  ;;  %v9154_v31 = vld [vmem:[%s10834_s3 + $0x110] sm:$0xff] }
 0x31e   : > { %3938 = vst [vmem:[#allocation3 + $0x298] sm:$0xf] %v3620_v23  ;;  %6202 = vmatpush.bf16.msrb.mxu1 %v9154_v31 }
 0x31f   : > { %v3491_v7 = vld [vmem:[#allocation2 + $0xe0] sm:$0xff]  ;;  %4225 = vst [vmem:[#allocation3 + $0x25c] sm:$0xf] %v3620_v23  ;;  %v3339_v23 = vadd.f32 %v10259_v38, %v3250_v6 }
 0x320   : > { %v3682_v39 = vld [vmem:[#allocation2 + $0xda] sm:$0xff]  ;;  %v3683_v9 = vld [vmem:[#allocation2 + $0xe2] sm:$0xff]  ;;  %v3523_v10 = vpack.c.bf16 %v3491_v7, %v3491_v7  ;;  %6032 = vmatmul.bf16.gmra.mxu3 %v7940_v5  ;;  %3459 = vst [vmem:[#allocation2 + $0xf9] sm:$0xff] %v3387_v57  ;;  %5948 = vmatmul.bf16.gmra.mxu2 %v7972_v13  ;;  %v3252_v57 = vadd.f32 %v3251_v21, %v3163_v62  ;;  %v8011_v21 = vld [vmem:[#allocation3 + $0xe0] sm:$0xf] }
 0x321   : > { %v3714_v29 = vpack.c.bf16 %v3682_v39, %v3682_v39  ;;  %v3715_v33 = vpack.c.bf16 %v3683_v9, %v3683_v9  ;;  %3653 = vst [vmem:[#allocation3 + $0x2f8] sm:$0xf] %v10261_v14  ;;  %v7980_v5 = vor.u32 %v8995_v59, %v7977_v37  ;;  %v3388_v13 = vmax.f32 %v3339_v23, 0.0 }
 0x322   : > { %3555 = vst [vmem:[#allocation3 + $0x2ac] sm:$0xf] %v3523_v10  ;;  %v3341_v3 = vadd.f32 %v3340_v35, %v3252_v57  ;;  %v3255_v7 = vadd.f32 %v3254_v44, %v3166_v32  ;;  %v3345_v35 = vpop.f32.mrf.mxu0  ;;  %v3084_v32 = vadd.f32 %v10053_v58, %v10058_v61  ;;  %v8049_v61 = vld [vmem:[#allocation3 + $0x14c] sm:$0xf0] }
 0x323   : > { %3746 = vst [vmem:[#allocation3 + $0x290] sm:$0xf] %v3714_v29  ;;  %6121 = vmatmul.bf16.gmra.mxu0 %v7944_v15  ;;  %v3492_v45 = vld [vmem:[#allocation2 + $0xf0] sm:$0xff]  ;;  %v3622_v9 = vpack.c.bf16 %v3388_v13, %v3388_v13  ;;  %v3256_v15 = vpop.f32.mrf.mxu3 }
 0x324   : > { %3747 = vst [vmem:[#allocation3 + $0x2b4] sm:$0xf] %v3715_v33  ;;  %v3524_v63 = vpack.c.bf16 %v3492_v45, %v3492_v45  ;;  %v3167_v25 = vpop.f32.mrf.mxu2  ;;  %v10277_v39 = vpop.f32.mrf.mxu1 }
 0x325   : > { %3841 = vst [vmem:[#allocation3 + $0x270] sm:$0xf] %v3523_v10  ;;  %v3168_v6 = vadd.f32 %v3167_v25, %v3079_v49 }
 0x326   : > { %4032 = vst [vmem:[#allocation3 + $0x254] sm:$0xf] %v3714_v29 }
 0x327   : > { %4033 = vst [vmem:[#allocation3 + $0x278] sm:$0xf] %v3715_v33  ;;  %v3493_v2 = vld [vmem:[#allocation2 + $0xf8] sm:$0xff] }
 0x328   : > { %4128 = vst [vmem:[#allocation3 + $0x234] sm:$0xf] %v3523_v10  ;;  %v3684_v22 = vld [vmem:[#allocation2 + $0xf2] sm:$0xff]  ;;  %v3685_v27 = vld [vmem:[#allocation2 + $0xfa] sm:$0xff]  ;;  %v3525_v26 = vpack.c.bf16 %v3493_v2, %v3493_v2  ;;  %v3389_v10 = vmax.f32 %v3341_v3, 0.0 }
 0x329   : > { %4319 = vst [vmem:[#allocation3 + $0x218] sm:$0xf] %v3714_v29  ;;  %v9061_v30 = vld [vmem:[#allocation3 + $0x2a8] sm:$0xf0]  ;;  %v3716_v24 = vpack.c.bf16 %v3684_v22, %v3684_v22  ;;  %v3717_v47 = vpack.c.bf16 %v3685_v27, %v3685_v27  ;;  %v3344_v29 = vadd.f32 %v3343_v51, %v3255_v7  ;;  %v8041_v2 = vld [vmem:[#allocation3 + $0x144] sm:$0xf0] }
 0x32a   : > { %4320 = vst [vmem:[#allocation3 + $0x23c] sm:$0xf] %v3715_v33  ;;  %v8220_v20 = vor.u32 %v9061_v30, %v8219_v54  ;;  %v3623_v45 = vpack.c.bf16 %v3389_v10, %v3389_v10  ;;  %v8013_v54 = vld [vmem:[#allocation3 + $0x104] sm:$0xf0]  ;;  %v9017_v3 = vld [vmem:[#allocation3 + $0x148] sm:$0xf0] }
 0x32b   : > { %3556 = vst [vmem:[#allocation3 + $0x2d0] sm:$0xf] %v3524_v63  ;;  %v3390_v11 = vmax.f32 %v3344_v29, 0.0  ;;  %v8016_v62 = vor.u32 %v9004_v56, %v8013_v54  ;;  %v8083_v56 = vld [vmem:[#allocation3 + $0x170] sm:$0xf] }
 0x32c   : > { %3842 = vst [vmem:[#allocation3 + $0x294] sm:$0xf] %v3524_v63  ;;  %5894 = vmatmul.bf16.gmra.mxu1 %v8220_v20 }
 0x32d   : > { %4129 = vst [vmem:[#allocation3 + $0x258] sm:$0xf] %v3524_v63  ;;  %v9008_v63 = vld [vmem:[#allocation3 + $0x100] sm:$0xf0]  ;;  %v10282_v27 = vpack.c.bf16 %v3390_v11, %v3390_v11 }
 0x32e   : > { %3557 = vst [vmem:[#allocation3 + $0x2f4] sm:$0xf] %v3525_v26  ;;  %v8012_v22 = vor.u32 %v9008_v63, %v8011_v21 }
 0x32f   : > { %3748 = vst [vmem:[#allocation3 + $0x2d8] sm:$0xf] %v3716_v24 }
 0x330   : > { %3749 = vst [vmem:[#allocation3 + $0x2fc] sm:$0xf] %v3717_v47  ;;  %6037 = vmatmul.bf16.gmra.mxu3 %v7976_v18  ;;  %5953 = vmatmul.bf16.gmra.mxu2 %v8008_v36  ;;  %v3348_v18 = vpop.f32.mrf.mxu0 }
 0x331   : > { %3843 = vst [vmem:[#allocation3 + $0x2b8] sm:$0xf] %v3525_v26  ;;  %v3170_v28 = vpop.f32.mrf.mxu2 }
 0x332   : > { %3939 = vst [vmem:[#allocation3 + $0x2bc] sm:$0xf] %v10261_v14  ;;  %v8255_v33 = vld [vmem:[#allocation3 + $0x2d0] sm:$0xf]  ;;  %v3171_v57 = vadd.f32 %v3170_v28, %v10055_v60 }
 0x333   : > { %4034 = vst [vmem:[#allocation3 + $0x29c] sm:$0xf] %v3716_v24  ;;  %6126 = vmatmul.bf16.gmra.mxu0 %v7980_v5  ;;  %v3259_v41 = vpop.f32.mrf.mxu3  ;;  %v8077_v60 = vld [vmem:[#allocation3 + $0x18c] sm:$0xf0] }
 0x334   : > { %4035 = vst [vmem:[#allocation3 + $0x2c0] sm:$0xf] %v3717_v47  ;;  %v3260_v51 = vadd.f32 %v3259_v41, %v3171_v57  ;;  %v8085_v57 = vld [vmem:[#allocation3 + $0x194] sm:$0xf0] }
 0x335   : > { %4130 = vst [vmem:[#allocation3 + $0x27c] sm:$0xf] %v3525_v26  ;;  %v9070_v38 = vld [vmem:[#allocation3 + $0x2f0] sm:$0xf0]  ;;  %v10284_v26 = vpop.f32.mrf.mxu1 }
 0x336   : > { %4226 = vst [vmem:[#allocation3 + $0x280] sm:$0xf] %v10261_v14  ;;  %v8256_v52 = vor.u32 %v9070_v38, %v8255_v33  ;;  %v9012_v14 = vld [vmem:[#allocation3 + $0x124] sm:$0xf]  ;;  %v9021_v38 = vld [vmem:[#allocation3 + $0x16c] sm:$0xf] }
 0x337   : > { %4321 = vst [vmem:[#allocation3 + $0x260] sm:$0xf] %v3716_v24  ;;  %v8044_v30 = vor.u32 %v9012_v14, %v8041_v2 }
 0x338   : > { %4322 = vst [vmem:[#allocation3 + $0x284] sm:$0xf] %v3717_v47  ;;  %v3257_v47 = vadd.f32 %v3256_v15, %v3168_v6  ;;  %v3350_v33 = vpop.f32.mrf.mxu0 }
 0x339   : > { %3460 = vst [vmem:[#allocation2 + $0x109] sm:$0xff] %v3388_v13  ;;  %v3172_v36 = vpop.f32.mrf.mxu2  ;;  %v8047_v13 = vld [vmem:[#allocation3 + $0x128] sm:$0xf] }
 0x33a   : > { %3654 = vst [vmem:[#allocation3 + $0x31c] sm:$0xf] %v3622_v9  ;;  %v3346_v59 = vadd.f32 %v3345_v35, %v3257_v47  ;;  %v3173_v5 = vadd.f32 %v3172_v36, %v3084_v32  ;;  %v8048_v29 = vor.u32 %v9017_v3, %v8047_v13  ;;  %v9013_v35 = vld [vmem:[#allocation3 + $0x12c] sm:$0xf] }
 0x33b   : > { %3940 = vst [vmem:[#allocation3 + $0x2e0] sm:$0xf] %v3622_v9  ;;  %v3261_v31 = vpop.f32.mrf.mxu3  ;;  %v8052_v2 = vor.u32 %v9013_v35, %v8049_v61 }
 0x33c   : > { %4227 = vst [vmem:[#allocation3 + $0x2a4] sm:$0xf] %v3622_v9  ;;  %5899 = vmatmul.bf16.gmra.mxu1 %v8256_v52  ;;  %v3391_v58 = vmax.f32 %v3346_v59, 0.0  ;;  %v3349_v9 = vadd.f32 %v3348_v18, %v3260_v51  ;;  %v9153_v51 = vld [vmem:[%s10834_s3 + $0x108] sm:$0xff] }
 0x33d   : > { %3461 = vst [vmem:[#allocation2 + $0x111] sm:$0xff] %v3389_v10  ;;  %v10291_v25 = vpop.f32.mrf.mxu1  ;;  %v3262_v10 = vadd.f32 %v3261_v31, %v3173_v5  ;;  %6203 = vmatpush.bf16.msrb.mxu1 %v9153_v51 }
 0x33e   : > { %3655 = vst [vmem:[#allocation3 + $0x340] sm:$0xf] %v3623_v45  ;;  %v3625_v63 = vpack.c.bf16 %v3391_v58, %v3391_v58  ;;  %v3392_v28 = vmax.f32 %v3349_v9, 0.0 }
 0x33f   : > { %3941 = vst [vmem:[#allocation3 + $0x304] sm:$0xf] %v3623_v45  ;;  %v3351_v14 = vadd.f32 %v3350_v33, %v3262_v10 }
 0x340   : > { %v3494_v17 = vld [vmem:[#allocation2 + $0x108] sm:$0xff]  ;;  %4228 = vst [vmem:[#allocation3 + $0x2c8] sm:$0xf] %v3623_v45  ;;  %6042 = vmatmul.bf16.gmra.mxu3 %v8012_v22  ;;  %5958 = vmatmul.bf16.gmra.mxu2 %v8044_v30  ;;  %v8080_v45 = vor.u32 %v9021_v38, %v8077_v60  ;;  %v3626_v22 = vpack.c.bf16 %v3392_v28, %v3392_v28  ;;  %v10839_v38 = vld [vmem:[#allocation5_spill] sm:$0xff] }
 0x341   : > { %v3526_v20 = vpack.c.bf16 %v3494_v17, %v3494_v17  ;;  %3462 = vst [vmem:[#allocation2 + $0x121] sm:$0xff] %v3390_v11  ;;  %v3175_v11 = vpop.f32.mrf.mxu2  ;;  %v3393_v54 = vmax.f32 %v3351_v14, 0.0  ;;  %v9035_v14 = vld [vmem:[#allocation3 + $0x1d8] sm:$0xf0] }
 0x342   : > { %3656 = vst [vmem:[#allocation3 + $0x364] sm:$0xf] %v10282_v27  ;;  %v3176_v5 = vadd.f32 %v3175_v11, %v10072_v42 }
 0x343   : > { %3558 = vst [vmem:[#allocation3 + $0x318] sm:$0xf] %v3526_v20  ;;  %6131 = vmatmul.bf16.gmra.mxu0 %v8016_v62  ;;  %v10298_v17 = vpack.c.bf16 %v3393_v54, %v3393_v54  ;;  %v8113_v62 = vld [vmem:[#allocation3 + $0x1d4] sm:$0xf0] }
 0x344   : > { %3844 = vst [vmem:[#allocation3 + $0x2dc] sm:$0xf] %v3526_v20  ;;  %v3495_v19 = vld [vmem:[#allocation2 + $0x110] sm:$0xff] }
 0x345   : > { %v3686_v24 = vld [vmem:[#allocation2 + $0x10a] sm:$0xff]  ;;  %v3687_v34 = vld [vmem:[#allocation2 + $0x112] sm:$0xff]  ;;  %4131 = vst [vmem:[#allocation3 + $0x2a0] sm:$0xf] %v3526_v20  ;;  %v3527_v12 = vpack.c.bf16 %v3495_v19, %v3495_v19  ;;  %v10294_v49 = vpop.f32.mrf.mxu1 }
 0x346   : > { %v3718_v37 = vpack.c.bf16 %v3686_v24, %v3686_v24  ;;  %v3719_v23 = vpack.c.bf16 %v3687_v34, %v3687_v34  ;;  %3942 = vst [vmem:[#allocation3 + $0x328] sm:$0xf] %v10282_v27 }
 0x347   : > { %3559 = vst [vmem:[#allocation3 + $0x33c] sm:$0xf] %v3527_v12 }
 0x348   : > { %3750 = vst [vmem:[#allocation3 + $0x320] sm:$0xf] %v3718_v37  ;;  %v3496_v44 = vld [vmem:[#allocation2 + $0x120] sm:$0xff] }
 0x349   : > { %3751 = vst [vmem:[#allocation3 + $0x344] sm:$0xf] %v3719_v23  ;;  %v3528_v7 = vpack.c.bf16 %v3496_v44, %v3496_v44  ;;  %v10296_v30 = vpop.f32.mrf.mxu0  ;;  %v3177_v20 = vpop.f32.mrf.mxu2  ;;  %v9022_v44 = vld [vmem:[#allocation3 + $0x174] sm:$0xf] }
 0x34a   : > { %3845 = vst [vmem:[#allocation3 + $0x300] sm:$0xf] %v3527_v12  ;;  %v8291_v52 = vld [vmem:[#allocation3 + $0x318] sm:$0xf]  ;;  %v8088_v59 = vor.u32 %v9022_v44, %v8085_v57 }
 0x34b   : > { %4036 = vst [vmem:[#allocation3 + $0x2e4] sm:$0xf] %v3718_v37 }
 0x34c   : > { %4037 = vst [vmem:[#allocation3 + $0x308] sm:$0xf] %v3719_v23 }
 0x34d   : > { %4132 = vst [vmem:[#allocation3 + $0x2c4] sm:$0xf] %v3527_v12  ;;  %v3264_v6 = vpop.f32.mrf.mxu3  ;;  %v10301_v12 = vpop.f32.mrf.mxu1 }
 0x34e   : > { %4323 = vst [vmem:[#allocation3 + $0x2a8] sm:$0xf] %v3718_v37  ;;  %v9079_v15 = vld [vmem:[#allocation3 + $0x338] sm:$0xf0]  ;;  %v9030_v37 = vld [vmem:[#allocation3 + $0x1b4] sm:$0xf]  ;;  %v3265_v42 = vadd.f32 %v3264_v6, %v3176_v5 }
 0x34f   : > { %4324 = vst [vmem:[#allocation3 + $0x2cc] sm:$0xf] %v3719_v23  ;;  %v8292_v21 = vor.u32 %v9079_v15, %v8291_v52  ;;  %v8116_v36 = vor.u32 %v9030_v37, %v8113_v62  ;;  %v9039_v62 = vld [vmem:[#allocation3 + $0x1fc] sm:$0xf] }
 0x350   : > { %3560 = vst [vmem:[#allocation3 + $0x360] sm:$0xf] %v3528_v7  ;;  %6047 = vmatmul.bf16.gmra.mxu3 %v8048_v29  ;;  %5963 = vmatmul.bf16.gmra.mxu2 %v8080_v45 }
 0x351   : > { %3846 = vst [vmem:[#allocation3 + $0x324] sm:$0xf] %v3528_v7  ;;  %5904 = vmatmul.bf16.gmra.mxu1 %v8292_v21  ;;  %v3355_v13 = vpop.f32.mrf.mxu0 }
 0x352   : > { %4133 = vst [vmem:[#allocation3 + $0x2e8] sm:$0xf] %v3528_v7 }
 0x353   : > { %4229 = vst [vmem:[#allocation3 + $0x2ec] sm:$0xf] %v10282_v27  ;;  %6136 = vmatmul.bf16.gmra.mxu0 %v8052_v2  ;;  %v9026_v27 = vld [vmem:[#allocation3 + $0x190] sm:$0xf0] }
 0x354   : > { %3463 = vst [vmem:[#allocation2 + $0x129] sm:$0xff] %v3391_v58  ;;  %v8084_v23 = vor.u32 %v9026_v27, %v8083_v56  ;;  %v10840_v58 = vld [vmem:[#allocation4_spill] sm:$0xff] }
 0x355   : > { %3657 = vst [vmem:[#allocation3 + $0x388] sm:$0xf] %v3625_v63  ;;  %v3266_v7 = vpop.f32.mrf.mxu3  ;;  %v3089_v61 = vadd.f32 %v10840_v58, %v10839_v38  ;;  %v10309_v11 = vpop.f32.mrf.mxu1  ;;  %v9044_v38 = vld [vmem:[#allocation3 + $0x220] sm:$0xf0]  ;;  %v8185_v58 = vld [vmem:[#allocation3 + $0x264] sm:$0xf0] }
 0x356   : > { %3943 = vst [vmem:[#allocation3 + $0x34c] sm:$0xf] %v3625_v63 }
 0x357   : > { %4230 = vst [vmem:[#allocation3 + $0x310] sm:$0xf] %v3625_v63  ;;  %v8327_v10 = vld [vmem:[#allocation3 + $0x360] sm:$0xf]  ;;  %v3178_v45 = vadd.f32 %v3177_v20, %v3089_v61  ;;  %v3354_v63 = vadd.f32 %v10296_v30, %v3265_v42 }
 0x358   : > { %3464 = vst [vmem:[#allocation2 + $0x139] sm:$0xff] %v3392_v28  ;;  %v8119_v28 = vld [vmem:[#allocation3 + $0x1b8] sm:$0xf] }
 0x359   : > { %3658 = vst [vmem:[#allocation3 + $0x3ac] sm:$0xf] %v3626_v22  ;;  %v3180_v31 = vpop.f32.mrf.mxu2  ;;  %v3267_v2 = vadd.f32 %v3266_v7, %v3178_v45  ;;  %v8120_v6 = vor.u32 %v9035_v14, %v8119_v28 }
 0x35a   : > { %3944 = vst [vmem:[#allocation3 + $0x370] sm:$0xf] %v3626_v22 }
 0x35b   : > { %v3497_v41 = vld [vmem:[#allocation2 + $0x128] sm:$0xff]  ;;  %4231 = vst [vmem:[#allocation3 + $0x334] sm:$0xf] %v3626_v22  ;;  %v3181_v22 = vadd.f32 %v3180_v31, %v10084_v16  ;;  %v8155_v31 = vld [vmem:[#allocation3 + $0x200] sm:$0xf] }
 0x35c   : > { %v3688_v19 = vld [vmem:[#allocation2 + $0x122] sm:$0xff]  ;;  %v3689_v24 = vld [vmem:[#allocation2 + $0x12a] sm:$0xff]  ;;  %v3529_v34 = vpack.c.bf16 %v3497_v41, %v3497_v41  ;;  %3465 = vst [vmem:[#allocation2 + $0x141] sm:$0xff] %v3393_v54  ;;  %v3394_v41 = vmax.f32 %v3354_v63, 0.0 }
 0x35d   : > { %v3720_v47 = vpack.c.bf16 %v3688_v19, %v3688_v19  ;;  %v3721_v18 = vpack.c.bf16 %v3689_v24, %v3689_v24  ;;  %3659 = vst [vmem:[#allocation3 + $0x3d0] sm:$0xf] %v10298_v17  ;;  %v8149_v54 = vld [vmem:[#allocation3 + $0x21c] sm:$0xf0]  ;;  %v3356_v19 = vadd.f32 %v3355_v13, %v3267_v2  ;;  %v9031_v16 = vld [vmem:[#allocation3 + $0x1bc] sm:$0xf]  ;;  %v10314_v37 = vpop.f32.mrf.mxu1 }
 0x35e   : > { %3561 = vst [vmem:[#allocation3 + $0x384] sm:$0xf] %v3529_v34  ;;  %v8121_v24 = vld [vmem:[#allocation3 + $0x1dc] sm:$0xf0] }
 0x35f   : > { %3752 = vst [vmem:[#allocation3 + $0x368] sm:$0xf] %v3720_v47  ;;  %v3498_v32 = vld [vmem:[#allocation2 + $0x138] sm:$0xff]  ;;  %v3395_v57 = vmax.f32 %v3356_v19, 0.0 }
 0x360   : > { %3753 = vst [vmem:[#allocation3 + $0x38c] sm:$0xf] %v3721_v18  ;;  %6052 = vmatmul.bf16.gmra.mxu3 %v8084_v23  ;;  %5968 = vmatmul.bf16.gmra.mxu2 %v8116_v36  ;;  %v3530_v3 = vpack.c.bf16 %v3498_v32, %v3498_v32  ;;  %v3628_v23 = vpack.c.bf16 %v3394_v41, %v3394_v41 }
 0x361   : > { %3847 = vst [vmem:[#allocation3 + $0x348] sm:$0xf] %v3529_v34  ;;  %v3182_v27 = vpop.f32.mrf.mxu2 }
 0x362   : > { %4038 = vst [vmem:[#allocation3 + $0x32c] sm:$0xf] %v3720_v47 }
 0x363   : > { %4039 = vst [vmem:[#allocation3 + $0x350] sm:$0xf] %v3721_v18  ;;  %v3499_v60 = vld [vmem:[#allocation2 + $0x140] sm:$0xff]  ;;  %6141 = vmatmul.bf16.gmra.mxu0 %v8088_v59  ;;  %v3358_v56 = vpop.f32.mrf.mxu0  ;;  %v3629_v59 = vpack.c.bf16 %v3395_v57, %v3395_v57 }
 0x364   : > { %4134 = vst [vmem:[#allocation3 + $0x30c] sm:$0xf] %v3529_v34  ;;  %v3690_v9 = vld [vmem:[#allocation2 + $0x13a] sm:$0xff]  ;;  %v3691_v29 = vld [vmem:[#allocation2 + $0x142] sm:$0xff]  ;;  %v3531_v52 = vpack.c.bf16 %v3499_v60, %v3499_v60  ;;  %v8152_v34 = vor.u32 %v9039_v62, %v8149_v54  ;;  %v3094_v60 = vadd.f32 %v10087_v46, %v10089_v40  ;;  %v9040_v46 = vld [vmem:[#allocation3 + $0x204] sm:$0xf] }
 0x365   : > { %4325 = vst [vmem:[#allocation3 + $0x2f0] sm:$0xf] %v3720_v47  ;;  %v9088_v33 = vld [vmem:[#allocation3 + $0x380] sm:$0xf0]  ;;  %v3722_v21 = vpack.c.bf16 %v3690_v9, %v3690_v9  ;;  %v3723_v35 = vpack.c.bf16 %v3691_v29, %v3691_v29  ;;  %v8124_v47 = vor.u32 %v9031_v16, %v8121_v24  ;;  %v8157_v29 = vld [vmem:[#allocation3 + $0x224] sm:$0xf0] }
 0x366   : > { %4326 = vst [vmem:[#allocation3 + $0x314] sm:$0xf] %v3721_v18  ;;  %v8328_v15 = vor.u32 %v9088_v33, %v8327_v10  ;;  %v3183_v9 = vadd.f32 %v3182_v27, %v3094_v60  ;;  %v9048_v33 = vld [vmem:[#allocation3 + $0x244] sm:$0xf]  ;;  %v8160_v2 = vor.u32 %v9040_v46, %v8157_v29  ;;  %v9152_v62 = vld [vmem:[%s10834_s3 + $0x100] sm:$0xff] }
 0x367   : > { %3562 = vst [vmem:[#allocation3 + $0x3a8] sm:$0xf] %v3530_v3  ;;  %v3269_v20 = vpop.f32.mrf.mxu3  ;;  %v8188_v42 = vor.u32 %v9048_v33, %v8185_v58  ;;  %6204 = vmatpush.bf16.msrb.mxu1 %v9152_v62  ;;  %v9057_v58 = vld [vmem:[#allocation3 + $0x28c] sm:$0xf] }
 0x368   : > { %3848 = vst [vmem:[#allocation3 + $0x36c] sm:$0xf] %v3530_v3  ;;  %5909 = vmatmul.bf16.gmra.mxu1 %v8328_v15  ;;  %v3270_v30 = vadd.f32 %v3269_v20, %v3181_v22  ;;  %v7861_v20 = vld [vmem:[%s9294_s8 + $0x19] sm:$0xff] }
 0x369   : > { %4135 = vst [vmem:[#allocation3 + $0x330] sm:$0xf] %v3530_v3  ;;  %v9049_v46 = vld [vmem:[#allocation3 + $0x24c] sm:$0xf] }
 0x36a   : > { %3563 = vst [vmem:[#allocation3 + $0x3cc] sm:$0xf] %v3531_v52  ;;  %v3359_v36 = vadd.f32 %v3358_v56, %v3270_v30  ;;  %v5851_v30 = vadd.f32 %v7861_v20, %v10247_v50  ;;  %v9167_v50 = vld [vmem:[%s10834_s3 + $0x178] sm:$0xff] }
 0x36b   : > { %3754 = vst [vmem:[#allocation3 + $0x3b0] sm:$0xf] %v3722_v21  ;;  %v3360_v5 = vpop.f32.mrf.mxu0  ;;  %6286 = vmatpush.bf16.msra.mxu2 %v9167_v50 }
 0x36c   : > { %3755 = vst [vmem:[#allocation3 + $0x3d4] sm:$0xf] %v3723_v35  ;;  %v3396_v51 = vmax.f32 %v3359_v36, 0.0  ;;  %v8191_v36 = vld [vmem:[#allocation3 + $0x248] sm:$0xf] }
 0x36d   : > { %3849 = vst [vmem:[#allocation3 + $0x390] sm:$0xf] %v3531_v52 }
 0x36e   : > { %3945 = vst [vmem:[#allocation3 + $0x394] sm:$0xf] %v10298_v17  ;;  %v8363_v32 = vld [vmem:[#allocation3 + $0x3a8] sm:$0xf]  ;;  %v10321_v7 = vpack.c.bf16 %v3396_v51, %v3396_v51 }
 0x36f   : > { %4040 = vst [vmem:[#allocation3 + $0x374] sm:$0xf] %v3722_v21  ;;  %v3271_v3 = vpop.f32.mrf.mxu3 }
 0x370   : > { %4041 = vst [vmem:[#allocation3 + $0x398] sm:$0xf] %v3723_v35  ;;  %6057 = vmatmul.bf16.gmra.mxu3 %v8120_v6  ;;  %5973 = vmatmul.bf16.gmra.mxu2 %v8152_v34  ;;  %v3010_v6 = vadd.f32 %v10091_v43, %v10097_v1 }
 0x371   : > { %4136 = vst [vmem:[#allocation3 + $0x354] sm:$0xf] %v3531_v52  ;;  %v9097_v18 = vld [vmem:[#allocation3 + $0x3c8] sm:$0xf0]  ;;  %v8156_v52 = vor.u32 %v9044_v38, %v8155_v31 }
 0x372   : > { %4232 = vst [vmem:[#allocation3 + $0x358] sm:$0xf] %v10298_v17  ;;  %v8364_v44 = vor.u32 %v9097_v18, %v8363_v32  ;;  %v10317_v17 = vpop.f32.mrf.mxu1  ;;  %v3099_v24 = vadd.f32 %v10243_v0, %v3010_v6  ;;  %v9053_v32 = vld [vmem:[#allocation3 + $0x268] sm:$0xf0] }
 0x373   : > { %4327 = vst [vmem:[#allocation3 + $0x338] sm:$0xf] %v3722_v21  ;;  %6146 = vmatmul.bf16.gmra.mxu0 %v8124_v47  ;;  %v3185_v13 = vpop.f32.mrf.mxu2 }
 0x374   : > { %4328 = vst [vmem:[#allocation3 + $0x35c] sm:$0xf] %v3723_v35  ;;  %v3272_v35 = vadd.f32 %v3271_v3, %v3183_v9  ;;  %v3186_v54 = vadd.f32 %v3185_v13, %v10094_v48  ;;  %v8221_v13 = vld [vmem:[#allocation3 + $0x2ac] sm:$0xf0]  ;;  %v9183_v3 = vld [vmem:[%s10834_s3 + $0x1f8] sm:$0xff]  ;;  %v8192_v9 = vor.u32 %v9053_v32, %v8191_v36 }
 0x375   : > { %3466 = vst [vmem:[#allocation2 + $0x151] sm:$0xff] %v3394_v41  ;;  %v8224_v29 = vor.u32 %v9057_v58, %v8221_v13  ;;  %6464 = vmatpush.bf16.msra.mxu0 %v9183_v3  ;;  %v8229_v32 = vld [vmem:[#allocation3 + $0x2b4] sm:$0xf0] }
 0x376   : > { %3660 = vst [vmem:[#allocation3 + $0x3f4] sm:$0xf] %v3628_v23  ;;  %v3361_v19 = vadd.f32 %v3360_v5, %v3272_v35  ;;  %v9175_v5 = vld [vmem:[%s10834_s3 + $0x1b8] sm:$0xff] }
 0x377   : > { %3946 = vst [vmem:[#allocation3 + $0x3b8] sm:$0xf] %v3628_v23  ;;  %6375 = vmatpush.bf16.msra.mxu3 %v9175_v5  ;;  %v7863_v35 = vld [vmem:[%s9294_s8 + $0x31] sm:$0xff] }
 0x378   : > { %4233 = vst [vmem:[#allocation3 + $0x37c] sm:$0xf] %v3628_v23  ;;  %5914 = vmatmul.bf16.gmra.mxu1 %v8364_v44  ;;  %v3397_v18 = vmax.f32 %v3361_v19, 0.0 }
 0x379   : > { %3467 = vst [vmem:[#allocation2 + $0x159] sm:$0xff] %v3395_v57 }
 0x37a   : > { %3661 = vst [vmem:[#allocation3 + $0x418] sm:$0xf] %v3629_v59  ;;  %v10325_v56 = vpop.f32.mrf.mxu1  ;;  %v3631_v31 = vpack.c.bf16 %v3397_v18, %v3397_v18 }
 0x37b   : > { %3947 = vst [vmem:[#allocation3 + $0x3dc] sm:$0xf] %v3629_v59  ;;  %v3187_v40 = vpop.f32.mrf.mxu2 }
 0x37c   : > { %v3500_v61 = vld [vmem:[#allocation2 + $0x150] sm:$0xff]  ;;  %4234 = vst [vmem:[#allocation3 + $0x3a0] sm:$0xf] %v3629_v59  ;;  %v3188_v16 = vadd.f32 %v3187_v40, %v3099_v24 }
 0x37d   : > { %v3532_v10 = vpack.c.bf16 %v3500_v61, %v3500_v61  ;;  %3468 = vst [vmem:[#allocation2 + $0x169] sm:$0xff] %v3396_v51 }
 0x37e   : > { %3662 = vst [vmem:[#allocation3 + $0x43c] sm:$0xf] %v10321_v7 }
 0x37f   : > { %3564 = vst [vmem:[#allocation3 + $0x3f0] sm:$0xf] %v3532_v10 }
 0x380   : > { %3850 = vst [vmem:[#allocation3 + $0x3b4] sm:$0xf] %v3532_v10  ;;  %v3501_v15 = vld [vmem:[#allocation2 + $0x158] sm:$0xff]  ;;  %v3363_v63 = vpop.f32.mrf.mxu0  ;;  %6062 = vmatmul.bf16.gmra.mxu3 %v8156_v52  ;;  %5978 = vmatmul.bf16.gmra.mxu2 %v8188_v42 }
 0x381   : > { %v3692_v45 = vld [vmem:[#allocation2 + $0x152] sm:$0xff]  ;;  %v3693_v21 = vld [vmem:[#allocation2 + $0x15a] sm:$0xff]  ;;  %4137 = vst [vmem:[#allocation3 + $0x378] sm:$0xf] %v3532_v10  ;;  %v3533_v28 = vpack.c.bf16 %v3501_v15, %v3501_v15 }
 0x382   : > { %v3724_v14 = vpack.c.bf16 %v3692_v45, %v3692_v45  ;;  %v3725_v22 = vpack.c.bf16 %v3693_v21, %v3693_v21  ;;  %3948 = vst [vmem:[#allocation3 + $0x400] sm:$0xf] %v10321_v7  ;;  %v10336_v44 = vpop.f32.mrf.mxu1  ;;  %v8193_v10 = vld [vmem:[#allocation3 + $0x26c] sm:$0xf0] }
 0x383   : > { %3565 = vst [vmem:[#allocation3 + $0x414] sm:$0xf] %v3533_v28  ;;  %6151 = vmatmul.bf16.gmra.mxu0 %v8160_v2  ;;  %v3274_v27 = vpop.f32.mrf.mxu3  ;;  %v5939_v43 = vpop.f32.mrf.mxu2  ;;  %v8196_v15 = vor.u32 %v9049_v46, %v8193_v10  ;;  %v7862_v21 = vld [vmem:[%s9294_s8 + $0x21] sm:$0xff] }
 0x384   : > { %3756 = vst [vmem:[#allocation3 + $0x3f8] sm:$0xf] %v3724_v14  ;;  %v3502_v41 = vld [vmem:[#allocation2 + $0x168] sm:$0xff]  ;;  %v3275_v48 = vadd.f32 %v3274_v27, %v3186_v54  ;;  %v5940_v47 = vadd.f32 %v5939_v43, %v5851_v30 }
 0x385   : > { %3757 = vst [vmem:[#allocation3 + $0x41c] sm:$0xf] %v3725_v22  ;;  %v3534_v1 = vpack.c.bf16 %v3502_v41, %v3502_v41 }
 0x386   : > { %3851 = vst [vmem:[#allocation3 + $0x3d8] sm:$0xf] %v3533_v28  ;;  %v3364_v23 = vadd.f32 %v3363_v63, %v3275_v48  ;;  %v8399_v57 = vld [vmem:[#allocation3 + $0x3f0] sm:$0xf] }
 0x387   : > { %4042 = vst [vmem:[#allocation3 + $0x3bc] sm:$0xf] %v3724_v14 }
 0x388   : > { %4043 = vst [vmem:[#allocation3 + $0x3e0] sm:$0xf] %v3725_v22  ;;  %v3365_v34 = vpop.f32.mrf.mxu0  ;;  %v3398_v38 = vmax.f32 %v3364_v23, 0.0  ;;  %v9066_v23 = vld [vmem:[#allocation3 + $0x2d4] sm:$0xf] }
 0x389   : > { %4138 = vst [vmem:[#allocation3 + $0x39c] sm:$0xf] %v3533_v28  ;;  %v9191_v28 = vld [vmem:[%s10834_s3 + $0x238] sm:$0xff] }
 0x38a   : > { %4329 = vst [vmem:[#allocation3 + $0x380] sm:$0xf] %v3724_v14  ;;  %v9106_v0 = vld [vmem:[#allocation3 + $0x410] sm:$0xf0]  ;;  %v3918_v40 = vpack.c.bf16 %v3398_v38, %v3398_v38  ;;  %v10348_v45 = vpop.f32.mrf.mxu1  ;;  %v5853_v14 = vadd.f32 %v7862_v21, %v10255_v8  ;;  %6553 = vmatpush.bf16.msra.mxu1 %v9191_v28  ;;  %v9174_v21 = vld [vmem:[%s10834_s3 + $0x1b0] sm:$0xff] }
 0x38b   : > { %4330 = vst [vmem:[#allocation3 + $0x3a4] sm:$0xf] %v3725_v22  ;;  %v8400_v59 = vor.u32 %v9106_v0, %v8399_v57  ;;  %v3276_v51 = vpop.f32.mrf.mxu3  ;;  %v5941_v33 = vpop.f32.mrf.mxu2  ;;  %v5856_v22 = vadd.f32 %v7863_v35, %v10257_v55  ;;  %v8227_v55 = vld [vmem:[#allocation3 + $0x290] sm:$0xf]  ;;  %6376 = vmatpush.bf16.msra.mxu3 %v9174_v21  ;;  %v8991_v21 = vld [vmem:[#allocation3 + $0x78] sm:$0xf0] }
 0x38c   : > { %3566 = vst [vmem:[#allocation3 + $0x438] sm:$0xf] %v3534_v1  ;;  %v3277_v60 = vadd.f32 %v3276_v51, %v3188_v16  ;;  %v5942_v62 = vadd.f32 %v5941_v33, %v5853_v14  ;;  %v8257_v16 = vld [vmem:[#allocation3 + $0x2f4] sm:$0xf0]  ;;  %v7864_v33 = vld [vmem:[%s9294_s8 + $0x39] sm:$0xff] }
 0x38d   : > { %3852 = vst [vmem:[#allocation3 + $0x3fc] sm:$0xf] %v3534_v1  ;;  %5919 = vmatmul.bf16.gmra.mxu1 %v8400_v59  ;;  %v8260_v0 = vor.u32 %v9066_v23, %v8257_v16  ;;  %v5858_v35 = vadd.f32 %v7864_v33, %v10264_v4  ;;  %v9067_v16 = vld [vmem:[#allocation3 + $0x2dc] sm:$0xf]  ;;  %v8329_v33 = vld [vmem:[#allocation3 + $0x384] sm:$0xf0] }
 0x38e   : > { %4139 = vst [vmem:[#allocation3 + $0x3c0] sm:$0xf] %v3534_v1  ;;  %v3366_v61 = vadd.f32 %v3365_v34, %v3277_v60  ;;  %v9062_v34 = vld [vmem:[#allocation3 + $0x2b0] sm:$0xf0] }
 0x38f   : > { %4235 = vst [vmem:[#allocation3 + $0x3c4] sm:$0xf] %v10321_v7  ;;  %v8228_v36 = vor.u32 %v9062_v34, %v8227_v55  ;;  %v9058_v60 = vld [vmem:[#allocation3 + $0x294] sm:$0xf] }
 0x390   : > { %3469 = vst [vmem:[#allocation2 + $0x171] sm:$0xff] %v3397_v18  ;;  %v3399_v52 = vmax.f32 %v3366_v61, 0.0  ;;  %v6117_v42 = vpop.f32.mrf.mxu0  ;;  %6067 = vmatmul.bf16.gmra.mxu3 %v8192_v9  ;;  %5983 = vmatmul.bf16.gmra.mxu2 %v8224_v29  ;;  %v8232_v61 = vor.u32 %v9058_v60, %v8229_v32  ;;  %v8982_v55 = vld [vmem:[#allocation3 + $0x30] sm:$0xf0] }
 0x391   : > { %3663 = vst [vmem:[#allocation3 + $0x460] sm:$0xf] %v3631_v31 }
 0x392   : > { %3949 = vst [vmem:[#allocation3 + $0x424] sm:$0xf] %v3631_v31  ;;  %v3919_v7 = vpack.c.bf16 %v3399_v52, %v3399_v52  ;;  %v10359_v8 = vpop.f32.mrf.mxu1 }
 0x393   : > { %4236 = vst [vmem:[#allocation3 + $0x3e8] sm:$0xf] %v3631_v31  ;;  %6156 = vmatmul.bf16.gmra.mxu0 %v8196_v15  ;;  %v6028_v63 = vpop.f32.mrf.mxu3  ;;  %v5944_v41 = vpop.f32.mrf.mxu2  ;;  %v9166_v15 = vld [vmem:[%s10834_s3 + $0x170] sm:$0xff] }
 0x394   : > { %3470 = vst [vmem:[#allocation2 + $0x181] sm:$0xff] %v3398_v38  ;;  %v6029_v2 = vadd.f32 %v6028_v63, %v5940_v47  ;;  %v5945_v43 = vadd.f32 %v5944_v41, %v5856_v22  ;;  %v8435_v38 = vld [vmem:[#allocation3 + $0x438] sm:$0xf]  ;;  %6287 = vmatpush.bf16.msra.mxu2 %v9166_v15 }
 0x395   : > { %3950 = vst [vmem:[#allocation3 + $0x448] sm:$0xf] %v3918_v40 }
 0x396   : > { %4237 = vst [vmem:[#allocation3 + $0x40c] sm:$0xf] %v3918_v40  ;;  %v10357_v54 = vadd.f32 %v6117_v42, %v6029_v2 }
 0x397   : > { %v3503_v6 = vld [vmem:[#allocation2 + $0x170] sm:$0xff]  ;;  %3471 = vst [vmem:[#allocation2 + $0x189] sm:$0xff] %v3399_v52 }
 0x398   : > { %v3694_v20 = vld [vmem:[#allocation2 + $0x16a] sm:$0xff]  ;;  %v3695_v27 = vld [vmem:[#allocation2 + $0x172] sm:$0xff]  ;;  %v3535_v19 = vpack.c.bf16 %v3503_v6, %v3503_v6  ;;  %3951 = vst [vmem:[#allocation3 + $0x46c] sm:$0xf] %v3919_v7  ;;  %v6119_v30 = vpop.f32.mrf.mxu0 }
 0x399   : > { %v3726_v48 = vpack.c.bf16 %v3694_v20, %v3694_v20  ;;  %v3727_v24 = vpack.c.bf16 %v3695_v27, %v3695_v27  ;;  %4238 = vst [vmem:[#allocation3 + $0x430] sm:$0xf] %v3919_v7  ;;  %v7865_v52 = vld [vmem:[%s9294_s8 + $0x49] sm:$0xff] }
 0x39a   : > { %3567 = vst [vmem:[#allocation3 + $0x45c] sm:$0xf] %v3535_v19  ;;  %v10363_v9 = vpop.f32.mrf.mxu1  ;;  %v5861_v63 = vadd.f32 %v7865_v52, %v10269_v53  ;;  %v9182_v6 = vld [vmem:[%s10834_s3 + $0x1f0] sm:$0xff]  ;;  %v8263_v53 = vld [vmem:[#allocation3 + $0x2d8] sm:$0xf] }
 0x39b   : > { %3758 = vst [vmem:[#allocation3 + $0x440] sm:$0xf] %v3726_v48  ;;  %v6030_v1 = vpop.f32.mrf.mxu3  ;;  %v3790_v47 = vld [vmem:[#allocation2 + $0x180] sm:$0xff]  ;;  %v5946_v5 = vpop.f32.mrf.mxu2  ;;  %6465 = vmatpush.bf16.msra.mxu0 %v9182_v6  ;;  %v9071_v27 = vld [vmem:[#allocation3 + $0x2f8] sm:$0xf0] }
 0x39c   : > { %3759 = vst [vmem:[#allocation3 + $0x464] sm:$0xf] %v3727_v24  ;;  %v6031_v18 = vadd.f32 %v6030_v1, %v5942_v62  ;;  %v3822_v59 = vpack.c.bf16 %v3790_v47, %v3790_v47  ;;  %v5947_v14 = vadd.f32 %v5946_v5, %v5858_v35  ;;  %v8293_v62 = vld [vmem:[#allocation3 + $0x33c] sm:$0xf0]  ;;  %v7911_v47 = vld [vmem:[#allocation3 + $0x10] sm:$0xf] }
 0x39d   : > { %3853 = vst [vmem:[#allocation3 + $0x420] sm:$0xf] %v3535_v19  ;;  %v7912_v23 = vor.u32 %v8982_v55, %v7911_v47  ;;  %v7868_v6 = vld [vmem:[%s9294_s8 + $0x69] sm:$0xff] }
 0x39e   : > { %4044 = vst [vmem:[#allocation3 + $0x404] sm:$0xf] %v3726_v48  ;;  %v3791_v57 = vld [vmem:[#allocation2 + $0x188] sm:$0xff]  ;;  %v10361_v50 = vadd.f32 %v6119_v30, %v6031_v18 }
 0x39f   : > { %4045 = vst [vmem:[#allocation3 + $0x428] sm:$0xf] %v3727_v24  ;;  %v3982_v51 = vld [vmem:[#allocation2 + $0x182] sm:$0xff]  ;;  %v3983_v13 = vld [vmem:[#allocation2 + $0x18a] sm:$0xff]  ;;  %v3823_v31 = vpack.c.bf16 %v3791_v57, %v3791_v57 }
 0x3a0   : > { %4140 = vst [vmem:[#allocation3 + $0x3e4] sm:$0xf] %v3535_v19  ;;  %v6122_v3 = vpop.f32.mrf.mxu0  ;;  %6072 = vmatmul.bf16.gmra.mxu3 %v8228_v36  ;;  %5988 = vmatmul.bf16.gmra.mxu2 %v8260_v0  ;;  %v4014_v10 = vpack.c.bf16 %v3982_v51, %v3982_v51  ;;  %v4015_v42 = vpack.c.bf16 %v3983_v13, %v3983_v13  ;;  %v9075_v19 = vld [vmem:[#allocation3 + $0x31c] sm:$0xf]  ;;  %v7866_v57 = vld [vmem:[%s9294_s8 + $0x51] sm:$0xff]  ;;  %v7867_v36 = vld [vmem:[%s9294_s8 + $0x61] sm:$0xff] }
 0x3a1   : > { %4331 = vst [vmem:[#allocation3 + $0x3c8] sm:$0xf] %v3726_v48  ;;  %v9115_v58 = vld [vmem:[#allocation3 + $0x458] sm:$0xf0]  ;;  %v8264_v48 = vor.u32 %v9071_v27, %v8263_v53  ;;  %v8296_v30 = vor.u32 %v9075_v19, %v8293_v62  ;;  %v9190_v51 = vld [vmem:[%s10834_s3 + $0x230] sm:$0xff]  ;;  %v5863_v5 = vadd.f32 %v7866_v57, %v10277_v39  ;;  %v5866_v13 = vadd.f32 %v7867_v36, %v10284_v26 }
 0x3a2   : > { %4332 = vst [vmem:[#allocation3 + $0x3ec] sm:$0xf] %v3727_v24  ;;  %v8436_v29 = vor.u32 %v9115_v58, %v8435_v38  ;;  %v8265_v24 = vld [vmem:[#allocation3 + $0x2fc] sm:$0xf0]  ;;  %6554 = vmatpush.bf16.msra.mxu1 %v9190_v51  ;;  %v9165_v62 = vld [vmem:[%s10834_s3 + $0x168] sm:$0xff]  ;;  %v5868_v19 = vadd.f32 %v7868_v6, %v10291_v25 }
 0x3a3   : > { %3854 = vst [vmem:[#allocation3 + $0x444] sm:$0xf] %v3822_v59  ;;  %6161 = vmatmul.bf16.gmra.mxu0 %v8232_v61  ;;  %v6033_v46 = vpop.f32.mrf.mxu3  ;;  %v5949_v2 = vpop.f32.mrf.mxu2  ;;  %v8268_v18 = vor.u32 %v9067_v16, %v8265_v24  ;;  %6288 = vmatpush.bf16.msra.mxu2 %v9165_v62  ;;  %v9181_v47 = vld [vmem:[%s10834_s3 + $0x1e8] sm:$0xff]  ;;  %v9089_v25 = vld [vmem:[#allocation3 + $0x388] sm:$0xf0] }
 0x3a4   : > { %4141 = vst [vmem:[#allocation3 + $0x408] sm:$0xf] %v3822_v59  ;;  %5924 = vmatmul.bf16.gmra.mxu1 %v8436_v29  ;;  %v6034_v40 = vadd.f32 %v6033_v46, %v5945_v43  ;;  %v5950_v22 = vadd.f32 %v5949_v2, %v5861_v63  ;;  %v9080_v29 = vld [vmem:[#allocation3 + $0x340] sm:$0xf0]  ;;  %6466 = vmatpush.bf16.msra.mxu0 %v9181_v47  ;;  %v8365_v57 = vld [vmem:[#allocation3 + $0x3cc] sm:$0xf0] }
 0x3a5   : > { %3855 = vst [vmem:[#allocation3 + $0x468] sm:$0xf] %v3823_v31  ;;  %v9084_v46 = vld [vmem:[#allocation3 + $0x364] sm:$0xf]  ;;  %v9093_v36 = vld [vmem:[#allocation3 + $0x3ac] sm:$0xf] }
 0x3a6   : > { %4046 = vst [vmem:[#allocation3 + $0x44c] sm:$0xf] %v4014_v10  ;;  %v10375_v7 = vadd.f32 %v6122_v3, %v6034_v40  ;;  %v8301_v40 = vld [vmem:[#allocation3 + $0x344] sm:$0xf0]  ;;  %v8332_v26 = vor.u32 %v9084_v46, %v8329_v33  ;;  %v9076_v2 = vld [vmem:[#allocation3 + $0x324] sm:$0xf]  ;;  %v8368_v51 = vor.u32 %v9093_v36, %v8365_v57 }
 0x3a7   : > { %4047 = vst [vmem:[#allocation3 + $0x470] sm:$0xf] %v4015_v42  ;;  %v7870_v33 = vld [vmem:[%s9294_s8 + $0x81] sm:$0xff]  ;;  %v8019_v47 = vld [vmem:[#allocation3 + $0xe8] sm:$0xf]  ;;  %v7873_v57 = vld [vmem:[%s9294_s8 + $0xa9] sm:$0xff] }
 0x3a8   : > { %4142 = vst [vmem:[#allocation3 + $0x42c] sm:$0xf] %v3823_v31  ;;  %v6124_v28 = vpop.f32.mrf.mxu0 }
 0x3a9   : > { %4333 = vst [vmem:[#allocation3 + $0x410] sm:$0xf] %v4014_v10  ;;  %v10380_v20 = vpop.f32.mrf.mxu1  ;;  %v8299_v10 = vld [vmem:[#allocation3 + $0x320] sm:$0xf] }
 0x3aa   : > { %4334 = vst [vmem:[#allocation3 + $0x434] sm:$0xf] %v4015_v42  ;;  %v8300_v39 = vor.u32 %v9080_v29, %v8299_v10 }
 0x3ab   : > { %v6035_v4 = vpop.f32.mrf.mxu3  ;;  %v5951_v1 = vpop.f32.mrf.mxu2 }
 0x3ac   : > { %v6036_v41 = vadd.f32 %v6035_v4, %v5947_v14  ;;  %v5952_v38 = vadd.f32 %v5951_v1, %v5863_v5  ;;  %v8304_v14 = vor.u32 %v9076_v2, %v8301_v40  ;;  %v7869_v4 = vld [vmem:[%s9294_s8 + $0x79] sm:$0xff]  ;;  %v9189_v40 = vld [vmem:[%s10834_s3 + $0x228] sm:$0xff] }
 0x3ad   : > { %6555 = vmatpush.bf16.msra.mxu1 %v9189_v40  ;;  %v8437_v40 = vld [vmem:[#allocation3 + $0x45c] sm:$0xf0] }
 0x3ae   : > { %v10382_v43 = vadd.f32 %v6124_v28, %v6036_v41  ;;  %v7947_v28 = vld [vmem:[#allocation3 + $0x58] sm:$0xf] }
 0x3af   : > { %v9173_v41 = vld [vmem:[%s10834_s3 + $0x1a8] sm:$0xff] }
 0x3b0   : > { %v6127_v34 = vpop.f32.mrf.mxu0  ;;  %6077 = vmatmul.bf16.gmra.mxu3 %v8264_v48  ;;  %5993 = vmatmul.bf16.gmra.mxu2 %v8296_v30  ;;  %v5871_v48 = vadd.f32 %v7869_v4, %v10294_v49  ;;  %v8371_v4 = vld [vmem:[#allocation3 + $0x3b0] sm:$0xf] }
 0x3b1   : > { %v10386_v0 = vpop.f32.mrf.mxu1  ;;  %6377 = vmatpush.bf16.msra.mxu3 %v9173_v41  ;;  %v9102_v41 = vld [vmem:[#allocation3 + $0x3f4] sm:$0xf] }
 0x3b3   : > { %6166 = vmatmul.bf16.gmra.mxu0 %v8268_v18  ;;  %v6038_v32 = vpop.f32.mrf.mxu3  ;;  %v5954_v60 = vpop.f32.mrf.mxu2 }
 0x3b4   : > { %6205 = vmatmul.bf16.vlgmr.msrb.gmra.mxu1 %v7912_v23  ;;  %v6039_v59 = vadd.f32 %v6038_v32, %v5950_v22  ;;  %v5955_v58 = vadd.f32 %v5954_v60, %v5866_v13  ;;  %v7948_v22 = vor.u32 %v8991_v21, %v7947_v28  ;;  %v8335_v23 = vld [vmem:[#allocation3 + $0x368] sm:$0xf]  ;;  %v9000_v13 = vld [vmem:[#allocation3 + $0xc0] sm:$0xf0] }
 0x3b5   : > { %v8336_v32 = vor.u32 %v9089_v25, %v8335_v23  ;;  %v7872_v25 = vld [vmem:[%s9294_s8 + $0x99] sm:$0xff] }
 0x3b6   : > { %v10393_v3 = vadd.f32 %v6127_v34, %v6039_v59  ;;  %v8337_v59 = vld [vmem:[#allocation3 + $0x38c] sm:$0xf0] }
 0x3b8   : > { %v6129_v31 = vpop.f32.mrf.mxu0 }
 0x3b9   : > { %v10395_v42 = vpop.f32.mrf.mxu1 }
 0x3bb   : > { %v6040_v61 = vpop.f32.mrf.mxu3  ;;  %v5956_v35 = vpop.f32.mrf.mxu2 }
 0x3bc   : > { %v6041_v52 = vadd.f32 %v6040_v61, %v5952_v38  ;;  %v5957_v34 = vadd.f32 %v5956_v35, %v5868_v19  ;;  %v9085_v38 = vld [vmem:[#allocation3 + $0x36c] sm:$0xf]  ;;  %v8373_v19 = vld [vmem:[#allocation3 + $0x3d4] sm:$0xf0] }
 0x3bd   : > { %v8340_v61 = vor.u32 %v9085_v38, %v8337_v59  ;;  %v9172_v59 = vld [vmem:[%s10834_s3 + $0x1a0] sm:$0xff]  ;;  %v9163_v38 = vld [vmem:[%s10834_s3 + $0x158] sm:$0xff] }
 0x3be   : > { %v10397_v15 = vadd.f32 %v6129_v31, %v6041_v52  ;;  %v7871_v52 = vld [vmem:[%s9294_s8 + $0x91] sm:$0xff]  ;;  %6378 = vmatpush.bf16.msra.mxu3 %v9172_v59 }
 0x3bf   : > { %v5876_v21 = vadd.f32 %v7871_v52, %v10309_v11 }
 0x3c0   : > { %v6132_v63 = vpop.f32.mrf.mxu0  ;;  %6082 = vmatmul.bf16.gmra.mxu3 %v8300_v39  ;;  %5998 = vmatmul.bf16.gmra.mxu2 %v8332_v26  ;;  %v5873_v26 = vadd.f32 %v7870_v33, %v10301_v12 }
 0x3c1   : > { %v10411_v30 = vpop.f32.mrf.mxu1 }
 0x3c3   : > { %6171 = vmatmul.bf16.gmra.mxu0 %v8304_v14  ;;  %v6043_v53 = vpop.f32.mrf.mxu3  ;;  %v5959_v55 = vpop.f32.mrf.mxu2 }
 0x3c4   : > { %6210 = vmatmul.bf16.gmra.mxu1 %v7948_v22  ;;  %v6044_v27 = vadd.f32 %v6043_v53, %v5955_v58  ;;  %v5960_v16 = vadd.f32 %v5959_v55, %v5871_v48  ;;  %v7983_v58 = vld [vmem:[#allocation3 + $0xa0] sm:$0xf]  ;;  %v9098_v53 = vld [vmem:[#allocation3 + $0x3d0] sm:$0xf0]  ;;  %v9009_v55 = vld [vmem:[#allocation3 + $0x108] sm:$0xf0] }
 0x3c5   : > { %v7984_v29 = vor.u32 %v9000_v13, %v7983_v58  ;;  %v8372_v12 = vor.u32 %v9098_v53, %v8371_v4  ;;  %v8020_v23 = vor.u32 %v9009_v55, %v8019_v47  ;;  %v9180_v13 = vld [vmem:[%s10834_s3 + $0x1e0] sm:$0xff]  ;;  %v9171_v58 = vld [vmem:[%s10834_s3 + $0x198] sm:$0xff]  ;;  %v8409_v4 = vld [vmem:[#allocation3 + $0x41c] sm:$0xf0] }
 0x3c6   : > { %v10409_v24 = vadd.f32 %v6132_v63, %v6044_v27  ;;  %v8401_v27 = vld [vmem:[#allocation3 + $0x414] sm:$0xf0]  ;;  %6467 = vmatpush.bf16.msra.mxu0 %v9180_v13  ;;  %6379 = vmatpush.bf16.msra.mxu3 %v9171_v58  ;;  %v8055_v55 = vld [vmem:[#allocation3 + $0x130] sm:$0xf] }
 0x3c7   : > { %v8404_v11 = vor.u32 %v9102_v41, %v8401_v27  ;;  %v7875_v47 = vld [vmem:[%s9294_s8 + $0xc1] sm:$0xff] }
 0x3c8   : > { %v6134_v1 = vpop.f32.mrf.mxu0  ;;  %v5886_v59 = vadd.f32 %v7875_v47, %v10336_v44  ;;  %v9160_v13 = vld [vmem:[%s10834_s3 + $0x140] sm:$0xff] }
 0x3cb   : > { %v6045_v18 = vpop.f32.mrf.mxu3  ;;  %v5961_v60 = vpop.f32.mrf.mxu2 }
 0x3cc   : > { %v6046_v49 = vadd.f32 %v6045_v18, %v5957_v34  ;;  %v5962_v28 = vadd.f32 %v5961_v60, %v5873_v26  ;;  %v5878_v60 = vadd.f32 %v7872_v25, %v10314_v37  ;;  %v9179_v37 = vld [vmem:[%s10834_s3 + $0x1d8] sm:$0xff]  ;;  %v9188_v25 = vld [vmem:[%s10834_s3 + $0x220] sm:$0xff] }
 0x3cd   : > { %6468 = vmatpush.bf16.msra.mxu0 %v9179_v37  ;;  %6556 = vmatpush.bf16.msra.mxu1 %v9188_v25 }
 0x3ce   : > { %v10416_v5 = vadd.f32 %v6134_v1, %v6046_v49  ;;  %v10418_v10 = vpop.f32.mrf.mxu1 }
 0x3d0   : > { %v6137_v31 = vpop.f32.mrf.mxu0  ;;  %6087 = vmatmul.bf16.gmra.mxu3 %v8336_v32  ;;  %6003 = vmatmul.bf16.gmra.mxu2 %v8368_v51  ;;  %v9164_v32 = vld [vmem:[%s10834_s3 + $0x160] sm:$0xff] }
 0x3d1   : > { %6289 = vmatpush.bf16.msra.mxu2 %v9164_v32 }
 0x3d3   : > { %6176 = vmatmul.bf16.gmra.mxu0 %v8340_v61  ;;  %v6048_v46 = vpop.f32.mrf.mxu3  ;;  %v5964_v63 = vpop.f32.mrf.mxu2 }
 0x3d4   : > { %6215 = vmatmul.bf16.gmra.mxu1 %v7984_v29  ;;  %v6049_v39 = vadd.f32 %v6048_v46, %v5960_v16  ;;  %v5965_v14 = vadd.f32 %v5964_v63, %v5876_v21  ;;  %v9094_v16 = vld [vmem:[#allocation3 + $0x3b4] sm:$0xf]  ;;  %v8407_v46 = vld [vmem:[#allocation3 + $0x3f8] sm:$0xf]  ;;  %v9162_v21 = vld [vmem:[%s10834_s3 + $0x150] sm:$0xff] }
 0x3d5   : > { %v8376_v18 = vor.u32 %v9094_v16, %v8373_v19  ;;  %6290 = vmatpush.bf16.msra.mxu2 %v9163_v38  ;;  %v9170_v63 = vld [vmem:[%s10834_s3 + $0x190] sm:$0xff]  ;;  %v9168_v38 = vld [vmem:[%s10834_s3 + $0x180] sm:$0xff] }
 0x3d6   : > { %v10427_v35 = vadd.f32 %v6137_v31, %v6049_v39  ;;  %v10429_v6 = vpop.f32.mrf.mxu1  ;;  %v5881_v31 = vadd.f32 %v7873_v57, %v10317_v17  ;;  %v9107_v39 = vld [vmem:[#allocation3 + $0x418] sm:$0xf0]  ;;  %6380 = vmatpush.bf16.msra.mxu3 %v9170_v63  ;;  %v7874_v16 = vld [vmem:[%s9294_s8 + $0xb1] sm:$0xff] }
 0x3d7   : > { %v9161_v57 = vld [vmem:[%s10834_s3 + $0x148] sm:$0xff]  ;;  %v5883_v32 = vadd.f32 %v7874_v16, %v10325_v56  ;;  %v9176_v56 = vld [vmem:[%s10834_s3 + $0x1c0] sm:$0xff] }
 0x3d8   : > { %v6139_v2 = vpop.f32.mrf.mxu0 }
 0x3d9   : > { %6291 = vmatpush.bf16.msra.mxu2 %v9162_v21  ;;  %v8445_v21 = vld [vmem:[#allocation3 + $0x464] sm:$0xf0] }
 0x3db   : > { %v6050_v22 = vpop.f32.mrf.mxu3  ;;  %v5966_v1 = vpop.f32.mrf.mxu2 }
 0x3dc   : > { %v6051_v62 = vadd.f32 %v6050_v22, %v5962_v28  ;;  %v5967_v17 = vadd.f32 %v5966_v1, %v5878_v60  ;;  %v8408_v22 = vor.u32 %v9107_v39, %v8407_v46  ;;  %v9116_v46 = vld [vmem:[#allocation3 + $0x460] sm:$0xf0]  ;;  %v7913_v39 = vld [vmem:[#allocation3 + $0x34] sm:$0xf0] }
 0x3dd   : > { %6292 = vmatpush.bf16.msra.mxu2 %v9161_v57 }
 0x3de   : > { %v10431_v48 = vadd.f32 %v6139_v2, %v6051_v62  ;;  %v9178_v2 = vld [vmem:[%s10834_s3 + $0x1d0] sm:$0xff]  ;;  %v9018_v62 = vld [vmem:[#allocation3 + $0x150] sm:$0xf0] }
 0x3df   : > { %6469 = vmatpush.bf16.msra.mxu0 %v9178_v2 }
 0x3e0   : > { %v6142_v34 = vpop.f32.mrf.mxu0  ;;  %6092 = vmatmul.bf16.gmra.mxu3 %v8372_v12  ;;  %6008 = vmatmul.bf16.gmra.mxu2 %v8404_v11  ;;  %v9103_v11 = vld [vmem:[#allocation3 + $0x3fc] sm:$0xf] }
 0x3e1   : > { %v8412_v1 = vor.u32 %v9103_v11, %v8409_v4  ;;  %6293 = vmatpush.bf16.msra.mxu2 %v9160_v13  ;;  %v9112_v4 = vld [vmem:[#allocation3 + $0x444] sm:$0xf]  ;;  %v7877_v11 = vld [vmem:[%s9294_s8 + $0xd9] sm:$0xff]  ;;  %v7949_v13 = vld [vmem:[#allocation3 + $0x7c] sm:$0xf0] }
 0x3e2   : > { %v5891_v47 = vadd.f32 %v7877_v11, %v10359_v8 }
 0x3e3   : > { %6181 = vmatmul.bf16.gmra.mxu0 %v8376_v18  ;;  %v6053_v49 = vpop.f32.mrf.mxu3  ;;  %v5969_v29 = vpop.f32.mrf.mxu2 }
 0x3e4   : > { %6220 = vmatmul.bf16.gmra.mxu1 %v8020_v23  ;;  %v6054_v36 = vadd.f32 %v6053_v49, %v5965_v14  ;;  %v5970_v52 = vadd.f32 %v5969_v29, %v5881_v31  ;;  %v9111_v14 = vld [vmem:[#allocation3 + $0x43c] sm:$0xf] }
 0x3e5   : > { %v10441_v51 = vpop.f32.mrf.mxu1  ;;  %v8440_v53 = vor.u32 %v9111_v14, %v8437_v40  ;;  %v9169_v49 = vld [vmem:[%s10834_s3 + $0x188] sm:$0xff] }
 0x3e6   : > { %v10454_v61 = vadd.f32 %v6142_v34, %v6054_v36  ;;  %v8056_v34 = vor.u32 %v9018_v62, %v8055_v55  ;;  %v9177_v36 = vld [vmem:[%s10834_s3 + $0x1c8] sm:$0xff]  ;;  %6381 = vmatpush.bf16.msra.mxu3 %v9169_v49  ;;  %v8448_v62 = vor.u32 %v9112_v4, %v8445_v21  ;;  %v7879_v21 = vld [vmem:[%s9294_s8 + $0xf1] sm:$0xff] }
 0x3e7   : > { %6470 = vmatpush.bf16.msra.mxu0 %v9177_v36  ;;  %v5896_v4 = vadd.f32 %v7879_v21, %v10380_v20 }
 0x3e8   : > { %v6144_v33 = vpop.f32.mrf.mxu0 }
 0x3ea   : > { %6382 = vmatpush.bf16.msra.mxu3 %v9168_v38 }
 0x3eb   : > { %v6055_v26 = vpop.f32.mrf.mxu3  ;;  %v5971_v12 = vpop.f32.mrf.mxu2  ;;  %6471 = vmatpush.bf16.msra.mxu0 %v9176_v56  ;;  %v7919_v56 = vld [vmem:[#allocation3 + $0x18] sm:$0xf] }
 0x3ec   : > { %v6056_v28 = vadd.f32 %v6055_v26, %v5967_v17  ;;  %v5972_v58 = vadd.f32 %v5971_v12, %v5883_v32  ;;  %v8983_v32 = vld [vmem:[#allocation3 + $0x38] sm:$0xf0] }
 0x3ed   : > { %v10470_v41 = vpop.f32.mrf.mxu1 }
 0x3ee   : > { %v10468_v27 = vadd.f32 %v6144_v33, %v6056_v28  ;;  %v8978_v33 = vld [vmem:[#allocation3 + $0x14] sm:$0xf]  ;;  %v9027_v28 = vld [vmem:[#allocation3 + $0x198] sm:$0xf0] }
 0x3ef   : > { %v7916_v63 = vor.u32 %v8978_v33, %v7913_v39 }
 0x3f0   : > { %v6147_v19 = vpop.f32.mrf.mxu0  ;;  %6097 = vmatmul.bf16.gmra.mxu3 %v8408_v22  ;;  %6013 = vmatmul.bf16.gmra.mxu2 %v8440_v53  ;;  %v8091_v53 = vld [vmem:[#allocation3 + $0x178] sm:$0xf] }
 0x3f1   : > { %v8092_v12 = vor.u32 %v9027_v28, %v8091_v53 }
 0x3f3   : > { %6186 = vmatmul.bf16.gmra.mxu0 %v8412_v1  ;;  %v6058_v18 = vpop.f32.mrf.mxu3  ;;  %v5974_v31 = vpop.f32.mrf.mxu2 }
 0x3f4   : > { %6225 = vmatmul.bf16.gmra.mxu1 %v8056_v34  ;;  %v6059_v23 = vadd.f32 %v6058_v18, %v5970_v52  ;;  %v5975_v29 = vadd.f32 %v5974_v31, %v5886_v59  ;;  %v8443_v52 = vld [vmem:[#allocation3 + $0x440] sm:$0xf]  ;;  %v8987_v59 = vld [vmem:[#allocation3 + $0x5c] sm:$0xf] }
 0x3f5   : > { %v10499_v37 = vpop.f32.mrf.mxu1  ;;  %v8444_v26 = vor.u32 %v9116_v46, %v8443_v52  ;;  %v8979_v52 = vld [vmem:[#allocation3 + $0x1c] sm:$0xf]  ;;  %v8127_v46 = vld [vmem:[#allocation3 + $0x1c0] sm:$0xf] }
 0x3f6   : > { %v10491_v60 = vadd.f32 %v6147_v19, %v6059_v23  ;;  %v7876_v19 = vld [vmem:[%s9294_s8 + $0xc9] sm:$0xff] }
 0x3f7   : > { %v5888_v16 = vadd.f32 %v7876_v19, %v10348_v45  ;;  %v7921_v45 = vld [vmem:[#allocation3 + $0x3c] sm:$0xf0] }
 0x3f8   : > { %v6149_v44 = vpop.f32.mrf.mxu0  ;;  %v7924_v39 = vor.u32 %v8979_v52, %v7921_v45 }
 0x3fb   : > { %v6060_v17 = vpop.f32.mrf.mxu3  ;;  %v5976_v14 = vpop.f32.mrf.mxu2 }
 0x3fc   : > { %v6061_v40 = vadd.f32 %v6060_v17, %v5972_v58  ;;  %v5977_v57 = vadd.f32 %v5976_v14, %v5888_v16  ;;  %v7952_v58 = vor.u32 %v8987_v59, %v7949_v13  ;;  %v9187_v14 = vld [vmem:[%s10834_s3 + $0x218] sm:$0xff]  ;;  %v8992_v16 = vld [vmem:[#allocation3 + $0x80] sm:$0xf0] }
 0x3fd   : > { %v10505_v55 = vpop.f32.mrf.mxu1  ;;  %6557 = vmatpush.bf16.msra.mxu1 %v9187_v14 }
 0x3fe   : > { %v10501_v2 = vadd.f32 %v6149_v44, %v6061_v40  ;;  %v7920_v44 = vor.u32 %v8983_v32, %v7919_v56  ;;  %v9045_v32 = vld [vmem:[#allocation3 + $0x228] sm:$0xf0] }
 0x400   : > { %v6152_v22 = vpop.f32.mrf.mxu0  ;;  %6102 = vmatmul.bf16.gmra.mxu3 %v8444_v26  ;;  %6294 = vmatmul.bf16.vlgmr.msra.gmra.mxu2 %v7916_v63  ;;  %v7878_v26 = vld [vmem:[%s9294_s8 + $0xe1] sm:$0xff] }
 0x403   : > { %6191 = vmatmul.bf16.gmra.mxu0 %v8448_v62  ;;  %v6063_v1 = vpop.f32.mrf.mxu3  ;;  %v5979_v23 = vpop.f32.mrf.mxu2 }
 0x404   : > { %6230 = vmatmul.bf16.gmra.mxu1 %v8092_v12  ;;  %v6064_v34 = vadd.f32 %v6063_v1, %v5975_v29  ;;  %v5980_v49 = vadd.f32 %v5979_v23, %v5891_v47  ;;  %v9036_v29 = vld [vmem:[#allocation3 + $0x1e0] sm:$0xf0]  ;;  %v7985_v23 = vld [vmem:[#allocation3 + $0xc4] sm:$0xf0] }
 0x405   : > { %v8128_v40 = vor.u32 %v9036_v29, %v8127_v46  ;;  %v8996_v47 = vld [vmem:[#allocation3 + $0xa4] sm:$0xf]  ;;  %v7880_v29 = vld [vmem:[%s9294_s8 + $0xf9] sm:$0xff] }
 0x406   : > { %v10509_v18 = vadd.f32 %v6152_v22, %v6064_v34  ;;  %v5893_v22 = vadd.f32 %v7878_v26, %v10363_v9  ;;  %v7988_v20 = vor.u32 %v8996_v47, %v7985_v23  ;;  %v5898_v46 = vadd.f32 %v7880_v29, %v10386_v0  ;;  %v7993_v0 = vld [vmem:[#allocation3 + $0xcc] sm:$0xf0]  ;;  %v9054_v47 = vld [vmem:[#allocation3 + $0x270] sm:$0xf0] }
 0x408   : > { %v6154_v25 = vpop.f32.mrf.mxu0 }
 0x40a   : > { %v10511_v38 = vpop.f32.mrf.mxu1 }
 0x40b   : > { %v6065_v36 = vpop.f32.mrf.mxu3  ;;  %v5981_v33 = vpop.f32.mrf.mxu2 }
 0x40c   : > { %v6066_v31 = vadd.f32 %v6065_v36, %v5977_v57  ;;  %v5982_v11 = vadd.f32 %v5981_v33, %v5893_v22  ;;  %v7955_v57 = vld [vmem:[#allocation3 + $0x60] sm:$0xf] }
 0x40d   : > { %v7956_v9 = vor.u32 %v8992_v16, %v7955_v57  ;;  %v7881_v33 = vld [vmem:[%s9294_s8 + $0x109] sm:$0xff]  ;;  %v8997_v57 = vld [vmem:[#allocation3 + $0xac] sm:$0xf] }
 0x40e   : > { %v10513_v8 = vadd.f32 %v6154_v25, %v6066_v31  ;;  %v8988_v31 = vld [vmem:[#allocation3 + $0x64] sm:$0xf] }
 0x410   : > { %v6157_v17 = vpop.f32.mrf.mxu0  ;;  %6383 = vmatmul.bf16.vlgmr.msra.gmra.mxu3 %v7920_v44  ;;  %6299 = vmatmul.bf16.gmra.mxu2 %v7952_v58  ;;  %v8163_v44 = vld [vmem:[#allocation3 + $0x208] sm:$0xf] }
 0x411   : > { %v8164_v58 = vor.u32 %v9045_v32, %v8163_v44 }
 0x412   : > { %v10524_v62 = vpop.f32.mrf.mxu1 }
 0x413   : > { %6472 = vmatmul.bf16.vlgmr.msra.gmra.mxu0 %v7924_v39  ;;  %v6068_v63 = vpop.f32.mrf.mxu3  ;;  %v5984_v12 = vpop.f32.mrf.mxu2  ;;  %v5901_v39 = vadd.f32 %v7881_v33, %v10395_v42 }
 0x414   : > { %6235 = vmatmul.bf16.gmra.mxu1 %v8128_v40  ;;  %v6069_v28 = vadd.f32 %v6068_v63, %v5980_v49  ;;  %v5985_v1 = vadd.f32 %v5984_v12, %v5896_v4  ;;  %v7957_v49 = vld [vmem:[#allocation3 + $0x84] sm:$0xf0]  ;;  %v9001_v4 = vld [vmem:[#allocation3 + $0xc8] sm:$0xf0] }
 0x415   : > { %v7960_v45 = vor.u32 %v8988_v31, %v7957_v49  ;;  %v9005_v12 = vld [vmem:[#allocation3 + $0xec] sm:$0xf]  ;;  %v8199_v49 = vld [vmem:[#allocation3 + $0x250] sm:$0xf] }
 0x416   : > { %v10522_v53 = vadd.f32 %v6157_v17, %v6069_v28  ;;  %v7883_v31 = vld [vmem:[%s9294_s8 + $0x121] sm:$0xff] }
 0x417   : > { %v5906_v33 = vadd.f32 %v7883_v31, %v10418_v10  ;;  %v8029_v10 = vld [vmem:[#allocation3 + $0x114] sm:$0xf0] }
 0x418   : > { %v6159_v19 = vpop.f32.mrf.mxu0 }
 0x41b   : > { %v6070_v34 = vpop.f32.mrf.mxu3  ;;  %v5986_v59 = vpop.f32.mrf.mxu2 }
 0x41c   : > { %v6071_v25 = vadd.f32 %v6070_v34, %v5982_v11  ;;  %v5987_v63 = vadd.f32 %v5986_v59, %v5898_v46  ;;  %v7991_v34 = vld [vmem:[#allocation3 + $0xa8] sm:$0xf]  ;;  %v8200_v59 = vor.u32 %v9054_v47, %v8199_v49  ;;  %v9006_v47 = vld [vmem:[#allocation3 + $0xf4] sm:$0xf]  ;;  %v7884_v49 = vld [vmem:[%s9294_s8 + $0x129] sm:$0xff] }
 0x41d   : > { %v5908_v31 = vadd.f32 %v7884_v49, %v10429_v6  ;;  %v9185_v49 = vld [vmem:[%s10834_s3 + $0x208] sm:$0xff] }
 0x41e   : > { %v10526_v36 = vadd.f32 %v6159_v19, %v6071_v25  ;;  %v8021_v19 = vld [vmem:[#allocation3 + $0x10c] sm:$0xf0] }
 0x41f   : > { %v8024_v16 = vor.u32 %v9005_v12, %v8021_v19  ;;  %v8027_v19 = vld [vmem:[#allocation3 + $0xf0] sm:$0xf] }
 0x420   : > { %v6162_v13 = vpop.f32.mrf.mxu0  ;;  %6388 = vmatmul.bf16.gmra.mxu3 %v7956_v9  ;;  %6304 = vmatmul.bf16.gmra.mxu2 %v7988_v20  ;;  %v7996_v20 = vor.u32 %v8997_v57, %v7993_v0 }
 0x421   : > { %v10528_v56 = vpop.f32.mrf.mxu1 }
 0x423   : > { %6477 = vmatmul.bf16.gmra.mxu0 %v7960_v45  ;;  %v6073_v17 = vpop.f32.mrf.mxu3  ;;  %v5989_v26 = vpop.f32.mrf.mxu2 }
 0x424   : > { %6240 = vmatmul.bf16.gmra.mxu1 %v8164_v58  ;;  %v6074_v52 = vadd.f32 %v6073_v17, %v5985_v1  ;;  %v5990_v28 = vadd.f32 %v5989_v26, %v5901_v39  ;;  %v7992_v1 = vor.u32 %v9001_v4, %v7991_v34  ;;  %v9186_v58 = vld [vmem:[%s10834_s3 + $0x210] sm:$0xff]  ;;  %v8057_v4 = vld [vmem:[#allocation3 + $0x154] sm:$0xf0] }
 0x425   : > { %6558 = vmatpush.bf16.msra.mxu1 %v9186_v58 }
 0x426   : > { %v10534_v40 = vadd.f32 %v6162_v13, %v6074_v52  ;;  %v7882_v13 = vld [vmem:[%s9294_s8 + $0x111] sm:$0xff] }
 0x427   : > { %v5903_v29 = vadd.f32 %v7882_v13, %v10411_v30 }
 0x428   : > { %v6164_v21 = vpop.f32.mrf.mxu0 }
 0x429   : > { %v10536_v14 = vpop.f32.mrf.mxu1  ;;  %6559 = vmatpush.bf16.msra.mxu1 %v9185_v49 }
 0x42b   : > { %v6075_v22 = vpop.f32.mrf.mxu3  ;;  %v5991_v23 = vpop.f32.mrf.mxu2 }
 0x42c   : > { %v6076_v11 = vadd.f32 %v6075_v22, %v5987_v63  ;;  %v5992_v46 = vadd.f32 %v5991_v23, %v5903_v29  ;;  %v9014_v22 = vld [vmem:[#allocation3 + $0x134] sm:$0xf]  ;;  %v8235_v23 = vld [vmem:[#allocation3 + $0x298] sm:$0xf] }
 0x42e   : > { %v10538_v42 = vadd.f32 %v6164_v21, %v6076_v11  ;;  %v8060_v11 = vor.u32 %v9014_v22, %v8057_v4 }
 0x430   : > { %v6167_v25 = vpop.f32.mrf.mxu0  ;;  %6393 = vmatmul.bf16.gmra.mxu3 %v7992_v1  ;;  %6309 = vmatmul.bf16.gmra.mxu2 %v8024_v16  ;;  %v9063_v1 = vld [vmem:[#allocation3 + $0x2b8] sm:$0xf0] }
 0x431   : > { %v6206_v9 = vpop.f32.mrf.mxu1 }
 0x432   : > { %v10541_v32 = vadd.f32 %v6206_v9, %v10357_v54  ;;  %v8236_v9 = vor.u32 %v9063_v1, %v8235_v23  ;;  %v8271_v1 = vld [vmem:[#allocation3 + $0x2e0] sm:$0xf] }
 0x433   : > { %6482 = vmatmul.bf16.gmra.mxu0 %v7996_v20  ;;  %v6078_v44 = vpop.f32.mrf.mxu3  ;;  %v5994_v54 = vpop.f32.mrf.mxu2  ;;  %v7885_v20 = vld [vmem:[%s9294_s8 + $0x139] sm:$0xff]  ;;  %v7887_v23 = vld [vmem:[%s9294_s8 + $0x151] sm:$0xff] }
 0x434   : > { %6245 = vmatmul.bf16.gmra.mxu1 %v8200_v59  ;;  %v6079_v45 = vadd.f32 %v6078_v44, %v5990_v28  ;;  %v5995_v39 = vadd.f32 %v5994_v54, %v5906_v33  ;;  %v9010_v28 = vld [vmem:[#allocation3 + $0x110] sm:$0xf0]  ;;  %v5911_v44 = vadd.f32 %v7885_v20, %v10441_v51  ;;  %v8065_v51 = vld [vmem:[#allocation3 + $0x15c] sm:$0xf0] }
 0x435   : > { %v8028_v30 = vor.u32 %v9010_v28, %v8027_v19  ;;  %v8093_v28 = vld [vmem:[#allocation3 + $0x19c] sm:$0xf0]  ;;  %v9072_v19 = vld [vmem:[#allocation3 + $0x300] sm:$0xf0] }
 0x436   : > { %v10550_v17 = vadd.f32 %v6167_v25, %v6079_v45  ;;  %v8032_v25 = vor.u32 %v9006_v47, %v8029_v10  ;;  %v8272_v47 = vor.u32 %v9072_v19, %v8271_v1  ;;  %v9024_v19 = vld [vmem:[#allocation3 + $0x184] sm:$0xf]  ;;  %v7888_v1 = vld [vmem:[%s9294_s8 + $0x159] sm:$0xff] }
 0x438   : > { %v6169_v52 = vpop.f32.mrf.mxu0 }
 0x439   : > { %v6208_v26 = vpop.f32.mrf.mxu1 }
 0x43a   : > { %v10553_v21 = vadd.f32 %v6208_v26, %v10361_v50  ;;  %v9019_v26 = vld [vmem:[#allocation3 + $0x158] sm:$0xf0] }
 0x43b   : > { %v6080_v63 = vpop.f32.mrf.mxu3  ;;  %v5996_v0 = vpop.f32.mrf.mxu2 }
 0x43c   : > { %v6081_v12 = vadd.f32 %v6080_v63, %v5992_v46  ;;  %v5997_v33 = vadd.f32 %v5996_v0, %v5908_v31  ;;  %v9023_v63 = vld [vmem:[#allocation3 + $0x17c] sm:$0xf] }
 0x43d   : > { %v8096_v4 = vor.u32 %v9023_v63, %v8093_v28  ;;  %v8099_v28 = vld [vmem:[#allocation3 + $0x180] sm:$0xf] }
 0x43e   : > { %v10555_v34 = vadd.f32 %v6169_v52, %v6081_v12 }
 0x440   : > { %v6172_v16 = vpop.f32.mrf.mxu0  ;;  %6398 = vmatmul.bf16.gmra.mxu3 %v8028_v30  ;;  %6314 = vmatmul.bf16.gmra.mxu2 %v8060_v11  ;;  %v9015_v11 = vld [vmem:[#allocation3 + $0x13c] sm:$0xf] }
 0x441   : > { %v6211_v50 = vpop.f32.mrf.mxu1  ;;  %v8068_v0 = vor.u32 %v9015_v11, %v8065_v51 }
 0x442   : > { %v10558_v57 = vadd.f32 %v6211_v50, %v10375_v7  ;;  %v7886_v50 = vld [vmem:[%s9294_s8 + $0x141] sm:$0xff] }
 0x443   : > { %6487 = vmatmul.bf16.gmra.mxu0 %v8032_v25  ;;  %v6083_v59 = vpop.f32.mrf.mxu3  ;;  %v5999_v58 = vpop.f32.mrf.mxu2  ;;  %v5913_v20 = vadd.f32 %v7886_v50, %v10470_v41 }
 0x444   : > { %6250 = vmatmul.bf16.gmra.mxu1 %v8236_v9  ;;  %v6084_v13 = vadd.f32 %v6083_v59, %v5995_v39  ;;  %v6000_v54 = vadd.f32 %v5999_v58, %v5911_v44  ;;  %v8063_v39 = vld [vmem:[#allocation3 + $0x138] sm:$0xf]  ;;  %v5916_v59 = vadd.f32 %v7887_v23, %v10499_v37  ;;  %v8101_v37 = vld [vmem:[#allocation3 + $0x1a4] sm:$0xf0]  ;;  %v5918_v23 = vadd.f32 %v7888_v1, %v10505_v55  ;;  %v9184_v1 = vld [vmem:[%s10834_s3 + $0x200] sm:$0xff] }
 0x445   : > { %v8064_v6 = vor.u32 %v9019_v26, %v8063_v39  ;;  %v8129_v26 = vld [vmem:[#allocation3 + $0x1e4] sm:$0xf0]  ;;  %6560 = vmatpush.bf16.msra.mxu1 %v9184_v1 }
 0x446   : > { %v10564_v45 = vadd.f32 %v6172_v16, %v6084_v13 }
 0x448   : > { %v6174_v29 = vpop.f32.mrf.mxu0 }
 0x449   : > { %v6213_v52 = vpop.f32.mrf.mxu1 }
 0x44a   : > { %v10567_v7 = vadd.f32 %v6213_v52, %v10382_v43  ;;  %v9028_v52 = vld [vmem:[#allocation3 + $0x1a0] sm:$0xf0] }
 0x44b   : > { %v6085_v46 = vpop.f32.mrf.mxu3  ;;  %v6001_v30 = vpop.f32.mrf.mxu2  ;;  %v8100_v41 = vor.u32 %v9028_v52, %v8099_v28  ;;  %v8165_v52 = vld [vmem:[#allocation3 + $0x22c] sm:$0xf0]  ;;  %v9090_v28 = vld [vmem:[#allocation3 + $0x390] sm:$0xf0] }
 0x44c   : > { %v6086_v22 = vadd.f32 %v6085_v46, %v5997_v33  ;;  %v6002_v44 = vadd.f32 %v6001_v30, %v5913_v20  ;;  %v9032_v46 = vld [vmem:[#allocation3 + $0x1c4] sm:$0xf]  ;;  %v8307_v30 = vld [vmem:[#allocation3 + $0x328] sm:$0xf] }
 0x44e   : > { %v10569_v12 = vadd.f32 %v6174_v29, %v6086_v22  ;;  %v8132_v22 = vor.u32 %v9032_v46, %v8129_v26 }
 0x450   : > { %v6177_v10 = vpop.f32.mrf.mxu0  ;;  %6403 = vmatmul.bf16.gmra.mxu3 %v8064_v6  ;;  %6319 = vmatmul.bf16.gmra.mxu2 %v8096_v4  ;;  %v9081_v6 = vld [vmem:[#allocation3 + $0x348] sm:$0xf0] }
 0x451   : > { %v6216_v43 = vpop.f32.mrf.mxu1 }
 0x452   : > { %v10572_v16 = vadd.f32 %v6216_v43, %v10393_v3  ;;  %v8308_v43 = vor.u32 %v9081_v6, %v8307_v30  ;;  %v8343_v6 = vld [vmem:[#allocation3 + $0x370] sm:$0xf] }
 0x453   : > { %6492 = vmatmul.bf16.gmra.mxu0 %v8068_v0  ;;  %v6088_v25 = vpop.f32.mrf.mxu3  ;;  %v6004_v3 = vpop.f32.mrf.mxu2  ;;  %v7889_v0 = vld [vmem:[%s9294_s8 + $0x169] sm:$0xff]  ;;  %v7891_v30 = vld [vmem:[%s9294_s8 + $0x181] sm:$0xff] }
 0x454   : > { %6255 = vmatmul.bf16.gmra.mxu1 %v8272_v47  ;;  %v6089_v9 = vadd.f32 %v6088_v25, %v6000_v54  ;;  %v6005_v58 = vadd.f32 %v6004_v3, %v5916_v59  ;;  %v5921_v25 = vadd.f32 %v7889_v0, %v10511_v38  ;;  %v8137_v38 = vld [vmem:[#allocation3 + $0x1ec] sm:$0xf0] }
 0x456   : > { %v10581_v13 = vadd.f32 %v6177_v10, %v6089_v9  ;;  %v8104_v10 = vor.u32 %v9024_v19, %v8101_v37  ;;  %v8344_v19 = vor.u32 %v9090_v28, %v8343_v6 }
 0x458   : > { %v6179_v31 = vpop.f32.mrf.mxu0 }
 0x459   : > { %v6218_v29 = vpop.f32.mrf.mxu1 }
 0x45a   : > { %v10584_v33 = vadd.f32 %v6218_v29, %v10397_v15  ;;  %v9037_v29 = vld [vmem:[#allocation3 + $0x1e8] sm:$0xf0] }
 0x45b   : > { %v6090_v54 = vpop.f32.mrf.mxu3  ;;  %v6006_v51 = vpop.f32.mrf.mxu2 }
 0x45c   : > { %v6091_v63 = vadd.f32 %v6090_v54, %v6002_v44  ;;  %v6007_v59 = vadd.f32 %v6006_v51, %v5918_v23  ;;  %v9041_v54 = vld [vmem:[#allocation3 + $0x20c] sm:$0xf] }
 0x45d   : > { %v8168_v26 = vor.u32 %v9041_v54, %v8165_v52  ;;  %v8201_v54 = vld [vmem:[#allocation3 + $0x274] sm:$0xf0] }
 0x45e   : > { %v10586_v39 = vadd.f32 %v6179_v31, %v6091_v63 }
 0x460   : > { %v6182_v4 = vpop.f32.mrf.mxu0  ;;  %6408 = vmatmul.bf16.gmra.mxu3 %v8100_v41  ;;  %6324 = vmatmul.bf16.gmra.mxu2 %v8132_v22  ;;  %v9033_v22 = vld [vmem:[#allocation3 + $0x1cc] sm:$0xf] }
 0x461   : > { %v6221_v15 = vpop.f32.mrf.mxu1  ;;  %v8140_v51 = vor.u32 %v9033_v22, %v8137_v38 }
 0x462   : > { %v10589_v11 = vadd.f32 %v6221_v15, %v10409_v24  ;;  %v7890_v15 = vld [vmem:[%s9294_s8 + $0x171] sm:$0xff] }
 0x463   : > { %6497 = vmatmul.bf16.gmra.mxu0 %v8104_v10  ;;  %v6093_v47 = vpop.f32.mrf.mxu3  ;;  %v6009_v49 = vpop.f32.mrf.mxu2  ;;  %v5923_v0 = vadd.f32 %v7890_v15, %v10524_v62  ;;  %v8171_v62 = vld [vmem:[#allocation3 + $0x210] sm:$0xf] }
 0x464   : > { %6260 = vmatmul.bf16.gmra.mxu1 %v8308_v43  ;;  %v6094_v50 = vadd.f32 %v6093_v47, %v6005_v58  ;;  %v6010_v3 = vadd.f32 %v6009_v49, %v5921_v25  ;;  %v8135_v58 = vld [vmem:[#allocation3 + $0x1c8] sm:$0xf]  ;;  %v5926_v47 = vadd.f32 %v7891_v30, %v10528_v56 }
 0x465   : > { %v8136_v55 = vor.u32 %v9037_v29, %v8135_v58  ;;  %v9046_v29 = vld [vmem:[#allocation3 + $0x230] sm:$0xf0]  ;;  %v8173_v58 = vld [vmem:[#allocation3 + $0x234] sm:$0xf0] }
 0x466   : > { %v10595_v9 = vadd.f32 %v6182_v4, %v6094_v50 }
 0x468   : > { %v6184_v20 = vpop.f32.mrf.mxu0 }
 0x469   : > { %v6223_v31 = vpop.f32.mrf.mxu1 }
 0x46a   : > { %v10598_v24 = vadd.f32 %v6223_v31, %v10416_v5  ;;  %v7892_v31 = vld [vmem:[%s9294_s8 + $0x189] sm:$0xff] }
 0x46b   : > { %v6095_v44 = vpop.f32.mrf.mxu3  ;;  %v6011_v41 = vpop.f32.mrf.mxu2  ;;  %v5928_v56 = vadd.f32 %v7892_v31, %v10536_v14 }
 0x46c   : > { %v6096_v46 = vadd.f32 %v6095_v44, %v6007_v59  ;;  %v6012_v25 = vadd.f32 %v6011_v41, %v5923_v0 }
 0x46e   : > { %v10600_v63 = vadd.f32 %v6184_v20, %v6096_v46  ;;  %v8172_v46 = vor.u32 %v9046_v29, %v8171_v62 }
 0x470   : > { %v6187_v37 = vpop.f32.mrf.mxu0  ;;  %6413 = vmatmul.bf16.gmra.mxu3 %v8136_v55  ;;  %6329 = vmatmul.bf16.gmra.mxu2 %v8168_v26  ;;  %v9099_v26 = vld [vmem:[#allocation3 + $0x3d8] sm:$0xf0] }
 0x471   : > { %v6226_v5 = vpop.f32.mrf.mxu1 }
 0x472   : > { %v10603_v4 = vadd.f32 %v6226_v5, %v10427_v35  ;;  %v8379_v5 = vld [vmem:[#allocation3 + $0x3b8] sm:$0xf] }
 0x473   : > { %6502 = vmatmul.bf16.gmra.mxu0 %v8140_v51  ;;  %v6098_v10 = vpop.f32.mrf.mxu3  ;;  %v6014_v35 = vpop.f32.mrf.mxu2 }
 0x474   : > { %6265 = vmatmul.bf16.gmra.mxu1 %v8344_v19  ;;  %v6099_v43 = vadd.f32 %v6098_v10, %v6010_v3  ;;  %v6015_v49 = vadd.f32 %v6014_v35, %v5926_v47  ;;  %v9050_v3 = vld [vmem:[#allocation3 + $0x254] sm:$0xf]  ;;  %v8380_v19 = vor.u32 %v9099_v26, %v8379_v5 }
 0x475   : > { %v8204_v55 = vor.u32 %v9050_v3, %v8201_v54  ;;  %v8207_v3 = vld [vmem:[#allocation3 + $0x258] sm:$0xf]  ;;  %v9108_v54 = vld [vmem:[#allocation3 + $0x420] sm:$0xf0] }
 0x476   : > { %v10612_v50 = vadd.f32 %v6187_v37, %v6099_v43 }
 0x478   : > { %v6189_v23 = vpop.f32.mrf.mxu0 }
 0x479   : > { %v6228_v20 = vpop.f32.mrf.mxu1 }
 0x47a   : > { %v10615_v59 = vadd.f32 %v6228_v20, %v10431_v48  ;;  %v9042_v48 = vld [vmem:[#allocation3 + $0x214] sm:$0xf] }
 0x47b   : > { %v6100_v44 = vpop.f32.mrf.mxu3  ;;  %v6016_v28 = vpop.f32.mrf.mxu2  ;;  %v8176_v6 = vor.u32 %v9042_v48, %v8173_v58 }
 0x47c   : > { %v6101_v52 = vadd.f32 %v6100_v44, %v6012_v25  ;;  %v6017_v37 = vadd.f32 %v6016_v28, %v5928_v56  ;;  %v9059_v25 = vld [vmem:[#allocation3 + $0x29c] sm:$0xf]  ;;  %v8209_v44 = vld [vmem:[#allocation3 + $0x27c] sm:$0xf0] }
 0x47e   : > { %v10619_v38 = vadd.f32 %v6189_v23, %v6101_v52  ;;  %v9055_v23 = vld [vmem:[#allocation3 + $0x278] sm:$0xf0] }
 0x47f   : > { %v8208_v31 = vor.u32 %v9055_v23, %v8207_v3 }
 0x480   : > { %v6192_v41 = vpop.f32.mrf.mxu0  ;;  %6418 = vmatmul.bf16.gmra.mxu3 %v8172_v46  ;;  %6334 = vmatmul.bf16.gmra.mxu2 %v8204_v55  ;;  %v8415_v46 = vld [vmem:[#allocation3 + $0x400] sm:$0xf] }
 0x481   : > { %v6231_v22 = vpop.f32.mrf.mxu1  ;;  %v8416_v26 = vor.u32 %v9108_v54, %v8415_v46 }
 0x482   : > { %v10622_v51 = vadd.f32 %v6231_v22, %v10454_v61  ;;  %v8237_v61 = vld [vmem:[#allocation3 + $0x2bc] sm:$0xf0] }
 0x483   : > { %6507 = vmatmul.bf16.gmra.mxu0 %v8176_v6  ;;  %v6103_v14 = vpop.f32.mrf.mxu3  ;;  %v6295_v10 = vpop.f32.mrf.mxu2  ;;  %v8240_v29 = vor.u32 %v9059_v25, %v8237_v61  ;;  %v9117_v25 = vld [vmem:[#allocation3 + $0x468] sm:$0xf0] }
 0x484   : > { %6270 = vmatmul.bf16.gmra.mxu1 %v8380_v19  ;;  %v6104_v15 = vadd.f32 %v6103_v14, %v6015_v49  ;;  %v6296_v1 = vadd.f32 %v6295_v10, %v10541_v32  ;;  %v9051_v32 = vld [vmem:[#allocation3 + $0x25c] sm:$0xf]  ;;  %v9064_v14 = vld [vmem:[#allocation3 + $0x2c0] sm:$0xf0] }
 0x485   : > { %v8212_v58 = vor.u32 %v9051_v32, %v8209_v44 }
 0x486   : > { %v10624_v30 = vadd.f32 %v6192_v41, %v6104_v15  ;;  %v9068_v15 = vld [vmem:[#allocation3 + $0x2e4] sm:$0xf] }
 0x488   : > { %v6194_v43 = vpop.f32.mrf.mxu0 }
 0x489   : > { %v6233_v0 = vpop.f32.mrf.mxu1 }
 0x48a   : > { %v10628_v47 = vadd.f32 %v6233_v0, %v10468_v27 }
 0x48b   : > { %v6105_v35 = vpop.f32.mrf.mxu3  ;;  %v6297_v52 = vpop.f32.mrf.mxu2 }
 0x48c   : > { %v6106_v20 = vadd.f32 %v6105_v35, %v6017_v37  ;;  %v6298_v56 = vadd.f32 %v6297_v52, %v10553_v21  ;;  %v8245_v35 = vld [vmem:[#allocation3 + $0x2c4] sm:$0xf0] }
 0x48e   : > { %v10630_v49 = vadd.f32 %v6194_v43, %v6106_v20  ;;  %v8243_v43 = vld [vmem:[#allocation3 + $0x2a0] sm:$0xf] }
 0x48f   : > { %v8244_v0 = vor.u32 %v9064_v14, %v8243_v43 }
 0x490   : > { %v6473_v62 = vpop.f32.mrf.mxu0  ;;  %6423 = vmatmul.bf16.gmra.mxu3 %v8208_v31  ;;  %6339 = vmatmul.bf16.gmra.mxu2 %v8240_v29  ;;  %v8451_v31 = vld [vmem:[#allocation3 + $0x448] sm:$0xf] }
 0x491   : > { %v6236_v27 = vpop.f32.mrf.mxu1  ;;  %v8452_v54 = vor.u32 %v9117_v25, %v8451_v31 }
 0x492   : > { %v10634_v55 = vadd.f32 %v6236_v27, %v10491_v60  ;;  %v8273_v60 = vld [vmem:[#allocation3 + $0x304] sm:$0xf0] }
 0x493   : > { %6512 = vmatmul.bf16.gmra.mxu0 %v8212_v58  ;;  %v6384_v28 = vpop.f32.mrf.mxu3  ;;  %v6300_v37 = vpop.f32.mrf.mxu2  ;;  %v8276_v23 = vor.u32 %v9068_v15, %v8273_v60  ;;  %v7927_v15 = vld [vmem:[#allocation3 + $0x20] sm:$0xf]  ;;  %v8984_v60 = vld [vmem:[#allocation3 + $0x40] sm:$0xf0] }
 0x494   : > { %6275 = vmatmul.bf16.gmra.mxu1 %v8416_v26  ;;  %v6385_v41 = vadd.f32 %v6384_v28, %v6296_v1  ;;  %v6301_v5 = vadd.f32 %v6300_v37, %v10558_v57  ;;  %v9060_v57 = vld [vmem:[#allocation3 + $0x2a4] sm:$0xf]  ;;  %v9073_v28 = vld [vmem:[#allocation3 + $0x308] sm:$0xf0]  ;;  %v7928_v25 = vor.u32 %v8984_v60, %v7927_v15 }
 0x495   : > { %v8248_v44 = vor.u32 %v9060_v57, %v8245_v35 }
 0x496   : > { %v10636_v48 = vadd.f32 %v6473_v62, %v6385_v41  ;;  %v9077_v41 = vld [vmem:[#allocation3 + $0x32c] sm:$0xf] }
 0x498   : > { %v6475_v22 = vpop.f32.mrf.mxu0 }
 0x499   : > { %v6238_v6 = vpop.f32.mrf.mxu1 }
 0x49a   : > { %v10640_v21 = vadd.f32 %v6238_v6, %v10501_v2 }
 0x49b   : > { %v6386_v19 = vpop.f32.mrf.mxu3  ;;  %v6302_v61 = vpop.f32.mrf.mxu2 }
 0x49c   : > { %v6387_v10 = vadd.f32 %v6386_v19, %v6298_v56  ;;  %v6303_v3 = vadd.f32 %v6302_v61, %v10567_v7  ;;  %v8281_v19 = vld [vmem:[#allocation3 + $0x30c] sm:$0xf0] }
 0x49e   : > { %v10642_v1 = vadd.f32 %v6475_v22, %v6387_v10  ;;  %v8279_v22 = vld [vmem:[#allocation3 + $0x2e8] sm:$0xf] }
 0x49f   : > { %v8280_v6 = vor.u32 %v9073_v28, %v8279_v22 }
 0x4a0   : > { %v6478_v20 = vpop.f32.mrf.mxu0  ;;  %6428 = vmatmul.bf16.gmra.mxu3 %v8244_v0  ;;  %6344 = vmatmul.bf16.gmra.mxu2 %v8276_v23 }
 0x4a1   : > { %v6241_v2 = vpop.f32.mrf.mxu1 }
 0x4a2   : > { %v10646_v29 = vadd.f32 %v6241_v2, %v10509_v18  ;;  %v8309_v18 = vld [vmem:[#allocation3 + $0x34c] sm:$0xf0] }
 0x4a3   : > { %6517 = vmatmul.bf16.gmra.mxu0 %v8248_v44  ;;  %v6389_v52 = vpop.f32.mrf.mxu3  ;;  %v6305_v56 = vpop.f32.mrf.mxu2  ;;  %v8312_v14 = vor.u32 %v9077_v41, %v8309_v18  ;;  %v7963_v41 = vld [vmem:[#allocation3 + $0x68] sm:$0xf]  ;;  %v8993_v18 = vld [vmem:[#allocation3 + $0x88] sm:$0xf0] }
 0x4a4   : > { %6280 = vmatmul.bf16.gmra.mxu1 %v8452_v54  ;;  %v6390_v62 = vadd.f32 %v6389_v52, %v6301_v5  ;;  %v6306_v46 = vadd.f32 %v6305_v56, %v10572_v16  ;;  %v9069_v16 = vld [vmem:[#allocation3 + $0x2ec] sm:$0xf]  ;;  %v9082_v52 = vld [vmem:[#allocation3 + $0x350] sm:$0xf0] }
 0x4a5   : > { %v8284_v35 = vor.u32 %v9069_v16, %v8281_v19 }
 0x4a6   : > { %v10648_v32 = vadd.f32 %v6478_v20, %v6390_v62  ;;  %v9086_v62 = vld [vmem:[#allocation3 + $0x374] sm:$0xf] }
 0x4a8   : > { %v6480_v27 = vpop.f32.mrf.mxu0 }
 0x4a9   : > { %v6243_v58 = vpop.f32.mrf.mxu1 }
 0x4aa   : > { %v10652_v7 = vadd.f32 %v6243_v58, %v10513_v8 }
 0x4ab   : > { %v6391_v26 = vpop.f32.mrf.mxu3  ;;  %v6307_v10 = vpop.f32.mrf.mxu2 }
 0x4ac   : > { %v6392_v37 = vadd.f32 %v6391_v26, %v6303_v3  ;;  %v6308_v8 = vadd.f32 %v6307_v10, %v10584_v33  ;;  %v8317_v26 = vld [vmem:[#allocation3 + $0x354] sm:$0xf0] }
 0x4ae   : > { %v10654_v5 = vadd.f32 %v6480_v27, %v6392_v37  ;;  %v8315_v27 = vld [vmem:[#allocation3 + $0x330] sm:$0xf] }
 0x4af   : > { %v8316_v58 = vor.u32 %v9082_v52, %v8315_v27  ;;  %v7999_v52 = vld [vmem:[#allocation3 + $0xb0] sm:$0xf] }
 0x4b0   : > { %v6483_v43 = vpop.f32.mrf.mxu0  ;;  %6433 = vmatmul.bf16.gmra.mxu3 %v8280_v6  ;;  %6349 = vmatmul.bf16.gmra.mxu2 %v8312_v14  ;;  %v7964_v14 = vor.u32 %v8993_v18, %v7963_v41  ;;  %v9104_v41 = vld [vmem:[#allocation3 + $0x404] sm:$0xf]  ;;  %v8417_v18 = vld [vmem:[#allocation3 + $0x424] sm:$0xf0] }
 0x4b1   : > { %v6246_v0 = vpop.f32.mrf.mxu1 }
 0x4b2   : > { %v10658_v23 = vadd.f32 %v6246_v0, %v10522_v53  ;;  %v8345_v53 = vld [vmem:[#allocation3 + $0x394] sm:$0xf0] }
 0x4b3   : > { %6522 = vmatmul.bf16.gmra.mxu0 %v8284_v35  ;;  %v6394_v61 = vpop.f32.mrf.mxu3  ;;  %v6310_v3 = vpop.f32.mrf.mxu2  ;;  %v8348_v28 = vor.u32 %v9086_v62, %v8345_v53  ;;  %v9095_v35 = vld [vmem:[#allocation3 + $0x3bc] sm:$0xf] }
 0x4b4   : > { %6561 = vmatmul.bf16.vlgmr.msra.gmra.mxu1 %v7928_v25  ;;  %v6395_v20 = vadd.f32 %v6394_v61, %v6306_v46  ;;  %v6311_v2 = vadd.f32 %v6310_v3, %v10589_v11  ;;  %v9078_v11 = vld [vmem:[#allocation3 + $0x334] sm:$0xf]  ;;  %v8381_v25 = vld [vmem:[#allocation3 + $0x3dc] sm:$0xf0]  ;;  %v9087_v62 = vld [vmem:[#allocation3 + $0x37c] sm:$0xf] }
 0x4b5   : > { %v8320_v6 = vor.u32 %v9078_v11, %v8317_v26 }
 0x4b6   : > { %v10660_v57 = vadd.f32 %v6483_v43, %v6395_v20 }
 0x4b8   : > { %v6485_v44 = vpop.f32.mrf.mxu0 }
 0x4b9   : > { %v6248_v31 = vpop.f32.mrf.mxu1 }
 0x4ba   : > { %v10664_v33 = vadd.f32 %v6248_v31, %v10526_v36  ;;  %v8353_v31 = vld [vmem:[#allocation3 + $0x39c] sm:$0xf0] }
 0x4bb   : > { %v6396_v54 = vpop.f32.mrf.mxu3  ;;  %v6312_v37 = vpop.f32.mrf.mxu2 }
 0x4bc   : > { %v6397_v56 = vadd.f32 %v6396_v54, %v6308_v8  ;;  %v6313_v22 = vadd.f32 %v6312_v37, %v10598_v24  ;;  %v9091_v24 = vld [vmem:[#allocation3 + $0x398] sm:$0xf0]  ;;  %v8387_v37 = vld [vmem:[#allocation3 + $0x3c0] sm:$0xf] }
 0x4be   : > { %v10666_v46 = vadd.f32 %v6485_v44, %v6397_v56  ;;  %v8384_v44 = vor.u32 %v9095_v35, %v8381_v25  ;;  %v9113_v35 = vld [vmem:[#allocation3 + $0x44c] sm:$0xf]  ;;  %v8453_v25 = vld [vmem:[#allocation3 + $0x46c] sm:$0xf0] }
 0x4c0   : > { %6438 = vmatmul.bf16.gmra.mxu3 %v8316_v58  ;;  %6354 = vmatmul.bf16.gmra.mxu2 %v8348_v28  ;;  %v6488_v15 = vpop.f32.mrf.mxu0  ;;  %v9100_v28 = vld [vmem:[#allocation3 + $0x3e0] sm:$0xf0] }
 0x4c1   : > { %v6251_v36 = vpop.f32.mrf.mxu1  ;;  %v8388_v11 = vor.u32 %v9100_v28, %v8387_v37  ;;  %v8107_v37 = vld [vmem:[#allocation3 + $0x188] sm:$0xf] }
 0x4c2   : > { %v10670_v19 = vadd.f32 %v6251_v36, %v10534_v40  ;;  %v8351_v40 = vld [vmem:[#allocation3 + $0x378] sm:$0xf]  ;;  %v8420_v36 = vor.u32 %v9104_v41, %v8417_v18  ;;  %v9114_v41 = vld [vmem:[#allocation3 + $0x454] sm:$0xf] }
 0x4c3   : > { %6527 = vmatmul.bf16.gmra.mxu0 %v8320_v6  ;;  %v6399_v60 = vpop.f32.mrf.mxu3  ;;  %v8352_v3 = vor.u32 %v9091_v24, %v8351_v40  ;;  %v8035_v6 = vld [vmem:[#allocation3 + $0xf8] sm:$0xf]  ;;  %v9109_v24 = vld [vmem:[#allocation3 + $0x428] sm:$0xf0]  ;;  %v8425_v40 = vld [vmem:[#allocation3 + $0x42c] sm:$0xf0] }
 0x4c4   : > { %6566 = vmatmul.bf16.gmra.mxu1 %v7964_v14  ;;  %v6400_v10 = vadd.f32 %v6399_v60, %v6311_v2  ;;  %v9002_v2 = vld [vmem:[#allocation3 + $0xd0] sm:$0xf0]  ;;  %v9011_v14 = vld [vmem:[#allocation3 + $0x118] sm:$0xf0]  ;;  %v8461_v18 = vld [vmem:[#allocation3 + $0x474] sm:$0xf0] }
 0x4c5   : > { %v8000_v27 = vor.u32 %v9002_v2, %v7999_v52  ;;  %v9105_v52 = vld [vmem:[#allocation3 + $0x40c] sm:$0xf] }
 0x4c6   : > { %v10672_v43 = vadd.f32 %v6488_v15, %v6400_v10  ;;  %v9096_v15 = vld [vmem:[#allocation3 + $0x3c4] sm:$0xf]  ;;  %v8428_v2 = vor.u32 %v9105_v52, %v8425_v40 }
 0x4c8   : > { %v6490_v20 = vpop.f32.mrf.mxu0 }
 0x4c9   : > { %v6253_v16 = vpop.f32.mrf.mxu1 }
 0x4ca   : > { %v10675_v8 = vadd.f32 %v6253_v16, %v10538_v42  ;;  %v8356_v42 = vor.u32 %v9087_v62, %v8353_v31  ;;  %v8036_v16 = vor.u32 %v9011_v14, %v8035_v6  ;;  %v8071_v31 = vld [vmem:[#allocation3 + $0x140] sm:$0xf] }
 0x4cb   : > { %v6401_v0 = vpop.f32.mrf.mxu3 }
 0x4cc   : > { %v6402_v61 = vadd.f32 %v6401_v0, %v6313_v22  ;;  %v8389_v22 = vld [vmem:[#allocation3 + $0x3e4] sm:$0xf0] }
 0x4cd   : > { %v8392_v60 = vor.u32 %v9096_v15, %v8389_v22  ;;  %v8464_v22 = vor.u32 %v9114_v41, %v8461_v18  ;;  %v9065_v41 = vld [vmem:[#allocation3 + $0x2c8] sm:$0xf0] }
 0x4ce   : > { %v10677_v54 = vadd.f32 %v6490_v20, %v6402_v61  ;;  %v8423_v61 = vld [vmem:[#allocation3 + $0x408] sm:$0xf] }
 0x4cf   : > { %v8424_v20 = vor.u32 %v9109_v24, %v8423_v61 }
 0x4d0   : > { %6443 = vmatmul.bf16.gmra.mxu3 %v8352_v3  ;;  %6359 = vmatmul.bf16.gmra.mxu2 %v8384_v44  ;;  %v8456_v3 = vor.u32 %v9113_v35, %v8453_v25  ;;  %v9020_v44 = vld [vmem:[#allocation3 + $0x160] sm:$0xf0]  ;;  %v8179_v35 = vld [vmem:[#allocation3 + $0x218] sm:$0xf]  ;;  %v9047_v25 = vld [vmem:[#allocation3 + $0x238] sm:$0xf0] }
 0x4d1   : > { %v6256_v53 = vpop.f32.mrf.mxu1 }
 0x4d2   : > { %v10680_v56 = vadd.f32 %v6256_v53, %v10550_v17  ;;  %v8072_v53 = vor.u32 %v9020_v44, %v8071_v31  ;;  %v9056_v31 = vld [vmem:[#allocation3 + $0x280] sm:$0xf0]  ;;  %v10718_v44 = vld [vmem:[%s10835_s4] ss:$0 sm:$0xff] }
 0x4d3   : > { %6532 = vmatmul.bf16.gmra.mxu0 %v8356_v42  ;;  %v8459_v42 = vld [vmem:[#allocation3 + $0x450] sm:$0xf] }
 0x4d4   : > { %6571 = vmatmul.bf16.gmra.mxu1 %v8000_v27  ;;  %v9118_v27 = vld [vmem:[#allocation3 + $0x470] sm:$0xf0] }
 0x4d5   : > { %v8460_v28 = vor.u32 %v9118_v27, %v8459_v42  ;;  %v6404_v42 = vpop.f32.mrf.mxu3 }
 0x4d9   : > { %v6258_v58 = vpop.f32.mrf.mxu1 }
 0x4da   : > { %v10683_v26 = vadd.f32 %v6258_v58, %v10555_v34 }
 0x4e0   : > { %6448 = vmatmul.bf16.gmra.mxu3 %v8388_v11  ;;  %6364 = vmatmul.bf16.gmra.mxu2 %v8420_v36  ;;  %v9029_v11 = vld [vmem:[#allocation3 + $0x1a8] sm:$0xf0] }
 0x4e1   : > { %v6261_v17 = vpop.f32.mrf.mxu1  ;;  %v8108_v6 = vor.u32 %v9029_v11, %v8107_v37  ;;  %v6493_v37 = vpop.f32.mrf.mxu0 }
 0x4e2   : > { %v10686_v10 = vadd.f32 %v6261_v17, %v10564_v45  ;;  %v9038_v17 = vld [vmem:[#allocation3 + $0x1f0] sm:$0xf0] }
 0x4e3   : > { %6537 = vmatmul.bf16.gmra.mxu0 %v8392_v60 }
 0x4e4   : > { %6576 = vmatmul.bf16.gmra.mxu1 %v8036_v16 }
 0x4e9   : > { %v6263_v34 = vpop.f32.mrf.mxu1 }
 0x4ea   : > { %v10689_v0 = vadd.f32 %v6263_v34, %v10569_v12 }
 0x4f0   : > { %6453 = vmatmul.bf16.gmra.mxu3 %v8424_v20  ;;  %6369 = vmatmul.bf16.gmra.mxu2 %v8456_v3 }
 0x4f1   : > { %v6266_v45 = vpop.f32.mrf.mxu1 }
 0x4f2   : > { %v10692_v62 = vadd.f32 %v6266_v45, %v10581_v13 }
 0x4f3   : > { %6542 = vmatmul.bf16.gmra.mxu0 %v8428_v2 }
 0x4f4   : > { %6581 = vmatmul.bf16.gmra.mxu1 %v8072_v53 }
 0x4f9   : > { %v6268_v12 = vpop.f32.mrf.mxu1 }
 0x4fa   : > { %v10695_v58 = vadd.f32 %v6268_v12, %v10586_v39  ;;  %v8143_v39 = vld [vmem:[#allocation3 + $0x1d0] sm:$0xf] }
 0x4fb   : > { %v8144_v34 = vor.u32 %v9038_v17, %v8143_v39 }
 0x500   : > { %6458 = vmatmul.bf16.gmra.mxu3 %v8460_v28  ;;  %v8251_v28 = vld [vmem:[#allocation3 + $0x2a8] sm:$0xf] }
 0x501   : > { %v6271_v36 = vpop.f32.mrf.mxu1 }
 0x502   : > { %v10698_v13 = vadd.f32 %v6271_v36, %v10595_v9  ;;  %v8252_v36 = vor.u32 %v9065_v41, %v8251_v28  ;;  %v9083_v28 = vld [vmem:[#allocation3 + $0x358] sm:$0xf0] }
 0x503   : > { %6547 = vmatmul.bf16.gmra.mxu0 %v8464_v22 }
 0x504   : > { %6586 = vmatmul.bf16.gmra.mxu1 %v8108_v6 }
 0x509   : > { %v6273_v14 = vpop.f32.mrf.mxu1 }
 0x50a   : > { %v10701_v15 = vadd.f32 %v6273_v14, %v10600_v63  ;;  %v8180_v63 = vor.u32 %v9047_v25, %v8179_v35  ;;  %v8287_v25 = vld [vmem:[#allocation3 + $0x2f0] sm:$0xf] }
 0x511   : > { %v6276_v60 = vpop.f32.mrf.mxu1 }
 0x512   : > { %v10704_v16 = vadd.f32 %v6276_v60, %v10612_v50  ;;  %v8215_v50 = vld [vmem:[#allocation3 + $0x260] sm:$0xf] }
 0x513   : > { %v8216_v45 = vor.u32 %v9056_v31, %v8215_v50 }
 0x514   : > { %6591 = vmatmul.bf16.gmra.mxu1 %v8144_v34  ;;  %v6495_v34 = vpop.f32.mrf.mxu0 }
 0x519   : > { %v6278_v24 = vpop.f32.mrf.mxu1 }
 0x51a   : > { %v10707_v9 = vadd.f32 %v6278_v24, %v10619_v38 }
 0x521   : > { %v6281_v61 = vpop.f32.mrf.mxu1 }
 0x522   : > { %v10710_v20 = vadd.f32 %v6281_v61, %v10624_v30  ;;  %v9074_v61 = vld [vmem:[#allocation3 + $0x310] sm:$0xf0] }
 0x523   : > { %v8288_v50 = vor.u32 %v9074_v61, %v8287_v25 }
 0x524   : > { %6596 = vmatmul.bf16.gmra.mxu1 %v8180_v63 }
 0x529   : > { %v6283_v40 = vpop.f32.mrf.mxu1 }
 0x52a   : > { %v10713_v3 = vadd.f32 %v6283_v40, %v10630_v49  ;;  %v6315_v49 = vpop.f32.mrf.mxu2 }
 0x531   : > { %v6562_v38 = vpop.f32.mrf.mxu1 }
 0x532   : > { %v6563_v52 = vadd.f32 %v6562_v38, %v10636_v48  ;;  %v6317_v18 = vpop.f32.mrf.mxu2 }
 0x534   : > { %v6646_v30 = vadd.f32 %v10718_v44, %v6563_v52  ;;  %6601 = vmatmul.bf16.gmra.mxu1 %v8216_v45  ;;  %v6498_v52 = vpop.f32.mrf.mxu0 }
 0x536   : > { %v6678_v2 = vmax.f32 %v6646_v30, 0.0 }
 0x538   : > { %6710 = vst [vmem:[%s10726_s6] sm:$0xff] %v6678_v2 }
 0x539   : > { %v6564_v53 = vpop.f32.mrf.mxu1 }
 0x53a   : > { %v6565_v12 = vadd.f32 %v6564_v53, %v10642_v1  ;;  %v6406_v1 = vpop.f32.mrf.mxu3  ;;  %v6320_v17 = vpop.f32.mrf.mxu2 }
 0x53c   : > { %v6647_v48 = vadd.f32 %v10718_v44, %v6565_v12 }
 0x53e   : > { %v6679_v27 = vmax.f32 %v6647_v48, 0.0 }
 0x540   : > { %6711 = vst [vmem:[%s10726_s6 + $0x8] sm:$0xff] %v6679_v27  ;;  %v8323_v27 = vld [vmem:[#allocation3 + $0x338] sm:$0xf] }
 0x541   : > { %v6567_v11 = vpop.f32.mrf.mxu1 }
 0x542   : > { %v6568_v22 = vadd.f32 %v6567_v11, %v10648_v32  ;;  %v6409_v32 = vpop.f32.mrf.mxu3  ;;  %v6322_v31 = vpop.f32.mrf.mxu2 }
 0x544   : > { %v6648_v6 = vadd.f32 %v10718_v44, %v6568_v22  ;;  %6606 = vmatmul.bf16.gmra.mxu1 %v8252_v36  ;;  %v8324_v22 = vor.u32 %v9083_v28, %v8323_v27  ;;  %v6321_v27 = vadd.f32 %v6320_v17, %v10622_v51 }
 0x546   : > { %v6680_v14 = vmax.f32 %v6648_v6, 0.0 }
 0x548   : > { %6712 = vst [vmem:[%s10726_s6 + $0x10] sm:$0xff] %v6680_v14  ;;  %v6316_v14 = vadd.f32 %v6315_v49, %v10603_v4 }
 0x549   : > { %v6569_v39 = vpop.f32.mrf.mxu1 }
 0x54a   : > { %v6570_v60 = vadd.f32 %v6569_v39, %v10654_v5  ;;  %v6411_v2 = vpop.f32.mrf.mxu3  ;;  %v10743_v12 = vpop.f32.mrf.mxu2  ;;  %v6405_v25 = vadd.f32 %v6404_v42, %v6316_v14  ;;  %v8395_v14 = vld [vmem:[#allocation3 + $0x3c8] sm:$0xf] }
 0x54c   : > { %v6649_v24 = vadd.f32 %v10718_v44, %v6570_v60 }
 0x54e   : > { %v6681_v35 = vmax.f32 %v6649_v24, 0.0 }
 0x550   : > { %6713 = vst [vmem:[%s10726_s6 + $0x18] sm:$0xff] %v6681_v35 }
 0x551   : > { %v6572_v63 = vpop.f32.mrf.mxu1 }
 0x552   : > { %v6573_v40 = vadd.f32 %v6572_v63, %v10660_v57  ;;  %v10745_v57 = vpop.f32.mrf.mxu0  ;;  %v6327_v39 = vpop.f32.mrf.mxu2 }
 0x554   : > { %v6650_v38 = vadd.f32 %v10718_v44, %v6573_v40  ;;  %6611 = vmatmul.bf16.gmra.mxu1 %v8288_v50  ;;  %v8359_v40 = vld [vmem:[#allocation3 + $0x380] sm:$0xf]  ;;  %v9092_v50 = vld [vmem:[#allocation3 + $0x3a0] sm:$0xf0] }
 0x556   : > { %v6682_v5 = vmax.f32 %v6650_v38, 0.0  ;;  %v6318_v38 = vadd.f32 %v6317_v18, %v10615_v59  ;;  %v6410_v18 = vadd.f32 %v6409_v32, %v6321_v27 }
 0x558   : > { %6714 = vst [vmem:[%s10726_s6 + $0x20] sm:$0xff] %v6682_v5  ;;  %v6494_v5 = vadd.f32 %v6493_v37, %v6405_v25 }
 0x559   : > { %v6574_v45 = vpop.f32.mrf.mxu1 }
 0x55a   : > { %v6575_v30 = vadd.f32 %v6574_v45, %v10666_v46  ;;  %v6414_v46 = vpop.f32.mrf.mxu3  ;;  %v6503_v60 = vpop.f32.mrf.mxu0 }
 0x55b   : > { %v6330_v4 = vpop.f32.mrf.mxu2 }
 0x55c   : > { %v6651_v53 = vadd.f32 %v10718_v44, %v6575_v30  ;;  %v8360_v30 = vor.u32 %v9092_v50, %v8359_v40 }
 0x55e   : > { %v6683_v48 = vmax.f32 %v6651_v53, 0.0 }
 0x560   : > { %6715 = vst [vmem:[%s10726_s6 + $0x28] sm:$0xff] %v6683_v48  ;;  %v6407_v48 = vadd.f32 %v6406_v1, %v6318_v38  ;;  %v9101_v1 = vld [vmem:[#allocation3 + $0x3e8] sm:$0xf0]  ;;  %v6326_v38 = vadd.f32 %v10743_v12, %v10634_v55 }
 0x561   : > { %v6577_v41 = vpop.f32.mrf.mxu1  ;;  %v8396_v17 = vor.u32 %v9101_v1, %v8395_v14 }
 0x562   : > { %v6578_v11 = vadd.f32 %v6577_v41, %v10672_v43  ;;  %v6416_v43 = vpop.f32.mrf.mxu3  ;;  %v6505_v53 = vpop.f32.mrf.mxu0  ;;  %v6496_v28 = vadd.f32 %v6495_v34, %v6407_v48  ;;  %v9110_v48 = vld [vmem:[#allocation3 + $0x430] sm:$0xf0] }
 0x563   : > { %v6332_v37 = vpop.f32.mrf.mxu2 }
 0x564   : > { %v6652_v36 = vadd.f32 %v10718_v44, %v6578_v11  ;;  %6616 = vmatmul.bf16.gmra.mxu1 %v8324_v22 }
 0x566   : > { %v6684_v6 = vmax.f32 %v6652_v36, 0.0 }
 0x568   : > { %6716 = vst [vmem:[%s10726_s6 + $0x30] sm:$0xff] %v6684_v6 }
 0x569   : > { %v6579_v24 = vpop.f32.mrf.mxu1 }
 0x56a   : > { %v6580_v35 = vadd.f32 %v6579_v24, %v10677_v54  ;;  %v6419_v41 = vpop.f32.mrf.mxu3  ;;  %v6508_v36 = vpop.f32.mrf.mxu0  ;;  %v6323_v24 = vadd.f32 %v6322_v31, %v10628_v47 }
 0x56b   : > { %v6335_v32 = vpop.f32.mrf.mxu2 }
 0x56c   : > { %v6653_v61 = vadd.f32 %v10718_v44, %v6580_v35  ;;  %v6499_v35 = vadd.f32 %v6498_v52, %v6410_v18 }
 0x56e   : > { %v6685_v63 = vmax.f32 %v6653_v61, 0.0  ;;  %v6412_v61 = vadd.f32 %v6411_v2, %v6323_v24 }
 0x570   : > { %6717 = vst [vmem:[%s10726_s6 + $0x38] sm:$0xff] %v6685_v63  ;;  %v6501_v47 = vadd.f32 %v10745_v57, %v6412_v61 }
 0x571   : > { %v6582_v45 = vpop.f32.mrf.mxu1 }
 0x572   : > { %v6583_v49 = vadd.f32 %v6582_v45, %v6494_v5  ;;  %v6421_v34 = vpop.f32.mrf.mxu3  ;;  %v6510_v50 = vpop.f32.mrf.mxu0  ;;  %v6415_v5 = vadd.f32 %v6414_v46, %v6326_v38 }
 0x574   : > { %v6654_v54 = vadd.f32 %v10718_v44, %v6583_v49  ;;  %6621 = vmatmul.bf16.gmra.mxu1 %v8360_v30  ;;  %v8431_v30 = vld [vmem:[#allocation3 + $0x410] sm:$0xf]  ;;  %v6504_v27 = vadd.f32 %v6503_v60, %v6415_v5 }
 0x576   : > { %v6686_v42 = vmax.f32 %v6654_v54, 0.0  ;;  %v6328_v54 = vadd.f32 %v6327_v39, %v10640_v21 }
 0x578   : > { %6718 = vst [vmem:[%s10726_s6 + $0x40] sm:$0xff] %v6686_v42  ;;  %v6337_v42 = vpop.f32.mrf.mxu2  ;;  %v6417_v57 = vadd.f32 %v6416_v43, %v6328_v54 }
 0x579   : > { %v6584_v11 = vpop.f32.mrf.mxu1 }
 0x57a   : > { %v6585_v59 = vadd.f32 %v6584_v11, %v6496_v28  ;;  %v6424_v49 = vpop.f32.mrf.mxu3  ;;  %v6513_v28 = vpop.f32.mrf.mxu0  ;;  %v8432_v11 = vor.u32 %v9110_v48, %v8431_v30  ;;  %v6338_v48 = vadd.f32 %v6337_v42, %v10664_v33 }
 0x57c   : > { %v6655_v22 = vadd.f32 %v10718_v44, %v6585_v59 }
 0x57e   : > { %v6687_v6 = vmax.f32 %v6655_v22, 0.0  ;;  %v6331_v22 = vadd.f32 %v6330_v4, %v10646_v29 }
 0x580   : > { %6719 = vst [vmem:[%s10726_s6 + $0x48] sm:$0xff] %v6687_v6  ;;  %v6506_v6 = vadd.f32 %v6505_v53, %v6417_v57  ;;  %v6340_v21 = vpop.f32.mrf.mxu2  ;;  %v6420_v60 = vadd.f32 %v6419_v41, %v6331_v22 }
 0x581   : > { %v6587_v25 = vpop.f32.mrf.mxu1 }
 0x582   : > { %v6588_v51 = vadd.f32 %v6587_v25, %v6499_v35  ;;  %v6426_v18 = vpop.f32.mrf.mxu3  ;;  %v6515_v1 = vpop.f32.mrf.mxu0  ;;  %v8467_v35 = vld [vmem:[#allocation3 + $0x458] sm:$0xf]  ;;  %v9119_v25 = vld [vmem:[#allocation3 + $0x478] sm:$0xf0] }
 0x583   : > { %v8468_v61 = vor.u32 %v9119_v25, %v8467_v35 }
 0x584   : > { %v6656_v63 = vadd.f32 %v10718_v44, %v6588_v51  ;;  %6626 = vmatmul.bf16.gmra.mxu1 %v8396_v17  ;;  %v6333_v51 = vadd.f32 %v6332_v37, %v10652_v7  ;;  %v6509_v17 = vadd.f32 %v6508_v36, %v6420_v60 }
 0x586   : > { %v6688_v40 = vmax.f32 %v6656_v63, 0.0  ;;  %v6422_v53 = vadd.f32 %v6421_v34, %v6333_v51 }
 0x588   : > { %6720 = vst [vmem:[%s10726_s6 + $0x50] sm:$0xff] %v6688_v40  ;;  %v6342_v40 = vpop.f32.mrf.mxu2 }
 0x589   : > { %v6589_v31 = vpop.f32.mrf.mxu1 }
 0x58a   : > { %v6590_v52 = vadd.f32 %v6589_v31, %v6501_v47  ;;  %v6429_v63 = vpop.f32.mrf.mxu3  ;;  %v6518_v41 = vpop.f32.mrf.mxu0  ;;  %v6336_v31 = vadd.f32 %v6335_v32, %v10658_v23 }
 0x58c   : > { %v6657_v45 = vadd.f32 %v10718_v44, %v6590_v52  ;;  %v6511_v52 = vadd.f32 %v6510_v50, %v6422_v53  ;;  %v6425_v36 = vadd.f32 %v6424_v49, %v6336_v31  ;;  %v6341_v49 = vadd.f32 %v6340_v21, %v10670_v19 }
 0x58e   : > { %v6689_v2 = vmax.f32 %v6657_v45, 0.0  ;;  %v6514_v54 = vadd.f32 %v6513_v28, %v6425_v36  ;;  %v6430_v33 = vadd.f32 %v6429_v63, %v6341_v49 }
 0x590   : > { %6721 = vst [vmem:[%s10726_s6 + $0x58] sm:$0xff] %v6689_v2  ;;  %v6345_v2 = vpop.f32.mrf.mxu2 }
 0x591   : > { %v6592_v55 = vpop.f32.mrf.mxu1  ;;  %v6346_v25 = vadd.f32 %v6345_v2, %v10680_v56 }
 0x592   : > { %v6593_v12 = vadd.f32 %v6592_v55, %v6504_v27  ;;  %v6431_v37 = vpop.f32.mrf.mxu3  ;;  %v6520_v30 = vpop.f32.mrf.mxu0 }
 0x594   : > { %v6658_v59 = vadd.f32 %v10718_v44, %v6593_v12  ;;  %6631 = vmatmul.bf16.gmra.mxu1 %v8432_v11  ;;  %v6427_v12 = vadd.f32 %v6426_v18, %v6338_v48  ;;  %v6343_v18 = vadd.f32 %v6342_v40, %v10675_v8 }
 0x596   : > { %v6690_v46 = vmax.f32 %v6658_v59, 0.0  ;;  %v6516_v57 = vadd.f32 %v6515_v1, %v6427_v12  ;;  %v6432_v21 = vadd.f32 %v6431_v37, %v6343_v18 }
 0x598   : > { %6722 = vst [vmem:[%s10726_s6 + $0x60] sm:$0xff] %v6690_v46  ;;  %v6347_v11 = vpop.f32.mrf.mxu2 }
 0x599   : > { %v6594_v14 = vpop.f32.mrf.mxu1  ;;  %v6348_v40 = vadd.f32 %v6347_v11, %v10683_v26 }
 0x59a   : > { %v6595_v39 = vadd.f32 %v6594_v14, %v6506_v6  ;;  %v6434_v32 = vpop.f32.mrf.mxu3  ;;  %v6523_v59 = vpop.f32.mrf.mxu0  ;;  %v6519_v14 = vadd.f32 %v6518_v41, %v6430_v33 }
 0x59b   : > { %v6435_v63 = vadd.f32 %v6434_v32, %v6346_v25 }
 0x59c   : > { %v6659_v24 = vadd.f32 %v10718_v44, %v6595_v39 }
 0x59e   : > { %v6691_v43 = vmax.f32 %v6659_v24, 0.0 }
 0x5a0   : > { %6723 = vst [vmem:[%s10726_s6 + $0x68] sm:$0xff] %v6691_v43  ;;  %v6350_v60 = vpop.f32.mrf.mxu2  ;;  %v6521_v43 = vadd.f32 %v6520_v30, %v6432_v21 }
 0x5a1   : > { %v6597_v29 = vpop.f32.mrf.mxu1  ;;  %v6351_v36 = vadd.f32 %v6350_v60, %v10686_v10 }
 0x5a2   : > { %v6598_v4 = vadd.f32 %v6597_v29, %v6509_v17  ;;  %v6436_v6 = vpop.f32.mrf.mxu3  ;;  %v6525_v19 = vpop.f32.mrf.mxu0 }
 0x5a3   : > { %v6437_v56 = vadd.f32 %v6436_v6, %v6348_v40 }
 0x5a4   : > { %v6660_v38 = vadd.f32 %v10718_v44, %v6598_v4  ;;  %6636 = vmatmul.bf16.gmra.mxu1 %v8468_v61 }
 0x5a6   : > { %v6692_v47 = vmax.f32 %v6660_v38, 0.0  ;;  %v6524_v38 = vadd.f32 %v6523_v59, %v6435_v63 }
 0x5a8   : > { %6724 = vst [vmem:[%s10726_s6 + $0x70] sm:$0xff] %v6692_v47  ;;  %v6352_v8 = vpop.f32.mrf.mxu2 }
 0x5a9   : > { %v6599_v5 = vpop.f32.mrf.mxu1 }
 0x5aa   : > { %v6600_v7 = vadd.f32 %v6599_v5, %v6511_v52  ;;  %v6439_v51 = vpop.f32.mrf.mxu3  ;;  %v6528_v4 = vpop.f32.mrf.mxu0 }
 0x5ab   : > { %v6440_v30 = vadd.f32 %v6439_v51, %v6351_v36 }
 0x5ac   : > { %v6661_v45 = vadd.f32 %v10718_v44, %v6600_v7 }
 0x5ad   : > { %v6529_v12 = vadd.f32 %v6528_v4, %v6440_v30 }
 0x5ae   : > { %v6693_v34 = vmax.f32 %v6661_v45, 0.0  ;;  %v6526_v45 = vadd.f32 %v6525_v19, %v6437_v56 }
 0x5b0   : > { %6725 = vst [vmem:[%s10726_s6 + $0x78] sm:$0xff] %v6693_v34  ;;  %v6355_v5 = vpop.f32.mrf.mxu2 }
 0x5b1   : > { %v6602_v27 = vpop.f32.mrf.mxu1  ;;  %v6356_v59 = vadd.f32 %v6355_v5, %v10692_v62 }
 0x5b2   : > { %v6603_v55 = vadd.f32 %v6602_v27, %v6514_v54  ;;  %v6441_v31 = vpop.f32.mrf.mxu3  ;;  %v6530_v37 = vpop.f32.mrf.mxu0  ;;  %v6353_v27 = vadd.f32 %v6352_v8, %v10689_v0 }
 0x5b4   : > { %v6662_v23 = vadd.f32 %v10718_v44, %v6603_v55  ;;  %v6442_v10 = vadd.f32 %v6441_v31, %v6353_v27 }
 0x5b6   : > { %v6694_v50 = vmax.f32 %v6662_v23, 0.0 }
 0x5b8   : > { %6726 = vst [vmem:[%s10726_s6 + $0x80] sm:$0xff] %v6694_v50  ;;  %v6357_v55 = vpop.f32.mrf.mxu2 }
 0x5b9   : > { %v6604_v46 = vpop.f32.mrf.mxu1 }
 0x5ba   : > { %v6605_v22 = vadd.f32 %v6604_v46, %v6516_v57  ;;  %v6444_v48 = vpop.f32.mrf.mxu3  ;;  %v6533_v23 = vpop.f32.mrf.mxu0  ;;  %v6531_v46 = vadd.f32 %v6530_v37, %v6442_v10 }
 0x5bc   : > { %v6663_v42 = vadd.f32 %v10718_v44, %v6605_v22 }
 0x5be   : > { %v6695_v28 = vmax.f32 %v6663_v42, 0.0 }
 0x5c0   : > { %6727 = vst [vmem:[%s10726_s6 + $0x88] sm:$0xff] %v6695_v28  ;;  %v6360_v33 = vpop.f32.mrf.mxu2  ;;  %v6445_v28 = vadd.f32 %v6444_v48, %v6356_v59 }
 0x5c1   : > { %v6607_v39 = vpop.f32.mrf.mxu1 }
 0x5c2   : > { %v6608_v24 = vadd.f32 %v6607_v39, %v6519_v14  ;;  %v6446_v57 = vpop.f32.mrf.mxu3  ;;  %v6535_v0 = vpop.f32.mrf.mxu0  ;;  %v6358_v14 = vadd.f32 %v6357_v55, %v10695_v58  ;;  %v6534_v39 = vadd.f32 %v6533_v23, %v6445_v28 }
 0x5c4   : > { %v6664_v1 = vadd.f32 %v10718_v44, %v6608_v24  ;;  %v6447_v21 = vadd.f32 %v6446_v57, %v6358_v14 }
 0x5c6   : > { %v6696_v35 = vmax.f32 %v6664_v1, 0.0  ;;  %v6536_v51 = vadd.f32 %v6535_v0, %v6447_v21 }
 0x5c8   : > { %6728 = vst [vmem:[%s10726_s6 + $0x90] sm:$0xff] %v6696_v35  ;;  %v6362_v62 = vpop.f32.mrf.mxu2 }
 0x5c9   : > { %v6609_v17 = vpop.f32.mrf.mxu1  ;;  %v6363_v40 = vadd.f32 %v6362_v62, %v10701_v15 }
 0x5ca   : > { %v6610_v61 = vadd.f32 %v6609_v17, %v6521_v43  ;;  %v6449_v60 = vpop.f32.mrf.mxu3  ;;  %v6538_v35 = vpop.f32.mrf.mxu0  ;;  %v6361_v43 = vadd.f32 %v6360_v33, %v10698_v13 }
 0x5cc   : > { %v6665_v29 = vadd.f32 %v10718_v44, %v6610_v61  ;;  %v6450_v58 = vadd.f32 %v6449_v60, %v6361_v43 }
 0x5ce   : > { %v6697_v53 = vmax.f32 %v6665_v29, 0.0 }
 0x5d0   : > { %6729 = vst [vmem:[%s10726_s6 + $0x98] sm:$0xff] %v6697_v53  ;;  %v6365_v29 = vpop.f32.mrf.mxu2 }
 0x5d1   : > { %v6612_v41 = vpop.f32.mrf.mxu1  ;;  %v6366_v5 = vadd.f32 %v6365_v29, %v10704_v16 }
 0x5d2   : > { %v6613_v47 = vadd.f32 %v6612_v41, %v6524_v38  ;;  %v6451_v63 = vpop.f32.mrf.mxu3  ;;  %v6540_v53 = vpop.f32.mrf.mxu0  ;;  %v6539_v38 = vadd.f32 %v6538_v35, %v6450_v58 }
 0x5d3   : > { %v6452_v31 = vadd.f32 %v6451_v63, %v6363_v40 }
 0x5d4   : > { %v6666_v52 = vadd.f32 %v10718_v44, %v6613_v47 }
 0x5d5   : > { %v6541_v37 = vadd.f32 %v6540_v53, %v6452_v31 }
 0x5d6   : > { %v6698_v7 = vmax.f32 %v6666_v52, 0.0 }
 0x5d8   : > { %6730 = vst [vmem:[%s10726_s6 + $0xa0] sm:$0xff] %v6698_v7  ;;  %v6367_v7 = vpop.f32.mrf.mxu2 }
 0x5d9   : > { %v6614_v2 = vpop.f32.mrf.mxu1  ;;  %v6368_v48 = vadd.f32 %v6367_v7, %v10707_v9 }
 0x5da   : > { %v6615_v34 = vadd.f32 %v6614_v2, %v6526_v45  ;;  %v6454_v56 = vpop.f32.mrf.mxu3  ;;  %v6543_v36 = vpop.f32.mrf.mxu0 }
 0x5dc   : > { %v6667_v26 = vadd.f32 %v10718_v44, %v6615_v34  ;;  %v6455_v34 = vadd.f32 %v6454_v56, %v6366_v5 }
 0x5de   : > { %v6699_v54 = vmax.f32 %v6667_v26, 0.0 }
 0x5e0   : > { %6731 = vst [vmem:[%s10726_s6 + $0xa8] sm:$0xff] %v6699_v54  ;;  %v6544_v54 = vadd.f32 %v6543_v36, %v6455_v34  ;;  %v6370_v16 = vpop.f32.mrf.mxu2 }
 0x5e1   : > { %v6617_v32 = vpop.f32.mrf.mxu1 }
 0x5e2   : > { %v6618_v50 = vadd.f32 %v6617_v32, %v6529_v12  ;;  %v6456_v26 = vpop.f32.mrf.mxu3  ;;  %v6545_v12 = vpop.f32.mrf.mxu0 }
 0x5e3   : > { %v6457_v23 = vadd.f32 %v6456_v26, %v6368_v48 }
 0x5e4   : > { %v6668_v49 = vadd.f32 %v10718_v44, %v6618_v50 }
 0x5e6   : > { %v6700_v11 = vmax.f32 %v6668_v49, 0.0  ;;  %v6371_v49 = vadd.f32 %v6370_v16, %v10710_v20 }
 0x5e8   : > { %6732 = vst [vmem:[%s10726_s6 + $0xb0] sm:$0xff] %v6700_v11  ;;  %v6546_v11 = vadd.f32 %v6545_v12, %v6457_v23  ;;  %v6372_v33 = vpop.f32.mrf.mxu2 }
 0x5e9   : > { %v6619_v22 = vpop.f32.mrf.mxu1  ;;  %v6373_v28 = vadd.f32 %v6372_v33, %v10713_v3 }
 0x5ea   : > { %v6620_v42 = vadd.f32 %v6619_v22, %v6531_v46  ;;  %v6459_v10 = vpop.f32.mrf.mxu3  ;;  %v6548_v46 = vpop.f32.mrf.mxu0 }
 0x5eb   : > { %v6460_v9 = vadd.f32 %v6459_v10, %v6371_v49 }
 0x5ec   : > { %v6669_v6 = vadd.f32 %v10718_v44, %v6620_v42 }
 0x5ed   : > { %v6549_v0 = vadd.f32 %v6548_v46, %v6460_v9 }
 0x5ee   : > { %v6701_v18 = vmax.f32 %v6669_v6, 0.0 }
 0x5f0   : > { %6733 = vst [vmem:[%s10726_s6 + $0xb8] sm:$0xff] %v6701_v18 }
 0x5f1   : > { %v6622_v24 = vpop.f32.mrf.mxu1 }
 0x5f2   : > { %v6623_v19 = vadd.f32 %v6622_v24, %v6534_v39  ;;  %v6461_v6 = vpop.f32.mrf.mxu3  ;;  %v6550_v60 = vpop.f32.mrf.mxu0 }
 0x5f3   : > { %v6462_v20 = vadd.f32 %v6461_v6, %v6373_v28 }
 0x5f4   : > { %v6670_v1 = vadd.f32 %v10718_v44, %v6623_v19 }
 0x5f5   : > { %v6551_v19 = vadd.f32 %v6550_v60, %v6462_v20 }
 0x5f6   : > { %v6702_v25 = vmax.f32 %v6670_v1, 0.0 }
 0x5f8   : > { %6734 = vst [vmem:[%s10726_s6 + $0xc0] sm:$0xff] %v6702_v25 }
 0x5f9   : > { %v6624_v17 = vpop.f32.mrf.mxu1 }
 0x5fa   : > { %v6625_v61 = vadd.f32 %v6624_v17, %v6536_v51 }
 0x5fc   : > { %v6671_v8 = vadd.f32 %v10718_v44, %v6625_v61 }
 0x5fe   : > { %v6703_v4 = vmax.f32 %v6671_v8, 0.0 }
 0x600   : > { %6735 = vst [vmem:[%s10726_s6 + $0xc8] sm:$0xff] %v6703_v4 }
 0x601   : > { %v6627_v41 = vpop.f32.mrf.mxu1 }
 0x602   : > { %v6628_v47 = vadd.f32 %v6627_v41, %v6539_v38 }
 0x604   : > { %v6672_v13 = vadd.f32 %v10718_v44, %v6628_v47 }
 0x606   : > { %v6704_v52 = vmax.f32 %v6672_v13, 0.0 }
 0x608   : > { %6736 = vst [vmem:[%s10726_s6 + $0xd0] sm:$0xff] %v6704_v52 }
 0x609   : > { %v6629_v45 = vpop.f32.mrf.mxu1 }
 0x60a   : > { %v6630_v2 = vadd.f32 %v6629_v45, %v6541_v37 }
 0x60c   : > { %v6673_v15 = vadd.f32 %v10718_v44, %v6630_v2 }
 0x60e   : > { %v6705_v30 = vmax.f32 %v6673_v15, 0.0 }
 0x610   : > { %6737 = vst [vmem:[%s10726_s6 + $0xd8] sm:$0xff] %v6705_v30 }
 0x611   : > { %v6632_v27 = vpop.f32.mrf.mxu1 }
 0x612   : > { %v6633_v55 = vadd.f32 %v6632_v27, %v6544_v54 }
 0x614   : > { %v6674_v32 = vadd.f32 %v10718_v44, %v6633_v55 }
 0x616   : > { %v6706_v50 = vmax.f32 %v6674_v32, 0.0 }
 0x618   : > { %6738 = vst [vmem:[%s10726_s6 + $0xe0] sm:$0xff] %v6706_v50 }
 0x619   : > { %v6634_v57 = vpop.f32.mrf.mxu1 }
 0x61a   : > { %v6635_v59 = vadd.f32 %v6634_v57, %v6546_v11 }
 0x61c   : > { %v6675_v22 = vadd.f32 %v10718_v44, %v6635_v59 }
 0x61e   : > { %v6707_v42 = vmax.f32 %v6675_v22, 0.0 }
 0x620   : > { %6739 = vst [vmem:[%s10726_s6 + $0xe8] sm:$0xff] %v6707_v42 }
 0x621   : > { %v6637_v18 = vpop.f32.mrf.mxu1 }
 0x622   : > { %v6638_v14 = vadd.f32 %v6637_v18, %v6549_v0 }
 0x624   : > { %v6676_v39 = vadd.f32 %v10718_v44, %v6638_v14 }
 0x626   : > { %v6708_v24 = vmax.f32 %v6676_v39, 0.0 }
 0x628   : > { %6740 = vst [vmem:[%s10726_s6 + $0xf0] sm:$0xff] %v6708_v24 }
 0x629   : > { %v6639_v21 = vpop.f32.mrf.mxu1 }
 0x62a   : > { %v6640_v62 = vadd.f32 %v6639_v21, %v6551_v19 }
 0x62c   : > { %v6677_v1 = vadd.f32 %v10718_v44, %v6640_v62 }
 0x62e   : > { %v6709_v35 = vmax.f32 %v6677_v1, 0.0 }
 0x630   : > { %6741 = vst [vmem:[%s10726_s6 + $0xf8] sm:$0xff] %v6709_v35 }
 0x631 PF: > { %s15_s18 = sadd.s32 1, %s9227_s18  }
 0x632   : > { %p12_p4 = scmp.ge.s32.totalorder %s15_s18, 4  }
 0x634   :  { %14 = sbr.rel (!%p12_p4) target bundleno = 1 (0x1), region = 75 }

</bundles_post_ra>
